<compile_context>
chip_gen: v7x
topology: tpu7x:2x2x1
jax: 0.10.0
libtpu: 0.0.40
codegen_flags: <defaults>
</compile_context>

<pallas_src>
import math

import numpy as np

import jax
import jax.numpy as jnp
from jax.experimental import pallas as pl
from jax.experimental.pallas import tpu as pltpu


# ----------------------------------------------------------------------------- constants
def _make_pool_matrix(s0):
    """(4*slot^2, s0*s0) matrix mapping the flattened stem feature map to pyramid levels 1..4.

    Repeated 2x2 average pooling == a single 2^k x 2^k average pool, so each level is a
    constant linear map of the stem feature. Each level is written into the top-left corner
    of a slot x slot grid (slot = s0 // 2), padded rows are all-zero.
    """
    slot = s0 // 2
    P = np.zeros((4 * slot * slot, s0 * s0), np.float32)
    for k in range(1, 5):
        sk = max(s0 >> k, 1)
        blk = s0 // sk
        inv = 1.0 / float(blk * blk)
        for hh in range(sk):
            for ww in range(sk):
                row = (k - 1) * slot * slot + hh * slot + ww
                for dy in range(blk):
                    for dx in range(blk):
                        P[row, (hh * blk + dy) * s0 + (ww * blk + dx)] = inv
    return P


def _make_small_masks(s0):
    """(4, slot^2, 1) 1/0 masks of the valid positions inside each level's slot x slot grid."""
    slot = s0 // 2
    M = np.zeros((4, slot * slot, 1), np.float32)
    for k in range(1, 5):
        sk = max(s0 >> k, 1)
        for hh in range(sk):
            for ww in range(sk):
                M[k - 1, hh * slot + ww, 0] = 1.0
    return M


# ----------------------------------------------------------------------------- Pallas kernels
def _level0_kernel(x_ref, pm_ref, sw_ref, sb_ref,
                   fw_ref, fb_ref, a1w_ref, a1b_ref, a2w_ref, a2b_ref,
                   rw_ref, rb_ref, obw_ref, obb_ref,
                   small_ref, ob_ref, pool_ref,
                   rpad_ref):
    """Stem 3x3 conv + pyramid build + level-0 FPN/SE/RPN/obj|box/pooling, fully fused.

    x_ref:(1,S+2,S+2,Cin) bf16   pm:(4*NS,S*S) bf16   sw:(9*Cin,C) bf16
    fw:(C,C) a1w:(C,cr) a2w:(cr,C) rw:(9*C,C) obw:(C,128) bf16   biases f32
    small:(1,4,NS,C) bf16   ob:(1,S*S,128) bf16   pool:(1,1,C) f32
    rpad:(S+2,S+2,C) bf16 scratch (conv halo buffer)
    """
    S = x_ref.shape[1] - 2
    Cin = x_ref.shape[3]
    C = fw_ref.shape[0]
    NS = pm_ref.shape[0] // 4
    SS = S * S

    # ---- stem 3x3 conv + relu: single (SS, 9*Cin) @ (9*Cin, C) matmul (K = 9*Cin)
    taps = [x_ref[0, dy:dy + S, dx:dx + S, :].reshape(SS, Cin)
            for dy in range(3) for dx in range(3)]
    col = jnp.concatenate(taps, axis=1)                               # (SS, 9*Cin) bf16
    feat0 = jnp.dot(col, sw_ref[...], preferred_element_type=jnp.float32) + sb_ref[...]
    feat0 = jnp.maximum(feat0, 0.0)                                   # (SS, C) f32
    feat0_b = feat0.astype(jnp.bfloat16)

    # ---- pyramid levels 1..4: one constant-matrix pooling matmul, kept resident in VMEM
    small = jnp.dot(pm_ref[...], feat0_b, preferred_element_type=jnp.float32)   # (4*NS, C)
    small_ref[0] = small.reshape(4, NS, C).astype(small_ref.dtype)

    # ---- level-0 FPN 1x1 + relu fused with SE channel attention (level 0 is fully valid)
    f = jnp.dot(feat0_b, fw_ref[...], preferred_element_type=jnp.float32) + fb_ref[...]
    f = jnp.maximum(f, 0.0)                                           # (SS, C) f32
    pooled = jnp.sum(f, axis=0, keepdims=True) * (1.0 / float(SS))    # (1, C)
    h = jnp.maximum(jnp.dot(pooled.astype(jnp.bfloat16), a1w_ref[...],
                            preferred_element_type=jnp.float32) + a1b_ref[...], 0.0)
    s = jax.nn.sigmoid(jnp.dot(h.astype(jnp.bfloat16), a2w_ref[...],
                               preferred_element_type=jnp.float32) + a2b_ref[...])
    f_att = f * s
    f_att_b = f_att.astype(jnp.bfloat16)

    # ---- RPN 3x3 conv + relu: halo built in VMEM scratch, single K=9*C matmul
    rpad_ref[...] = jnp.zeros((S + 2, S + 2, C), jnp.bfloat16)
    rpad_ref[1:S + 1, 1:S + 1, :] = f_att_b.reshape(S, S, C)
    rtaps = [rpad_ref[dy:dy + S, dx:dx + S, :].reshape(SS, C)
             for dy in range(3) for dx in range(3)]
    rcol = jnp.concatenate(rtaps, axis=1)                             # (SS, 9*C) bf16
    t_feat = jnp.dot(rcol, rw_ref[...], preferred_element_type=jnp.float32) + rb_ref[...]
    t_feat = jnp.maximum(t_feat, 0.0)

    # ---- fused objectness|box 1x1 (lane-padded to 128) + objectness-softmax pooling
    ob = jnp.dot(t_feat.astype(jnp.bfloat16), obw_ref[...],
                 preferred_element_type=jnp.float32) + obb_ref[...]   # (SS, 128) f32
    ob_ref[0] = ob.astype(ob_ref.dtype)
    logits = ob[:, 0:1]
    mx = jnp.max(logits, axis=0, keepdims=True)
    wts = jnp.exp(logits - mx)
    wts = wts * pl.reciprocal(jnp.sum(wts, axis=0, keepdims=True), approx=True)
    pool_ref[0] = jnp.sum(f_att * wts, axis=0, keepdims=True)


def _small_level_kernel(f_ref, m_ref, fw_ref, fb_ref,
                        a1w_ref, a1b_ref, a2w_ref, a2b_ref,
                        rw_ref, rb_ref, obw_ref, obb_ref,
                        pool_ref, rpad_ref):
    """Levels 1..4 (stacked, zero-padded slots): FPN 1x1 + SE + RPN 3x3 + objectness pooling.

    Only the pooled feature is emitted (the obj|box map of these levels is never consumed).
    f:(1,1,NS,C) bf16   m:(1,NS,1) f32 (valid mask)   weights as in _level0_kernel
    pool:(1,1,1,C) f32   rpad:(S+2,S+2,C) bf16 scratch
    """
    NS = f_ref.shape[2]
    C = f_ref.shape[3]
    S = math.isqrt(NS)

    x = f_ref[0, 0]                                                   # (NS, C) bf16
    mask = m_ref[0]                                                   # (NS, 1) f32

    # ---- FPN 1x1 + relu, masked so the padded slots stay exactly zero for the 3x3 conv
    f = jnp.dot(x, fw_ref[0], preferred_element_type=jnp.float32) + fb_ref[0]
    f = jnp.maximum(f, 0.0) * mask                                    # (NS, C) f32

    # ---- SE channel attention over the valid positions only
    cnt = jnp.sum(mask, axis=0, keepdims=True)                        # (1,1) == HL*WL
    pooled = jnp.sum(f, axis=0, keepdims=True) / cnt
    h = jnp.maximum(jnp.dot(pooled.astype(jnp.bfloat16), a1w_ref[...],
                            preferred_element_type=jnp.float32) + a1b_ref[...], 0.0)
    s = jax.nn.sigmoid(jnp.dot(h.astype(jnp.bfloat16), a2w_ref[...],
                               preferred_element_type=jnp.float32) + a2b_ref[...])
    f_att = f * s
    f_att_b = f_att.astype(jnp.bfloat16)

    # ---- RPN 3x3 conv + relu (in-kernel halo, single K=9*C matmul)
    rpad_ref[...] = jnp.zeros((S + 2, S + 2, C), jnp.bfloat16)
    rpad_ref[1:S + 1, 1:S + 1, :] = f_att_b.reshape(S, S, C)
    rtaps = [rpad_ref[dy:dy + S, dx:dx + S, :].reshape(NS, C)
             for dy in range(3) for dx in range(3)]
    rcol = jnp.concatenate(rtaps, axis=1)
    t_feat = jnp.maximum(jnp.dot(rcol, rw_ref[...],
                                 preferred_element_type=jnp.float32) + rb_ref[...], 0.0)

    # ---- objectness-softmax weighted pooling over valid positions (proposal surrogate)
    ob = jnp.dot(t_feat.astype(jnp.bfloat16), obw_ref[...],
                 preferred_element_type=jnp.float32) + obb_ref[...]
    logits = jnp.where(mask > 0.5, ob[:, 0:1], -1e30)
    mx = jnp.max(logits, axis=0, keepdims=True)
    wts = jnp.exp(logits - mx)
    wts = wts * pl.reciprocal(jnp.sum(wts, axis=0, keepdims=True), approx=True)
    pool_ref[0, 0] = jnp.sum(f_att * wts, axis=0, keepdims=True)


def _head_kernel(x_ref, w6_ref, b6_ref, w7_ref, b7_ref, wcb_ref, bcb_ref, o_ref):
    """Box head: fc6 -> relu -> fc7 -> relu -> fused (cls_score | bbox_pred), one kernel.

    x:(B,C) bf16, weights bf16, biases f32, o:(B,128) f32.
    """
    h6 = jnp.maximum(jnp.dot(x_ref[...], w6_ref[...],
                             preferred_element_type=jnp.float32) + b6_ref[...], 0.0)
    h7 = jnp.maximum(jnp.dot(h6.astype(jnp.bfloat16), w7_ref[...],
                             preferred_element_type=jnp.float32) + b7_ref[...], 0.0)
    o_ref[...] = jnp.dot(h7.astype(jnp.bfloat16), wcb_ref[...],
                         preferred_element_type=jnp.float32) + bcb_ref[...]


# ----------------------------------------------------------------------------- wrappers
def _level0_call(xp, p):
    B, Sp2, _, Cin = xp.shape
    S = Sp2 - 2
    SS = S * S
    C = p["fpn0_w"].shape[0]
    cr = p["att_w1"].shape[1]
    NS = p["pool_mat"].shape[0] // 4

    return pl.pallas_call(
        _level0_kernel,
        grid=(B,),
        in_specs=[
            pl.BlockSpec((1, S + 2, S + 2, Cin), lambda b: (b, 0, 0, 0)),
            pl.BlockSpec((4 * NS, SS), lambda b: (0, 0)),
            pl.BlockSpec((9 * Cin, C), lambda b: (0, 0)),
            pl.BlockSpec((1, C), lambda b: (0, 0)),
            pl.BlockSpec((C, C), lambda b: (0, 0)),
            pl.BlockSpec((1, C), lambda b: (0, 0)),
            pl.BlockSpec((C, cr), lambda b: (0, 0)),
            pl.BlockSpec((1, cr), lambda b: (0, 0)),
            pl.BlockSpec((cr, C), lambda b: (0, 0)),
            pl.BlockSpec((1, C), lambda b: (0, 0)),
            pl.BlockSpec((9 * C, C), lambda b: (0, 0)),
            pl.BlockSpec((1, C), lambda b: (0, 0)),
            pl.BlockSpec((C, 128), lambda b: (0, 0)),
            pl.BlockSpec((1, 128), lambda b: (0, 0)),
        ],
        out_specs=(
            pl.BlockSpec((1, 4, NS, C), lambda b: (b, 0, 0, 0)),
            pl.BlockSpec((1, SS, 128), lambda b: (b, 0, 0)),
            pl.BlockSpec((1, 1, C), lambda b: (b, 0, 0)),
        ),
        out_shape=(
            jax.ShapeDtypeStruct((B, 4, NS, C), jnp.bfloat16),
            jax.ShapeDtypeStruct((B, SS, 128), jnp.bfloat16),
            jax.ShapeDtypeStruct((B, 1, C), jnp.float32),
        ),
        scratch_shapes=[pltpu.VMEM((S + 2, S + 2, C), jnp.bfloat16)],
        compiler_params=pltpu.CompilerParams(dimension_semantics=("parallel",)),
    )(xp, p["pool_mat"], p["stem_w9"], p["stem_b"],
      p["fpn0_w"], p["fpn0_b"],
      p["att_w1"], p["att_b1"], p["att_w2"], p["att_b2"],
      p["rpn_w9c"], p["rpn_b"], p["ob_w"], p["ob_b"])


def _small_levels_call(small_levels, p):
    B, _, NS, C = small_levels.shape
    S = math.isqrt(NS)
    cr = p["att_w1"].shape[1]

    return pl.pallas_call(
        _small_level_kernel,
        grid=(B, 4),
        in_specs=[
            pl.BlockSpec((1, 1, NS, C), lambda b, l: (b, l, 0, 0)),
            pl.BlockSpec((1, NS, 1), lambda b, l: (l, 0, 0)),
            pl.BlockSpec((1, C, C), lambda b, l: (l, 0, 0)),
            pl.BlockSpec((1, 1, C), lambda b, l: (l, 0, 0)),
            pl.BlockSpec((C, cr), lambda b, l: (0, 0)),
            pl.BlockSpec((1, cr), lambda b, l: (0, 0)),
            pl.BlockSpec((cr, C), lambda b, l: (0, 0)),
            pl.BlockSpec((1, C), lambda b, l: (0, 0)),
            pl.BlockSpec((9 * C, C), lambda b, l: (0, 0)),
            pl.BlockSpec((1, C), lambda b, l: (0, 0)),
            pl.BlockSpec((C, 128), lambda b, l: (0, 0)),
            pl.BlockSpec((1, 128), lambda b, l: (0, 0)),
        ],
        out_specs=pl.BlockSpec((1, 1, 1, C), lambda b, l: (b, l, 0, 0)),
        out_shape=jax.ShapeDtypeStruct((B, 4, 1, C), jnp.float32),
        scratch_shapes=[pltpu.VMEM((S + 2, S + 2, C), jnp.bfloat16)],
        compiler_params=pltpu.CompilerParams(
            dimension_semantics=("parallel", "parallel")),
    )(small_levels, p["masks_small"],
      p["fpn_w_small"], p["fpn_b_small"],
      p["att_w1"], p["att_b1"], p["att_w2"], p["att_b2"],
      p["rpn_w9c"], p["rpn_b"], p["ob_w"], p["ob_b"])


def _box_head_call(roi_feat_bf16, p):
    B = roi_feat_bf16.shape[0]
    return pl.pallas_call(
        _head_kernel,
        out_shape=jax.ShapeDtypeStruct((B, 128), jnp.float32),
    )(roi_feat_bf16, p["fc6_w"], p["fc6_b"], p["fc7_w"], p["fc7_b"], p["wcb"], p["bcb"])


# ----------------------------------------------------------------------------- parameters
def init_params(key, cin=4, c=32, rep=64, num_classes=8, se_ratio=4, s0=16):
    """All weights are pre-packed / lane-padded / bf16-cast ONCE here (not per forward)."""
    ks = iter(jax.random.split(key, 64))

    def nrm(shape, scale=0.05):
        return scale * jax.random.normal(next(ks), shape, dtype=jnp.float32)

    cr = c // se_ratio
    p = {}
    # backbone stem: 3x3 conv weights pre-reshaped to (9*Cin, C) for the single-matmul im2col
    p["stem_w9"] = nrm((3, 3, cin, c)).reshape(9 * cin, c).astype(jnp.bfloat16)
    p["stem_b"] = jnp.zeros((1, c), jnp.float32)
    # constant pyramid-pooling matrix and valid-position masks for the padded tiny levels
    p["pool_mat"] = jnp.asarray(_make_pool_matrix(s0)).astype(jnp.bfloat16)
    p["masks_small"] = jnp.asarray(_make_small_masks(s0))
    # per-level FPN 1x1
    p["fpn0_w"] = nrm((c, c)).astype(jnp.bfloat16)
    p["fpn0_b"] = jnp.zeros((1, c), jnp.float32)
    p["fpn_w_small"] = jnp.stack([nrm((c, c)) for _ in range(4)]).astype(jnp.bfloat16)
    p["fpn_b_small"] = jnp.zeros((4, 1, c), jnp.float32)
    # att (SE), shared across levels (single self.att in the original)
    p["att_w1"] = nrm((c, cr)).astype(jnp.bfloat16)
    p["att_b1"] = jnp.zeros((1, cr), jnp.float32)
    p["att_w2"] = nrm((cr, c)).astype(jnp.bfloat16)
    p["att_b2"] = jnp.zeros((1, c), jnp.float32)
    # rpn_list[0]: shared 3x3 conv (pre-reshaped to (9*C, C)) + fused obj|box 1x1 (128 lanes)
    p["rpn_w9c"] = nrm((3, 3, c, c)).reshape(9 * c, c).astype(jnp.bfloat16)
    p["rpn_b"] = jnp.zeros((1, c), jnp.float32)
    ob_w = jnp.zeros((c, 128), jnp.float32)
    ob_w = ob_w.at[:, 0:1].set(nrm((c, 1))).at[:, 1:5].set(nrm((c, 4)))
    p["ob_w"] = ob_w.astype(jnp.bfloat16)
    p["ob_b"] = jnp.zeros((1, 128), jnp.float32)
    # head_list[0]: fc6 / fc7 / fused (cls_score | bbox_pred) lane-padded to 128
    p["fc6_w"] = nrm((c, rep)).astype(jnp.bfloat16)
    p["fc6_b"] = jnp.zeros((1, rep), jnp.float32)
    p["fc7_w"] = nrm((rep, rep)).astype(jnp.bfloat16)
    p["fc7_b"] = jnp.zeros((1, rep), jnp.float32)
    wcb = jnp.zeros((rep, 128), jnp.float32)
    wcb = wcb.at[:, :num_classes].set(nrm((rep, num_classes)))
    wcb = wcb.at[:, num_classes:5 * num_classes].set(nrm((rep, 4 * num_classes)))
    p["wcb"] = wcb.astype(jnp.bfloat16)
    p["bcb"] = jnp.zeros((1, 128), jnp.float32)
    return p


# ----------------------------------------------------------------------------- forward
def generalized_rcnn_forward(params, images_nchw, *, num_classes=8):
    """GeneralizedRCNN.forward, eval mode, unify=True, uod=True."""
    x = jnp.transpose(images_nchw.astype(jnp.float32), (0, 2, 3, 1))   # NCHW -> NHWC
    B, S0, _, _ = x.shape
    C = params["fpn0_w"].shape[0]
    xp = jnp.pad(x, ((0, 0), (1, 1), (1, 1), (0, 0))).astype(jnp.bfloat16)

    # ---- kernel 1: stem conv + pyramid + level-0 FPN/SE/RPN/obj|box/pooling (grid over B)
    small_levels, objbox0, pooled0 = _level0_call(xp, params)

    # ---- kernel 2: levels 1..4 FPN/SE/RPN/pooling (grid over B x level, both parallel)
    pooled_small = _small_levels_call(small_levels, params)            # (B, 4, 1, C) f32

    # TODO(synk): anchor decoding + NMS proposal selection / ROIAlign are data-dependent box
    #             ops; proposals are approximated by the objectness-softmax weighted pooling.
    roi_feat = pooled0.reshape(B, C) + jnp.sum(pooled_small.reshape(B, 4, C), axis=1)

    # ---- kernel 3: head_list[0]: fc6 -> fc7 -> fused (cls_score | bbox_pred)
    head_out = _box_head_call(roi_feat.astype(jnp.bfloat16), params)   # (B, 128) f32
    NC = num_classes
    cls_prob = jax.nn.softmax(head_out[:, :NC], axis=-1)
    bbox_pred = head_out[:, NC:5 * NC]

    # TODO(synk): training branch (loss dicts, pseudo/seperate flags) is not implemented.
    return {
        "scores": cls_prob,                                            # (B, num_classes)
        "box_deltas": bbox_pred,                                       # (B, num_classes*4)
        "objectness_p2": objbox0[:, :, 0:1].astype(jnp.float32).reshape(B, S0, S0, 1),
        "rpn_box_p2": objbox0[:, :, 1:5].astype(jnp.float32).reshape(B, S0, S0, 4),
    }


# ----------------------------------------------------------------------------- main
if __name__ == "__main__":
    key = jax.random.PRNGKey(0)
    k_img, k_par = jax.random.split(key)

    B, Cin, H, W = 2, 4, 16, 16
    images = jax.random.normal(k_img, (B, Cin, H, W), dtype=jnp.float32)   # NCHW input

    params = init_params(k_par, cin=Cin, c=32, rep=64, num_classes=8, s0=H)

    fwd = jax.jit(generalized_rcnn_forward)
    out = fwd(params, images)
    jax.block_until_ready(out["scores"])
    jax.block_until_ready(out["box_deltas"])
    jax.block_until_ready(out["objectness_p2"])
    jax.block_until_ready(out["rpn_box_p2"])

    assert out["scores"].shape == (B, 8)
    assert out["box_deltas"].shape == (B, 32)
    assert out["objectness_p2"].shape == (B, H, W, 1)
    assert out["rpn_box_p2"].shape == (B, H, W, 4)
    assert bool(jnp.all(jnp.isfinite(out["scores"])))
    assert bool(jnp.all(jnp.isfinite(out["box_deltas"])))
    assert bool(jnp.all(jnp.isfinite(out["objectness_p2"])))
    assert bool(jnp.all(jnp.isfinite(out["rpn_box_p2"])))
    print("KERNEL_OK")
</pallas_src>

<mosaic_0001>
module attributes {stable_mosaic.version = 11 : i64} {
  func.func @_level0_kernel(%arg0: i32, %arg1: memref<1x18x18x4xbf16, #tpu.memory_space<vmem>>, %arg2: memref<256x256xbf16, #tpu.memory_space<vmem>>, %arg3: memref<36x32xbf16, #tpu.memory_space<vmem>>, %arg4: memref<1x32xf32, #tpu.memory_space<vmem>>, %arg5: memref<32x32xbf16, #tpu.memory_space<vmem>>, %arg6: memref<1x32xf32, #tpu.memory_space<vmem>>, %arg7: memref<32x8xbf16, #tpu.memory_space<vmem>>, %arg8: memref<1x8xf32, #tpu.memory_space<vmem>>, %arg9: memref<8x32xbf16, #tpu.memory_space<vmem>>, %arg10: memref<1x32xf32, #tpu.memory_space<vmem>>, %arg11: memref<288x32xbf16, #tpu.memory_space<vmem>>, %arg12: memref<1x32xf32, #tpu.memory_space<vmem>>, %arg13: memref<32x128xbf16, #tpu.memory_space<vmem>>, %arg14: memref<1x128xf32, #tpu.memory_space<vmem>>, %arg15: memref<1x4x64x32xbf16, #tpu.memory_space<vmem>>, %arg16: memref<1x256x128xbf16, #tpu.memory_space<vmem>>, %arg17: memref<1x1x32xf32, #tpu.memory_space<vmem>>, %arg18: memref<18x18x32xbf16, #tpu.memory_space<vmem>>) attributes {dimension_semantics = [#tpu.dimension_semantics<parallel>], iteration_bounds = array<i64: 2>, scalar_prefetch = 0 : i64, scratch_operands = 1 : i64, tpu.core_type = #tpu.core_type<tc>, window_params = [{transform_indices = @transform_0, window_bounds = array<i64: 1, 18, 18, 4>}, {pipeline_mode = #tpu.pipeline_mode<synchronous>, transform_indices = @transform_1, window_bounds = array<i64: 256, 256>}, {pipeline_mode = #tpu.pipeline_mode<synchronous>, transform_indices = @transform_2, window_bounds = array<i64: 36, 32>}, {pipeline_mode = #tpu.pipeline_mode<synchronous>, transform_indices = @transform_3, window_bounds = array<i64: 1, 32>}, {pipeline_mode = #tpu.pipeline_mode<synchronous>, transform_indices = @transform_4, window_bounds = array<i64: 32, 32>}, {pipeline_mode = #tpu.pipeline_mode<synchronous>, transform_indices = @transform_5, window_bounds = array<i64: 1, 32>}, {pipeline_mode = #tpu.pipeline_mode<synchronous>, transform_indices = @transform_6, window_bounds = array<i64: 32, 8>}, {pipeline_mode = #tpu.pipeline_mode<synchronous>, transform_indices = @transform_7, window_bounds = array<i64: 1, 8>}, {pipeline_mode = #tpu.pipeline_mode<synchronous>, transform_indices = @transform_8, window_bounds = array<i64: 8, 32>}, {pipeline_mode = #tpu.pipeline_mode<synchronous>, transform_indices = @transform_9, window_bounds = array<i64: 1, 32>}, {pipeline_mode = #tpu.pipeline_mode<synchronous>, transform_indices = @transform_10, window_bounds = array<i64: 288, 32>}, {pipeline_mode = #tpu.pipeline_mode<synchronous>, transform_indices = @transform_11, window_bounds = array<i64: 1, 32>}, {pipeline_mode = #tpu.pipeline_mode<synchronous>, transform_indices = @transform_12, window_bounds = array<i64: 32, 128>}, {pipeline_mode = #tpu.pipeline_mode<synchronous>, transform_indices = @transform_13, window_bounds = array<i64: 1, 128>}, {transform_indices = @transform_14, window_bounds = array<i64: 1, 4, 64, 32>}, {transform_indices = @transform_15, window_bounds = array<i64: 1, 256, 128>}, {transform_indices = @transform_16, window_bounds = array<i64: 1, 1, 32>}]} {
    %c0 = arith.constant 0 : index
    %c0_0 = arith.constant 0 : index
    %c0_1 = arith.constant 0 : index
    %c0_2 = arith.constant 0 : index
    %0 = vector.load %arg1[%c0, %c0_0, %c0_1, %c0_2] : memref<1x18x18x4xbf16, #tpu.memory_space<vmem>>, vector<1x16x16x4xbf16>
    %1 = vector.shape_cast %0 : vector<1x16x16x4xbf16> to vector<16x16x4xbf16>
    %2 = vector.shape_cast %1 : vector<16x16x4xbf16> to vector<256x4xbf16>
    %c0_3 = arith.constant 0 : index
    %c0_4 = arith.constant 0 : index
    %c1 = arith.constant 1 : index
    %c0_5 = arith.constant 0 : index
    %3 = vector.load %arg1[%c0_3, %c0_4, %c1, %c0_5] : memref<1x18x18x4xbf16, #tpu.memory_space<vmem>>, vector<1x16x16x4xbf16>
    %4 = vector.shape_cast %3 : vector<1x16x16x4xbf16> to vector<16x16x4xbf16>
    %5 = vector.shape_cast %4 : vector<16x16x4xbf16> to vector<256x4xbf16>
    %c0_6 = arith.constant 0 : index
    %c0_7 = arith.constant 0 : index
    %c2 = arith.constant 2 : index
    %c0_8 = arith.constant 0 : index
    %6 = vector.load %arg1[%c0_6, %c0_7, %c2, %c0_8] : memref<1x18x18x4xbf16, #tpu.memory_space<vmem>>, vector<1x16x16x4xbf16>
    %7 = vector.shape_cast %6 : vector<1x16x16x4xbf16> to vector<16x16x4xbf16>
    %8 = vector.shape_cast %7 : vector<16x16x4xbf16> to vector<256x4xbf16>
    %c0_9 = arith.constant 0 : index
    %c1_10 = arith.constant 1 : index
    %c0_11 = arith.constant 0 : index
    %c0_12 = arith.constant 0 : index
    %9 = vector.load %arg1[%c0_9, %c1_10, %c0_11, %c0_12] : memref<1x18x18x4xbf16, #tpu.memory_space<vmem>>, vector<1x16x16x4xbf16>
    %10 = vector.shape_cast %9 : vector<1x16x16x4xbf16> to vector<16x16x4xbf16>
    %11 = vector.shape_cast %10 : vector<16x16x4xbf16> to vector<256x4xbf16>
    %c0_13 = arith.constant 0 : index
    %c1_14 = arith.constant 1 : index
    %c1_15 = arith.constant 1 : index
    %c0_16 = arith.constant 0 : index
    %12 = vector.load %arg1[%c0_13, %c1_14, %c1_15, %c0_16] : memref<1x18x18x4xbf16, #tpu.memory_space<vmem>>, vector<1x16x16x4xbf16>
    %13 = vector.shape_cast %12 : vector<1x16x16x4xbf16> to vector<16x16x4xbf16>
    %14 = vector.shape_cast %13 : vector<16x16x4xbf16> to vector<256x4xbf16>
    %c0_17 = arith.constant 0 : index
    %c1_18 = arith.constant 1 : index
    %c2_19 = arith.constant 2 : index
    %c0_20 = arith.constant 0 : index
    %15 = vector.load %arg1[%c0_17, %c1_18, %c2_19, %c0_20] : memref<1x18x18x4xbf16, #tpu.memory_space<vmem>>, vector<1x16x16x4xbf16>
    %16 = vector.shape_cast %15 : vector<1x16x16x4xbf16> to vector<16x16x4xbf16>
    %17 = vector.shape_cast %16 : vector<16x16x4xbf16> to vector<256x4xbf16>
    %c0_21 = arith.constant 0 : index
    %c2_22 = arith.constant 2 : index
    %c0_23 = arith.constant 0 : index
    %c0_24 = arith.constant 0 : index
    %18 = vector.load %arg1[%c0_21, %c2_22, %c0_23, %c0_24] : memref<1x18x18x4xbf16, #tpu.memory_space<vmem>>, vector<1x16x16x4xbf16>
    %19 = vector.shape_cast %18 : vector<1x16x16x4xbf16> to vector<16x16x4xbf16>
    %20 = vector.shape_cast %19 : vector<16x16x4xbf16> to vector<256x4xbf16>
    %c0_25 = arith.constant 0 : index
    %c2_26 = arith.constant 2 : index
    %c1_27 = arith.constant 1 : index
    %c0_28 = arith.constant 0 : index
    %21 = vector.load %arg1[%c0_25, %c2_26, %c1_27, %c0_28] : memref<1x18x18x4xbf16, #tpu.memory_space<vmem>>, vector<1x16x16x4xbf16>
    %22 = vector.shape_cast %21 : vector<1x16x16x4xbf16> to vector<16x16x4xbf16>
    %23 = vector.shape_cast %22 : vector<16x16x4xbf16> to vector<256x4xbf16>
    %c0_29 = arith.constant 0 : index
    %c2_30 = arith.constant 2 : index
    %c2_31 = arith.constant 2 : index
    %c0_32 = arith.constant 0 : index
    %24 = vector.load %arg1[%c0_29, %c2_30, %c2_31, %c0_32] : memref<1x18x18x4xbf16, #tpu.memory_space<vmem>>, vector<1x16x16x4xbf16>
    %25 = vector.shape_cast %24 : vector<1x16x16x4xbf16> to vector<16x16x4xbf16>
    %26 = vector.shape_cast %25 : vector<16x16x4xbf16> to vector<256x4xbf16>
    %27 = tpu.concatenate %2, %5, %8, %11, %14, %17, %20, %23, %26 in 1 : vector<256x4xbf16>, vector<256x4xbf16>, vector<256x4xbf16>, vector<256x4xbf16>, vector<256x4xbf16>, vector<256x4xbf16>, vector<256x4xbf16>, vector<256x4xbf16>, vector<256x4xbf16> -> vector<256x36xbf16>
    %c0_33 = arith.constant 0 : index
    %c0_34 = arith.constant 0 : index
    %28 = vector.load %arg3[%c0_33, %c0_34] : memref<36x32xbf16, #tpu.memory_space<vmem>>, vector<36x32xbf16>
    %cst = arith.constant dense<0.000000e+00> : vector<256x32xf32>
    %29 = tpu.matmul %27, %28, %cst {dimension_numbers = #tpu.dot_dimension_numbers<[1], [0], [0], [1], [0, 0, 1, 1], [], []>} : vector<256x36xbf16>, vector<36x32xbf16>, vector<256x32xf32> -> vector<256x32xf32>
    %c0_35 = arith.constant 0 : index
    %c0_36 = arith.constant 0 : index
    %30 = vector.load %arg4[%c0_35, %c0_36] : memref<1x32xf32, #tpu.memory_space<vmem>>, vector<1x32xf32>
    %31 = vector.broadcast %30 : vector<1x32xf32> to vector<256x32xf32>
    %32 = arith.addf %29, %31 : vector<256x32xf32>
    %cst_37 = arith.constant 0.000000e+00 : f32
    %33 = vector.broadcast %cst_37 : f32 to vector<256x32xf32>
    %34 = arith.maximumf %32, %33 : vector<256x32xf32>
    %35 = arith.truncf %34 : vector<256x32xf32> to vector<256x32xbf16>
    %c0_38 = arith.constant 0 : index
    %c0_39 = arith.constant 0 : index
    %36 = vector.load %arg2[%c0_38, %c0_39] : memref<256x256xbf16, #tpu.memory_space<vmem>>, vector<256x256xbf16>
    %cst_40 = arith.constant dense<0.000000e+00> : vector<256x32xf32>
    %37 = tpu.matmul %36, %35, %cst_40 {dimension_numbers = #tpu.dot_dimension_numbers<[1], [0], [0], [1], [0, 0, 1, 1], [], []>} : vector<256x256xbf16>, vector<256x32xbf16>, vector<256x32xf32> -> vector<256x32xf32>
    %38 = vector.shape_cast %37 : vector<256x32xf32> to vector<4x64x32xf32>
    %39 = arith.truncf %38 : vector<4x64x32xf32> to vector<4x64x32xbf16>
    %c0_41 = arith.constant 0 : index
    %c0_42 = arith.constant 0 : index
    %c0_43 = arith.constant 0 : index
    %c0_44 = arith.constant 0 : index
    %40 = vector.load %arg15[%c0_41, %c0_42, %c0_43, %c0_44] : memref<1x4x64x32xbf16, #tpu.memory_space<vmem>>, vector<1x4x64x32xbf16>
    %41 = vector.shape_cast %40 : vector<1x4x64x32xbf16> to vector<4x64x32xbf16>
    %42 = vector.shape_cast %39 : vector<4x64x32xbf16> to vector<1x4x64x32xbf16>
    tpu.vector_store %arg15[%c0_41, %c0_42, %c0_43, %c0_44], %42 {strides = array<i32>} : memref<1x4x64x32xbf16, #tpu.memory_space<vmem>>, vector<1x4x64x32xbf16>,
    %c0_45 = arith.constant 0 : index
    %c0_46 = arith.constant 0 : index
    %43 = vector.load %arg5[%c0_45, %c0_46] : memref<32x32xbf16, #tpu.memory_space<vmem>>, vector<32x32xbf16>
    %cst_47 = arith.constant dense<0.000000e+00> : vector<256x32xf32>
    %44 = tpu.matmul %35, %43, %cst_47 {dimension_numbers = #tpu.dot_dimension_numbers<[1], [0], [0], [1], [0, 0, 1, 1], [], []>} : vector<256x32xbf16>, vector<32x32xbf16>, vector<256x32xf32> -> vector<256x32xf32>
    %c0_48 = arith.constant 0 : index
    %c0_49 = arith.constant 0 : index
    %45 = vector.load %arg6[%c0_48, %c0_49] : memref<1x32xf32, #tpu.memory_space<vmem>>, vector<1x32xf32>
    %46 = vector.broadcast %45 : vector<1x32xf32> to vector<256x32xf32>
    %47 = arith.addf %44, %46 : vector<256x32xf32>
    %cst_50 = arith.constant 0.000000e+00 : f32
    %48 = vector.broadcast %cst_50 : f32 to vector<256x32xf32>
    %49 = arith.maximumf %47, %48 : vector<256x32xf32>
    %cst_51 = arith.constant dense<0.000000e+00> : vector<32xf32>
    %50 = vector.multi_reduction <add>, %49, %cst_51 [0] : vector<256x32xf32> to vector<32xf32>
    %51 = vector.shape_cast %50 : vector<32xf32> to vector<1x32xf32>
    %cst_52 = arith.constant 3.906250e-03 : f32
    %52 = vector.broadcast %cst_52 : f32 to vector<1x32xf32>
    %53 = arith.mulf %51, %52 : vector<1x32xf32>
    %54 = arith.truncf %53 : vector<1x32xf32> to vector<1x32xbf16>
    %c0_53 = arith.constant 0 : index
    %c0_54 = arith.constant 0 : index
    %55 = vector.load %arg7[%c0_53, %c0_54] : memref<32x8xbf16, #tpu.memory_space<vmem>>, vector<32x8xbf16>
    %cst_55 = arith.constant dense<0.000000e+00> : vector<1x8xf32>
    %56 = tpu.matmul %54, %55, %cst_55 {dimension_numbers = #tpu.dot_dimension_numbers<[1], [0], [0], [1], [0, 0, 1, 1], [], []>} : vector<1x32xbf16>, vector<32x8xbf16>, vector<1x8xf32> -> vector<1x8xf32>
    %c0_56 = arith.constant 0 : index
    %c0_57 = arith.constant 0 : index
    %57 = vector.load %arg8[%c0_56, %c0_57] : memref<1x8xf32, #tpu.memory_space<vmem>>, vector<1x8xf32>
    %58 = arith.addf %56, %57 : vector<1x8xf32>
    %cst_58 = arith.constant 0.000000e+00 : f32
    %59 = vector.broadcast %cst_58 : f32 to vector<1x8xf32>
    %60 = arith.maximumf %58, %59 : vector<1x8xf32>
    %61 = arith.truncf %60 : vector<1x8xf32> to vector<1x8xbf16>
    %c0_59 = arith.constant 0 : index
    %c0_60 = arith.constant 0 : index
    %62 = vector.load %arg9[%c0_59, %c0_60] : memref<8x32xbf16, #tpu.memory_space<vmem>>, vector<8x32xbf16>
    %cst_61 = arith.constant dense<0.000000e+00> : vector<1x32xf32>
    %63 = tpu.matmul %61, %62, %cst_61 {dimension_numbers = #tpu.dot_dimension_numbers<[1], [0], [0], [1], [0, 0, 1, 1], [], []>} : vector<1x8xbf16>, vector<8x32xbf16>, vector<1x32xf32> -> vector<1x32xf32>
    %c0_62 = arith.constant 0 : index
    %c0_63 = arith.constant 0 : index
    %64 = vector.load %arg10[%c0_62, %c0_63] : memref<1x32xf32, #tpu.memory_space<vmem>>, vector<1x32xf32>
    %65 = arith.addf %63, %64 : vector<1x32xf32>
    %66 = arith.negf %65 : vector<1x32xf32>
    %67 = math.exp %66 : vector<1x32xf32>
    %cst_64 = arith.constant 1.000000e+00 : f32
    %68 = vector.broadcast %cst_64 : f32 to vector<1x32xf32>
    %69 = arith.addf %68, %67 : vector<1x32xf32>
    %70 = arith.divf %68, %69 : vector<1x32xf32>
    %71 = vector.broadcast %70 : vector<1x32xf32> to vector<256x32xf32>
    %72 = arith.mulf %49, %71 : vector<256x32xf32>
    %73 = arith.truncf %72 : vector<256x32xf32> to vector<256x32xbf16>
    %cst_65 = arith.constant 0.000000e+00 : bf16
    %74 = vector.broadcast %cst_65 : bf16 to vector<18x18x32xbf16>
    %c0_66 = arith.constant 0 : index
    %c0_67 = arith.constant 0 : index
    %c0_68 = arith.constant 0 : index
    %75 = vector.load %arg18[%c0_66, %c0_67, %c0_68] : memref<18x18x32xbf16, #tpu.memory_space<vmem>>, vector<18x18x32xbf16>
    tpu.vector_store %arg18[%c0_66, %c0_67, %c0_68], %74 {strides = array<i32>} : memref<18x18x32xbf16, #tpu.memory_space<vmem>>, vector<18x18x32xbf16>,
    %76 = vector.shape_cast %73 : vector<256x32xbf16> to vector<16x16x32xbf16>
    %c1_69 = arith.constant 1 : index
    %c1_70 = arith.constant 1 : index
    %c0_71 = arith.constant 0 : index
    %77 = vector.load %arg18[%c1_69, %c1_70, %c0_71] : memref<18x18x32xbf16, #tpu.memory_space<vmem>>, vector<16x16x32xbf16>
    tpu.vector_store %arg18[%c1_69, %c1_70, %c0_71], %76 {strides = array<i32>} : memref<18x18x32xbf16, #tpu.memory_space<vmem>>, vector<16x16x32xbf16>,
    %c0_72 = arith.constant 0 : index
    %c0_73 = arith.constant 0 : index
    %c0_74 = arith.constant 0 : index
    %78 = vector.load %arg18[%c0_72, %c0_73, %c0_74] : memref<18x18x32xbf16, #tpu.memory_space<vmem>>, vector<16x16x32xbf16>
    %79 = vector.shape_cast %78 : vector<16x16x32xbf16> to vector<256x32xbf16>
    %c0_75 = arith.constant 0 : index
    %c1_76 = arith.constant 1 : index
    %c0_77 = arith.constant 0 : index
    %80 = vector.load %arg18[%c0_75, %c1_76, %c0_77] : memref<18x18x32xbf16, #tpu.memory_space<vmem>>, vector<16x16x32xbf16>
    %81 = vector.shape_cast %80 : vector<16x16x32xbf16> to vector<256x32xbf16>
    %c0_78 = arith.constant 0 : index
    %c2_79 = arith.constant 2 : index
    %c0_80 = arith.constant 0 : index
    %82 = vector.load %arg18[%c0_78, %c2_79, %c0_80] : memref<18x18x32xbf16, #tpu.memory_space<vmem>>, vector<16x16x32xbf16>
    %83 = vector.shape_cast %82 : vector<16x16x32xbf16> to vector<256x32xbf16>
    %c1_81 = arith.constant 1 : index
    %c0_82 = arith.constant 0 : index
    %c0_83 = arith.constant 0 : index
    %84 = vector.load %arg18[%c1_81, %c0_82, %c0_83] : memref<18x18x32xbf16, #tpu.memory_space<vmem>>, vector<16x16x32xbf16>
    %85 = vector.shape_cast %84 : vector<16x16x32xbf16> to vector<256x32xbf16>
    %c1_84 = arith.constant 1 : index
    %c1_85 = arith.constant 1 : index
    %c0_86 = arith.constant 0 : index
    %86 = vector.load %arg18[%c1_84, %c1_85, %c0_86] : memref<18x18x32xbf16, #tpu.memory_space<vmem>>, vector<16x16x32xbf16>
    %87 = vector.shape_cast %86 : vector<16x16x32xbf16> to vector<256x32xbf16>
    %c1_87 = arith.constant 1 : index
    %c2_88 = arith.constant 2 : index
    %c0_89 = arith.constant 0 : index
    %88 = vector.load %arg18[%c1_87, %c2_88, %c0_89] : memref<18x18x32xbf16, #tpu.memory_space<vmem>>, vector<16x16x32xbf16>
    %89 = vector.shape_cast %88 : vector<16x16x32xbf16> to vector<256x32xbf16>
    %c2_90 = arith.constant 2 : index
    %c0_91 = arith.constant 0 : index
    %c0_92 = arith.constant 0 : index
    %90 = vector.load %arg18[%c2_90, %c0_91, %c0_92] : memref<18x18x32xbf16, #tpu.memory_space<vmem>>, vector<16x16x32xbf16>
    %91 = vector.shape_cast %90 : vector<16x16x32xbf16> to vector<256x32xbf16>
    %c2_93 = arith.constant 2 : index
    %c1_94 = arith.constant 1 : index
    %c0_95 = arith.constant 0 : index
    %92 = vector.load %arg18[%c2_93, %c1_94, %c0_95] : memref<18x18x32xbf16, #tpu.memory_space<vmem>>, vector<16x16x32xbf16>
    %93 = vector.shape_cast %92 : vector<16x16x32xbf16> to vector<256x32xbf16>
    %c2_96 = arith.constant 2 : index
    %c2_97 = arith.constant 2 : index
    %c0_98 = arith.constant 0 : index
    %94 = vector.load %arg18[%c2_96, %c2_97, %c0_98] : memref<18x18x32xbf16, #tpu.memory_space<vmem>>, vector<16x16x32xbf16>
    %95 = vector.shape_cast %94 : vector<16x16x32xbf16> to vector<256x32xbf16>
    %96 = tpu.concatenate %79, %81, %83, %85, %87, %89, %91, %93, %95 in 1 : vector<256x32xbf16>, vector<256x32xbf16>, vector<256x32xbf16>, vector<256x32xbf16>, vector<256x32xbf16>, vector<256x32xbf16>, vector<256x32xbf16>, vector<256x32xbf16>, vector<256x32xbf16> -> vector<256x288xbf16>
    %c0_99 = arith.constant 0 : index
    %c0_100 = arith.constant 0 : index
    %97 = vector.load %arg11[%c0_99, %c0_100] : memref<288x32xbf16, #tpu.memory_space<vmem>>, vector<288x32xbf16>
    %cst_101 = arith.constant dense<0.000000e+00> : vector<256x32xf32>
    %98 = tpu.matmul %96, %97, %cst_101 {dimension_numbers = #tpu.dot_dimension_numbers<[1], [0], [0], [1], [0, 0, 1, 1], [], []>} : vector<256x288xbf16>, vector<288x32xbf16>, vector<256x32xf32> -> vector<256x32xf32>
    %c0_102 = arith.constant 0 : index
    %c0_103 = arith.constant 0 : index
    %99 = vector.load %arg12[%c0_102, %c0_103] : memref<1x32xf32, #tpu.memory_space<vmem>>, vector<1x32xf32>
    %100 = vector.broadcast %99 : vector<1x32xf32> to vector<256x32xf32>
    %101 = arith.addf %98, %100 : vector<256x32xf32>
    %cst_104 = arith.constant 0.000000e+00 : f32
    %102 = vector.broadcast %cst_104 : f32 to vector<256x32xf32>
    %103 = arith.maximumf %101, %102 : vector<256x32xf32>
    %104 = arith.truncf %103 : vector<256x32xf32> to vector<256x32xbf16>
    %c0_105 = arith.constant 0 : index
    %c0_106 = arith.constant 0 : index
    %105 = vector.load %arg13[%c0_105, %c0_106] : memref<32x128xbf16, #tpu.memory_space<vmem>>, vector<32x128xbf16>
    %cst_107 = arith.constant dense<0.000000e+00> : vector<256x128xf32>
    %106 = tpu.matmul %104, %105, %cst_107 {dimension_numbers = #tpu.dot_dimension_numbers<[1], [0], [0], [1], [0, 0, 1, 1], [], []>} : vector<256x32xbf16>, vector<32x128xbf16>, vector<256x128xf32> -> vector<256x128xf32>
    %c0_108 = arith.constant 0 : index
    %c0_109 = arith.constant 0 : index
    %107 = vector.load %arg14[%c0_108, %c0_109] : memref<1x128xf32, #tpu.memory_space<vmem>>, vector<1x128xf32>
    %108 = vector.broadcast %107 : vector<1x128xf32> to vector<256x128xf32>
    %109 = arith.addf %106, %108 : vector<256x128xf32>
    %110 = arith.truncf %109 : vector<256x128xf32> to vector<256x128xbf16>
    %c0_110 = arith.constant 0 : index
    %c0_111 = arith.constant 0 : index
    %c0_112 = arith.constant 0 : index
    %111 = vector.load %arg16[%c0_110, %c0_111, %c0_112] : memref<1x256x128xbf16, #tpu.memory_space<vmem>>, vector<1x256x128xbf16>
    %112 = vector.shape_cast %111 : vector<1x256x128xbf16> to vector<256x128xbf16>
    %113 = vector.shape_cast %110 : vector<256x128xbf16> to vector<1x256x128xbf16>
    tpu.vector_store %arg16[%c0_110, %c0_111, %c0_112], %113 {strides = array<i32>} : memref<1x256x128xbf16, #tpu.memory_space<vmem>>, vector<1x256x128xbf16>,
    %114 = vector.extract_strided_slice %109 {offsets = [0, 0], sizes = [256, 1], strides = [1, 1]} : vector<256x128xf32> to vector<256x1xf32>
    %cst_113 = arith.constant dense<0xFF800000> : vector<1xf32>
    %115 = vector.multi_reduction <maximumf>, %114, %cst_113 [0] : vector<256x1xf32> to vector<1xf32>
    %116 = vector.shape_cast %115 : vector<1xf32> to vector<1x1xf32>
    %117 = vector.broadcast %116 : vector<1x1xf32> to vector<256x1xf32>
    %118 = arith.subf %114, %117 : vector<256x1xf32>
    %119 = math.exp %118 : vector<256x1xf32>
    %cst_114 = arith.constant dense<0.000000e+00> : vector<1xf32>
    %120 = vector.multi_reduction <add>, %119, %cst_114 [0] : vector<256x1xf32> to vector<1xf32>
    %121 = vector.shape_cast %120 : vector<1xf32> to vector<1x1xf32>
    %122 = tpu.reciprocal %121 {approx = true} : vector<1x1xf32> -> vector<1x1xf32>
    %123 = vector.broadcast %122 : vector<1x1xf32> to vector<256x1xf32>
    %124 = arith.mulf %119, %123 : vector<256x1xf32>
    %125 = vector.broadcast %124 : vector<256x1xf32> to vector<256x32xf32>
    %126 = arith.mulf %72, %125 : vector<256x32xf32>
    %cst_115 = arith.constant dense<0.000000e+00> : vector<32xf32>
    %127 = vector.multi_reduction <add>, %126, %cst_115 [0] : vector<256x32xf32> to vector<32xf32>
    %128 = vector.shape_cast %127 : vector<32xf32> to vector<1x32xf32>
    %c0_116 = arith.constant 0 : index
    %c0_117 = arith.constant 0 : index
    %c0_118 = arith.constant 0 : index
    %129 = vector.load %arg17[%c0_116, %c0_117, %c0_118] : memref<1x1x32xf32, #tpu.memory_space<vmem>>, vector<1x1x32xf32>
    %130 = vector.shape_cast %129 : vector<1x1x32xf32> to vector<1x32xf32>
    %131 = vector.shape_cast %128 : vector<1x32xf32> to vector<1x1x32xf32>
    tpu.vector_store %arg17[%c0_116, %c0_117, %c0_118], %131 {strides = array<i32>} : memref<1x1x32xf32, #tpu.memory_space<vmem>>, vector<1x1x32xf32>,
    return
  }
  func.func @transform_0(%arg0: i32) -> (i32, i32, i32, i32) {
    %c0_i32 = arith.constant 0 : i32
    %c0_i32_0 = arith.constant 0 : i32
    %c0_i32_1 = arith.constant 0 : i32
    %c0_i32_2 = arith.constant 0 : i32
    return %arg0, %c0_i32, %c0_i32_0, %c0_i32_1 : i32, i32, i32, i32
  }
  func.func @transform_1(%arg0: i32) -> (i32, i32) {
    %c0_i32 = arith.constant 0 : i32
    %c0_i32_0 = arith.constant 0 : i32
    %c0_i32_1 = arith.constant 0 : i32
    return %c0_i32, %c0_i32_0 : i32, i32
  }
  func.func @transform_2(%arg0: i32) -> (i32, i32) {
    %c0_i32 = arith.constant 0 : i32
    %c0_i32_0 = arith.constant 0 : i32
    %c0_i32_1 = arith.constant 0 : i32
    return %c0_i32, %c0_i32_0 : i32, i32
  }
  func.func @transform_3(%arg0: i32) -> (i32, i32) {
    %c0_i32 = arith.constant 0 : i32
    %c0_i32_0 = arith.constant 0 : i32
    %c0_i32_1 = arith.constant 0 : i32
    return %c0_i32, %c0_i32_0 : i32, i32
  }
  func.func @transform_4(%arg0: i32) -> (i32, i32) {
    %c0_i32 = arith.constant 0 : i32
    %c0_i32_0 = arith.constant 0 : i32
    %c0_i32_1 = arith.constant 0 : i32
    return %c0_i32, %c0_i32_0 : i32, i32
  }
  func.func @transform_5(%arg0: i32) -> (i32, i32) {
    %c0_i32 = arith.constant 0 : i32
    %c0_i32_0 = arith.constant 0 : i32
    %c0_i32_1 = arith.constant 0 : i32
    return %c0_i32, %c0_i32_0 : i32, i32
  }
  func.func @transform_6(%arg0: i32) -> (i32, i32) {
    %c0_i32 = arith.constant 0 : i32
    %c0_i32_0 = arith.constant 0 : i32
    %c0_i32_1 = arith.constant 0 : i32
    return %c0_i32, %c0_i32_0 : i32, i32
  }
  func.func @transform_7(%arg0: i32) -> (i32, i32) {
    %c0_i32 = arith.constant 0 : i32
    %c0_i32_0 = arith.constant 0 : i32
    %c0_i32_1 = arith.constant 0 : i32
    return %c0_i32, %c0_i32_0 : i32, i32
  }
  func.func @transform_8(%arg0: i32) -> (i32, i32) {
    %c0_i32 = arith.constant 0 : i32
    %c0_i32_0 = arith.constant 0 : i32
    %c0_i32_1 = arith.constant 0 : i32
    return %c0_i32, %c0_i32_0 : i32, i32
  }
  func.func @transform_9(%arg0: i32) -> (i32, i32) {
    %c0_i32 = arith.constant 0 : i32
    %c0_i32_0 = arith.constant 0 : i32
    %c0_i32_1 = arith.constant 0 : i32
    return %c0_i32, %c0_i32_0 : i32, i32
  }
  func.func @transform_10(%arg0: i32) -> (i32, i32) {
    %c0_i32 = arith.constant 0 : i32
    %c0_i32_0 = arith.constant 0 : i32
    %c0_i32_1 = arith.constant 0 : i32
    return %c0_i32, %c0_i32_0 : i32, i32
  }
  func.func @transform_11(%arg0: i32) -> (i32, i32) {
    %c0_i32 = arith.constant 0 : i32
    %c0_i32_0 = arith.constant 0 : i32
    %c0_i32_1 = arith.constant 0 : i32
    return %c0_i32, %c0_i32_0 : i32, i32
  }
  func.func @transform_12(%arg0: i32) -> (i32, i32) {
    %c0_i32 = arith.constant 0 : i32
    %c0_i32_0 = arith.constant 0 : i32
    %c0_i32_1 = arith.constant 0 : i32
    return %c0_i32, %c0_i32_0 : i32, i32
  }
  func.func @transform_13(%arg0: i32) -> (i32, i32) {
    %c0_i32 = arith.constant 0 : i32
    %c0_i32_0 = arith.constant 0 : i32
    %c0_i32_1 = arith.constant 0 : i32
    return %c0_i32, %c0_i32_0 : i32, i32
  }
  func.func @transform_14(%arg0: i32) -> (i32, i32, i32, i32) {
    %c0_i32 = arith.constant 0 : i32
    %c0_i32_0 = arith.constant 0 : i32
    %c0_i32_1 = arith.constant 0 : i32
    %c0_i32_2 = arith.constant 0 : i32
    return %arg0, %c0_i32, %c0_i32_0, %c0_i32_1 : i32, i32, i32, i32
  }
  func.func @transform_15(%arg0: i32) -> (i32, i32, i32) {
    %c0_i32 = arith.constant 0 : i32
    %c0_i32_0 = arith.constant 0 : i32
    %c0_i32_1 = arith.constant 0 : i32
    return %arg0, %c0_i32, %c0_i32_0 : i32, i32, i32
  }
  func.func @transform_16(%arg0: i32) -> (i32, i32, i32) {
    %c0_i32 = arith.constant 0 : i32
    %c0_i32_0 = arith.constant 0 : i32
    %c0_i32_1 = arith.constant 0 : i32
    return %arg0, %c0_i32, %c0_i32_0 : i32, i32, i32
  }
}

module attributes {stable_mosaic.version = 11 : i64} {
  func.func @_small_level_kernel(%arg0: i32, %arg1: i32, %arg2: memref<1x1x64x32xbf16, #tpu.memory_space<vmem>>, %arg3: memref<1x64x1xf32, #tpu.memory_space<vmem>>, %arg4: memref<1x32x32xbf16, #tpu.memory_space<vmem>>, %arg5: memref<1x1x32xf32, #tpu.memory_space<vmem>>, %arg6: memref<32x8xbf16, #tpu.memory_space<vmem>>, %arg7: memref<1x8xf32, #tpu.memory_space<vmem>>, %arg8: memref<8x32xbf16, #tpu.memory_space<vmem>>, %arg9: memref<1x32xf32, #tpu.memory_space<vmem>>, %arg10: memref<288x32xbf16, #tpu.memory_space<vmem>>, %arg11: memref<1x32xf32, #tpu.memory_space<vmem>>, %arg12: memref<32x128xbf16, #tpu.memory_space<vmem>>, %arg13: memref<1x128xf32, #tpu.memory_space<vmem>>, %arg14: memref<1x1x1x32xf32, #tpu.memory_space<vmem>>, %arg15: memref<10x10x32xbf16, #tpu.memory_space<vmem>>) attributes {dimension_semantics = [#tpu.dimension_semantics<parallel>, #tpu.dimension_semantics<parallel>], iteration_bounds = array<i64: 2, 4>, scalar_prefetch = 0 : i64, scratch_operands = 1 : i64, tpu.core_type = #tpu.core_type<tc>, window_params = [{transform_indices = @transform_0, window_bounds = array<i64: 1, 1, 64, 32>}, {transform_indices = @transform_1, window_bounds = array<i64: 1, 64, 1>}, {transform_indices = @transform_2, window_bounds = array<i64: 1, 32, 32>}, {transform_indices = @transform_3, window_bounds = array<i64: 1, 1, 32>}, {pipeline_mode = #tpu.pipeline_mode<synchronous>, transform_indices = @transform_4, window_bounds = array<i64: 32, 8>}, {pipeline_mode = #tpu.pipeline_mode<synchronous>, transform_indices = @transform_5, window_bounds = array<i64: 1, 8>}, {pipeline_mode = #tpu.pipeline_mode<synchronous>, transform_indices = @transform_6, window_bounds = array<i64: 8, 32>}, {pipeline_mode = #tpu.pipeline_mode<synchronous>, transform_indices = @transform_7, window_bounds = array<i64: 1, 32>}, {pipeline_mode = #tpu.pipeline_mode<synchronous>, transform_indices = @transform_8, window_bounds = array<i64: 288, 32>}, {pipeline_mode = #tpu.pipeline_mode<synchronous>, transform_indices = @transform_9, window_bounds = array<i64: 1, 32>}, {pipeline_mode = #tpu.pipeline_mode<synchronous>, transform_indices = @transform_10, window_bounds = array<i64: 32, 128>}, {pipeline_mode = #tpu.pipeline_mode<synchronous>, transform_indices = @transform_11, window_bounds = array<i64: 1, 128>}, {transform_indices = @transform_12, window_bounds = array<i64: 1, 1, 1, 32>}]} {
    %c0 = arith.constant 0 : index
    %c0_0 = arith.constant 0 : index
    %c0_1 = arith.constant 0 : index
    %c0_2 = arith.constant 0 : index
    %0 = vector.load %arg2[%c0, %c0_0, %c0_1, %c0_2] : memref<1x1x64x32xbf16, #tpu.memory_space<vmem>>, vector<1x1x64x32xbf16>
    %1 = vector.shape_cast %0 : vector<1x1x64x32xbf16> to vector<64x32xbf16>
    %c0_3 = arith.constant 0 : index
    %c0_4 = arith.constant 0 : index
    %c0_5 = arith.constant 0 : index
    %2 = vector.load %arg3[%c0_3, %c0_4, %c0_5] : memref<1x64x1xf32, #tpu.memory_space<vmem>>, vector<1x64x1xf32>
    %3 = vector.shape_cast %2 : vector<1x64x1xf32> to vector<64x1xf32>
    %c0_6 = arith.constant 0 : index
    %c0_7 = arith.constant 0 : index
    %c0_8 = arith.constant 0 : index
    %4 = vector.load %arg4[%c0_6, %c0_7, %c0_8] : memref<1x32x32xbf16, #tpu.memory_space<vmem>>, vector<1x32x32xbf16>
    %5 = vector.shape_cast %4 : vector<1x32x32xbf16> to vector<32x32xbf16>
    %cst = arith.constant dense<0.000000e+00> : vector<64x32xf32>
    %6 = tpu.matmul %1, %5, %cst {dimension_numbers = #tpu.dot_dimension_numbers<[1], [0], [0], [1], [0, 0, 1, 1], [], []>} : vector<64x32xbf16>, vector<32x32xbf16>, vector<64x32xf32> -> vector<64x32xf32>
    %c0_9 = arith.constant 0 : index
    %c0_10 = arith.constant 0 : index
    %c0_11 = arith.constant 0 : index
    %7 = vector.load %arg5[%c0_9, %c0_10, %c0_11] : memref<1x1x32xf32, #tpu.memory_space<vmem>>, vector<1x1x32xf32>
    %8 = vector.shape_cast %7 : vector<1x1x32xf32> to vector<1x32xf32>
    %9 = vector.broadcast %8 : vector<1x32xf32> to vector<64x32xf32>
    %10 = arith.addf %6, %9 : vector<64x32xf32>
    %cst_12 = arith.constant 0.000000e+00 : f32
    %11 = vector.broadcast %cst_12 : f32 to vector<64x32xf32>
    %12 = arith.maximumf %10, %11 : vector<64x32xf32>
    %13 = vector.broadcast %3 : vector<64x1xf32> to vector<64x32xf32>
    %14 = arith.mulf %12, %13 : vector<64x32xf32>
    %cst_13 = arith.constant dense<0.000000e+00> : vector<1xf32>
    %15 = vector.multi_reduction <add>, %3, %cst_13 [0] : vector<64x1xf32> to vector<1xf32>
    %16 = vector.shape_cast %15 : vector<1xf32> to vector<1x1xf32>
    %cst_14 = arith.constant dense<0.000000e+00> : vector<32xf32>
    %17 = vector.multi_reduction <add>, %14, %cst_14 [0] : vector<64x32xf32> to vector<32xf32>
    %18 = vector.shape_cast %17 : vector<32xf32> to vector<1x32xf32>
    %19 = vector.broadcast %16 : vector<1x1xf32> to vector<1x32xf32>
    %20 = arith.divf %18, %19 : vector<1x32xf32>
    %21 = arith.truncf %20 : vector<1x32xf32> to vector<1x32xbf16>
    %c0_15 = arith.constant 0 : index
    %c0_16 = arith.constant 0 : index
    %22 = vector.load %arg6[%c0_15, %c0_16] : memref<32x8xbf16, #tpu.memory_space<vmem>>, vector<32x8xbf16>
    %cst_17 = arith.constant dense<0.000000e+00> : vector<1x8xf32>
    %23 = tpu.matmul %21, %22, %cst_17 {dimension_numbers = #tpu.dot_dimension_numbers<[1], [0], [0], [1], [0, 0, 1, 1], [], []>} : vector<1x32xbf16>, vector<32x8xbf16>, vector<1x8xf32> -> vector<1x8xf32>
    %c0_18 = arith.constant 0 : index
    %c0_19 = arith.constant 0 : index
    %24 = vector.load %arg7[%c0_18, %c0_19] : memref<1x8xf32, #tpu.memory_space<vmem>>, vector<1x8xf32>
    %25 = arith.addf %23, %24 : vector<1x8xf32>
    %cst_20 = arith.constant 0.000000e+00 : f32
    %26 = vector.broadcast %cst_20 : f32 to vector<1x8xf32>
    %27 = arith.maximumf %25, %26 : vector<1x8xf32>
    %28 = arith.truncf %27 : vector<1x8xf32> to vector<1x8xbf16>
    %c0_21 = arith.constant 0 : index
    %c0_22 = arith.constant 0 : index
    %29 = vector.load %arg8[%c0_21, %c0_22] : memref<8x32xbf16, #tpu.memory_space<vmem>>, vector<8x32xbf16>
    %cst_23 = arith.constant dense<0.000000e+00> : vector<1x32xf32>
    %30 = tpu.matmul %28, %29, %cst_23 {dimension_numbers = #tpu.dot_dimension_numbers<[1], [0], [0], [1], [0, 0, 1, 1], [], []>} : vector<1x8xbf16>, vector<8x32xbf16>, vector<1x32xf32> -> vector<1x32xf32>
    %c0_24 = arith.constant 0 : index
    %c0_25 = arith.constant 0 : index
    %31 = vector.load %arg9[%c0_24, %c0_25] : memref<1x32xf32, #tpu.memory_space<vmem>>, vector<1x32xf32>
    %32 = arith.addf %30, %31 : vector<1x32xf32>
    %33 = arith.negf %32 : vector<1x32xf32>
    %34 = math.exp %33 : vector<1x32xf32>
    %cst_26 = arith.constant 1.000000e+00 : f32
    %35 = vector.broadcast %cst_26 : f32 to vector<1x32xf32>
    %36 = arith.addf %35, %34 : vector<1x32xf32>
    %37 = arith.divf %35, %36 : vector<1x32xf32>
    %38 = vector.broadcast %37 : vector<1x32xf32> to vector<64x32xf32>
    %39 = arith.mulf %14, %38 : vector<64x32xf32>
    %40 = arith.truncf %39 : vector<64x32xf32> to vector<64x32xbf16>
    %cst_27 = arith.constant 0.000000e+00 : bf16
    %41 = vector.broadcast %cst_27 : bf16 to vector<10x10x32xbf16>
    %c0_28 = arith.constant 0 : index
    %c0_29 = arith.constant 0 : index
    %c0_30 = arith.constant 0 : index
    %42 = vector.load %arg15[%c0_28, %c0_29, %c0_30] : memref<10x10x32xbf16, #tpu.memory_space<vmem>>, vector<10x10x32xbf16>
    tpu.vector_store %arg15[%c0_28, %c0_29, %c0_30], %41 {strides = array<i32>} : memref<10x10x32xbf16, #tpu.memory_space<vmem>>, vector<10x10x32xbf16>,
    %43 = vector.shape_cast %40 : vector<64x32xbf16> to vector<8x8x32xbf16>
    %c1 = arith.constant 1 : index
    %c1_31 = arith.constant 1 : index
    %c0_32 = arith.constant 0 : index
    %44 = vector.load %arg15[%c1, %c1_31, %c0_32] : memref<10x10x32xbf16, #tpu.memory_space<vmem>>, vector<8x8x32xbf16>
    tpu.vector_store %arg15[%c1, %c1_31, %c0_32], %43 {strides = array<i32>} : memref<10x10x32xbf16, #tpu.memory_space<vmem>>, vector<8x8x32xbf16>,
    %c0_33 = arith.constant 0 : index
    %c0_34 = arith.constant 0 : index
    %c0_35 = arith.constant 0 : index
    %45 = vector.load %arg15[%c0_33, %c0_34, %c0_35] : memref<10x10x32xbf16, #tpu.memory_space<vmem>>, vector<8x8x32xbf16>
    %46 = vector.shape_cast %45 : vector<8x8x32xbf16> to vector<64x32xbf16>
    %c0_36 = arith.constant 0 : index
    %c1_37 = arith.constant 1 : index
    %c0_38 = arith.constant 0 : index
    %47 = vector.load %arg15[%c0_36, %c1_37, %c0_38] : memref<10x10x32xbf16, #tpu.memory_space<vmem>>, vector<8x8x32xbf16>
    %48 = vector.shape_cast %47 : vector<8x8x32xbf16> to vector<64x32xbf16>
    %c0_39 = arith.constant 0 : index
    %c2 = arith.constant 2 : index
    %c0_40 = arith.constant 0 : index
    %49 = vector.load %arg15[%c0_39, %c2, %c0_40] : memref<10x10x32xbf16, #tpu.memory_space<vmem>>, vector<8x8x32xbf16>
    %50 = vector.shape_cast %49 : vector<8x8x32xbf16> to vector<64x32xbf16>
    %c1_41 = arith.constant 1 : index
    %c0_42 = arith.constant 0 : index
    %c0_43 = arith.constant 0 : index
    %51 = vector.load %arg15[%c1_41, %c0_42, %c0_43] : memref<10x10x32xbf16, #tpu.memory_space<vmem>>, vector<8x8x32xbf16>
    %52 = vector.shape_cast %51 : vector<8x8x32xbf16> to vector<64x32xbf16>
    %c1_44 = arith.constant 1 : index
    %c1_45 = arith.constant 1 : index
    %c0_46 = arith.constant 0 : index
    %53 = vector.load %arg15[%c1_44, %c1_45, %c0_46] : memref<10x10x32xbf16, #tpu.memory_space<vmem>>, vector<8x8x32xbf16>
    %54 = vector.shape_cast %53 : vector<8x8x32xbf16> to vector<64x32xbf16>
    %c1_47 = arith.constant 1 : index
    %c2_48 = arith.constant 2 : index
    %c0_49 = arith.constant 0 : index
    %55 = vector.load %arg15[%c1_47, %c2_48, %c0_49] : memref<10x10x32xbf16, #tpu.memory_space<vmem>>, vector<8x8x32xbf16>
    %56 = vector.shape_cast %55 : vector<8x8x32xbf16> to vector<64x32xbf16>
    %c2_50 = arith.constant 2 : index
    %c0_51 = arith.constant 0 : index
    %c0_52 = arith.constant 0 : index
    %57 = vector.load %arg15[%c2_50, %c0_51, %c0_52] : memref<10x10x32xbf16, #tpu.memory_space<vmem>>, vector<8x8x32xbf16>
    %58 = vector.shape_cast %57 : vector<8x8x32xbf16> to vector<64x32xbf16>
    %c2_53 = arith.constant 2 : index
    %c1_54 = arith.constant 1 : index
    %c0_55 = arith.constant 0 : index
    %59 = vector.load %arg15[%c2_53, %c1_54, %c0_55] : memref<10x10x32xbf16, #tpu.memory_space<vmem>>, vector<8x8x32xbf16>
    %60 = vector.shape_cast %59 : vector<8x8x32xbf16> to vector<64x32xbf16>
    %c2_56 = arith.constant 2 : index
    %c2_57 = arith.constant 2 : index
    %c0_58 = arith.constant 0 : index
    %61 = vector.load %arg15[%c2_56, %c2_57, %c0_58] : memref<10x10x32xbf16, #tpu.memory_space<vmem>>, vector<8x8x32xbf16>
    %62 = vector.shape_cast %61 : vector<8x8x32xbf16> to vector<64x32xbf16>
    %63 = tpu.concatenate %46, %48, %50, %52, %54, %56, %58, %60, %62 in 1 : vector<64x32xbf16>, vector<64x32xbf16>, vector<64x32xbf16>, vector<64x32xbf16>, vector<64x32xbf16>, vector<64x32xbf16>, vector<64x32xbf16>, vector<64x32xbf16>, vector<64x32xbf16> -> vector<64x288xbf16>
    %c0_59 = arith.constant 0 : index
    %c0_60 = arith.constant 0 : index
    %64 = vector.load %arg10[%c0_59, %c0_60] : memref<288x32xbf16, #tpu.memory_space<vmem>>, vector<288x32xbf16>
    %cst_61 = arith.constant dense<0.000000e+00> : vector<64x32xf32>
    %65 = tpu.matmul %63, %64, %cst_61 {dimension_numbers = #tpu.dot_dimension_numbers<[1], [0], [0], [1], [0, 0, 1, 1], [], []>} : vector<64x288xbf16>, vector<288x32xbf16>, vector<64x32xf32> -> vector<64x32xf32>
    %c0_62 = arith.constant 0 : index
    %c0_63 = arith.constant 0 : index
    %66 = vector.load %arg11[%c0_62, %c0_63] : memref<1x32xf32, #tpu.memory_space<vmem>>, vector<1x32xf32>
    %67 = vector.broadcast %66 : vector<1x32xf32> to vector<64x32xf32>
    %68 = arith.addf %65, %67 : vector<64x32xf32>
    %cst_64 = arith.constant 0.000000e+00 : f32
    %69 = vector.broadcast %cst_64 : f32 to vector<64x32xf32>
    %70 = arith.maximumf %68, %69 : vector<64x32xf32>
    %71 = arith.truncf %70 : vector<64x32xf32> to vector<64x32xbf16>
    %c0_65 = arith.constant 0 : index
    %c0_66 = arith.constant 0 : index
    %72 = vector.load %arg12[%c0_65, %c0_66] : memref<32x128xbf16, #tpu.memory_space<vmem>>, vector<32x128xbf16>
    %cst_67 = arith.constant dense<0.000000e+00> : vector<64x128xf32>
    %73 = tpu.matmul %71, %72, %cst_67 {dimension_numbers = #tpu.dot_dimension_numbers<[1], [0], [0], [1], [0, 0, 1, 1], [], []>} : vector<64x32xbf16>, vector<32x128xbf16>, vector<64x128xf32> -> vector<64x128xf32>
    %c0_68 = arith.constant 0 : index
    %c0_69 = arith.constant 0 : index
    %74 = vector.load %arg13[%c0_68, %c0_69] : memref<1x128xf32, #tpu.memory_space<vmem>>, vector<1x128xf32>
    %75 = vector.broadcast %74 : vector<1x128xf32> to vector<64x128xf32>
    %76 = arith.addf %73, %75 : vector<64x128xf32>
    %cst_70 = arith.constant 5.000000e-01 : f32
    %77 = vector.broadcast %cst_70 : f32 to vector<64x1xf32>
    %78 = arith.cmpf ogt, %3, %77 : vector<64x1xf32>
    %79 = vector.extract_strided_slice %76 {offsets = [0, 0], sizes = [64, 1], strides = [1, 1]} : vector<64x128xf32> to vector<64x1xf32>
    %cst_71 = arith.constant -1.000000e+30 : f32
    %80 = vector.broadcast %cst_71 : f32 to vector<64x1xf32>
    %81 = arith.select %78, %79, %80 : vector<64x1xi1>, vector<64x1xf32>
    %cst_72 = arith.constant dense<0xFF800000> : vector<1xf32>
    %82 = vector.multi_reduction <maximumf>, %81, %cst_72 [0] : vector<64x1xf32> to vector<1xf32>
    %83 = vector.shape_cast %82 : vector<1xf32> to vector<1x1xf32>
    %84 = vector.broadcast %83 : vector<1x1xf32> to vector<64x1xf32>
    %85 = arith.subf %81, %84 : vector<64x1xf32>
    %86 = math.exp %85 : vector<64x1xf32>
    %cst_73 = arith.constant dense<0.000000e+00> : vector<1xf32>
    %87 = vector.multi_reduction <add>, %86, %cst_73 [0] : vector<64x1xf32> to vector<1xf32>
    %88 = vector.shape_cast %87 : vector<1xf32> to vector<1x1xf32>
    %89 = tpu.reciprocal %88 {approx = true} : vector<1x1xf32> -> vector<1x1xf32>
    %90 = vector.broadcast %89 : vector<1x1xf32> to vector<64x1xf32>
    %91 = arith.mulf %86, %90 : vector<64x1xf32>
    %92 = vector.broadcast %91 : vector<64x1xf32> to vector<64x32xf32>
    %93 = arith.mulf %39, %92 : vector<64x32xf32>
    %cst_74 = arith.constant dense<0.000000e+00> : vector<32xf32>
    %94 = vector.multi_reduction <add>, %93, %cst_74 [0] : vector<64x32xf32> to vector<32xf32>
    %95 = vector.shape_cast %94 : vector<32xf32> to vector<1x32xf32>
    %c0_75 = arith.constant 0 : index
    %c0_76 = arith.constant 0 : index
    %c0_77 = arith.constant 0 : index
    %c0_78 = arith.constant 0 : index
    %96 = vector.load %arg14[%c0_75, %c0_76, %c0_77, %c0_78] : memref<1x1x1x32xf32, #tpu.memory_space<vmem>>, vector<1x1x1x32xf32>
    %97 = vector.shape_cast %96 : vector<1x1x1x32xf32> to vector<1x32xf32>
    %98 = vector.shape_cast %95 : vector<1x32xf32> to vector<1x1x1x32xf32>
    tpu.vector_store %arg14[%c0_75, %c0_76, %c0_77, %c0_78], %98 {strides = array<i32>} : memref<1x1x1x32xf32, #tpu.memory_space<vmem>>, vector<1x1x1x32xf32>,
    return
  }
  func.func @transform_0(%arg0: i32, %arg1: i32) -> (i32, i32, i32, i32) {
    %c0_i32 = arith.constant 0 : i32
    %c0_i32_0 = arith.constant 0 : i32
    %c0_i32_1 = arith.constant 0 : i32
    return %arg0, %arg1, %c0_i32, %c0_i32_0 : i32, i32, i32, i32
  }
  func.func @transform_1(%arg0: i32, %arg1: i32) -> (i32, i32, i32) {
    %c0_i32 = arith.constant 0 : i32
    %c0_i32_0 = arith.constant 0 : i32
    %c0_i32_1 = arith.constant 0 : i32
    return %arg1, %c0_i32, %c0_i32_0 : i32, i32, i32
  }
  func.func @transform_2(%arg0: i32, %arg1: i32) -> (i32, i32, i32) {
    %c0_i32 = arith.constant 0 : i32
    %c0_i32_0 = arith.constant 0 : i32
    %c0_i32_1 = arith.constant 0 : i32
    return %arg1, %c0_i32, %c0_i32_0 : i32, i32, i32
  }
  func.func @transform_3(%arg0: i32, %arg1: i32) -> (i32, i32, i32) {
    %c0_i32 = arith.constant 0 : i32
    %c0_i32_0 = arith.constant 0 : i32
    %c0_i32_1 = arith.constant 0 : i32
    return %arg1, %c0_i32, %c0_i32_0 : i32, i32, i32
  }
  func.func @transform_4(%arg0: i32, %arg1: i32) -> (i32, i32) {
    %c0_i32 = arith.constant 0 : i32
    %c0_i32_0 = arith.constant 0 : i32
    %c0_i32_1 = arith.constant 0 : i32
    return %c0_i32, %c0_i32_0 : i32, i32
  }
  func.func @transform_5(%arg0: i32, %arg1: i32) -> (i32, i32) {
    %c0_i32 = arith.constant 0 : i32
    %c0_i32_0 = arith.constant 0 : i32
    %c0_i32_1 = arith.constant 0 : i32
    return %c0_i32, %c0_i32_0 : i32, i32
  }
  func.func @transform_6(%arg0: i32, %arg1: i32) -> (i32, i32) {
    %c0_i32 = arith.constant 0 : i32
    %c0_i32_0 = arith.constant 0 : i32
    %c0_i32_1 = arith.constant 0 : i32
    return %c0_i32, %c0_i32_0 : i32, i32
  }
  func.func @transform_7(%arg0: i32, %arg1: i32) -> (i32, i32) {
    %c0_i32 = arith.constant 0 : i32
    %c0_i32_0 = arith.constant 0 : i32
    %c0_i32_1 = arith.constant 0 : i32
    return %c0_i32, %c0_i32_0 : i32, i32
  }
  func.func @transform_8(%arg0: i32, %arg1: i32) -> (i32, i32) {
    %c0_i32 = arith.constant 0 : i32
    %c0_i32_0 = arith.constant 0 : i32
    %c0_i32_1 = arith.constant 0 : i32
    return %c0_i32, %c0_i32_0 : i32, i32
  }
  func.func @transform_9(%arg0: i32, %arg1: i32) -> (i32, i32) {
    %c0_i32 = arith.constant 0 : i32
    %c0_i32_0 = arith.constant 0 : i32
    %c0_i32_1 = arith.constant 0 : i32
    return %c0_i32, %c0_i32_0 : i32, i32
  }
  func.func @transform_10(%arg0: i32, %arg1: i32) -> (i32, i32) {
    %c0_i32 = arith.constant 0 : i32
    %c0_i32_0 = arith.constant 0 : i32
    %c0_i32_1 = arith.constant 0 : i32
    return %c0_i32, %c0_i32_0 : i32, i32
  }
  func.func @transform_11(%arg0: i32, %arg1: i32) -> (i32, i32) {
    %c0_i32 = arith.constant 0 : i32
    %c0_i32_0 = arith.constant 0 : i32
    %c0_i32_1 = arith.constant 0 : i32
    return %c0_i32, %c0_i32_0 : i32, i32
  }
  func.func @transform_12(%arg0: i32, %arg1: i32) -> (i32, i32, i32, i32) {
    %c0_i32 = arith.constant 0 : i32
    %c0_i32_0 = arith.constant 0 : i32
    %c0_i32_1 = arith.constant 0 : i32
    return %arg0, %arg1, %c0_i32, %c0_i32_0 : i32, i32, i32, i32
  }
}

module attributes {stable_mosaic.version = 11 : i64} {
  func.func @_head_kernel(%arg0: memref<2x32xbf16, #tpu.memory_space<vmem>>, %arg1: memref<32x64xbf16, #tpu.memory_space<vmem>>, %arg2: memref<1x64xf32, #tpu.memory_space<vmem>>, %arg3: memref<64x64xbf16, #tpu.memory_space<vmem>>, %arg4: memref<1x64xf32, #tpu.memory_space<vmem>>, %arg5: memref<64x128xbf16, #tpu.memory_space<vmem>>, %arg6: memref<1x128xf32, #tpu.memory_space<vmem>>, %arg7: memref<2x128xf32, #tpu.memory_space<vmem>>) attributes {dimension_semantics = [], scalar_prefetch = 0 : i64, scratch_operands = 0 : i64, tpu.core_type = #tpu.core_type<tc>} {
    %c0 = arith.constant 0 : index
    %c0_0 = arith.constant 0 : index
    %0 = vector.load %arg0[%c0, %c0_0] : memref<2x32xbf16, #tpu.memory_space<vmem>>, vector<2x32xbf16>
    %c0_1 = arith.constant 0 : index
    %c0_2 = arith.constant 0 : index
    %1 = vector.load %arg1[%c0_1, %c0_2] : memref<32x64xbf16, #tpu.memory_space<vmem>>, vector<32x64xbf16>
    %cst = arith.constant dense<0.000000e+00> : vector<2x64xf32>
    %2 = tpu.matmul %0, %1, %cst {dimension_numbers = #tpu.dot_dimension_numbers<[1], [0], [0], [1], [0, 0, 1, 1], [], []>} : vector<2x32xbf16>, vector<32x64xbf16>, vector<2x64xf32> -> vector<2x64xf32>
    %c0_3 = arith.constant 0 : index
    %c0_4 = arith.constant 0 : index
    %3 = vector.load %arg2[%c0_3, %c0_4] : memref<1x64xf32, #tpu.memory_space<vmem>>, vector<1x64xf32>
    %4 = vector.broadcast %3 : vector<1x64xf32> to vector<2x64xf32>
    %5 = arith.addf %2, %4 : vector<2x64xf32>
    %cst_5 = arith.constant 0.000000e+00 : f32
    %6 = vector.broadcast %cst_5 : f32 to vector<2x64xf32>
    %7 = arith.maximumf %5, %6 : vector<2x64xf32>
    %8 = arith.truncf %7 : vector<2x64xf32> to vector<2x64xbf16>
    %c0_6 = arith.constant 0 : index
    %c0_7 = arith.constant 0 : index
    %9 = vector.load %arg3[%c0_6, %c0_7] : memref<64x64xbf16, #tpu.memory_space<vmem>>, vector<64x64xbf16>
    %cst_8 = arith.constant dense<0.000000e+00> : vector<2x64xf32>
    %10 = tpu.matmul %8, %9, %cst_8 {dimension_numbers = #tpu.dot_dimension_numbers<[1], [0], [0], [1], [0, 0, 1, 1], [], []>} : vector<2x64xbf16>, vector<64x64xbf16>, vector<2x64xf32> -> vector<2x64xf32>
    %c0_9 = arith.constant 0 : index
    %c0_10 = arith.constant 0 : index
    %11 = vector.load %arg4[%c0_9, %c0_10] : memref<1x64xf32, #tpu.memory_space<vmem>>, vector<1x64xf32>
    %12 = vector.broadcast %11 : vector<1x64xf32> to vector<2x64xf32>
    %13 = arith.addf %10, %12 : vector<2x64xf32>
    %cst_11 = arith.constant 0.000000e+00 : f32
    %14 = vector.broadcast %cst_11 : f32 to vector<2x64xf32>
    %15 = arith.maximumf %13, %14 : vector<2x64xf32>
    %16 = arith.truncf %15 : vector<2x64xf32> to vector<2x64xbf16>
    %c0_12 = arith.constant 0 : index
    %c0_13 = arith.constant 0 : index
    %17 = vector.load %arg5[%c0_12, %c0_13] : memref<64x128xbf16, #tpu.memory_space<vmem>>, vector<64x128xbf16>
    %cst_14 = arith.constant dense<0.000000e+00> : vector<2x128xf32>
    %18 = tpu.matmul %16, %17, %cst_14 {dimension_numbers = #tpu.dot_dimension_numbers<[1], [0], [0], [1], [0, 0, 1, 1], [], []>} : vector<2x64xbf16>, vector<64x128xbf16>, vector<2x128xf32> -> vector<2x128xf32>
    %c0_15 = arith.constant 0 : index
    %c0_16 = arith.constant 0 : index
    %19 = vector.load %arg6[%c0_15, %c0_16] : memref<1x128xf32, #tpu.memory_space<vmem>>, vector<1x128xf32>
    %20 = vector.broadcast %19 : vector<1x128xf32> to vector<2x128xf32>
    %21 = arith.addf %18, %20 : vector<2x128xf32>
    %c0_17 = arith.constant 0 : index
    %c0_18 = arith.constant 0 : index
    %22 = vector.load %arg7[%c0_17, %c0_18] : memref<2x128xf32, #tpu.memory_space<vmem>>, vector<2x128xf32>
    tpu.vector_store %arg7[%c0_17, %c0_18], %21 {strides = array<i32>} : memref<2x128xf32, #tpu.memory_space<vmem>>, vector<2x128xf32>,
    return
  }
}

</mosaic_0001>

<bundles_post_ra>
// kernel: generalized_rcnn_forward.5
= control target key start
LH: loop header
LB: loop body
LE: loop exit
PB: predicated region body
PF: predicated region fallthrough
CT: control target
= control target key end

     0   :  { %v342_v0 = vmov 0.0   ;;  %vm343_vm0 = vmmov 0   ;;  %vm51_vm1 = vcmask 261120   ;;  %vm136_vm2 = vcmask 523264   ;;  %s434_s1 = inlined_call_operand.vmem [shape: bf16[32,64], index: 1, kind: input, shape index: {}]   ;;  %s435_s3 = inlined_call_operand.vmem [shape: bf16[64,64], index: 3, kind: input, shape index: {}]   ;;  %s436_s0 = inlined_call_operand.vmem [shape: bf16[2,32], index: 0, kind: input, shape index: {}]   ;;  %s437_s5 = inlined_call_operand.vmem [shape: bf16[64,128], index: 5, kind: input, shape index: {}]   ;;  %s438_s2 = inlined_call_operand.vmem [shape: f32[1,64], index: 2, kind: input, shape index: {}]   ;;  %s439_s4 = inlined_call_operand.vmem [shape: f32[1,64], index: 4, kind: input, shape index: {}]   ;;  %s440_s6 = inlined_call_operand.vmem [shape: f32[1,128], index: 6, kind: input, shape index: {}]   ;;  %s441_s7 = inlined_call_operand.vmem [shape: f32[2,128], index: 7, kind: output, shape index: {}]  }
   0x1   :  { %298 = vmatprep.subr.bf16.mxu0 %v342_v0  ;;  %v332_v1 = vld [vmem:[%s434_s1] sm:$0xff]   ;;  %302 = vmatprep.mubr.msk.bf16.mxu0 %vm343_vm0, %v342_v0  ;;  %v333_v2 = vld [vmem:[%s434_s1 + $0x8] sm:$0xff]   ;;  %v336_v6 = vld [vmem:[%s435_s3 + $0x10] sm:$0xff]  }
   0x2   :  { %306 = vmatprep.subr.bf16.mxu1 %v342_v0  ;;  %314 = vmatprep.mubr.msk.bf16.mxu1 %vm343_vm0, %v342_v0  ;;  %v334_v3 = vld [vmem:[%s435_s3] sm:$0xff]   ;;  %v335_v4 = vld [vmem:[%s435_s3 + $0x8] sm:$0xff]   ;;  %v337_v7 = vld [vmem:[%s435_s3 + $0x18] sm:$0xff]  }
   0x3   :  { %299 = vmatpush3.bf16.msra.mxu0 %v332_v1  ;;  %307 = vmatpush3.bf16.msra.mxu1 %v334_v3  ;;  %v27_v5 = vld [vmem:[%s436_s0] sm:$0x1]  ;;  %v339_v9 = vld [vmem:[%s437_s5 + $0x8] sm:$0xff]   ;;  %v340_v18 = vld [vmem:[%s437_s5 + $0x10] sm:$0xff]  }
   0x4   :  { %300 = vmatprep.subr.bf16.mxu0 %v342_v0  ;;  %308 = vmatprep.subr.bf16.mxu1 %v342_v0  ;;  %v338_v8 = vld [vmem:[%s437_s5] sm:$0xff]   ;;  %v341_v19 = vld [vmem:[%s437_s5 + $0x18] sm:$0xff]  }
   0x5   :  { %v269_v10 = vld [vmem:[%s438_s2] ss:$0 sm:$0xff] }
   0x6   :  { %v273_v20 = vld [vmem:[%s439_s4] ss:$0 sm:$0xff] }
   0x7   :  { %301 = vmatpush3.bf16.msra.mxu0 %v333_v2  ;;  %309 = vmatpush3.bf16.msra.mxu1 %v335_v4  ;;  %v279_v28 = vld [vmem:[%s440_s6] ss:$0 sm:$0xff] }
   0x8   :  { %318 = vmatprep.subr.bf16.mxu0 %v342_v0  ;;  %310 = vmatprep.subr.bf16.mxu1 %v342_v0 }
   0xa   :  { %303 = vmatmul.mubr.msk.bf16.vlgmr.msra.gmra.mrb[0].mxu0 %vm51_vm1, %v27_v5 }
   0xb   :  { %326 = vmatprep.mubr.msk.bf16.mxu0 %vm343_vm0, %v342_v0  ;;  %311 = vmatpush3.bf16.msra.mxu1 %v336_v6 }
   0xc   :  { %312 = vmatprep.subr.bf16.mxu1 %v342_v0  ;;  %319 = vmatpush3.bf16.msra.mxu0 %v338_v8 }
   0xd   :  { %320 = vmatprep.subr.bf16.mxu0 %v342_v0 }
   0xf   :  { %313 = vmatpush3.bf16.msra.mxu1 %v337_v7 }
  0x10   :  { %321 = vmatpush3.bf16.msra.mxu0 %v339_v9 }
  0x11   :  { %322 = vmatprep.subr.bf16.mxu0 %v342_v0 }
  0x14   :  { %323 = vmatpush3.bf16.msra.mxu0 %v340_v18 }
  0x15   :  { %324 = vmatprep.subr.bf16.mxu0 %v342_v0 }
  0x18   :  { %325 = vmatpush3.bf16.msra.mxu0 %v341_v19 }
  0xdd   :  { %v89_v11 = vpop.f32.mrb[0].mxu0 }
  0xde   :  { %v90_v12 = vadd.f32 %v269_v10, %v89_v11  ;;  %v304_v13 = vpop.f32.mrb[1].mxu0 }
  0xdf   :  { %v92_v14 = vpop.f32.mrb[2].mxu0 }
  0xe0   :  { %v95_v15 = vmax.f32 %v90_v12, 0.0  ;;  %v305_v16 = vpop.f32.mrb[3].mxu0 }
  0xe2   :  { %v96_v17 = vpack.c.bf16 %v95_v15, %v95_v15 }
  0xe4   :  { %315 = vmatmul.mubr.msk.bf16.vlgmr.msra.gmra.mrb[0].mxu1 %vm136_vm2, %v96_v17 }
 0x1b7   :  { %v174_v21 = vpop.f32.mrb[0].mxu1 }
 0x1b8   :  { %v175_v22 = vadd.f32 %v273_v20, %v174_v21  ;;  %v316_v23 = vpop.f32.mrb[1].mxu1 }
 0x1b9   :  { %v177_v24 = vpop.f32.mrb[2].mxu1 }
 0x1ba   :  { %v180_v25 = vmax.f32 %v175_v22, 0.0  ;;  %v317_v26 = vpop.f32.mrb[3].mxu1 }
 0x1bc   :  { %v181_v27 = vpack.c.bf16 %v180_v25, %v180_v25 }
 0x1be   :  { %327 = vmatmul.mubr.msk.bf16.vlgmr.msra.gmra.mrb[4].mxu0 %vm136_vm2, %v181_v27 }
 0x291   :  { %v258_v29 = vpop.f32.mrb[4].mxu0 }
 0x292   :  { %v259_v30 = vadd.f32 %v279_v28, %v258_v29  ;;  %v328_v31 = vpop.f32.mrb[5].mxu0 }
 0x293   :  { %v261_v32 = vpop.f32.mrb[6].mxu0 }
 0x294   :  { %264 = vst [vmem:[%s441_s7] sm:$0x3] %v259_v30  ;;  %v329_v33 = vpop.f32.mrb[7].mxu0 }

// kernel: generalized_rcnn_forward.4
= control target key start
LH: loop header
LB: loop body
LE: loop exit
PB: predicated region body
PF: predicated region fallthrough
CT: control target
= control target key end

     0   :  { %s3027_s21 = smov 0   ;;  %s3029_s22 = smov 0   ;;  %s3888_s0 = inlined_call_operand.vmem [shape: bf16[2,4,64,32], index: 0, kind: input, shape index: {}]   ;;  %s3889_s1 = inlined_call_operand.vmem [shape: f32[4,64,1], index: 1, kind: input, shape index: {}]   ;;  %s3890_s2 = inlined_call_operand.vmem [shape: bf16[4,32,32], index: 2, kind: input, shape index: {}]   ;;  %s3891_s3 = inlined_call_operand.vmem [shape: f32[4,1,32], index: 3, kind: input, shape index: {}]   ;;  %s3892_s4 = inlined_call_operand.vmem [shape: bf16[32,8], index: 4, kind: input, shape index: {}]   ;;  %s3893_s5 = inlined_call_operand.vmem [shape: f32[1,8], index: 5, kind: input, shape index: {}]   ;;  %s3894_s6 = inlined_call_operand.vmem [shape: bf16[8,32], index: 6, kind: input, shape index: {}]   ;;  %s3895_s7 = inlined_call_operand.vmem [shape: f32[1,32], index: 7, kind: input, shape index: {}]   ;;  %s3896_s8 = inlined_call_operand.vmem [shape: bf16[288,32], index: 8, kind: input, shape index: {}]   ;;  %s3897_s9 = inlined_call_operand.vmem [shape: f32[1,32], index: 9, kind: input, shape index: {}]   ;;  %s3898_s10 = inlined_call_operand.vmem [shape: bf16[32,128], index: 10, kind: input, shape index: {}]   ;;  %s3899_s11 = inlined_call_operand.vmem [shape: f32[1,128], index: 11, kind: input, shape index: {}]   ;;  %s3900_s12 = inlined_call_operand.vmem [shape: f32[2,4,1,32], index: 12, kind: output, shape index: {}]  }
   0x1   :  { %s3031_s23 = smov 0   ;;  %s3033_s24 = smov 0  }
   0x2   :  { %s3035_s25 = smov 0  }
   0x3 LB: > { %3903 = sst [smem:[#allocation3_spill]] %s2950_s24  ;;  %s31_s26 = sadd.s32 1, %s2946_s23  ;;  %s2954_s25 = sphi %s3035_s25, %s22_s25   ;;  %s2950_s24 = sphi %s3033_s24, %s3927_s24   ;;  %s2946_s23 = sphi %s3031_s23, %s3929_s23   ;;  %s2942_s22 = sphi %s3029_s22, %s3925_s22   ;;  %s2938_s21 = sphi %s3027_s21, %s3928_s21  }
   0x4   : > { %s34_s27 = sadd.s32 1, %s2950_s24  ;;  %p32_p0 = scmp.ge.s32.totalorder %s31_s26, 4 }
   0x5   : > { %p2547_p1 = scmp.ge.s32.totalorder %s2954_s25, 1  ;;  %p410_p2 = scmp.lt.s32.totalorder %s2954_s25, 9 }
   0x6   : > { %s3931_s26 = smov (%p32_p0, %s31_s26), 0  ;;  %s3933_s27 = smov (!%p32_p0, %s34_s27), %s2950_s24 }
   0x7   : > { %3904 = sst [smem:[#allocation4_spill]] %s3931_s26  ;;  %p411_p3 = pnand %p2547_p1, %p410_p2 }
   0x8   : > { %p36_p4 = scmp.ge.s32.totalorder %s3933_s27, 2 }
   0x9   : > { %414 = sbr.rel (%p411_p3) target bundleno = 1633 (0x661), region = 68 }
   0xa   : > { %s3935_s27 = smov (%p36_p4, %s3933_s27), 0 }
   0xb   : > { %3905 = sst [smem:[#allocation5_spill]] %s3935_s27 }
  0x10   : > { %p473_p5 = scmp.lt.s32.totalorder %s2938_s21, 3  ;;  %p471_p6 = scmp.lt.s32.totalorder %s2942_s22, 1  ;;  %v2956_v0 = vmov 0   ;;  %vm694_vm0 = vcmask 7168   ;;  %vm560_vm1 = vcmask 261120   ;;  %v2849_v36 = vld [vmem:[%s3892_s4] sm:$0xff]  }
  0x11   : > { %2841 = vset.pattern.permute.xlu0 %v2956_v0  ;;  %2842 = vset.pattern.permute.xlu1 %v2956_v0  ;;  %v2957_v37 = vmov 0.0   ;;  %vm2958_vm2 = vmmov 0   ;;  %v2850_v38 = vld [vmem:[%s3892_s4 + $0x8] sm:$0xff]   ;;  %vm813_vm3 = vcmask 1043456   ;;  %vm809_vm4 = vcmask 64512   ;;  %s2960_s19 = smov 96  }
  0x12   : > { %s3937_s21 = smov (!%p473_p5, %s2938_s21), 3  ;;  %s3939_s22 = smov (!%p471_p6, %s2942_s22), 1  ;;  %2757 = vmatprep.subr.bf16.mxu1 %v2957_v37  ;;  %2761 = vmatprep.mubr.msk.bf16.mxu1 %vm2958_vm2, %v2957_v37  ;;  %vm879_vm5 = vcmask 257024   ;;  %vm881_vm6 = vcmask 253952   ;;  %vm1003_vm7 = vsmask.f32 7938 }
  0x13   : > { %s2673_s28 = sshll.u32 %s3937_s21, 4  ;;  %s2548_s29 = sshll.u32 %s3937_s21, 3  ;;  %2758 = vmatpush3.bf16.msra.mxu1 %v2849_v36  ;;  %885 = vst.msk [vmem:[#allocation2 + $0x10] sm:$0xf] %vm879_vm5, %v2956_v0  ;;  %887 = vst.msk [vmem:[#allocation2 + $0x18] sm:$0xf] %vm879_vm5, %v2956_v0 }
  0x14   : > { %s489_s14 = scalar_lea.vmem %s3890_s2, %s2673_s28  ;;  %s2549_s15 = sshll.u32 %s3939_s22, 5  ;;  %2759 = vmatprep.subr.bf16.mxu1 %v2957_v37  ;;  %880 = vst.msk [vmem:[#allocation2] sm:$0xf] %vm879_vm5, %v2956_v0  ;;  %883 = vst.msk [vmem:[#allocation2 + $0x8] sm:$0xf] %vm879_vm5, %v2956_v0  ;;  %vm1211_vm11 = vcmask 1042432  }
  0x15   : > { %v2843_v1 = vld [vmem:[%s489_s14] sm:$0xff]   ;;  %s477_s16 = sadd.s32 %s2549_s15, %s2548_s29  ;;  %s2672_s17 = sshll.u32 %s3937_s21, 6  ;;  %v2844_v2 = vld [vmem:[%s489_s14 + $0x8] sm:$0xff]   ;;  %889 = vst.msk [vmem:[#allocation2 + $0x20] sm:$0xf] %vm879_vm5, %v2956_v0  ;;  %vm3315_vm9 = vmand %vm879_vm5, %vm1003_vm7  ;;  %vm1212_vm12 = vcmask 1046532  }
  0x16   : > { %s2550_s18 = sshll.u32 %s477_s16, 2  ;;  %s3073_s27 = scalar_lea.vmem %s3889_s1, %s2672_s17  ;;  %2745 = vmatprep.subr.bf16.mxu0 %v2843_v1  ;;  %891 = vst.msk [vmem:[#allocation2 + $0x28] sm:$0xf] %vm879_vm5, %v2956_v0  ;;  %893 = vst.msk [vmem:[#allocation2 + $0x30] sm:$0xf] %vm879_vm5, %v2956_v0 }
  0x17   : > { %s3078_s28 = scalar_lea.vmem %s3888_s0, %s2550_s18  ;;  %v509_v3 = vld [vmem:[%s3073_s27] sm:$0xff]  ;;  %v510_v4 = vld [vmem:[%s3073_s27 + $0x8] sm:$0xff]  ;;  %v511_v5 = vld [vmem:[%s3073_s27 + $0x10] sm:$0xff]  ;;  %2746 = vmatpush3.bf16.msra.mxu0 %v2843_v1  ;;  %2760 = vmatpush3.bf16.msra.mxu1 %v2850_v38  ;;  %s492_s15 = scalar_lea.vmem %s3891_s3, %s3937_s21  ;;  %895 = vst.msk [vmem:[#allocation2 + $0x38] sm:$0xf] %vm879_vm5, %v2956_v0 }
  0x18   : > { %v2845_v6 = vld [vmem:[%s3078_s28] sm:$0xff]   ;;  %648 = vperm.xlu0 %2841, %v509_v3   ;;  %v695_v7 = vsel %vm694_vm0, %v509_v3, 0.0  ;;  %2747 = vmatprep.subr.bf16.mxu0 %v2844_v2  ;;  %v696_v8 = vsel %vm694_vm0, %v510_v4, 0.0  ;;  %v2846_v9 = vld [vmem:[%s3078_s28 + $0x8] sm:$0xff]   ;;  %v698_v11 = vsel %vm694_vm0, %v511_v5, 0.0  ;;  %v2847_v12 = vld [vmem:[%s3078_s28 + $0x10] sm:$0xff]  }
  0x19   : > { %658 = vperm.xlu1 %2842, %v511_v5   ;;  %2749 = vmatprep.mubr.msk.bf16.mxu0 %vm560_vm1, %v2845_v6  ;;  %v697_v10 = vadd.f32 %v696_v8, %v695_v7  ;;  %v513_v14 = vld [vmem:[%s3073_s27 + $0x20] sm:$0xff]  ;;  %v512_v15 = vld [vmem:[%s3073_s27 + $0x18] sm:$0xff]  ;;  %v515_v16 = vld [vmem:[%s3073_s27 + $0x30] sm:$0xff]  ;;  %897 = vst.msk [vmem:[#allocation2 + $0x40] sm:$0xf] %vm879_vm5, %v2956_v0  ;;  %s2959_s18 = smov 64  }
  0x1a   : > { %v702_v17 = vsel %vm694_vm0, %v513_v14, 0.0  ;;  %v700_v18 = vsel %vm694_vm0, %v512_v15, 0.0  ;;  %v706_v19 = vsel %vm694_vm0, %v515_v16, 0.0  ;;  %v514_v20 = vld [vmem:[%s3073_s27 + $0x28] sm:$0xff]  ;;  %v516_v21 = vld [vmem:[%s3073_s27 + $0x38] sm:$0xff]  ;;  %2765 = vmatprep.subr.bf16.mxu1 %v2957_v37  ;;  %vm3395_vm15 = vmor %vm1211_vm11, %vm1212_vm12  ;;  %s2961_s17 = smov 32  }
  0x1b   : > { %2748 = vmatpush3.bf16.msra.mxu0 %v2844_v2  ;;  %v699_v13 = vadd.f32 %v698_v11, %v697_v10  ;;  %v704_v23 = vsel %vm694_vm0, %v514_v20, 0.0  ;;  %v708_v24 = vsel %vm694_vm0, %v516_v21, 0.0  ;;  %v2848_v26 = vld [vmem:[%s3078_s28 + $0x18] sm:$0xff]   ;;  %v2556_v40 = vld [vmem:[%s492_s15] ss:$0 sm:$0xff] }
  0x1c   : > { %653 = vperm.xlu0 %2841, %v510_v4   ;;  %899 = vst.msk [vmem:[#allocation2 + $0x48] sm:$0xf] %vm879_vm5, %v2956_v0  ;;  %vm1009_vm8 = vsmask.f32 256  ;;  %vm1072_vm13 = vsmask.f32 3328 }
  0x1d   : > { %663 = vperm.xlu1 %2842, %v512_v15   ;;  %v701_v22 = vadd.f32 %v700_v18, %v699_v13  ;;  %886 = vst.msk [vmem:[#allocation2 + $0x14] sm:$0x1] %vm881_vm6, %v2956_v0  ;;  %888 = vst.msk [vmem:[#allocation2 + $0x1c] sm:$0x1] %vm881_vm6, %v2956_v0  ;;  %vm1073_vm14 = vsmask.f32 7440 }
  0x1e   : > { %2750 = vmatmul.mubr.msk.bf16.vlgmr.msra.gmra.mrb[0].mxu0 %vm560_vm1, %v2846_v9  ;;  %882 = vst.msk [vmem:[#allocation2 + $0x4] sm:$0x1] %vm881_vm6, %v2956_v0  ;;  %884 = vst.msk [vmem:[#allocation2 + $0xc] sm:$0x1] %vm881_vm6, %v2956_v0 }
  0x1f   : > { %2753 = vmatprep.mubr.msk.bf16.mxu0 %vm560_vm1, %v2847_v12  ;;  %v703_v25 = vadd.f32 %v702_v17, %v701_v22  ;;  %890 = vst.msk [vmem:[#allocation2 + $0x24] sm:$0x1] %vm881_vm6, %v2956_v0  ;;  %892 = vst.msk [vmem:[#allocation2 + $0x2c] sm:$0x1] %vm881_vm6, %v2956_v0 }
  0x20   : > { %668 = vperm.xlu0 %2841, %v513_v14   ;;  %894 = vst.msk [vmem:[#allocation2 + $0x34] sm:$0x1] %vm881_vm6, %v2956_v0  ;;  %896 = vst.msk [vmem:[#allocation2 + $0x3c] sm:$0x1] %vm881_vm6, %v2956_v0 }
  0x21   : > { %673 = vperm.xlu1 %2842, %v514_v20   ;;  %v705_v27 = vadd.f32 %v704_v23, %v703_v25  ;;  %898 = vst.msk [vmem:[#allocation2 + $0x44] sm:$0x1] %vm881_vm6, %v2956_v0  ;;  %900 = vst.msk [vmem:[#allocation2 + $0x4c] sm:$0x1] %vm881_vm6, %v2956_v0  ;;  %v2863_v0 = vld [vmem:[%s3896_s8 + $0x48] sm:$0xff]  }
  0x22   : > { %vm3323_vm10 = vmand %vm881_vm6, %vm1009_vm8 }
  0x23   : > { %v707_v28 = vadd.f32 %v706_v19, %v705_v27 }
  0x24   : > { %678 = vperm.xlu0 %2841, %v515_v16  }
  0x25   : > { %683 = vperm.xlu1 %2842, %v516_v21   ;;  %v709_v29 = vadd.f32 %v708_v24, %v707_v28 }
  0x26   : > { %2754 = vmatmul.mubr.msk.bf16.gmra.mrb[4].mxu0 %vm560_vm1, %v2848_v26 }
  0x27   : > { %v710_v30 = vrot.slane %v709_v29, 4 }
  0x29   : > { %v711_v31 = vadd.f32 %v710_v30, %v709_v29 }
  0x2b   : > { %v712_v32 = vrot.slane %v711_v31, 2 }
  0x2d   : > { %v713_v33 = vadd.f32 %v712_v32, %v711_v31 }
  0x2f   : > { %v714_v34 = vrot.slane %v713_v33, 1 }
  0x31   : > { %v715_v35 = vadd.f32 %v714_v34, %v713_v33 }
  0x33   : > { %739 = vperm.xlu0 %2841, %v715_v35  }
  0x97   : > { %v649_v39 = vpop.permute.xlu0 %648 }
  0x98   : > { %v659_v41 = vpop.permute.xlu1 %658 }
  0x9b   : > { %v654_v47 = vpop.permute.xlu0 %653 }
  0x9c   : > { %v664_v53 = vpop.permute.xlu1 %663 }
  0x9f   : > { %v669_v60 = vpop.permute.xlu0 %668 }
  0xa0   : > { %v674_v5 = vpop.permute.xlu1 %673 }
  0xa3   : > { %v679_v18 = vpop.permute.xlu0 %678 }
  0xa4   : > { %v684_v23 = vpop.permute.xlu1 %683 }
  0xb2   : > { %v740_v31 = vpop.permute.xlu0 %739 }
  0xb3   : > { %2883 = vrcp.f32 %v740_v31 }
  0xf1   : > { %v2751_v42 = vpop.f32.mrb[0].mxu0 }
  0xf2   : > { %v616_v43 = vadd.f32 %v2751_v42, %v2556_v40  ;;  %v607_v44 = vpop.f32.mrb[1].mxu0 }
  0xf3   : > { %v608_v45 = vadd.f32 %v2556_v40, %v607_v44  ;;  %v2752_v46 = vpop.f32.mrb[2].mxu0 }
  0xf4   : > { %v619_v48 = vadd.f32 %v2752_v46, %v2556_v40  ;;  %v610_v49 = vpop.f32.mrb[3].mxu0  ;;  %v640_v50 = vmax.f32 %v616_v43, 0.0 }
  0xf5   : > { %v638_v51 = vmax.f32 %v608_v45, 0.0  ;;  %v611_v52 = vadd.f32 %v2556_v40, %v610_v49  ;;  %v749_v45 = vld [vmem:[%s3893_s5] sm:$0x1] }
  0xf6   : > { %v641_v55 = vmax.f32 %v619_v48, 0.0  ;;  %v3121_v57 = vmul.f32 %v659_v41, %v640_v50  ;;  %v807_v41 = vld [vmem:[%s3894_s6] sm:$0xf] }
  0xf7   : > { %v3119_v54 = vmul.f32 %v649_v39, %v638_v51  ;;  %v639_v56 = vmax.f32 %v611_v52, 0.0  ;;  %v815_v44 = vsel %vm813_vm3, %v807_v41, 0  ;;  %vm1807_vm3 = vcmask 523264  }
  0xf8   : > { %v3127_v1 = vmul.f32 %v664_v53, %v641_v55  ;;  %v719_v9 = vsel %vm560_vm1, %v3121_v57, 0.0  ;;  %v2852_v53 = vld [vmem:[%s3896_s8 + $0x88] sm:$0xff]   ;;  %v808_v55 = vld [vmem:[%s3895_s7] sm:$0x1] }
  0xf9   : > { %v3123_v58 = vmul.f32 %v654_v47, %v639_v56  ;;  %v2755_v59 = vpop.f32.mrb[4].mxu0  ;;  %v716_v63 = vsel %vm560_vm1, %v3119_v54, 0.0  ;;  %v2861_v56 = vld [vmem:[%s3896_s8 + $0x40] sm:$0xff]  }
  0xfa   : > { %v632_v61 = vadd.f32 %v2755_v59, %v2556_v40  ;;  %v623_v62 = vpop.f32.mrb[5].mxu0  ;;  %v721_v14 = vsel %vm560_vm1, %v3127_v1, 0.0  ;;  %v2862_v59 = vld [vmem:[%s3896_s8] sm:$0xff]   ;;  %2693 = vmatprep.subr.bf16.mxu0 %v2861_v56 }
  0xfb   : > { %v717_v2 = vsel %vm560_vm1, %v3123_v58, 0.0  ;;  %v624_v3 = vadd.f32 %v2556_v40, %v623_v62  ;;  %v2756_v4 = vpop.f32.mrb[6].mxu0  ;;  %2694 = vmatpush3.bf16.msra.mxu0 %v2862_v59 }
  0xfc   : > { %v718_v6 = vadd.f32 %v717_v2, %v716_v63  ;;  %v635_v7 = vadd.f32 %v2756_v4, %v2556_v40  ;;  %v626_v8 = vpop.f32.mrb[7].mxu0  ;;  %v644_v10 = vmax.f32 %v632_v61, 0.0  ;;  %v2864_v2 = vld [vmem:[%s3896_s8 + $0x8] sm:$0xff]   ;;  %2695 = vmatprep.subr.bf16.mxu0 %v2863_v0 }
  0xfd   : > { %v642_v11 = vmax.f32 %v624_v3, 0.0  ;;  %v627_v12 = vadd.f32 %v2556_v40, %v626_v8  ;;  %v2884_v40 = vpop.eup %2883 }
  0xfe   : > { %v720_v13 = vadd.f32 %v719_v9, %v718_v6  ;;  %v645_v16 = vmax.f32 %v635_v7, 0.0  ;;  %v3137_v20 = vmul.f32 %v679_v18, %v644_v10  ;;  %v2866_v6 = vld [vmem:[%s3896_s8 + $0x10] sm:$0xff]   ;;  %v863_v9 = vlaneseq  ;;  %v1056_v10 = vld [vmem:[#allocation2] sm:$0xf] }
  0xff   : > { %v3135_v15 = vmul.f32 %v669_v60, %v642_v11  ;;  %v643_v17 = vmax.f32 %v627_v12, 0.0  ;;  %2696 = vmatpush3.bf16.msra.mxu0 %v2864_v2  ;;  %v3227_v11 = vld [vmem:[#allocation2 + $0x48] sm:$0xf] }
 0x100   : > { %v722_v19 = vadd.f32 %v721_v14, %v720_v13  ;;  %v3143_v25 = vmul.f32 %v684_v23, %v645_v16  ;;  %v727_v28 = vsel %vm560_vm1, %v3137_v20, 0.0  ;;  %v864_v12 = vshrl.u32 %v863_v9, 7  ;;  %v3235_v23 = vld [vmem:[#allocation2 + $0x4c] sm:$0x1] }
 0x101   : > { %v723_v21 = vsel %vm560_vm1, %v3135_v15, 0.0  ;;  %v3141_v22 = vmul.f32 %v674_v5, %v643_v17  ;;  %v2865_v5 = vld [vmem:[%s3896_s8 + $0x50] sm:$0xff]   ;;  %v1076_v13 = vshrl.u32 %v1056_v10, 16  ;;  %v1079_v14 = vshll.u32 %v1056_v10, 16 }
 0x102   : > { %v724_v24 = vadd.f32 %v723_v21, %v722_v19  ;;  %v729_v30 = vsel %vm560_vm1, %v3143_v25, 0.0  ;;  %2697 = vmatprep.subr.bf16.mxu0 %v2865_v5  ;;  %v1546_v16 = vshrl.u32 %v3227_v11, 16  ;;  %v1549_v17 = vshll.u32 %v3227_v11, 16  ;;  %v3231_v19 = vld [vmem:[#allocation2 + $0x4] sm:$0x1] }
 0x103   : > { %v725_v26 = vsel %vm560_vm1, %v3141_v22, 0.0  ;;  %2698 = vmatpush3.bf16.msra.mxu0 %v2866_v6  ;;  %v865_v18 = vsub.s32 0, %v864_v12  ;;  %v3233_v21 = vld [vmem:[#allocation2] sm:$0xe] }
 0x104   : > { %v726_v27 = vadd.f32 %v725_v26, %v724_v24  ;;  %v3237_v24 = vld [vmem:[#allocation2 + $0x48] sm:$0xe]  ;;  %v3239_v26 = vrot.slane %v1076_v13, 4  ;;  %v2580_v31 = vrot.slane %v3233_v21, 9 }
 0x106   : > { %v728_v29 = vadd.f32 %v727_v28, %v726_v27  ;;  %v3241_v27 = vrot.slane %v1079_v14, 5  ;;  %v3243_v28 = vrot.slane %v1546_v16, 4  ;;  %v1029_v14 = vld [vmem:[#allocation2 + $0x24] sm:$0x1] }
 0x108   : > { %v730_v32 = vadd.f32 %v729_v30, %v728_v29  ;;  %v3245_v29 = vrot.slane %v1549_v17, 5 }
 0x10a   : > { %v731_v33 = vrot.slane %v730_v32, 4 }
 0x10c   : > { %v732_v34 = vadd.f32 %v731_v33, %v730_v32  ;;  %v1216_v33 = vrot.slane %v3231_v19, 5 }
 0x10e   : > { %v733_v35 = vrot.slane %v732_v34, 2 }
 0x110   : > { %v734_v36 = vadd.f32 %v733_v35, %v732_v34  ;;  %v2603_v34 = vrot.slane %v3237_v24, 9  ;;  %v1613_v35 = vrot.slane %v3235_v23, 5 }
 0x112   : > { %v735_v38 = vrot.slane %v734_v36, 1 }
 0x114   : > { %v736_v39 = vadd.f32 %v735_v38, %v734_v36  ;;  %v1082_v36 = vor.u32 %v3241_v27, %v3239_v26  ;;  %v1085_v38 = vshll.u32 %v3231_v19, 16  ;;  %v3437_v19 = vsel %vm3395_vm15, %v2603_v34, %v1613_v35 }
 0x116   : > { %v743_v42 = vmul.f32 %v2884_v40, %v736_v39  ;;  %v1552_v39 = vor.u32 %v3245_v29, %v3243_v28  ;;  %v1555_v40 = vshll.u32 %v3235_v23, 16 }
 0x118   : > { %v744_v43 = vpack.c.bf16 %v743_v42, %v743_v42 }
 0x11a   : > { %2762 = vmatmul.mubr.msk.bf16.vlgmr.msra.gmra.mrb[0].mxu1 %vm560_vm1, %v744_v43 }
 0x11b   : > { %2766 = vmatpush3.bf16.msra.mxu1 %v815_v44  ;;  %2767 = vmatprep.mubr.msk.bf16.mxu1 %vm2958_vm2, %v2957_v37  ;;  %v2851_v37 = vld [vmem:[%s3896_s8 + $0x80] sm:$0xff]   ;;  %vm3406_vm2 = vmor %vm1072_vm13, %vm1073_vm14 }
 0x11c   : > { %2771 = vmatprep.subr.bf16.mxu1 %v2851_v37 }
 0x1ed   : > { %v799_v46 = vpop.f32.mrb[0].mxu1 }
 0x1ee   : > { %v800_v47 = vadd.f32 %v799_v46, %v749_v45  ;;  %v2763_v48 = vpop.f32.mrb[1].mxu1 }
 0x1ef   : > { %v802_v49 = vpop.f32.mrb[2].mxu1 }
 0x1f0   : > { %v805_v50 = vmax.f32 %v800_v47, 0.0  ;;  %v2764_v51 = vpop.f32.mrb[3].mxu1 }
 0x1f2   : > { %v806_v52 = vpack.c.bf16 %v805_v50, %v805_v50 }
 0x1f4   : > { %2768 = vmatmul.mubr.msk.bf16.vlgmr.msra.gmra.mrb[4].mxu1 %vm809_vm4, %v806_v52  ;;  %vm1816_vm4 = vcmask 785408  }
 0x1f5   : > { %2772 = vmatpush3.bf16.msra.mxu1 %v2851_v37 }
 0x1f6   : > { %2773 = vmatprep.subr.bf16.mxu1 %v2852_v53 }
 0x1f9   : > { %2774 = vmatpush3.bf16.msra.mxu1 %v2852_v53 }
 0x2c7   : > { %v851_v60 = vpop.f32.mrb[4].mxu1 }
 0x2c8   : > { %v852_v61 = vadd.f32 %v851_v60, %v808_v55  ;;  %v2769_v62 = vpop.f32.mrb[5].mxu1 }
 0x2c9   : > { %v854_v63 = vpop.f32.mrb[6].mxu1  ;;  %v1014_v62 = vld [vmem:[#allocation2 + $0x10] sm:$0xf] }
 0x2ca   : > { %v2571_v3 = vmul.f32 -1.442695, %v852_v61  ;;  %v2770_v4 = vpop.f32.mrb[7].mxu1  ;;  %v1017_v63 = vld [vmem:[#allocation2 + $0x14] sm:$0x1] }
 0x2cc   : > { %2885 = vpow2.f32 %v2571_v3 }
 0x2d6   : > { %v2886_v7 = vpop.eup %2885 }
 0x2d7   : > { %v860_v8 = vadd.f32 1.0, %v2886_v7  ;;  %v1026_v7 = vld [vmem:[#allocation2 + $0x20] sm:$0xf] }
 0x2d9   : > { %2887 = vrcp.f32 %v860_v8 }
 0x2e3   : > { %v2888_v30 = vpop.eup %2887 }
 0x2e4   : > { %v866_v32 = vrot.slane %v2888_v30, %v865_v18 }
 0x2e6   : > { %v3258_v41 = vmul.f32 %v866_v32, %v3119_v54  ;;  %v3261_v42 = vmul.f32 %v866_v32, %v3123_v58  ;;  %v3264_v43 = vmul.f32 %v866_v32, %v3121_v57  ;;  %v3267_v44 = vmul.f32 %v866_v32, %v3127_v1 }
 0x2e7   : > { %v3270_v45 = vmul.f32 %v866_v32, %v3135_v15  ;;  %v3273_v46 = vmul.f32 %v866_v32, %v3141_v22  ;;  %v3276_v47 = vmul.f32 %v866_v32, %v3137_v20  ;;  %v3279_v54 = vmul.f32 %v866_v32, %v3143_v25  ;;  %v1032_v32 = vld [vmem:[#allocation2 + $0x28] sm:$0xf] }
 0x2e8   : > { %v2677_v58 = vpack.c.bf16 %v3267_v44, %v3267_v44  ;;  %v2675_v57 = vpack.c.bf16 %v3261_v42, %v3261_v42  ;;  %v3287_v1 = vpack.c.bf16 %v3264_v43, %v3264_v43  ;;  %v3291_v15 = vpack.c.bf16 %v3258_v41, %v3258_v41 }
 0x2e9   : > { %3906 = vst [vmem:[#allocation6_spill] sm:$0xff] %v3276_v47  ;;  %v2678_v20 = vpack.c.bf16 %v3270_v45, %v3270_v45  ;;  %v3297_v22 = vpack.c.bf16 %v3273_v46, %v3273_v46  ;;  %v3301_v25 = vpack.c.bf16 %v3276_v47, %v3276_v47  ;;  %v3305_v48 = vpack.c.bf16 %v3279_v54, %v3279_v54 }
 0x2ea   : > { %v946_v49 = vshrl.u32 %v2677_v58, 16  ;;  %v949_v50 = vshll.u32 %v2677_v58, 16  ;;  %v930_v51 = vshrl.u32 %v2675_v57, 16  ;;  %v933_v52 = vshll.u32 %v2675_v57, 16  ;;  %v1035_v58 = vld [vmem:[#allocation2 + $0x2c] sm:$0x1] }
 0x2eb   : > { %v954_v37 = vshrl.u32 %v2678_v20, 16  ;;  %v957_v53 = vshll.u32 %v2678_v20, 16  ;;  %v962_v55 = vshrl.u32 %v3297_v22, 16  ;;  %v965_v56 = vshll.u32 %v3297_v22, 16 }
 0x2ec   : > { %v948_v59 = vrot.slane %v946_v49, 7  ;;  %v970_v0 = vshrl.u32 %v3301_v25, 16  ;;  %v973_v60 = vshll.u32 %v3301_v25, 16  ;;  %v978_v61 = vshrl.u32 %v3305_v48, 16 }
 0x2ed   : > { %v956_v2 = vrot.slane %v954_v37, 7  ;;  %v964_v3 = vrot.slane %v962_v55, 7  ;;  %v981_v4 = vshll.u32 %v3305_v48, 16  ;;  %v932_v5 = vrot.slane %v930_v51, 7  ;;  %v1005_v51 = vld [vmem:[#allocation2 + $0x8] sm:$0xf] }
 0x2ee   : > { %v951_v8 = vor.u32 %v949_v50, %v948_v59  ;;  %v952_v9 = vrot.slane %v948_v59, 4  ;;  %v972_v10 = vrot.slane %v970_v0, 7  ;;  %v3319_v12 = vrot.slane %v978_v61, 7  ;;  %v1020_v50 = vld [vmem:[#allocation2 + $0x18] sm:$0xf] }
 0x2ef   : > { %v959_v16 = vor.u32 %v957_v53, %v956_v2  ;;  %v960_v17 = vrot.slane %v956_v2, 4  ;;  %v935_v18 = vor.u32 %v933_v52, %v932_v5  ;;  %v936_v30 = vrot.slane %v932_v5, 4  ;;  %v1023_v37 = vld [vmem:[#allocation2 + $0x1c] sm:$0x1]  ;;  %v1041_v59 = vld [vmem:[#allocation2 + $0x34] sm:$0x1] }
 0x2f0   : > { %v938_v57 = vshrl.u32 %v3287_v1, 16  ;;  %v941_v20 = vshll.u32 %v3287_v1, 16  ;;  %v922_v22 = vshrl.u32 %v3291_v15, 16  ;;  %v925_v25 = vshll.u32 %v3291_v15, 16  ;;  %v1038_v1 = vld [vmem:[#allocation2 + $0x30] sm:$0xf] }
 0x2f1   : > { %v1015_v49 = vsel %vm3315_vm9, %v935_v18, %v1014_v62  ;;  %v1018_v52 = vsel %vm3323_vm10, %v936_v30, %v1017_v63  ;;  %v1027_v53 = vsel %vm3315_vm9, %v951_v8, %v1026_v7  ;;  %v1030_v55 = vsel %vm3323_vm10, %v952_v9, %v1029_v14  ;;  %v1044_v63 = vld [vmem:[#allocation2 + $0x38] sm:$0xf]  ;;  %v1047_v2 = vld [vmem:[#allocation2 + $0x3c] sm:$0x1]  ;;  %v1011_v14 = vld [vmem:[#allocation2 + $0xc] sm:$0x1] }
 0x2f2   : > { %v940_v0 = vrot.slane %v938_v57, 7  ;;  %1016 = vst [vmem:[#allocation2 + $0x10] sm:$0xf] %v1015_v49  ;;  %v924_v15 = vrot.slane %v922_v22, 7  ;;  %1019 = vst [vmem:[#allocation2 + $0x14] sm:$0x1] %v1018_v52  ;;  %v1033_v61 = vsel %vm3315_vm9, %v959_v16, %v1032_v32  ;;  %v1036_v62 = vsel %vm3323_vm10, %v960_v17, %v1035_v58 }
 0x2f3   : > { %1028 = vst [vmem:[#allocation2 + $0x20] sm:$0xf] %v1027_v53  ;;  %1031 = vst [vmem:[#allocation2 + $0x24] sm:$0x1] %v1030_v55  ;;  %v967_v5 = vor.u32 %v965_v56, %v964_v3  ;;  %v968_v7 = vrot.slane %v964_v3, 4  ;;  %v975_v8 = vor.u32 %v973_v60, %v972_v10  ;;  %v976_v9 = vrot.slane %v972_v10, 4 }
 0x2f4   : > { %1034 = vst [vmem:[#allocation2 + $0x28] sm:$0xf] %v1033_v61  ;;  %1037 = vst [vmem:[#allocation2 + $0x2c] sm:$0x1] %v1036_v62  ;;  %v2867_v18 = vld [vmem:[%s3896_s8 + $0x58] sm:$0xff]   ;;  %v943_v30 = vor.u32 %v941_v20, %v940_v0  ;;  %v944_v32 = vrot.slane %v940_v0, 4  ;;  %v927_v17 = vor.u32 %v925_v25, %v924_v15 }
 0x2f5   : > { %v2868_v16 = vld [vmem:[%s3896_s8 + $0x18] sm:$0xff]   ;;  %v928_v58 = vrot.slane %v924_v15, 4  ;;  %v1039_v57 = vsel %vm3315_vm9, %v967_v5, %v1038_v1  ;;  %v1042_v56 = vsel %vm3323_vm10, %v968_v7, %v1041_v59  ;;  %v1045_v60 = vsel %vm3315_vm9, %v975_v8, %v1044_v63  ;;  %2699 = vmatprep.subr.bf16.mxu0 %v2867_v18  ;;  %v1050_v49 = vld [vmem:[#allocation2 + $0x40] sm:$0xf]  ;;  %v1053_v52 = vld [vmem:[#allocation2 + $0x44] sm:$0x1] }
 0x2f6   : > { %v1048_v3 = vsel %vm3323_vm10, %v976_v9, %v1047_v2  ;;  %v1021_v10 = vsel %vm3315_vm9, %v943_v30, %v1020_v50  ;;  %v1006_v20 = vsel %vm3315_vm9, %v927_v17, %v1005_v51  ;;  %v1024_v22 = vsel %vm3323_vm10, %v944_v32, %v1023_v37  ;;  %1040 = vst [vmem:[#allocation2 + $0x30] sm:$0xf] %v1039_v57 }
 0x2f7   : > { %1043 = vst [vmem:[#allocation2 + $0x34] sm:$0x1] %v1042_v56  ;;  %1046 = vst [vmem:[#allocation2 + $0x38] sm:$0xf] %v1045_v60  ;;  %v1012_v25 = vsel %vm3323_vm10, %v928_v58, %v1011_v14  ;;  %2700 = vmatpush3.bf16.msra.mxu0 %v2868_v16  ;;  %v983_v50 = vor.u32 %v981_v4, %v3319_v12  ;;  %v984_v51 = vrot.slane %v3319_v12, 4  ;;  %v3372_v37 = vrot.slane %v1082_v36, 4 }
 0x2f8   : > { %1049 = vst [vmem:[#allocation2 + $0x3c] sm:$0x1] %v1048_v3  ;;  %1022 = vst [vmem:[#allocation2 + $0x18] sm:$0xf] %v1021_v10  ;;  %v3376_v53 = vrot.slane %v1085_v38, 5  ;;  %v3381_v55 = vrot.slane %v1552_v39, 4  ;;  %v3422_v18 = vsel %vm3395_vm15, %v2580_v31, %v1216_v33 }
 0x2f9   : > { %1007 = vst [vmem:[#allocation2 + $0x8] sm:$0xf] %v1006_v20  ;;  %1025 = vst [vmem:[#allocation2 + $0x1c] sm:$0x1] %v1024_v22  ;;  %v3385_v48 = vrot.slane %v1555_v40, 5  ;;  %v1051_v26 = vsel %vm3315_vm9, %v983_v50, %v1050_v49  ;;  %v1054_v27 = vsel %vm3323_vm10, %v984_v51, %v1053_v52  ;;  %v2869_v16 = vld [vmem:[%s3896_s8 + $0x60] sm:$0xff]  }
 0x2fa   : > { %1013 = vst [vmem:[#allocation2 + $0xc] sm:$0x1] %v1012_v25  ;;  %v1431_v4 = vld [vmem:[#allocation2 + $0x10] sm:$0xf]  ;;  %v3387_v1 = vld [vmem:[#allocation2 + $0x14] sm:$0x1]  ;;  %2701 = vmatprep.subr.bf16.mxu0 %v2869_v16 }
 0x2fb   : > { %v1247_v12 = vld [vmem:[#allocation2 + $0x10] sm:$0xf]  ;;  %v1448_v36 = vshrl.u32 %v1431_v4, 16  ;;  %v1451_v38 = vshll.u32 %v1431_v4, 16  ;;  %1052 = vst [vmem:[#allocation2 + $0x40] sm:$0xf] %v1051_v26 }
 0x2fc   : > { %v1277_v59 = vshrl.u32 %v1247_v12, 16  ;;  %v1280_v28 = vshll.u32 %v1247_v12, 16  ;;  %v1559_v39 = vld [vmem:[#allocation2 + $0x10] sm:$0xe]  ;;  %1055 = vst [vmem:[#allocation2 + $0x44] sm:$0x1] %v1054_v27 }
 0x2fd   : > { %v2596_v40 = vrot.slane %v1559_v39, 9  ;;  %v1585_v6 = vrot.slane %v3387_v1, 5  ;;  %v3400_v0 = vld [vmem:[#allocation2 + $0x24] sm:$0x1]  ;;  %v3402_v13 = vld [vmem:[#allocation2 + $0x2c] sm:$0x1] }
 0x2fe   : > { %v3410_v61 = vrot.slane %v1448_v36, 4  ;;  %v3412_v62 = vrot.slane %v1451_v38, 5  ;;  %v1279_v63 = vrot.slane %v1277_v59, 4  ;;  %v1282_v2 = vrot.slane %v1280_v28, 5  ;;  %v1561_v5 = vld [vmem:[#allocation2 + $0x20] sm:$0xe] }
 0x2ff   : > { %v1562_v7 = vld [vmem:[#allocation2 + $0x28] sm:$0xe]  ;;  %v2598_v8 = vrot.slane %v1561_v5, 9  ;;  %v1593_v9 = vrot.slane %v3400_v0, 5  ;;  %v1597_v14 = vrot.slane %v3402_v13, 5  ;;  %v1586_v57 = vsel %vm3395_vm15, %v2596_v40, %v1585_v6  ;;  %v2870_v50 = vld [vmem:[%s3896_s8 + $0x20] sm:$0xff]  }
 0x300   : > { %v1432_v30 = vld [vmem:[#allocation2 + $0x18] sm:$0xf]  ;;  %v1246_v32 = vld [vmem:[#allocation2 + $0x8] sm:$0xf]  ;;  %v1283_v17 = vor.u32 %v1282_v2, %v1279_v63  ;;  %v3427_v58 = vld [vmem:[#allocation2 + $0x1c] sm:$0x1]  ;;  %2702 = vmatpush3.bf16.msra.mxu0 %v2870_v50 }
 0x301   : > { %v1462_v31 = vshrl.u32 %v1432_v30, 16  ;;  %v1465_v33 = vshll.u32 %v1432_v30, 16  ;;  %v2628_v56 = vcombine.low %v1431_v4, %v1432_v30  ;;  %v2616_v60 = vcombine.low %v1246_v32, %v1247_v12  ;;  %v1560_v3 = vld [vmem:[#allocation2 + $0x18] sm:$0xe]  ;;  %v1433_v10 = vld [vmem:[#allocation2 + $0x20] sm:$0xf] }
 0x302   : > { %v3443_v20 = vrot.slane %v1283_v17, 4  ;;  %v1263_v23 = vshrl.u32 %v1246_v32, 16  ;;  %v1266_v24 = vshll.u32 %v1246_v32, 16  ;;  %v2597_v22 = vrot.slane %v1560_v3, 9  ;;  %v1434_v25 = vld [vmem:[#allocation2 + $0x28] sm:$0xf] }
 0x303   : > { %v3445_v34 = vrot.slane %v1462_v31, 4  ;;  %v3447_v35 = vrot.slane %v1465_v33, 5  ;;  %1755 = vrot.lane.b32.xlu1 %v2628_v56, %s2959_s18  ;;  %1695 = vrot.lane.b32.xlu0 %v2616_v60, %s2960_s19  ;;  %v1589_v49 = vrot.slane %v3427_v58, 5  ;;  %v1594_v52 = vsel %vm3395_vm15, %v2598_v8, %v1593_v9  ;;  %v1248_v27 = vld [vmem:[#allocation2 + $0x18] sm:$0xf]  ;;  %v2871_v8 = vld [vmem:[%s3896_s8 + $0x68] sm:$0xff]  }
 0x304   : > { %v1265_v51 = vrot.slane %v1263_v23, 4  ;;  %v1268_v4 = vrot.slane %v1266_v24, 5  ;;  %v2599_v12 = vrot.slane %v1562_v7, 9  ;;  %v1476_v26 = vshrl.u32 %v1433_v10, 16  ;;  %v1249_v39 = vld [vmem:[#allocation2 + $0x20] sm:$0xf]  ;;  %2703 = vmatprep.subr.bf16.mxu0 %v2871_v8 }
 0x305   : > { %v1590_v36 = vsel %vm3395_vm15, %v2597_v22, %v1589_v49  ;;  %v1479_v38 = vshll.u32 %v1433_v10, 16  ;;  %v1490_v59 = vshrl.u32 %v1434_v25, 16  ;;  %v1493_v28 = vshll.u32 %v1434_v25, 16  ;;  %v3463_v2 = vld [vmem:[#allocation2 + $0x34] sm:$0x1] }
 0x306   : > { %v2636_v40 = vcombine.low %v1586_v57, %v1590_v36  ;;  %v1598_v6 = vsel %vm3395_vm15, %v2599_v12, %v1597_v14  ;;  %v3461_v63 = vrot.slane %v1476_v26, 4  ;;  %v1563_v5 = vld [vmem:[#allocation2 + $0x30] sm:$0xe]  ;;  %v1269_v9 = vor.u32 %v1268_v4, %v1265_v51  ;;  %v3474_v32 = vld [vmem:[#allocation2 + $0x3c] sm:$0x1]  ;;  %v2872_v57 = vld [vmem:[%s3896_s8 + $0x28] sm:$0xff]  }
 0x307   : > { %v2637_v16 = vcombine.low %v1594_v52, %v1598_v6  ;;  %v3472_v30 = vrot.slane %v1479_v38, 5  ;;  %v1564_v14 = vld [vmem:[#allocation2 + $0x38] sm:$0xe]  ;;  %v1454_v17 = vor.u32 %v3412_v62, %v3410_v61  ;;  %v3482_v31 = vrot.slane %v1490_v59, 4  ;;  %v3484_v3 = vld [vmem:[#allocation2 + $0xc] sm:$0x1]  ;;  %2704 = vmatpush3.bf16.msra.mxu0 %v2872_v57 }
 0x308   : > { %2775 = vmatprep.mubr.msk.bf16.mxu1 %vm560_vm1, %v2636_v40  ;;  %v2629_v33 = vcombine.low %v1433_v10, %v1434_v25  ;;  %v1291_v56 = vshrl.u32 %v1248_v27, 16  ;;  %v1294_v60 = vshll.u32 %v1248_v27, 16  ;;  %v1305_v23 = vshrl.u32 %v1249_v39, 16  ;;  %v3487_v52 = vld [vmem:[#allocation2 + $0x14] sm:$0x1] }
 0x309   : > { %2776 = vmatmul.mubr.msk.bf16.vlgmr.msra.gmra.mrb[8].mxu1 %vm560_vm1, %v2637_v16  ;;  %v1308_v24 = vshll.u32 %v1249_v39, 16  ;;  %v2617_v22 = vcombine.low %v1248_v27, %v1249_v39  ;;  %v2600_v49 = vrot.slane %v1563_v5, 9  ;;  %v1601_v10 = vrot.slane %v3463_v2, 5  ;;  %v1374_v4 = vld [vmem:[#allocation2 + $0x8] sm:$0xe] }
 0x30a   : > { %1757 = vrot.lane.b32.xlu1 %v2629_v33, %s2959_s18  ;;  %v1293_v50 = vrot.slane %v1291_v56, 4  ;;  %v1296_v51 = vrot.slane %v1294_v60, 5  ;;  %v2601_v25 = vrot.slane %v1564_v14, 9  ;;  %v3491_v12 = vrot.slane %v1493_v28, 5  ;;  %v1375_v38 = vld [vmem:[#allocation2 + $0x10] sm:$0xe] }
 0x30b   : > { %v1307_v26 = vrot.slane %v1305_v23, 4  ;;  %v1310_v36 = vrot.slane %v1308_v24, 5  ;;  %1697 = vrot.lane.b32.xlu0 %v2617_v22, %s2960_s19  ;;  %v1605_v27 = vrot.slane %v3474_v32, 5  ;;  %v3495_v59 = vrot.slane %v1269_v9, 4  ;;  %v3499_v5 = vld [vmem:[#allocation2 + $0xc] sm:$0x1] }
 0x30c   : > { %v1297_v39 = vor.u32 %v1296_v51, %v1293_v50  ;;  %v1602_v40 = vsel %vm3395_vm15, %v2600_v49, %v1601_v10  ;;  %v2588_v6 = vrot.slane %v1374_v4, 9  ;;  %v1188_v8 = vld [vmem:[#allocation2 + $0x8] sm:$0xe]  ;;  %v1400_v14 = vrot.slane %v3484_v3, 5  ;;  %v3504_v33 = vld [vmem:[#allocation2 + $0x44] sm:$0x1] }
 0x30d   : > { %v1311_v16 = vor.u32 %v1310_v36, %v1307_v26  ;;  %v1606_v28 = vsel %vm3395_vm15, %v2601_v25, %v1605_v27  ;;  %v2589_v57 = vrot.slane %v1375_v38, 9  ;;  %v1565_v56 = vld [vmem:[#allocation2 + $0x40] sm:$0xe]  ;;  %v1404_v23 = vrot.slane %v3487_v52, 5  ;;  %v3508_v22 = vld [vmem:[#allocation2 + $0x1c] sm:$0x1] }
 0x30e   : > { %v2638_v9 = vcombine.low %v1602_v40, %v1606_v28  ;;  %v2581_v24 = vrot.slane %v1188_v8, 9  ;;  %v2873_v49 = vld [vmem:[%s3896_s8 + $0x70] sm:$0xff]   ;;  %v1401_v51 = vsel %vm3395_vm15, %v2588_v6, %v1400_v14  ;;  %v1220_v10 = vrot.slane %v3499_v5, 5  ;;  %v3517_v4 = vld [vmem:[#allocation2 + $0x24] sm:$0x1] }
 0x30f   : > { %v2602_v25 = vrot.slane %v1565_v56, 9  ;;  %v2874_v26 = vld [vmem:[%s3896_s8 + $0x30] sm:$0xff]   ;;  %v3522_v36 = vrot.slane %v1297_v39, 4  ;;  %v3524_v27 = vrot.slane %v1311_v16, 4  ;;  %v1405_v38 = vsel %vm3395_vm15, %v2589_v57, %v1404_v23  ;;  %v1376_v6 = vld [vmem:[#allocation2 + $0x18] sm:$0xe]  ;;  %2705 = vmatprep.subr.bf16.mxu0 %v2873_v49 }
 0x310   : > { %2779 = vmatprep.mubr.msk.bf16.mxu1 %vm560_vm1, %v2638_v9  ;;  %v1609_v40 = vrot.slane %v3504_v33, 5  ;;  %v2624_v8 = vcombine.low %v1401_v51, %v1405_v38  ;;  %v1221_v28 = vsel %vm3395_vm15, %v2581_v24, %v1220_v10  ;;  %v1377_v14 = vld [vmem:[#allocation2 + $0x20] sm:$0xe]  ;;  %v2590_v56 = vrot.slane %v1376_v6, 9  ;;  %v3533_v50 = vld [vmem:[#allocation2 + $0x14] sm:$0x1]  ;;  %2706 = vmatpush3.bf16.msra.mxu0 %v2874_v26 }
 0x311   : > { %v1408_v39 = vrot.slane %v3508_v22, 5  ;;  %v2612_v16 = vcombine.low %v3422_v18, %v1221_v28  ;;  %v2591_v9 = vrot.slane %v1377_v14, 9  ;;  %v1412_v23 = vrot.slane %v3517_v4, 5  ;;  %v3539_v49 = vld [vmem:[#allocation2 + $0x1c] sm:$0x1] }
 0x312   : > { %v1610_v57 = vsel %vm3395_vm15, %v2602_v25, %v1609_v40  ;;  %v1189_v51 = vld [vmem:[#allocation2 + $0x10] sm:$0xe]  ;;  %1727 = vrot.lane.b32.xlu1 %v2624_v8, %s2961_s17  ;;  %v1190_v26 = vld [vmem:[#allocation2 + $0x18] sm:$0xe]  ;;  %v1224_v18 = vrot.slane %v3533_v50, 5  ;;  %v1228_v8 = vrot.slane %v3539_v49, 5 }
 0x313   : > { %v2639_v24 = vcombine.low %v1610_v57, %v3437_v19  ;;  %v1409_v10 = vsel %vm3395_vm15, %v2590_v56, %v1408_v39  ;;  %v2582_v38 = vrot.slane %v1189_v51, 9  ;;  %v3546_v6 = vld [vmem:[#allocation2 + $0x2c] sm:$0x1]  ;;  %1667 = vrot.lane.b32.xlu0 %v2612_v16, %s2959_s18  ;;  %v1413_v40 = vsel %vm3395_vm15, %v2591_v9, %v1412_v23  ;;  %v3553_v19 = vld [vmem:[#allocation2 + $0x34] sm:$0x1] }
 0x314   : > { %v2583_v28 = vrot.slane %v1190_v26, 9  ;;  %v2625_v56 = vcombine.low %v1409_v10, %v1413_v40  ;;  %v1378_v57 = vld [vmem:[#allocation2 + $0x28] sm:$0xe]  ;;  %v1379_v16 = vld [vmem:[#allocation2 + $0x30] sm:$0xe]  ;;  %v1416_v51 = vrot.slane %v3546_v6, 5 }
 0x315   : > { %2780 = vmatmul.mubr.msk.bf16.gmra.mrb[12].mxu1 %vm560_vm1, %v2639_v24  ;;  %v1225_v39 = vsel %vm3395_vm15, %v2582_v38, %v1224_v18  ;;  %v2592_v23 = vrot.slane %v1378_v57, 9  ;;  %v2593_v26 = vrot.slane %v1379_v16, 9  ;;  %v1420_v25 = vrot.slane %v3553_v19, 5  ;;  %v3563_v60 = vld [vmem:[#allocation2 + $0x8] sm:$0xf]  ;;  %v2876_v24 = vld [vmem:[%s3896_s8 + $0x78] sm:$0xff]  }
 0x316   : > { %v1229_v9 = vsel %vm3395_vm15, %v2583_v28, %v1228_v8  ;;  %1729 = vrot.lane.b32.xlu1 %v2625_v56, %s2961_s17  ;;  %v1090_v38 = vshrl.u32 %v3563_v60, 16  ;;  %v1093_v18 = vshll.u32 %v3563_v60, 16  ;;  %v1099_v40 = vshll.u32 %v3499_v5, 16  ;;  %v3572_v28 = vld [vmem:[#allocation2 + $0x24] sm:$0x1]  ;;  %v2877_v8 = vld [vmem:[%s3896_s8 + $0x38] sm:$0xff]   ;;  %2707 = vmatprep.subr.bf16.mxu0 %v2876_v24 }
 0x317   : > { %v2613_v10 = vcombine.low %v1225_v39, %v1229_v9  ;;  %v1417_v57 = vsel %vm3395_vm15, %v2592_v23, %v1416_v51  ;;  %v1421_v16 = vsel %vm3395_vm15, %v2593_v26, %v1420_v25  ;;  %v1455_v56 = vrot.slane %v1454_v17, 4  ;;  %v3585_v9 = vld [vmem:[#allocation2 + $0x2c] sm:$0x1]  ;;  %v1191_v5 = vld [vmem:[#allocation2 + $0x20] sm:$0xe]  ;;  %2708 = vmatpush3.bf16.msra.mxu0 %v2877_v8 }
 0x318   : > { %v1457_v39 = vshll.u32 %v3387_v1, 16  ;;  %v2626_v14 = vcombine.low %v1417_v57, %v1421_v16  ;;  %v1092_v7 = vrot.slane %v1090_v38, 4  ;;  %v1095_v21 = vrot.slane %v1093_v18, 5  ;;  %v1192_v51 = vld [vmem:[#allocation2 + $0x28] sm:$0xe] }
 0x319   : > { %1669 = vrot.lane.b32.xlu0 %v2613_v10, %s2959_s18  ;;  %v1101_v47 = vrot.slane %v1099_v40, 5  ;;  %v1468_v25 = vor.u32 %v3447_v35, %v3445_v34  ;;  %v1471_v61 = vshll.u32 %v3427_v58, 16  ;;  %v2584_v62 = vrot.slane %v1191_v5, 9  ;;  %v1435_v1 = vld [vmem:[#allocation2 + $0x30] sm:$0xf] }
 0x31a   : > { %v1459_v23 = vrot.slane %v1457_v39, 5  ;;  %1731 = vrot.lane.b32.xlu1 %v2626_v14, %s2961_s17  ;;  %v1096_v17 = vor.u32 %v1095_v21, %v1092_v7  ;;  %v1232_v26 = vrot.slane %v3572_v28, 5  ;;  %v2585_v24 = vrot.slane %v1192_v51, 9  ;;  %v3594_v38 = vld [vmem:[#allocation2 + $0x38] sm:$0xf] }
 0x31b   : > { %v1236_v10 = vrot.slane %v3585_v9, 5  ;;  %v1469_v40 = vrot.slane %v1468_v25, 4  ;;  %v1473_v8 = vrot.slane %v1471_v61, 5  ;;  %v1504_v34 = vshrl.u32 %v1435_v1, 16  ;;  %v3602_v14 = vld [vmem:[#allocation2 + $0x10] sm:$0xf] }
 0x31c   : > { %v1460_v18 = vsel %vm3406_vm2, %v1455_v56, %v1459_v23  ;;  %v1097_v35 = vrot.slane %v1096_v17, 4  ;;  %v1233_v58 = vsel %vm3395_vm15, %v2584_v62, %v1232_v26  ;;  %v1507_v7 = vshll.u32 %v1435_v1, 16  ;;  %v3609_v5 = vld [vmem:[#allocation2 + $0x18] sm:$0xf] }
 0x31d   : > { %v1237_v21 = vsel %vm3395_vm15, %v2585_v24, %v1236_v10  ;;  %v1328_v57 = vshll.u32 %v3546_v6, 16  ;;  %v1474_v56 = vsel %vm3406_vm2, %v1469_v40, %v1473_v8  ;;  %v1518_v39 = vshrl.u32 %v3594_v38, 16 }
 0x31e   : > { %v1102_v51 = vsel %vm3406_vm2, %v1097_v35, %v1101_v47  ;;  %v2632_v23 = vcombine.low %v1460_v18, %v1474_v56  ;;  %v2614_v25 = vcombine.low %v1233_v58, %v1237_v21  ;;  %v3613_v61 = vrot.slane %v1504_v34, 4  ;;  %v3635_v58 = vld [vmem:[#allocation2 + $0x28] sm:$0xf] }
 0x31f   : > { %v3915_v62 = vsel %vm3406_vm2, %v3372_v37, %v3376_v53  ;;  %v3620_v26 = vrot.slane %v1507_v7, 5  ;;  %v1521_v24 = vshll.u32 %v3594_v38, 16  ;;  %v1104_v10 = vshrl.u32 %v3602_v14, 16 }
 0x320   : > { %v2608_v17 = vcombine.low %v3915_v62, %v1102_v51  ;;  %1775 = vrot.lane.b32.xlu1 %v2632_v23, %s2960_s19  ;;  %v3625_v40 = vrot.slane %v1518_v39, 4  ;;  %v1107_v47 = vshll.u32 %v3602_v14, 16  ;;  %v1113_v18 = vshll.u32 %v3533_v50, 16  ;;  %v3639_v39 = vld [vmem:[#allocation2 + $0x30] sm:$0xf] }
 0x321   : > { %v1118_v8 = vshrl.u32 %v3609_v5, 16  ;;  %v2630_v37 = vcombine.low %v1435_v1, %v3594_v38  ;;  %v1106_v53 = vrot.slane %v1104_v10, 4  ;;  %v1121_v34 = vshll.u32 %v3609_v5, 16 }
 0x322   : > { %1647 = vrot.lane.b32.xlu0 %v2608_v17, %s2961_s17  ;;  %v1482_v35 = vor.u32 %v3472_v30, %v3461_v63  ;;  %v1109_v21 = vrot.slane %v1107_v47, 5  ;;  %v1127_v56 = vshll.u32 %v3539_v49, 16  ;;  %v1485_v50 = vshll.u32 %v3400_v0, 16 }
 0x323   : > { %v1120_v7 = vrot.slane %v1118_v8, 4  ;;  %v1115_v51 = vrot.slane %v1113_v18, 5  ;;  %v1123_v23 = vrot.slane %v1121_v34, 5  ;;  %v1496_v1 = vor.u32 %v3491_v12, %v3482_v31 }
 0x324   : > { %v1483_v62 = vrot.slane %v1482_v35, 4  ;;  %1759 = vrot.lane.b32.xlu1 %v2630_v37, %s2959_s18  ;;  %v1110_v38 = vor.u32 %v1109_v21, %v1106_v53  ;;  %v1487_v63 = vrot.slane %v1485_v50, 5  ;;  %v1499_v30 = vshll.u32 %v3402_v13, 16  ;;  %v3651_v37 = vld [vmem:[#allocation2 + $0x3c] sm:$0x1] }
 0x325   : > { %v1319_v17 = vshrl.u32 %v3635_v58, 16  ;;  %v1124_v49 = vor.u32 %v1123_v23, %v1120_v7  ;;  %v1497_v0 = vrot.slane %v1496_v1, 4  ;;  %v1322_v10 = vshll.u32 %v3635_v58, 16  ;;  %v1381_v1 = vld [vmem:[#allocation2 + $0x40] sm:$0xe] }
 0x326   : > { %1671 = vrot.lane.b32.xlu0 %v2614_v25, %s2959_s18  ;;  %v1333_v47 = vshrl.u32 %v3639_v39, 16  ;;  %v1111_v18 = vrot.slane %v1110_v38, 4  ;;  %v1488_v31 = vsel %vm3406_vm2, %v1483_v62, %v1487_v63  ;;  %v1501_v12 = vrot.slane %v1499_v30, 5  ;;  %v1380_v25 = vld [vmem:[#allocation2 + $0x38] sm:$0xe] }
 0x327   : > { %v1321_v8 = vrot.slane %v1319_v17, 4  ;;  %v1125_v53 = vrot.slane %v1124_v49, 4  ;;  %v1129_v13 = vrot.slane %v1127_v56, 5  ;;  %v1324_v34 = vrot.slane %v1322_v10, 5  ;;  %v3660_v62 = vld [vmem:[#allocation2 + $0x44] sm:$0x1] }
 0x328   : > { %v1336_v35 = vshll.u32 %v3639_v39, 16  ;;  %v1523_v21 = vrot.slane %v1521_v24, 5  ;;  %v1116_v7 = vsel %vm3406_vm2, %v1111_v18, %v1115_v51  ;;  %v1502_v50 = vsel %vm3406_vm2, %v1497_v0, %v1501_v12  ;;  %v3666_v24 = vld [vmem:[#allocation2 + $0x20] sm:$0xf]  ;;  %v3670_v10 = vld [vmem:[#allocation2 + $0x28] sm:$0xf] }
 0x329   : > { %v3658_v23 = vrot.slane %v1333_v47, 4  ;;  %v1130_v38 = vsel %vm3406_vm2, %v1125_v53, %v1129_v13  ;;  %v2633_v56 = vcombine.low %v1488_v31, %v1502_v50  ;;  %v1325_v63 = vor.u32 %v1324_v34, %v1321_v8  ;;  %v1437_v18 = vld [vmem:[#allocation2 + $0x40] sm:$0xf] }
 0x32a   : > { %v2618_v30 = vcombine.low %v3635_v58, %v3639_v39  ;;  %v2609_v17 = vcombine.low %v1116_v7, %v1130_v38  ;;  %v2594_v49 = vrot.slane %v1380_v25, 9  ;;  %v1424_v0 = vrot.slane %v3651_v37, 5 }
 0x32b   : > { %1777 = vrot.lane.b32.xlu1 %v2633_v56, %s2960_s19  ;;  %v3673_v47 = vrot.slane %v1336_v35, 5  ;;  %v2595_v31 = vrot.slane %v1381_v1, 9  ;;  %v1428_v12 = vrot.slane %v3660_v62, 5  ;;  %v1132_v39 = vshrl.u32 %v3666_v24, 16  ;;  %v1193_v56 = vld [vmem:[#allocation2 + $0x30] sm:$0xe] }
 0x32c   : > { %1649 = vrot.lane.b32.xlu0 %v2609_v17, %s2961_s17  ;;  %v1425_v58 = vsel %vm3395_vm15, %v2594_v49, %v1424_v0  ;;  %v1135_v8 = vshll.u32 %v3666_v24, 16  ;;  %v1141_v53 = vshll.u32 %v3572_v28, 16  ;;  %v3683_v13 = vrot.slane %v1325_v63, 4  ;;  %v1070_v63 = vld [vmem:[#allocation2 + $0x34] sm:$0x1] }
 0x32d   : > { %v1429_v34 = vsel %vm3395_vm15, %v2595_v31, %v1428_v12  ;;  %v1146_v35 = vshrl.u32 %v3670_v10, 16  ;;  %v1149_v25 = vshll.u32 %v3670_v10, 16  ;;  %v1134_v50 = vrot.slane %v1132_v39, 4 }
 0x32e   : > { %v2627_v7 = vcombine.low %v1425_v58, %v1429_v34  ;;  %v1137_v1 = vrot.slane %v1135_v8, 5  ;;  %v1143_v38 = vrot.slane %v1141_v53, 5  ;;  %v1155_v0 = vshll.u32 %v3585_v9, 16  ;;  %v1071_v8 = vld [vmem:[#allocation2 + $0x3c] sm:$0x1] }
 0x32f   : > { %v1148_v17 = vrot.slane %v1146_v35, 4  ;;  %v1151_v49 = vrot.slane %v1149_v25, 5  ;;  %v1510_v28 = vor.u32 %v3620_v26, %v3613_v61  ;;  %v1513_v12 = vshll.u32 %v3463_v2, 16  ;;  %v1194_v53 = vld [vmem:[#allocation2 + $0x38] sm:$0xe] }
 0x330   : > { %1699 = vrot.lane.b32.xlu0 %v2618_v30, %s2960_s19  ;;  %1733 = vrot.lane.b32.xlu1 %v2627_v7, %s2961_s17  ;;  %v1138_v31 = vor.u32 %v1137_v1, %v1134_v50  ;;  %v1524_v58 = vor.u32 %v1523_v21, %v3625_v40  ;;  %v1527_v39 = vshll.u32 %v3474_v32, 16  ;;  %v1157_v35 = vrot.slane %v1155_v0, 5 }
 0x331   : > { %v1152_v34 = vor.u32 %v1151_v49, %v1148_v17  ;;  %v1511_v9 = vrot.slane %v1510_v28, 4  ;;  %v2586_v25 = vrot.slane %v1193_v56, 9  ;;  %v1515_v26 = vrot.slane %v1513_v12, 5  ;;  %v3703_v56 = vld [vmem:[#allocation2 + $0x30] sm:$0xf] }
 0x332   : > { %v1139_v61 = vrot.slane %v1138_v31, 4  ;;  %v1525_v51 = vrot.slane %v1524_v58, 4  ;;  %v1529_v30 = vrot.slane %v1527_v39, 5  ;;  %v1240_v7 = vrot.slane %v1070_v63, 5 }
 0x333   : > { %v1153_v16 = vrot.slane %v1152_v34, 4  ;;  %v2587_v50 = vrot.slane %v1194_v53, 9  ;;  %v1244_v1 = vrot.slane %v1071_v8, 5  ;;  %v1516_v32 = vsel %vm3406_vm2, %v1511_v9, %v1515_v26 }
 0x334   : > { %v1144_v2 = vsel %vm3406_vm2, %v1139_v61, %v1143_v38  ;;  %v1530_v40 = vsel %vm3406_vm2, %v1525_v51, %v1529_v30  ;;  %v1532_v21 = vshrl.u32 %v1437_v18, 16  ;;  %v1241_v0 = vsel %vm3395_vm15, %v2586_v25, %v1240_v7  ;;  %v3711_v38 = vld [vmem:[#allocation2 + $0x38] sm:$0xf]  ;;  %v1253_v7 = vld [vmem:[#allocation2 + $0x40] sm:$0xf] }
 0x335   : > { %v1158_v17 = vsel %vm3406_vm2, %v1153_v16, %v1157_v35  ;;  %v2634_v49 = vcombine.low %v1516_v32, %v1530_v40  ;;  %v1245_v28 = vsel %vm3395_vm15, %v2587_v50, %v1244_v1  ;;  %v1339_v31 = vor.u32 %v3673_v47, %v3658_v23  ;;  %v1252_v47 = vld [vmem:[#allocation2 + $0x38] sm:$0xf] }
 0x336   : > { %v2610_v12 = vcombine.low %v1144_v2, %v1158_v17  ;;  %v1534_v51 = vrot.slane %v1532_v21, 4  ;;  %v1535_v58 = vshll.u32 %v1437_v18, 16  ;;  %v2615_v39 = vcombine.low %v1241_v0, %v1245_v28 }
 0x337   : > { %1779 = vrot.lane.b32.xlu1 %v2634_v49, %s2960_s19  ;;  %v1160_v16 = vshrl.u32 %v3703_v56, 16  ;;  %v1163_v53 = vshll.u32 %v3703_v56, 16  ;;  %v1169_v34 = vshll.u32 %v1070_v63, 16  ;;  %v2631_v35 = vcombine.low %v1437_v18, %v3227_v11 }
 0x338   : > { %1651 = vrot.lane.b32.xlu0 %v2610_v12, %s2961_s17  ;;  %v1537_v29 = vrot.slane %v1535_v58, 5  ;;  %v1174_v9 = vshrl.u32 %v3711_v38, 16  ;;  %v1177_v23 = vshll.u32 %v3711_v38, 16  ;;  %v1183_v26 = vshll.u32 %v1071_v8, 16 }
 0x339   : > { %v1162_v25 = vrot.slane %v1160_v16, 4  ;;  %v1165_v61 = vrot.slane %v1163_v53, 5  ;;  %v1541_v30 = vshll.u32 %v3504_v33, 16  ;;  %v1171_v50 = vrot.slane %v1169_v34, 5 }
 0x33a   : > { %v1176_v1 = vrot.slane %v1174_v9, 4  ;;  %v1179_v2 = vrot.slane %v1177_v23, 5  ;;  %v1538_v63 = vor.u32 %v1537_v29, %v1534_v51  ;;  %v1347_v11 = vshrl.u32 %v1252_v47, 16 }
 0x33b   : > { %1761 = vrot.lane.b32.xlu1 %v2631_v35, %s2959_s18  ;;  %v1166_v32 = vor.u32 %v1165_v61, %v1162_v25  ;;  %v1543_v40 = vrot.slane %v1541_v30, 5  ;;  %v1350_v18 = vshll.u32 %v1252_v47, 16  ;;  %v1361_v49 = vshrl.u32 %v1253_v7, 16 }
 0x33c   : > { %1673 = vrot.lane.b32.xlu0 %v2615_v39, %s2959_s18  ;;  %v1180_v21 = vor.u32 %v1179_v2, %v1176_v1  ;;  %v1539_v17 = vrot.slane %v1538_v63, 4  ;;  %v1364_v0 = vshll.u32 %v1253_v7, 16  ;;  %v1185_v28 = vrot.slane %v1183_v26, 5 }
 0x33d   : > { %v1167_v8 = vrot.slane %v1166_v32, 4  ;;  %v1349_v33 = vrot.slane %v1347_v11, 4  ;;  %v1352_v12 = vrot.slane %v1350_v18, 5  ;;  %v1363_v16 = vrot.slane %v1361_v49, 4 }
 0x33e   : > { %v1181_v58 = vrot.slane %v1180_v21, 4  ;;  %v1544_v51 = vsel %vm3406_vm2, %v1539_v17, %v1543_v40  ;;  %v1366_v53 = vrot.slane %v1364_v0, 5  ;;  %v3916_v39 = vsel %vm3406_vm2, %v3381_v55, %v3385_v48 }
 0x33f   : > { %v1172_v34 = vsel %vm3406_vm2, %v1167_v8, %v1171_v50  ;;  %v2635_v29 = vcombine.low %v1544_v51, %v3916_v39  ;;  %v1353_v35 = vor.u32 %v1352_v12, %v1349_v33  ;;  %v3917_v9 = vshll.u32 %v3484_v3, 16 }
 0x340   : > { %v1186_v25 = vsel %vm3406_vm2, %v1181_v58, %v1185_v28  ;;  %v1367_v61 = vor.u32 %v1366_v53, %v1363_v16  ;;  %v3918_v26 = vshll.u32 %v3487_v52, 16  ;;  %v3919_v1 = vshll.u32 %v3508_v22, 16 }
 0x341   : > { %v1274_v23 = vrot.slane %v3917_v9, 5  ;;  %v1340_v2 = vrot.slane %v1339_v31, 4  ;;  %v2611_v63 = vcombine.low %v1172_v34, %v1186_v25  ;;  %1781 = vrot.lane.b32.xlu1 %v2635_v29, %s2960_s19  ;;  %v3920_v48 = vshll.u32 %v3517_v4, 16 }
 0x342   : > { %v1288_v30 = vrot.slane %v3918_v26, 5  ;;  %v1302_v50 = vrot.slane %v3919_v1, 5  ;;  %v1354_v32 = vrot.slane %v1353_v35, 4  ;;  %v1330_v31 = vrot.slane %v1328_v57, 5 }
 0x343   : > { %v1275_v55 = vsel %vm3406_vm2, %v3495_v59, %v1274_v23  ;;  %v1316_v3 = vrot.slane %v3920_v48, 5  ;;  %1653 = vrot.lane.b32.xlu0 %v2611_v63, %s2961_s17  ;;  %v1368_v40 = vrot.slane %v1367_v61, 4  ;;  %v3921_v4 = vshll.u32 %v3553_v19, 16 }
 0x344   : > { %v1289_v52 = vsel %vm3406_vm2, %v3443_v20, %v1288_v30  ;;  %v1303_v22 = vsel %vm3406_vm2, %v3522_v36, %v1302_v50  ;;  %v2619_v21 = vcombine.low %v1252_v47, %v1253_v7  ;;  %v1331_v36 = vsel %vm3406_vm2, %v3683_v13, %v1330_v31 }
 0x345   : > { %v2620_v11 = vcombine.low %v1275_v55, %v1289_v52  ;;  %v1317_v59 = vsel %vm3406_vm2, %v3524_v27, %v1316_v3  ;;  %v1344_v18 = vrot.slane %v3921_v4, 5  ;;  %v2605_v57 = vcombine.low %v3602_v14, %v3609_v5 }
 0x346   : > { %v2621_v20 = vcombine.low %v1303_v22, %v1317_v59  ;;  %v3922_v17 = vshll.u32 %v3651_v37, 16  ;;  %v3923_v27 = vshll.u32 %v3660_v62, 16  ;;  %v2606_v47 = vcombine.low %v3666_v24, %v3670_v10 }
 0x347   : > { %v1345_v6 = vsel %vm3406_vm2, %v1340_v2, %v1344_v18  ;;  %v2607_v7 = vcombine.low %v3703_v56, %v3711_v38  ;;  %1701 = vrot.lane.b32.xlu0 %v2619_v21, %s2960_s19  ;;  %v2907_v38 = vld [vmem:[#allocation2] sm:$0xf] }
 0x348   : > { %v1358_v49 = vrot.slane %v3922_v17, 5  ;;  %v1372_v0 = vrot.slane %v3923_v27, 5  ;;  %v2622_v19 = vcombine.low %v1331_v36, %v1345_v6  ;;  %v2604_v51 = vcombine.low %v2907_v38, %v3563_v60 }
 0x34a   : > { %v1359_v13 = vsel %vm3406_vm2, %v1354_v32, %v1358_v49  ;;  %v1373_v14 = vsel %vm3406_vm2, %v1368_v40, %v1372_v0 }
 0x34b   : > { %v2623_v5 = vcombine.low %v1359_v13, %v1373_v14 }
 0x375   : > { %v1756_v37 = vpop.permute.xlu1 %1755  ;;  %v1696_v8 = vpop.permute.xlu0 %1695 }
 0x37c   : > { %v1758_v62 = vpop.permute.xlu1 %1757 }
 0x37d   : > { %v1698_v28 = vpop.permute.xlu0 %1697 }
 0x384   : > { %v1728_v33 = vpop.permute.xlu1 %1727 }
 0x385   : > { %v1668_v12 = vpop.permute.xlu0 %1667  ;;  %v1831_v56 = vsel %vm560_vm1, %v2620_v11, %v1728_v33  ;;  %v2640_v33 = vld [vmem:[%s3897_s9] ss:$0 sm:$0xff] }
 0x386   : > { %v1842_v15 = vsel %vm1807_vm3, %v1831_v56, %v1756_v37 }
 0x388   : > { %v1730_v58 = vpop.permute.xlu1 %1729 }
 0x389   : > { %v1834_v25 = vsel %vm560_vm1, %v2621_v20, %v1730_v58 }
 0x38a   : > { %v1844_v61 = vsel %vm1807_vm3, %v1834_v25, %v1758_v62  ;;  %v2881_v62 = vld [vmem:[%s3898_s10] sm:$0xff]  }
 0x38b   : > { %v1670_v10 = vpop.permute.xlu0 %1669  ;;  %2783 = vmatprep.subr.bf16.mxu1 %v2881_v62 }
 0x38c   : > { %v1732_v24 = vpop.permute.xlu1 %1731  ;;  %2784 = vmatpush3.bf16.msra.mxu1 %v2881_v62 }
 0x38d   : > { %v1837_v48 = vsel %vm560_vm1, %v2622_v19, %v1732_v24 }
 0x392   : > { %v1776_v16 = vpop.permute.xlu1 %1775 }
 0x393   : > { %v1850_v34 = vsel %vm1816_vm4, %v1842_v15, %v1776_v16 }
 0x394   : > { %v1648_v53 = vpop.permute.xlu0 %1647  ;;  %2056 = vmatprep.mubr.bf16.mxu0 %v1850_v34 }
 0x395   : > { %v1797_v39 = vsel %vm560_vm1, %v2604_v51, %v1648_v53 }
 0x396   : > { %v1809_v29 = vsel %vm1807_vm3, %v1797_v39, %v1668_v12  ;;  %v1760_v9 = vpop.permute.xlu1 %1759 }
 0x397   : > { %v1818_v35 = vsel %vm1816_vm4, %v1809_v29, %v1696_v8  ;;  %v1846_v3 = vsel %vm1807_vm3, %v1837_v48, %v1760_v9 }
 0x398   : > { %2057 = vmatmul.mubr.bf16.vlgmr.msra.gmra.mrb[8].mxu0 %v1818_v35  ;;  %v1672_v23 = vpop.permute.xlu0 %1671 }
 0x39d   : > { %v1778_v60 = vpop.permute.xlu1 %1777 }
 0x39e   : > { %v1650_v26 = vpop.permute.xlu0 %1649  ;;  %v1853_v30 = vsel %vm1816_vm4, %v1844_v61, %v1778_v60 }
 0x39f   : > { %v1800_v1 = vsel %vm560_vm1, %v2605_v57, %v1650_v26  ;;  %2064 = vmatprep.mubr.bf16.mxu0 %v1853_v30 }
 0x3a0   : > { %v1811_v50 = vsel %vm1807_vm3, %v1800_v1, %v1670_v10 }
 0x3a1   : > { %v1821_v2 = vsel %vm1816_vm4, %v1811_v50, %v1698_v28 }
 0x3a2   : > { %2065 = vmatmul.mubr.bf16.gmra.mrb[12].mxu0 %v1821_v2  ;;  %v1734_v63 = vpop.permute.xlu1 %1733  ;;  %v1700_v55 = vpop.permute.xlu0 %1699 }
 0x3a3   : > { %v1840_v18 = vsel %vm560_vm1, %v2623_v5, %v1734_v63 }
 0x3a9   : > { %v1780_v32 = vpop.permute.xlu1 %1779 }
 0x3aa   : > { %v1652_v52 = vpop.permute.xlu0 %1651  ;;  %v1856_v22 = vsel %vm1816_vm4, %v1846_v3, %v1780_v32 }
 0x3ab   : > { %v1803_v31 = vsel %vm560_vm1, %v2606_v47, %v1652_v52  ;;  %2072 = vmatprep.mubr.bf16.mxu0 %v1856_v22 }
 0x3ac   : > { %v1813_v40 = vsel %vm1807_vm3, %v1803_v31, %v1672_v23 }
 0x3ad   : > { %v1824_v11 = vsel %vm1816_vm4, %v1813_v40, %v1700_v55  ;;  %v1762_v59 = vpop.permute.xlu1 %1761 }
 0x3ae   : > { %2073 = vmatmul.mubr.bf16.gmra.mrb[16].mxu0 %v1824_v11  ;;  %v1674_v4 = vpop.permute.xlu0 %1673  ;;  %v1848_v21 = vsel %vm1807_vm3, %v1840_v18, %v1762_v59 }
 0x3b3   : > { %v1782_v20 = vpop.permute.xlu1 %1781 }
 0x3b4   : > { %v1859_v36 = vsel %vm1816_vm4, %v1848_v21, %v1782_v20 }
 0x3b5   : > { %v1654_v6 = vpop.permute.xlu0 %1653  ;;  %2080 = vmatprep.mubr.bf16.mxu0 %v1859_v36 }
 0x3b6   : > { %v1806_v57 = vsel %vm560_vm1, %v2607_v7, %v1654_v6  ;;  %v2882_v7 = vld [vmem:[%s3898_s10 + $0x8] sm:$0xff]  }
 0x3b7   : > { %v1815_v49 = vsel %vm1807_vm3, %v1806_v57, %v1674_v4  ;;  %2785 = vmatprep.subr.bf16.mxu1 %v2882_v7 }
 0x3b8   : > { %2786 = vmatpush3.bf16.msra.mxu1 %v2882_v7 }
 0x3b9   : > { %v1702_v17 = vpop.permute.xlu0 %1701 }
 0x3ba   : > { %v1827_v27 = vsel %vm1816_vm4, %v1815_v49, %v1702_v17 }
 0x3bb   : > { %2081 = vmatmul.mubr.bf16.gmra.mrb[20].mxu0 %v1827_v27 }
 0x3dc   : > { %v2777_v0 = vpop.f32.mrb[8].mxu1 }
 0x3dd   : > { %v2123_v19 = vpop.f32.mrb[9].mxu1 }
 0x3de   : > { %v2778_v47 = vpop.f32.mrb[10].mxu1 }
 0x3df   : > { %v2126_v13 = vpop.f32.mrb[11].mxu1 }
 0x3e8   : > { %v2781_v14 = vpop.f32.mrb[12].mxu1 }
 0x3e9   : > { %v2139_v5 = vpop.f32.mrb[13].mxu1 }
 0x3ea   : > { %v2782_v37 = vpop.f32.mrb[14].mxu1 }
 0x3eb   : > { %v2142_v8 = vpop.f32.mrb[15].mxu1 }
 0x46b   : > { %v2709_v28 = vpop.f32.mrb[8].mxu0 }
 0x46c   : > { %v2710_v12 = vpop.f32.mrb[9].mxu0 }
 0x46d   : > { %v2711_v58 = vadd.f32 %v2710_v12, %v2709_v28  ;;  %v2712_v24 = vpop.f32.mrb[10].mxu0 }
 0x46e   : > { %v2713_v10 = vpop.f32.mrb[11].mxu0 }
 0x46f   : > { %v2059_v56 = vadd.f32 %v2711_v58, %v2640_v33  ;;  %v2714_v38 = vadd.f32 %v2713_v10, %v2712_v24  ;;  %v2663_v58 = vld [vmem:[%s3899_s11] ss:$0 sm:$0xff]  ;;  %v2908_v24 = vld [vmem:[%s3073_s27 + $0x10] sm:$0xff] }
 0x470   : > { %vm2268_vm5 = vcmp.gt.f32.partialorder %v2908_v24, 0.5 }
 0x471   : > { %v2124_v51 = vadd.f32 %v2123_v19, %v2059_v56  ;;  %v2062_v16 = vadd.f32 %v2714_v38, %v2640_v33  ;;  %v2910_v38 = vld [vmem:[%s3073_s27 + $0x18] sm:$0xff] }
 0x472   : > { %vm2269_vm8 = vcmp.gt.f32.partialorder %v2910_v38, 0.5 }
 0x473   : > { %v2127_v15 = vadd.f32 %v2126_v13, %v2062_v16  ;;  %v2154_v53 = vmax.f32 %v2124_v51, 0.0 }
 0x475   : > { %v2155_v34 = vmax.f32 %v2127_v15, 0.0  ;;  %v2715_v39 = vpop.f32.mrb[12].mxu0  ;;  %v2911_v15 = vld [vmem:[%s3073_s27 + $0x30] sm:$0xff] }
 0x476   : > { %v2716_v35 = vpop.f32.mrb[13].mxu0  ;;  %vm2272_vm9 = vcmp.gt.f32.partialorder %v2911_v15, 0.5 }
 0x477   : > { %v2162_v29 = vpack.c.bf16 %v2155_v34, %v2154_v53  ;;  %v2717_v9 = vadd.f32 %v2716_v35, %v2715_v39  ;;  %v2718_v23 = vpop.f32.mrb[14].mxu0  ;;  %v2912_v53 = vld [vmem:[%s3073_s27 + $0x8] sm:$0xff] }
 0x478   : > { %v2719_v25 = vpop.f32.mrb[15].mxu0  ;;  %vm2267_vm10 = vcmp.gt.f32.partialorder %v2912_v53, 0.5 }
 0x479   : > { %2787 = vmatprep.mubr.msk.bf16.mxu1 %vm560_vm1, %v2162_v29  ;;  %v2067_v60 = vadd.f32 %v2717_v9, %v2640_v33  ;;  %v2720_v61 = vadd.f32 %v2719_v25, %v2718_v23  ;;  %v2913_v29 = vld [vmem:[%s3073_s27 + $0x20] sm:$0xff]  ;;  %v2914_v25 = vld [vmem:[%s3073_s27 + $0x38] sm:$0xff] }
 0x47a   : > { %vm2270_vm11 = vcmp.gt.f32.partialorder %v2913_v29, 0.5  ;;  %vm2273_vm12 = vcmp.gt.f32.partialorder %v2914_v25, 0.5 }
 0x47b   : > { %v2132_v26 = vadd.f32 %v2777_v0, %v2067_v60  ;;  %v2070_v30 = vadd.f32 %v2720_v61, %v2640_v33  ;;  %v2915_v60 = vld [vmem:[%s3073_s27 + $0x28] sm:$0xff] }
 0x47c   : > { %vm2271_vm13 = vcmp.gt.f32.partialorder %v2915_v60, 0.5 }
 0x47d   : > { %v2135_v1 = vadd.f32 %v2778_v47, %v2070_v30  ;;  %v2156_v50 = vmax.f32 %v2132_v26, 0.0 }
 0x47f   : > { %v2157_v2 = vmax.f32 %v2135_v1, 0.0 }
 0x481   : > { %v2163_v63 = vpack.c.bf16 %v2157_v2, %v2156_v50  ;;  %v2721_v55 = vpop.f32.mrb[16].mxu0 }
 0x482   : > { %v2722_v48 = vpop.f32.mrb[17].mxu0 }
 0x483   : > { %v2723_v3 = vadd.f32 %v2722_v48, %v2721_v55  ;;  %v2724_v32 = vpop.f32.mrb[18].mxu0  ;;  %2788 = vmatmul.mubr.msk.bf16.vlgmr.msra.gmra.mrb[16].mxu1 %vm560_vm1, %v2163_v63 }
 0x484   : > { %v2725_v52 = vpop.f32.mrb[19].mxu0 }
 0x485   : > { %v2075_v22 = vadd.f32 %v2723_v3, %v2640_v33  ;;  %v2726_v31 = vadd.f32 %v2725_v52, %v2724_v32 }
 0x487   : > { %v2140_v40 = vadd.f32 %v2139_v5, %v2075_v22  ;;  %v2078_v11 = vadd.f32 %v2726_v31, %v2640_v33 }
 0x489   : > { %v2143_v59 = vadd.f32 %v2142_v8, %v2078_v11  ;;  %v2158_v4 = vmax.f32 %v2140_v40, 0.0 }
 0x48b   : > { %v2159_v18 = vmax.f32 %v2143_v59, 0.0 }
 0x48d   : > { %v2164_v21 = vpack.c.bf16 %v2159_v18, %v2158_v4 }
 0x48e   : > { %v2727_v20 = vpop.f32.mrb[20].mxu0 }
 0x48f   : > { %v2728_v36 = vpop.f32.mrb[21].mxu0  ;;  %2791 = vmatprep.mubr.msk.bf16.mxu1 %vm560_vm1, %v2164_v21 }
 0x490   : > { %v2729_v6 = vadd.f32 %v2728_v36, %v2727_v20  ;;  %v2730_v57 = vpop.f32.mrb[22].mxu0 }
 0x491   : > { %v2731_v17 = vpop.f32.mrb[23].mxu0 }
 0x492   : > { %v2083_v49 = vadd.f32 %v2729_v6, %v2640_v33  ;;  %v2732_v27 = vadd.f32 %v2731_v17, %v2730_v57 }
 0x494   : > { %v2148_v0 = vadd.f32 %v2781_v14, %v2083_v49  ;;  %v2086_v19 = vadd.f32 %v2732_v27, %v2640_v33  ;;  %v2909_v33 = vld [vmem:[%s3073_s27] sm:$0xff]  ;;  %s2555_s27 = sshll.u32 %s3939_s22, 2 }
 0x495   : > { %vm2266_vm7 = vcmp.gt.f32.partialorder %v2909_v33, 0.5  ;;  %s498_s17 = sadd.s32 %s2555_s27, %s3937_s21 }
 0x496   : > { %v2151_v47 = vadd.f32 %v2782_v37, %v2086_v19  ;;  %v2160_v13 = vmax.f32 %v2148_v0, 0.0  ;;  %s499_s24 = scalar_lea.vmem %s3900_s12, %s498_s17 }
 0x498   : > { %v2161_v5 = vmax.f32 %v2151_v47, 0.0 }
 0x49a   : > { %v2165_v8 = vpack.c.bf16 %v2161_v5, %v2160_v13 }
 0x49c   : > { %2792 = vmatmul.mubr.msk.bf16.gmra.mrb[20].mxu1 %vm560_vm1, %v2165_v8 }
 0x556   : > { %v2789_v62 = vpop.f32.mrb[16].mxu1 }
 0x557   : > { %v2235_v7 = vpop.f32.mrb[17].mxu1  ;;  %v2244_v14 = vadd.f32 %v2789_v62, %v2663_v58 }
 0x558   : > { %v2790_v28 = vpop.f32.mrb[18].mxu1  ;;  %v2236_v37 = vadd.f32 %v2663_v58, %v2235_v7 }
 0x559   : > { %v2238_v12 = vpop.f32.mrb[19].mxu1  ;;  %v2247_v10 = vadd.f32 %v2790_v28, %v2663_v58  ;;  %v2276_v56 = vsel %vm2268_vm5, %v2244_v14, -1e+30 }
 0x55a   : > { %v2239_v51 = vadd.f32 %v2663_v58, %v2238_v12  ;;  %v2274_v35 = vsel %vm2266_vm7, %v2236_v37, -1e+30  ;;  %v2284_v61 = vsel %vm694_vm0, %v2276_v56, -inf }
 0x55b   : > { %v2277_v26 = vsel %vm2269_vm8, %v2247_v10, -1e+30  ;;  %v2282_v3 = vsel %vm694_vm0, %v2274_v35, -inf }
 0x55c   : > { %v2275_v2 = vsel %vm2267_vm10, %v2239_v51, -1e+30  ;;  %v2285_v31 = vsel %vm694_vm0, %v2277_v26, -inf }
 0x55d   : > { %v2283_v4 = vsel %vm694_vm0, %v2275_v2, -inf }
 0x56f   : > { %v2793_v16 = vpop.f32.mrb[20].mxu1 }
 0x570   : > { %v2260_v34 = vadd.f32 %v2793_v16, %v2663_v58  ;;  %v2251_v39 = vpop.f32.mrb[21].mxu1 }
 0x571   : > { %v2252_v9 = vadd.f32 %v2663_v58, %v2251_v39  ;;  %v2794_v23 = vpop.f32.mrb[22].mxu1 }
 0x572   : > { %v2280_v30 = vsel %vm2272_vm9, %v2260_v34, -1e+30  ;;  %v2263_v1 = vadd.f32 %v2794_v23, %v2663_v58  ;;  %v2254_v50 = vpop.f32.mrb[23].mxu1 }
 0x573   : > { %v2290_v63 = vsel %vm694_vm0, %v2280_v30, -inf  ;;  %v2278_v55 = vsel %vm2270_vm11, %v2252_v9, -1e+30  ;;  %v2255_v48 = vadd.f32 %v2663_v58, %v2254_v50 }
 0x574   : > { %v2291_v32 = vmax.f32 %v2284_v61, %v2290_v63  ;;  %v2286_v52 = vsel %vm694_vm0, %v2278_v55, -inf  ;;  %v2281_v22 = vsel %vm2273_vm12, %v2263_v1, -1e+30 }
 0x575   : > { %v2287_v40 = vmax.f32 %v2282_v3, %v2286_v52  ;;  %v2292_v11 = vsel %vm694_vm0, %v2281_v22, -inf  ;;  %v2279_v59 = vsel %vm2271_vm13, %v2255_v48, -1e+30 }
 0x576   : > { %v2293_v18 = vmax.f32 %v2285_v31, %v2292_v11  ;;  %v2288_v21 = vsel %vm694_vm0, %v2279_v59, -inf }
 0x577   : > { %v2289_v20 = vmax.f32 %v2283_v4, %v2288_v21 }
 0x578   : > { %v2295_v36 = vmax.f32 %v2291_v32, %v2293_v18 }
 0x579   : > { %v2294_v6 = vmax.f32 %v2287_v40, %v2289_v20 }
 0x57b   : > { %v2296_v57 = vmax.f32 %v2294_v6, %v2295_v36 }
 0x57d   : > { %v2297_v17 = vrot.slane %v2296_v57, 4 }
 0x57f   : > { %v2298_v49 = vmax.f32 %v2296_v57, %v2297_v17 }
 0x581   : > { %v2299_v27 = vrot.slane %v2298_v49, 2 }
 0x583   : > { %v2300_v0 = vmax.f32 %v2298_v49, %v2299_v27 }
 0x585   : > { %v2301_v19 = vrot.slane %v2300_v0, 1 }
 0x587   : > { %v2302_v47 = vmax.f32 %v2300_v0, %v2301_v19 }
 0x589   : > { %v2308_v13 = vsub.f32 %v2279_v59, %v2302_v47  ;;  %v2309_v5 = vsub.f32 %v2280_v30, %v2302_v47  ;;  %v2310_v8 = vsub.f32 %v2281_v22, %v2302_v47  ;;  %v2303_v62 = vsub.f32 %v2274_v35, %v2302_v47 }
 0x58a   : > { %v2304_v7 = vsub.f32 %v2275_v2, %v2302_v47  ;;  %v2305_v28 = vsub.f32 %v2276_v56, %v2302_v47  ;;  %v2306_v12 = vsub.f32 %v2277_v26, %v2302_v47  ;;  %v2307_v58 = vsub.f32 %v2278_v55, %v2302_v47 }
 0x58b   : > { %v2311_v14 = vmul.f32 1.442695, %v2303_v62  ;;  %v2321_v38 = vmul.f32 1.442695, %v2308_v13  ;;  %v2323_v51 = vmul.f32 1.442695, %v2309_v5 }
 0x58c   : > { %v2313_v24 = vmul.f32 1.442695, %v2304_v7  ;;  %v2315_v37 = vmul.f32 1.442695, %v2305_v28  ;;  %v2317_v33 = vmul.f32 1.442695, %v2306_v12 }
 0x58d   : > { %2889 = vpow2.f32 %v2311_v14  ;;  %v2319_v10 = vmul.f32 1.442695, %v2307_v58  ;;  %v2325_v16 = vmul.f32 1.442695, %v2310_v8 }
 0x58e   : > { %2891 = vpow2.f32 %v2313_v24 }
 0x58f   : > { %2893 = vpow2.f32 %v2315_v37 }
 0x590   : > { %2895 = vpow2.f32 %v2317_v33 }
 0x591   : > { %2897 = vpow2.f32 %v2319_v10 }
 0x592   : > { %2899 = vpow2.f32 %v2321_v38 }
 0x593   : > { %2901 = vpow2.f32 %v2323_v51 }
 0x594   : > { %2903 = vpow2.f32 %v2325_v16 }
 0x597   : > { %v2890_v15 = vpop.eup %2889 }
 0x598   : > { %v2892_v53 = vpop.eup %2891  ;;  %v2327_v56 = vsel %vm694_vm0, %v2890_v15, 0.0 }
 0x599   : > { %v2894_v34 = vpop.eup %2893  ;;  %v2328_v39 = vsel %vm694_vm0, %v2892_v53, 0.0 }
 0x59a   : > { %v2896_v29 = vpop.eup %2895  ;;  %v2329_v35 = vadd.f32 %v2328_v39, %v2327_v56  ;;  %v2330_v9 = vsel %vm694_vm0, %v2894_v34, 0.0  ;;  %v3924_v56 = vld [vmem:[#allocation6_spill] sm:$0xff] }
 0x59b   : > { %v2898_v23 = vpop.eup %2897  ;;  %v2332_v60 = vsel %vm694_vm0, %v2896_v29, 0.0 }
 0x59c   : > { %v2331_v25 = vadd.f32 %v2330_v9, %v2329_v35  ;;  %v2900_v61 = vpop.eup %2899  ;;  %v2334_v30 = vsel %vm694_vm0, %v2898_v23, 0.0 }
 0x59d   : > { %v2902_v1 = vpop.eup %2901  ;;  %v2336_v2 = vsel %vm694_vm0, %v2900_v61, 0.0 }
 0x59e   : > { %v2333_v26 = vadd.f32 %v2332_v60, %v2331_v25  ;;  %v2904_v63 = vpop.eup %2903  ;;  %v2338_v48 = vsel %vm694_vm0, %v2902_v1, 0.0 }
 0x59f   : > { %v2340_v32 = vsel %vm694_vm0, %v2904_v63, 0.0 }
 0x5a0   : > { %v2335_v50 = vadd.f32 %v2334_v30, %v2333_v26 }
 0x5a2   : > { %v2337_v55 = vadd.f32 %v2336_v2, %v2335_v50 }
 0x5a4   : > { %v2339_v3 = vadd.f32 %v2338_v48, %v2337_v55 }
 0x5a6   : > { %v2341_v52 = vadd.f32 %v2340_v32, %v2339_v3 }
 0x5a8   : > { %v2342_v22 = vrot.slane %v2341_v52, 4 }
 0x5aa   : > { %v2343_v31 = vadd.f32 %v2342_v22, %v2341_v52 }
 0x5ac   : > { %v2344_v40 = vrot.slane %v2343_v31, 2 }
 0x5ae   : > { %v2345_v11 = vadd.f32 %v2344_v40, %v2343_v31 }
 0x5b0   : > { %v2346_v59 = vrot.slane %v2345_v11, 1 }
 0x5b2   : > { %v2347_v4 = vadd.f32 %v2346_v59, %v2345_v11 }
 0x5b4   : > { %2905 = vrcp.f32 %v2347_v4 }
 0x5be   : > { %v2906_v18 = vpop.eup %2905 }
 0x5bf   : > { %v2350_v21 = vmul.f32 %v2906_v18, %v2892_v53  ;;  %v2349_v20 = vmul.f32 %v2906_v18, %v2890_v15  ;;  %v2352_v36 = vmul.f32 %v2906_v18, %v2896_v29  ;;  %v2351_v6 = vmul.f32 %v2906_v18, %v2894_v34 }
 0x5c0   : > { %v2354_v57 = vmul.f32 %v2906_v18, %v2900_v61  ;;  %v2353_v17 = vmul.f32 %v2906_v18, %v2898_v23  ;;  %v2356_v49 = vmul.f32 %v2906_v18, %v2904_v63  ;;  %v2355_v27 = vmul.f32 %v2906_v18, %v2902_v1 }
 0x5c1   : > { %2364 = vperm.xlu0 %2841, %v2350_v21   ;;  %2359 = vperm.xlu1 %2842, %v2349_v20  }
 0x5c5   : > { %2374 = vperm.xlu0 %2841, %v2352_v36   ;;  %2369 = vperm.xlu1 %2842, %v2351_v6  }
 0x5c9   : > { %2384 = vperm.xlu0 %2841, %v2354_v57   ;;  %2379 = vperm.xlu1 %2842, %v2353_v17  }
 0x5cd   : > { %2394 = vperm.xlu0 %2841, %v2356_v49   ;;  %2389 = vperm.xlu1 %2842, %v2355_v27  }
 0x640   : > { %v2365_v0 = vpop.permute.xlu0 %2364  ;;  %v2360_v19 = vpop.permute.xlu1 %2359 }
 0x641   : > { %v2398_v47 = vmul.f32 %v2365_v0, %v3261_v42  ;;  %v2397_v13 = vmul.f32 %v2360_v19, %v3258_v41 }
 0x643   : > { %v2406_v5 = vsel %vm560_vm1, %v2398_v47, 0.0  ;;  %v2405_v8 = vsel %vm560_vm1, %v2397_v13, 0.0 }
 0x644   : > { %v2375_v62 = vpop.permute.xlu0 %2374  ;;  %v2370_v7 = vpop.permute.xlu1 %2369  ;;  %v2407_v58 = vadd.f32 %v2406_v5, %v2405_v8 }
 0x645   : > { %v2400_v28 = vmul.f32 %v2375_v62, %v3267_v44  ;;  %v2399_v12 = vmul.f32 %v2370_v7, %v3264_v43 }
 0x647   : > { %v2408_v14 = vsel %vm560_vm1, %v2399_v12, 0.0  ;;  %v2410_v42 = vsel %vm560_vm1, %v2400_v28, 0.0 }
 0x648   : > { %v2409_v24 = vadd.f32 %v2408_v14, %v2407_v58  ;;  %v2385_v37 = vpop.permute.xlu0 %2384  ;;  %v2380_v33 = vpop.permute.xlu1 %2379 }
 0x649   : > { %v2402_v41 = vmul.f32 %v2385_v37, %v3273_v46  ;;  %v2401_v10 = vmul.f32 %v2380_v33, %v3270_v45 }
 0x64a   : > { %v2411_v38 = vadd.f32 %v2410_v42, %v2409_v24 }
 0x64b   : > { %v2412_v51 = vsel %vm560_vm1, %v2401_v10, 0.0  ;;  %v2414_v15 = vsel %vm560_vm1, %v2402_v41, 0.0 }
 0x64c   : > { %v2413_v44 = vadd.f32 %v2412_v51, %v2411_v38  ;;  %v2395_v16 = vpop.permute.xlu0 %2394  ;;  %v2390_v43 = vpop.permute.xlu1 %2389 }
 0x64d   : > { %v2404_v53 = vmul.f32 %v2395_v16, %v3279_v54  ;;  %v2403_v34 = vmul.f32 %v2390_v43, %v3924_v56 }
 0x64e   : > { %v2415_v39 = vadd.f32 %v2414_v15, %v2413_v44 }
 0x64f   : > { %v2416_v29 = vsel %vm560_vm1, %v2403_v34, 0.0  ;;  %v2418_v45 = vsel %vm560_vm1, %v2404_v53, 0.0 }
 0x650   : > { %v2417_v46 = vadd.f32 %v2416_v29, %v2415_v39 }
 0x652   : > { %v2419_v35 = vadd.f32 %v2418_v45, %v2417_v46 }
 0x654   : > { %v2420_v9 = vrot.slane %v2419_v35, 4 }
 0x656   : > { %v2421_v23 = vadd.f32 %v2420_v9, %v2419_v35 }
 0x658   : > { %v2422_v25 = vrot.slane %v2421_v23, 2 }
 0x65a   : > { %v2423_v60 = vadd.f32 %v2422_v25, %v2421_v23 }
 0x65c   : > { %v2424_v61 = vrot.slane %v2423_v60, 1 }
 0x65e   : > { %v2425_v54 = vadd.f32 %v2424_v61, %v2423_v60 }
 0x660   : > { %2426 = vst.msk [vmem:[%s499_s24] sm:$0x1] %vm881_vm6, %v2425_v54 }
 0x661 PF: > { %s22_s25 = sadd.s32 1, %s2954_s25   ;;  %s3925_s22 = sld [smem:[#allocation3_spill]] }
 0x662   : > { %p19_p7 = scmp.ge.s32.totalorder %s22_s25, 10   ;;  %s3926_s26 = sld [smem:[#allocation4_spill]] }
 0x663   : > { %s3927_s24 = sld [smem:[#allocation5_spill]]  ;;  %s3928_s21 = smov %s2946_s23 }
 0x664   :  { %21 = sbr.rel (!%p19_p7) target bundleno = 3 (0x3), region = 109 }
 0x668   : > { %s3929_s23 = smov %s3926_s26 }

// kernel: generalized_rcnn_forward.3
= control target key start
LH: loop header
LB: loop body
LE: loop exit
PB: predicated region body
PF: predicated region fallthrough
CT: control target
= control target key end

     0   :  { %s11525_s21 = smov 0   ;;  %s16869_s0 = inlined_call_operand.vmem [shape: bf16[2,18,18,4], index: 0, kind: input, shape index: {}]   ;;  %s16870_s1 = inlined_call_operand.vmem [shape: bf16[256,256], index: 1, kind: input, shape index: {}]   ;;  %s16871_s2 = inlined_call_operand.vmem [shape: bf16[36,32], index: 2, kind: input, shape index: {}]   ;;  %s16872_s3 = inlined_call_operand.vmem [shape: f32[1,32], index: 3, kind: input, shape index: {}]   ;;  %s16873_s4 = inlined_call_operand.vmem [shape: bf16[32,32], index: 4, kind: input, shape index: {}]   ;;  %s16874_s5 = inlined_call_operand.vmem [shape: f32[1,32], index: 5, kind: input, shape index: {}]   ;;  %s16875_s6 = inlined_call_operand.vmem [shape: bf16[32,8], index: 6, kind: input, shape index: {}]   ;;  %s16876_s7 = inlined_call_operand.vmem [shape: f32[1,8], index: 7, kind: input, shape index: {}]   ;;  %s16877_s8 = inlined_call_operand.vmem [shape: bf16[8,32], index: 8, kind: input, shape index: {}]   ;;  %s16878_s9 = inlined_call_operand.vmem [shape: f32[1,32], index: 9, kind: input, shape index: {}]   ;;  %s16879_s10 = inlined_call_operand.vmem [shape: bf16[288,32], index: 10, kind: input, shape index: {}]   ;;  %s16880_s11 = inlined_call_operand.vmem [shape: f32[1,32], index: 11, kind: input, shape index: {}]   ;;  %s16881_s12 = inlined_call_operand.vmem [shape: bf16[32,128], index: 12, kind: input, shape index: {}]   ;;  %s16882_s13 = inlined_call_operand.vmem [shape: f32[1,128], index: 13, kind: input, shape index: {}]   ;;  %s16883_s14 = inlined_call_operand.vmem [shape: bf16[2,4,64,32], index: 14, kind: output, shape index: {0}]   ;;  %s16884_s15 = inlined_call_operand.vmem [shape: bf16[2,256,128], index: 15, kind: output, shape index: {1}]   ;;  %s16885_s16 = inlined_call_operand.vmem [shape: f32[2,1,32], index: 16, kind: output, shape index: {2}]  }
   0x1   :  { %16967 = sst [smem:[#allocation106_spill]] %s16869_s0 }
   0x2 LB: > { %s9618_s22 = sadd.s32 4294967295, %s11425_s21   ;;  %p9622_p0 = scmp.ge.s32.totalorder %s11425_s21, 1  ;;  %s11425_s21 = sphi %s11525_s21, %s27_s21  }
   0x3   : > { %p467_p1 = scmp.lt.s32.totalorder %s11425_s21, 3 }
   0x5   : > { %p468_p2 = pnand %p9622_p0, %p467_p1 }
   0x7   : > { %471 = sbr.rel (%p468_p2) target bundleno = 2640 (0xa50), region = 76 }
   0xe   : > { %p525_p3 = scmp.lt.s32.totalorder %s9618_s22, 1  ;;  %vm1043_vm0 = vcmask 1042432   ;;  %vm1044_vm1 = vcmask 1046532   ;;  %s16968_s26 = sld [smem:[#allocation106_spill]]  ;;  %v16969_v17 = vmov 0  ;;  %vm3112_vm6 = vcmask 31744  }
   0xf   : > { %s11427_s28 = smov 12   ;;  %vm11563_vm2 = vmor %vm1043_vm0, %vm1044_vm1  ;;  %vm592_vm3 = vsmask.f32 3328  ;;  %vm593_vm4 = vsmask.f32 7440  ;;  %s11428_s29 = smov 20  }
  0x10   : > { %s17346_s22 = smov (!%p525_p3, %s9618_s22), 1  ;;  %v16970_v17 = vsel %vm11563_vm2, 4294967295, %v16969_v17  ;;  %s11429_s30 = smov 8   ;;  %vm11607_vm5 = vmor %vm592_vm3, %vm593_vm4  ;;  %vm3161_vm7 = vcmask 64512   ;;  %vm3194_vm8 = vcmask 97280   ;;  %vm3227_vm9 = vcmask 130048  }
  0x11   : > { %s11024_s23 = smul.u32 216, %s17346_s22  ;;  %16971 = vst [vmem:[#allocation3_spill] sm:$0xff] %v16970_v17  ;;  %s11430_s0 = smov 4   ;;  %vm3260_vm10 = vcmask 162816   ;;  %vm3293_vm11 = vcmask 195584   ;;  %vm3326_vm12 = vcmask 228352  }
  0x12   : > { %s11431_s17 = smov 16   ;;  %s11432_s18 = smov 24   ;;  %vm3452_vm13 = vcmask 1041408   ;;  %vm3359_vm14 = vcmask 261120   ;;  %vm3419_vm15 = vcmask 293888   ;;  %vm4146_vm0 = vcmask 257024  }
  0x13   : > { %s11433_s19 = smov 28   ;;  %s11434_s24 = smov 32   ;;  %vm4685_vm1 = vcmask 253952   ;;  %vm11437_vm3 = vmmov 0   ;;  %vm4581_vm4 = vcmask 1043456  }
  0x14   : > { %s11539_s27 = scalar_lea.vmem %s16968_s26, %s11024_s23 }
  0x15   : > { %v9646_v0 = vld [vmem:[%s11539_s27 + $0x18] sm:$0xf]  ;;  %v11543_v1 = vld [vmem:[%s11539_s27 + $0x1c] sm:$0xf]  ;;  %v9644_v2 = vld [vmem:[%s11539_s27 + $0xc] sm:$0xf] }
  0x16   : > { %v1241_v3 = vshll.u32 %v11543_v1, 16  ;;  %v1245_v4 = vshrl.u32 %v11543_v1, 16  ;;  %v9853_v5 = vcombine.low %v9646_v0, %v11543_v1  ;;  %v1232_v6 = vshrl.u32 %v9646_v0, 16  ;;  %v11550_v7 = vld [vmem:[%s11539_s27 + $0x10] sm:$0xf] }
  0x17   : > { %v1235_v8 = vshll.u32 %v9646_v0, 16  ;;  %v1217_v9 = vshll.u32 %v11550_v7, 16  ;;  %v1221_v10 = vshrl.u32 %v11550_v7, 16  ;;  %v9852_v11 = vcombine.low %v9644_v2, %v11550_v7  ;;  %v11556_v12 = vld [vmem:[%s11539_s27 + $0x14] sm:$0x1] }
  0x18   : > { %v11558_v13 = vrot.slane %v1245_v4, 4  ;;  %2666 = vrot.lane.b32.xlu1 %v9853_v5, %s11427_s28  ;;  %v1234_v14 = vrot.slane %v1232_v6, 4  ;;  %v1208_v15 = vshrl.u32 %v9644_v2, 16  ;;  %v1211_v16 = vshll.u32 %v9644_v2, 16  ;;  %v9692_v18 = vld [vmem:[%s11539_s27 + $0xc] sm:$0xe] }
  0x19   : > { %v1237_v19 = vrot.slane %v1235_v8, 5  ;;  %v11568_v20 = vrot.slane %v1221_v10, 4  ;;  %2664 = vrot.lane.b32.xlu0 %v9852_v11, %s11427_s28  ;;  %v9708_v21 = vrot.slane %v9692_v18, 9  ;;  %v1657_v22 = vrot.slane %v11550_v7, 5  ;;  %v545_v23 = vld [vmem:[%s11539_s27 + $0x4] sm:$0xf] }
  0x1a   : > { %v1210_v24 = vrot.slane %v1208_v15, 4  ;;  %v1213_v25 = vrot.slane %v1211_v16, 5  ;;  %v1660_v26 = vrot.slane %v11556_v12, 5  ;;  %v576_v27 = vld [vmem:[%s11539_s27 + $0x8] sm:$0x1]  ;;  %v1048_v28 = vrot.slane %v545_v23, 5 }
  0x1b   : > { %v1238_v29 = vor.u32 %v1237_v19, %v1234_v14  ;;  %v1658_v30 = vsel %vm11563_vm2, %v9708_v21, %v1657_v22  ;;  %v1659_v31 = vrot.slane %v1657_v22, 4  ;;  %v979_v32 = vld [vmem:[%s11539_s27] sm:$0xe]  ;;  %v1051_v33 = vrot.slane %v576_v27, 5  ;;  %v547_v34 = vld [vmem:[%s11539_s27 + $0x10] sm:$0xf] }
  0x1c   : > { %v1214_v35 = vor.u32 %v1213_v25, %v1210_v24  ;;  %v9628_v36 = vrot.slane %v979_v32, 9  ;;  %v1050_v37 = vrot.slane %v1048_v28, 4  ;;  %v577_v38 = vld [vmem:[%s11539_s27 + $0x14] sm:$0x1]  ;;  %v980_v39 = vld [vmem:[%s11539_s27 + $0xc] sm:$0xe] }
  0x1d   : > { %v11581_v40 = vrot.slane %v1238_v29, 4  ;;  %v1661_v41 = vsel %vm11563_vm2, %v1659_v31, %v1660_v26  ;;  %v9629_v42 = vrot.slane %v980_v39, 9  ;;  %v1055_v43 = vrot.slane %v547_v34, 5  ;;  %v544_v44 = vld [vmem:[%s11539_s27] sm:$0xf] }
  0x1e   : > { %v11586_v45 = vrot.slane %v1214_v35, 4  ;;  %v9884_v46 = vcombine.low %v1658_v30, %v1661_v41  ;;  %v1049_v47 = vsel %vm11563_vm2, %v9628_v36, %v1048_v28  ;;  %v1052_v48 = vsel %vm11563_vm2, %v1050_v37, %v1051_v33  ;;  %v9693_v49 = vld [vmem:[%s11539_s27 + $0x18] sm:$0xe]  ;;  %v9677_v58 = vld [vmem:[%s11539_s27 + $0x20] sm:$0x1] }
  0x1f   : > { %v9836_v50 = vcombine.low %v1049_v47, %v1052_v48  ;;  %v1056_v51 = vsel %vm11563_vm2, %v9629_v42, %v1055_v43  ;;  %v1057_v52 = vrot.slane %v1055_v43, 4  ;;  %v1058_v53 = vrot.slane %v577_v38, 5  ;;  %v546_v63 = vld [vmem:[%s11539_s27 + $0xc] sm:$0xf]  ;;  %v9726_v42 = vld [vmem:[%s11539_s27 + $0x24] sm:$0xf] }
  0x20   : > { %2824 = vrot.lane.b32.xlu0 %v9884_v46, %s11428_s29  ;;  %v596_v54 = vshrl.u32 %v544_v44, 16  ;;  %v599_v55 = vshll.u32 %v544_v44, 16  ;;  %v605_v56 = vshll.u32 %v545_v23, 16  ;;  %v609_v57 = vshrl.u32 %v545_v23, 16 }
  0x21   : > { %2568 = vrot.lane.b32.xlu1 %v9836_v50, %s11429_s30  ;;  %v1059_v59 = vsel %vm11563_vm2, %v1057_v52, %v1058_v53  ;;  %v615_v60 = vshll.u32 %v576_v27, 16  ;;  %v9709_v61 = vrot.slane %v9693_v49, 9  ;;  %v1664_v62 = vrot.slane %v11543_v1, 5 }
  0x22   : > { %v9837_v0 = vcombine.low %v1056_v51, %v1059_v59  ;;  %v598_v2 = vrot.slane %v596_v54, 4  ;;  %v601_v4 = vrot.slane %v599_v55, 5  ;;  %v607_v5 = vrot.slane %v605_v56, 5  ;;  %v9724_v51 = vld [vmem:[%s11539_s27 + $0x18] sm:$0xf] }
  0x23   : > { %v611_v6 = vrot.slane %v609_v57, 4  ;;  %v617_v8 = vrot.slane %v615_v60, 5  ;;  %v1665_v10 = vsel %vm11563_vm2, %v9709_v61, %v1664_v62  ;;  %v1666_v11 = vrot.slane %v1664_v62, 4  ;;  %v11649_v62 = vld [vmem:[%s11539_s27 + $0x2c] sm:$0x1] }
  0x24   : > { %v602_v14 = vor.u32 %v601_v4, %v598_v2  ;;  %v1667_v15 = vrot.slane %v9677_v58, 5  ;;  %v620_v16 = vshrl.u32 %v546_v63, 16  ;;  %v623_v18 = vshll.u32 %v546_v63, 16 }
  0x25   : > { %2570 = vrot.lane.b32.xlu1 %v9837_v0, %s11429_s30  ;;  %v16972_v19 = vmov 0  ;;  %v612_v21 = vor.u32 %v611_v6, %v607_v5  ;;  %v629_v22 = vshll.u32 %v547_v34, 16  ;;  %v633_v23 = vshrl.u32 %v547_v34, 16 }
  0x26   : > { %v16973_v19 = vsel %vm11607_vm5, 4294967295, %v16972_v19  ;;  %v639_v24 = vshll.u32 %v577_v38, 16  ;;  %v603_v25 = vrot.slane %v602_v14, 4  ;;  %v1668_v26 = vsel %vm11563_vm2, %v1666_v11, %v1667_v15  ;;  %v548_v14 = vld [vmem:[%s11539_s27 + $0x18] sm:$0xf] }
  0x27   : > { %16974 = vst [vmem:[#allocation4_spill] sm:$0xff] %v16973_v19  ;;  %v622_v27 = vrot.slane %v620_v16, 4  ;;  %v625_v28 = vrot.slane %v623_v18, 5  ;;  %v613_v29 = vrot.slane %v612_v21, 4  ;;  %v9885_v30 = vcombine.low %v1665_v10, %v1668_v26  ;;  %v11666_v26 = vld [vmem:[%s11539_s27 + $0x1c] sm:$0xf] }
  0x28   : > { %v631_v31 = vrot.slane %v629_v22, 5  ;;  %v635_v32 = vrot.slane %v633_v23, 4  ;;  %v608_v33 = vsel %vm11607_vm5, %v603_v25, %v607_v5  ;;  %v641_v36 = vrot.slane %v639_v24, 5  ;;  %v11657_v5 = vld [vmem:[%s11539_s27 + $0x20] sm:$0x1] }
  0x29   : > { %v626_v35 = vor.u32 %v625_v28, %v622_v27  ;;  %v1243_v34 = vrot.slane %v1241_v3, 5  ;;  %v618_v37 = vsel %vm11607_vm5, %v613_v29, %v617_v8  ;;  %2826 = vrot.lane.b32.xlu1 %v9885_v30, %s11428_s29  ;;  %v1251_v39 = vshll.u32 %v9677_v58, 16  ;;  %v11628_v3 = vld [vmem:[%s11539_s27 + $0x28] sm:$0xf]  ;;  %v11670_v30 = vld [vmem:[%s11539_s27 + $0x20] sm:$0x1] }
  0x2a   : > { %v636_v38 = vor.u32 %v635_v32, %v631_v31  ;;  %v1219_v41 = vrot.slane %v1217_v9, 5  ;;  %v9820_v43 = vcombine.low %v608_v33, %v618_v37  ;;  %v1841_v50 = vshrl.u32 %v9726_v42, 16 }
  0x2b   : > { %v627_v44 = vrot.slane %v626_v35, 4  ;;  %v1244_v46 = vsel %vm11607_vm5, %v11581_v40, %v1243_v34  ;;  %v1248_v1 = vor.u32 %v11558_v13, %v1243_v34  ;;  %v1253_v48 = vrot.slane %v1251_v39, 5  ;;  %v9772_v34 = vld [vmem:[%s11539_s27 + $0x18] sm:$0xe] }
  0x2c   : > { %v637_v47 = vrot.slane %v636_v38, 4  ;;  %v1220_v7 = vsel %vm11607_vm5, %v11586_v45, %v1219_v41  ;;  %v1224_v9 = vor.u32 %v11568_v20, %v1219_v41  ;;  %2488 = vrot.lane.b32.xlu0 %v9820_v43, %s11430_s0  ;;  %v1227_v13 = vshll.u32 %v11556_v12, 16  ;;  %v11643_v20 = vld [vmem:[%s11539_s27 + $0x1c] sm:$0xf] }
  0x2d   : > { %v632_v49 = vsel %vm11607_vm5, %v627_v44, %v631_v31  ;;  %v1249_v40 = vrot.slane %v1248_v1, 4  ;;  %v1844_v54 = vshll.u32 %v9726_v42, 16  ;;  %v1854_v45 = vshrl.u32 %v11628_v3, 16 }
  0x2e   : > { %v642_v52 = vsel %vm11607_vm5, %v637_v47, %v641_v36  ;;  %v1225_v53 = vrot.slane %v1224_v9, 4  ;;  %v1229_v57 = vrot.slane %v1227_v13, 5  ;;  %v1843_v58 = vrot.slane %v1841_v50, 4  ;;  %v550_v9 = vld [vmem:[%s11539_s27 + $0x24] sm:$0xf] }
  0x2f   : > { %v9821_v55 = vcombine.low %v632_v49, %v642_v52  ;;  %v1254_v56 = vsel %vm11607_vm5, %v1249_v40, %v1253_v48  ;;  %v1846_v59 = vrot.slane %v1844_v54, 5  ;;  %v9901_v60 = vcombine.low %v9726_v42, %v11628_v3 }
  0x30   : > { %v9869_v12 = vcombine.low %v1244_v46, %v1254_v56  ;;  %v1817_v61 = vshrl.u32 %v9724_v51, 16  ;;  %v1230_v63 = vsel %vm11607_vm5, %v1225_v53, %v1229_v57  ;;  %v1820_v0 = vshll.u32 %v9724_v51, 16 }
  0x31   : > { %2490 = vrot.lane.b32.xlu0 %v9821_v55, %s11430_s0  ;;  %v1830_v2 = vshrl.u32 %v11643_v20, 16  ;;  %v9900_v4 = vcombine.low %v9724_v51, %v11643_v20  ;;  %v9868_v6 = vcombine.low %v1220_v7, %v1230_v63  ;;  %v1847_v10 = vor.u32 %v1846_v59, %v1843_v58  ;;  %v551_v51 = vld [vmem:[%s11539_s27 + $0x28] sm:$0xf]  ;;  %v579_v58 = vld [vmem:[%s11539_s27 + $0x2c] sm:$0x1] }
  0x32   : > { %2746 = vrot.lane.b32.xlu1 %v9869_v12, %s11431_s17  ;;  %v1819_v8 = vrot.slane %v1817_v61, 4  ;;  %v1850_v11 = vshll.u32 %v11628_v3, 16  ;;  %v1822_v15 = vrot.slane %v1820_v0, 5  ;;  %v1856_v16 = vrot.slane %v1854_v45, 4  ;;  %v9773_v0 = vld [vmem:[%s11539_s27 + $0x24] sm:$0xe] }
  0x33   : > { %v1860_v18 = vshll.u32 %v11649_v62, 16  ;;  %v1826_v21 = vshll.u32 %v11643_v20, 16  ;;  %v1848_v22 = vrot.slane %v1847_v10, 4  ;;  %v1832_v24 = vrot.slane %v1830_v2, 4 }
  0x34   : > { %v1852_v23 = vrot.slane %v1850_v11, 5  ;;  %v1836_v25 = vshll.u32 %v11657_v5, 16  ;;  %v1823_v28 = vor.u32 %v1822_v15, %v1819_v8  ;;  %v644_v31 = vshrl.u32 %v548_v14, 16  ;;  %v11066_v15 = vld [vmem:[%s16871_s2] sm:$0xff]  }
  0x35   : > { %2744 = vrot.lane.b32.xlu0 %v9868_v6, %s11431_s17  ;;  %v1862_v27 = vrot.slane %v1860_v18, 5  ;;  %v1828_v29 = vrot.slane %v1826_v21, 5  ;;  %v647_v36 = vshll.u32 %v548_v14, 16  ;;  %v653_v41 = vshll.u32 %v11666_v26, 16  ;;  %v982_v14 = vld [vmem:[%s11539_s27 + $0x24] sm:$0xe]  ;;  %10863 = vmatprep.subr.bf16.mxu0 %v11066_v15 }
  0x36   : > { %2922 = vrot.lane.b32.xlu1 %v9901_v60, %s11432_s18  ;;  %v1853_v32 = vsel %vm11607_vm5, %v1848_v22, %v1852_v23  ;;  %v1857_v33 = vor.u32 %v1856_v16, %v1852_v23  ;;  %v1838_v35 = vrot.slane %v1836_v25, 5  ;;  %v1824_v37 = vrot.slane %v1823_v28, 4  ;;  %v981_v28 = vld [vmem:[%s11539_s27 + $0x18] sm:$0xe]  ;;  %10864 = vmatpush3.bf16.msra.mxu0 %v11066_v15  ;;  %v9694_v15 = vld [vmem:[%s11539_s27 + $0x24] sm:$0xe] }
  0x37   : > { %v1833_v38 = vor.u32 %v1832_v24, %v1828_v29  ;;  %v646_v39 = vrot.slane %v644_v31, 4  ;;  %v649_v43 = vrot.slane %v647_v36, 5  ;;  %v657_v44 = vshrl.u32 %v11666_v26, 16 }
  0x38   : > { %v1858_v42 = vrot.slane %v1857_v33, 4  ;;  %v663_v46 = vshll.u32 %v11670_v30, 16  ;;  %v1829_v1 = vsel %vm11607_vm5, %v1824_v37, %v1828_v29  ;;  %v655_v48 = vrot.slane %v653_v41, 5  ;;  %v11714_v37 = vld [vmem:[%s11539_s27 + $0x30] sm:$0xf] }
  0x39   : > { %2920 = vrot.lane.b32.xlu0 %v9900_v4, %s11432_s18  ;;  %v1834_v47 = vrot.slane %v1833_v38, 4  ;;  %v9788_v7 = vrot.slane %v9772_v34, 9  ;;  %v650_v40 = vor.u32 %v649_v43, %v646_v39  ;;  %v659_v13 = vrot.slane %v657_v44, 4  ;;  %v11069_v38 = vld [vmem:[%s16871_s2 + $0x8] sm:$0xff]  }
  0x3a   : > { %v1863_v49 = vsel %vm11607_vm5, %v1858_v42, %v1862_v27  ;;  %v665_v50 = vrot.slane %v663_v46, 5  ;;  %v2266_v54 = vrot.slane %v11643_v20, 5  ;;  %v2269_v45 = vrot.slane %v11657_v5, 5  ;;  %10865 = vmatprep.subr.bf16.mxu0 %v11069_v38 }
  0x3b   : > { %v9917_v52 = vcombine.low %v1853_v32, %v1863_v49  ;;  %v1839_v53 = vsel %vm11607_vm5, %v1834_v47, %v1838_v35  ;;  %v651_v56 = vrot.slane %v650_v40, 4  ;;  %v660_v57 = vor.u32 %v659_v13, %v655_v48  ;;  %v9651_v47 = vld [vmem:[%s11539_s27 + $0x34] sm:$0xf]  ;;  %v9648_v40 = vld [vmem:[%s11539_s27 + $0x24] sm:$0xf]  ;;  %10866 = vmatpush3.bf16.msra.mxu0 %v11069_v38 }
  0x3c   : > { %v9916_v55 = vcombine.low %v1829_v1, %v1839_v53  ;;  %v668_v12 = vshrl.u32 %v550_v9, 16  ;;  %v2267_v59 = vsel %vm11563_vm2, %v9788_v7, %v2266_v54  ;;  %v2268_v60 = vrot.slane %v2266_v54, 4  ;;  %v11735_v13 = vld [vmem:[%s11539_s27 + $0x28] sm:$0xf] }
  0x3d   : > { %3002 = vrot.lane.b32.xlu1 %v9917_v52, %s11433_s19  ;;  %v671_v61 = vshll.u32 %v550_v9, 16  ;;  %v677_v63 = vshll.u32 %v551_v51, 16  ;;  %v656_v20 = vsel %vm11607_vm5, %v651_v56, %v655_v48  ;;  %v661_v2 = vrot.slane %v660_v57, 4 }
  0x3e   : > { %3000 = vrot.lane.b32.xlu0 %v9916_v55, %s11433_s19  ;;  %v670_v4 = vrot.slane %v668_v12, 4  ;;  %v681_v5 = vshrl.u32 %v551_v51, 16  ;;  %v2270_v6 = vsel %vm11563_vm2, %v2268_v60, %v2269_v45  ;;  %v687_v11 = vshll.u32 %v579_v58, 16  ;;  %v9679_v55 = vld [vmem:[%s11539_s27 + $0x38] sm:$0x1] }
  0x3f   : > { %v673_v8 = vrot.slane %v671_v61, 5  ;;  %v679_v10 = vrot.slane %v677_v63, 5  ;;  %v666_v16 = vsel %vm11607_vm5, %v661_v2, %v665_v50  ;;  %v9932_v18 = vcombine.low %v2267_v59, %v2270_v6 }
  0x40   : > { %v683_v21 = vrot.slane %v681_v5, 4  ;;  %v9789_v22 = vrot.slane %v9773_v0, 9  ;;  %v9822_v23 = vcombine.low %v656_v20, %v666_v16  ;;  %v689_v25 = vrot.slane %v687_v11, 5  ;;  %v9678_v0 = vld [vmem:[%s11539_s27 + $0x2c] sm:$0x1] }
  0x41   : > { %v674_v24 = vor.u32 %v673_v8, %v670_v4  ;;  %v2273_v27 = vrot.slane %v11628_v3, 5  ;;  %v2276_v31 = vrot.slane %v11649_v62, 5  ;;  %v9631_v32 = vrot.slane %v982_v14, 9  ;;  %v9695_v20 = vld [vmem:[%s11539_s27 + $0x30] sm:$0xe] }
  0x42   : > { %3080 = vrot.lane.b32.xlu0 %v9932_v18, %s11434_s24  ;;  %v684_v29 = vor.u32 %v683_v21, %v679_v10  ;;  %v1069_v33 = vrot.slane %v551_v51, 5  ;;  %2492 = vrot.lane.b32.xlu1 %v9822_v23, %s11430_s0  ;;  %v1072_v3 = vrot.slane %v579_v58, 5  ;;  %v9630_v42 = vrot.slane %v981_v28, 9 }
  0x43   : > { %v675_v35 = vrot.slane %v674_v24, 4  ;;  %v2274_v36 = vsel %vm11563_vm2, %v9789_v22, %v2273_v27  ;;  %v2275_v34 = vrot.slane %v2273_v27, 4  ;;  %v1062_v46 = vrot.slane %v11666_v26, 5 }
  0x44   : > { %v685_v62 = vrot.slane %v684_v29, 4  ;;  %v1070_v39 = vsel %vm11563_vm2, %v9631_v32, %v1069_v33  ;;  %v1071_v41 = vrot.slane %v1069_v33, 4  ;;  %v1065_v1 = vrot.slane %v11670_v30, 5  ;;  %v11755_v33 = vld [vmem:[%s11539_s27 + $0x3c] sm:$0xf] }
  0x45   : > { %v680_v43 = vsel %vm11607_vm5, %v675_v35, %v679_v10  ;;  %v2277_v44 = vsel %vm11563_vm2, %v2275_v34, %v2276_v31  ;;  %v1280_v49 = vshrl.u32 %v11714_v37, 16  ;;  %v1063_v30 = vsel %vm11563_vm2, %v9630_v42, %v1062_v46 }
  0x46   : > { %v690_v48 = vsel %vm11607_vm5, %v685_v62, %v689_v25  ;;  %v9933_v7 = vcombine.low %v2274_v36, %v2277_v44  ;;  %v1073_v9 = vsel %vm11563_vm2, %v1071_v41, %v1072_v3  ;;  %v1064_v51 = vrot.slane %v1062_v46, 4 }
  0x47   : > { %v9823_v50 = vcombine.low %v680_v43, %v690_v48  ;;  %v9839_v26 = vcombine.low %v1070_v39, %v1073_v9  ;;  %v1282_v52 = vrot.slane %v1280_v49, 4  ;;  %v1283_v53 = vshll.u32 %v11714_v37, 16  ;;  %v11769_v43 = vld [vmem:[%s11539_s27 + $0x40] sm:$0xf]  ;;  %v9728_v9 = vld [vmem:[%s11539_s27 + $0x30] sm:$0xf] }
  0x48   : > { %3082 = vrot.lane.b32.xlu0 %v9933_v7, %s11434_s24  ;;  %v1293_v54 = vshrl.u32 %v9651_v47, 16  ;;  %v9855_v45 = vcombine.low %v11714_v37, %v9651_v47  ;;  %v1066_v56 = vsel %vm11563_vm2, %v1064_v51, %v1065_v1  ;;  %v1256_v57 = vshrl.u32 %v9648_v40, 16  ;;  %v11779_v49 = vld [vmem:[%s11539_s27 + $0x34] sm:$0xf] }
  0x49   : > { %2494 = vrot.lane.b32.xlu1 %v9823_v50, %s11430_s0  ;;  %v1259_v58 = vshll.u32 %v9648_v40, 16  ;;  %v1269_v12 = vshrl.u32 %v11735_v13, 16  ;;  %v9838_v59 = vcombine.low %v1063_v30, %v1066_v56  ;;  %v1285_v60 = vrot.slane %v1283_v53, 5 }
  0x4a   : > { %v9854_v61 = vcombine.low %v9648_v40, %v11735_v13  ;;  %v1289_v63 = vshll.u32 %v9651_v47, 16  ;;  %v1258_v2 = vrot.slane %v1256_v57, 4  ;;  %v1295_v5 = vrot.slane %v1293_v54, 4  ;;  %v11790_v54 = vld [vmem:[%s11539_s27 + $0x44] sm:$0x1] }
  0x4b   : > { %v1261_v4 = vrot.slane %v1259_v58, 5  ;;  %v1299_v6 = vshll.u32 %v9679_v55, 16  ;;  %v1286_v8 = vor.u32 %v1285_v60, %v1282_v52  ;;  %v1265_v11 = vshll.u32 %v11735_v13, 16  ;;  %v11794_v58 = vld [vmem:[%s11539_s27 + $0x38] sm:$0x1] }
  0x4c   : > { %2572 = vrot.lane.b32.xlu0 %v9838_v59, %s11429_s30  ;;  %v1291_v10 = vrot.slane %v1289_v63, 5  ;;  %v1271_v14 = vrot.slane %v1269_v12, 4  ;;  %v1275_v21 = vshll.u32 %v9678_v0, 16  ;;  %v9711_v22 = vrot.slane %v9695_v20, 9  ;;  %v552_v63 = vld [vmem:[%s11539_s27 + $0x30] sm:$0xf] }
  0x4d   : > { %2574 = vrot.lane.b32.xlu1 %v9839_v26, %s11429_s30  ;;  %v1301_v16 = vrot.slane %v1299_v6, 5  ;;  %v1262_v18 = vor.u32 %v1261_v4, %v1258_v2  ;;  %v1287_v23 = vrot.slane %v1286_v8, 4  ;;  %v1267_v25 = vrot.slane %v1265_v11, 5  ;;  %v11805_v11 = vld [vmem:[%s11539_s27 + $0x34] sm:$0xf] }
  0x4e   : > { %v1296_v24 = vor.u32 %v1295_v5, %v1291_v10  ;;  %v1678_v27 = vrot.slane %v9651_v47, 5  ;;  %v1277_v29 = vrot.slane %v1275_v21, 5  ;;  %v1681_v31 = vrot.slane %v9679_v55, 5 }
  0x4f   : > { %v1263_v28 = vrot.slane %v1262_v18, 4  ;;  %v9710_v32 = vrot.slane %v9694_v15, 9  ;;  %v1292_v35 = vsel %vm11607_vm5, %v1287_v23, %v1291_v10  ;;  %v1272_v34 = vor.u32 %v1271_v14, %v1267_v25  ;;  %v11808_v18 = vld [vmem:[%s11539_s27 + $0x38] sm:$0x1] }
  0x50   : > { %2668 = vrot.lane.b32.xlu0 %v9854_v61, %s11427_s28  ;;  %v1297_v36 = vrot.slane %v1296_v24, 4  ;;  %v1679_v3 = vsel %vm11563_vm2, %v9711_v22, %v1678_v27  ;;  %v1680_v38 = vrot.slane %v1678_v27, 4  ;;  %v1671_v62 = vrot.slane %v11735_v13, 5  ;;  %v9774_v27 = vld [vmem:[%s11539_s27 + $0x30] sm:$0xe] }
  0x51   : > { %2670 = vrot.lane.b32.xlu1 %v9855_v45, %s11427_s28  ;;  %v1268_v37 = vsel %vm11607_vm5, %v1263_v28, %v1267_v25  ;;  %v1674_v39 = vrot.slane %v9678_v0, 5  ;;  %v1273_v42 = vrot.slane %v1272_v34, 4  ;;  %v1889_v44 = vshrl.u32 %v11755_v33, 16 }
  0x52   : > { %v1302_v41 = vsel %vm11607_vm5, %v1297_v36, %v1301_v16  ;;  %v1892_v46 = vshll.u32 %v11755_v33, 16  ;;  %v1682_v47 = vsel %vm11563_vm2, %v1680_v38, %v1681_v31  ;;  %v1672_v48 = vsel %vm11563_vm2, %v9710_v32, %v1671_v62 }
  0x53   : > { %v9871_v1 = vcombine.low %v1292_v35, %v1302_v41  ;;  %v1673_v7 = vrot.slane %v1671_v62, 4  ;;  %v1278_v40 = vsel %vm11607_vm5, %v1273_v42, %v1277_v29  ;;  %v9887_v13 = vcombine.low %v1679_v3, %v1682_v47 }
  0x54   : > { %v1891_v50 = vrot.slane %v1889_v44, 4  ;;  %v1894_v26 = vrot.slane %v1892_v46, 5  ;;  %v9870_v30 = vcombine.low %v1268_v37, %v1278_v40  ;;  %v1902_v52 = vshrl.u32 %v11769_v43, 16 }
  0x55   : > { %2750 = vrot.lane.b32.xlu1 %v9871_v1, %s11431_s17  ;;  %v1675_v51 = vsel %vm11563_vm2, %v1673_v7, %v1674_v39  ;;  %v9903_v53 = vcombine.low %v11755_v33, %v11769_v43  ;;  %v1865_v55 = vshrl.u32 %v9728_v9, 16  ;;  %v1868_v56 = vshll.u32 %v9728_v9, 16  ;;  %v554_v39 = vld [vmem:[%s11539_s27 + $0x3c] sm:$0xf]  ;;  %v555_v1 = vld [vmem:[%s11539_s27 + $0x40] sm:$0xf] }
  0x56   : > { %v9886_v45 = vcombine.low %v1672_v48, %v1675_v51  ;;  %v1878_v57 = vshrl.u32 %v11779_v49, 16  ;;  %2748 = vrot.lane.b32.xlu0 %v9870_v30, %s11431_s17  ;;  %v9902_v12 = vcombine.low %v9728_v9, %v11779_v49  ;;  %v1895_v59 = vor.u32 %v1894_v26, %v1891_v50  ;;  %v581_v26 = vld [vmem:[%s11539_s27 + $0x44] sm:$0x1] }
  0x57   : > { %v1898_v60 = vshll.u32 %v11769_v43, 16  ;;  %v1904_v61 = vrot.slane %v1902_v52, 4  ;;  %v1867_v0 = vrot.slane %v1865_v55, 4  ;;  %v1870_v20 = vrot.slane %v1868_v56, 5  ;;  %v9775_v55 = vld [vmem:[%s11539_s27 + $0x3c] sm:$0xe] }
  0x58   : > { %v1908_v2 = vshll.u32 %v11790_v54, 16  ;;  %v1874_v4 = vshll.u32 %v11779_v49, 16  ;;  %v1896_v5 = vrot.slane %v1895_v59, 4  ;;  %v1880_v8 = vrot.slane %v1878_v57, 4 }
  0x59   : > { %2830 = vrot.lane.b32.xlu1 %v9887_v13, %s11428_s29  ;;  %v1900_v6 = vrot.slane %v1898_v60, 5  ;;  %v1884_v10 = vshll.u32 %v11794_v58, 16  ;;  %v1871_v15 = vor.u32 %v1870_v20, %v1867_v0  ;;  %v692_v21 = vshrl.u32 %v552_v63, 16 }
  0x5a   : > { %v1910_v14 = vrot.slane %v1908_v2, 5  ;;  %v1876_v16 = vrot.slane %v1874_v4, 5  ;;  %2828 = vrot.lane.b32.xlu0 %v9886_v45, %s11428_s29  ;;  %v695_v25 = vshll.u32 %v552_v63, 16  ;;  %v701_v32 = vshll.u32 %v11805_v11, 16  ;;  %v984_v63 = vld [vmem:[%s11539_s27 + $0x3c] sm:$0xe] }
  0x5b   : > { %v1901_v22 = vsel %vm11607_vm5, %v1896_v5, %v1900_v6  ;;  %v1905_v23 = vor.u32 %v1904_v61, %v1900_v6  ;;  %v1886_v24 = vrot.slane %v1884_v10, 5  ;;  %v1872_v28 = vrot.slane %v1871_v15, 4 }
  0x5c   : > { %v1881_v29 = vor.u32 %v1880_v8, %v1876_v16  ;;  %v694_v31 = vrot.slane %v692_v21, 4  ;;  %v697_v35 = vrot.slane %v695_v25, 5  ;;  %v705_v36 = vshrl.u32 %v11805_v11, 16 }
  0x5d   : > { %2926 = vrot.lane.b32.xlu1 %v9903_v53, %s11432_s18  ;;  %v1906_v33 = vrot.slane %v1905_v23, 4  ;;  %v711_v34 = vshll.u32 %v11808_v18, 16  ;;  %v1877_v3 = vsel %vm11607_vm5, %v1872_v28, %v1876_v16  ;;  %v703_v38 = vrot.slane %v701_v32, 5 }
  0x5e   : > { %v1882_v37 = vrot.slane %v1881_v29, 4  ;;  %v9790_v62 = vrot.slane %v9774_v27, 9  ;;  %2924 = vrot.lane.b32.xlu0 %v9902_v12, %s11432_s18  ;;  %v698_v42 = vor.u32 %v697_v35, %v694_v31  ;;  %v707_v44 = vrot.slane %v705_v36, 4 }
  0x5f   : > { %v1911_v41 = vsel %vm11607_vm5, %v1906_v33, %v1910_v14  ;;  %v713_v46 = vrot.slane %v711_v34, 5  ;;  %v2280_v7 = vrot.slane %v11779_v49, 5  ;;  %v2283_v9 = vrot.slane %v11794_v58, 5  ;;  %v983_v14 = vld [vmem:[%s11539_s27 + $0x30] sm:$0xe] }
  0x60   : > { %v9919_v47 = vcombine.low %v1901_v22, %v1911_v41  ;;  %v1887_v48 = vsel %vm11607_vm5, %v1882_v37, %v1886_v24  ;;  %v699_v13 = vrot.slane %v698_v42, 4  ;;  %v708_v50 = vor.u32 %v707_v44, %v703_v38  ;;  %v9655_v34 = vld [vmem:[%s11539_s27 + $0x4c] sm:$0xf]  ;;  %v11868_v41 = vld [vmem:[%s11539_s27 + $0x40] sm:$0xf] }
  0x61   : > { %v9918_v40 = vcombine.low %v1877_v3, %v1887_v48  ;;  %v716_v30 = vshrl.u32 %v554_v39, 16  ;;  %v2281_v51 = vsel %vm11563_vm2, %v9790_v62, %v2280_v7  ;;  %v2282_v52 = vrot.slane %v2280_v7, 4  ;;  %v9681_v7 = vld [vmem:[%s11539_s27 + $0x50] sm:$0x1] }
  0x62   : > { %3006 = vrot.lane.b32.xlu1 %v9919_v47, %s11433_s19  ;;  %v719_v53 = vshll.u32 %v554_v39, 16  ;;  %v725_v45 = vshll.u32 %v555_v1, 16  ;;  %v704_v49 = vsel %vm11607_vm5, %v699_v13, %v703_v38  ;;  %v709_v56 = vrot.slane %v708_v50, 4  ;;  %v9652_v39 = vld [vmem:[%s11539_s27 + $0x3c] sm:$0xf] }
  0x63   : > { %3004 = vrot.lane.b32.xlu0 %v9918_v40, %s11433_s19  ;;  %v718_v57 = vrot.slane %v716_v30, 4  ;;  %v729_v58 = vshrl.u32 %v555_v1, 16  ;;  %v2284_v12 = vsel %vm11563_vm2, %v2282_v52, %v2283_v9  ;;  %v735_v61 = vshll.u32 %v581_v26, 16 }
  0x64   : > { %v721_v59 = vrot.slane %v719_v53, 5  ;;  %v727_v60 = vrot.slane %v725_v45, 5  ;;  %v714_v0 = vsel %vm11607_vm5, %v709_v56, %v713_v46  ;;  %v9934_v20 = vcombine.low %v2281_v51, %v2284_v12  ;;  %v9680_v53 = vld [vmem:[%s11539_s27 + $0x44] sm:$0x1]  ;;  %v9697_v45 = vld [vmem:[%s11539_s27 + $0x48] sm:$0xe] }
  0x65   : > { %v731_v2 = vrot.slane %v729_v58, 4  ;;  %v9791_v4 = vrot.slane %v9775_v55, 9  ;;  %v9824_v5 = vcombine.low %v704_v49, %v714_v0  ;;  %v737_v8 = vrot.slane %v735_v61, 5  ;;  %v9696_v61 = vld [vmem:[%s11539_s27 + $0x3c] sm:$0xe] }
  0x66   : > { %v722_v6 = vor.u32 %v721_v59, %v718_v57  ;;  %v2287_v10 = vrot.slane %v11769_v43, 5  ;;  %v2290_v16 = vrot.slane %v11790_v54, 5  ;;  %v9633_v21 = vrot.slane %v984_v63, 9  ;;  %v11850_v43 = vld [vmem:[%s11539_s27 + $0x48] sm:$0xf] }
  0x67   : > { %3084 = vrot.lane.b32.xlu0 %v9934_v20, %s11434_s24  ;;  %v732_v15 = vor.u32 %v731_v2, %v727_v60  ;;  %v1083_v22 = vrot.slane %v555_v1, 5  ;;  %2496 = vrot.lane.b32.xlu1 %v9824_v5, %s11430_s0  ;;  %v1086_v27 = vrot.slane %v581_v26, 5  ;;  %v9632_v31 = vrot.slane %v983_v14, 9 }
  0x68   : > { %v723_v23 = vrot.slane %v722_v6, 4  ;;  %v2288_v24 = vsel %vm11563_vm2, %v9791_v4, %v2287_v10  ;;  %v2289_v25 = vrot.slane %v2287_v10, 4  ;;  %v1076_v35 = vrot.slane %v11805_v11, 5 }
  0x69   : > { %v733_v28 = vrot.slane %v732_v15, 4  ;;  %v1084_v29 = vsel %vm11563_vm2, %v9633_v21, %v1083_v22  ;;  %v1085_v54 = vrot.slane %v1083_v22, 4  ;;  %v1079_v36 = vrot.slane %v11808_v18, 5  ;;  %v11888_v21 = vld [vmem:[%s11539_s27 + $0x54] sm:$0xf] }
  0x6a   : > { %v728_v32 = vsel %vm11607_vm5, %v723_v23, %v727_v60  ;;  %v2291_v33 = vsel %vm11563_vm2, %v2289_v25, %v2290_v16  ;;  %v1328_v62 = vshrl.u32 %v11850_v43, 16  ;;  %v1077_v11 = vsel %vm11563_vm2, %v9632_v31, %v1076_v35 }
  0x6b   : > { %v738_v3 = vsel %vm11607_vm5, %v733_v28, %v737_v8  ;;  %v9935_v37 = vcombine.low %v2288_v24, %v2291_v33  ;;  %v1087_v38 = vsel %vm11563_vm2, %v1085_v54, %v1086_v27  ;;  %v1078_v18 = vrot.slane %v1076_v35, 4  ;;  %v11900_v54 = vld [vmem:[%s11539_s27 + $0x58] sm:$0xf] }
  0x6c   : > { %v9825_v42 = vcombine.low %v728_v32, %v738_v3  ;;  %v9841_v44 = vcombine.low %v1084_v29, %v1087_v38  ;;  %v1330_v46 = vrot.slane %v1328_v62, 4  ;;  %v1331_v1 = vshll.u32 %v11850_v43, 16  ;;  %v11914_v62 = vld [vmem:[%s11539_s27 + $0x4c] sm:$0xf] }
  0x6d   : > { %3086 = vrot.lane.b32.xlu0 %v9935_v37, %s11434_s24  ;;  %v1341_v47 = vshrl.u32 %v9655_v34, 16  ;;  %v9857_v48 = vcombine.low %v11850_v43, %v9655_v34  ;;  %v1080_v9 = vsel %vm11563_vm2, %v1078_v18, %v1079_v36  ;;  %v1304_v40 = vshrl.u32 %v9652_v39, 16  ;;  %v11907_v36 = vld [vmem:[%s11539_s27 + $0x48] sm:$0xf]  ;;  %v11922_v18 = vld [vmem:[%s11539_s27 + $0x50] sm:$0x1] }
  0x6e   : > { %2498 = vrot.lane.b32.xlu1 %v9825_v42, %s11430_s0  ;;  %v1307_v13 = vshll.u32 %v9652_v39, 16  ;;  %v1317_v50 = vshrl.u32 %v11868_v41, 16  ;;  %v9840_v26 = vcombine.low %v1077_v11, %v1080_v9  ;;  %v1333_v30 = vrot.slane %v1331_v1, 5 }
  0x6f   : > { %v9856_v51 = vcombine.low %v9652_v39, %v11868_v41  ;;  %v1337_v52 = vshll.u32 %v9655_v34, 16  ;;  %v1306_v55 = vrot.slane %v1304_v40, 4  ;;  %v1343_v56 = vrot.slane %v1341_v47, 4  ;;  %v11917_v39 = vld [vmem:[%s11539_s27 + $0x5c] sm:$0x1] }
  0x70   : > { %v1309_v49 = vrot.slane %v1307_v13, 5  ;;  %v1347_v57 = vshll.u32 %v9681_v7, 16  ;;  %v1334_v58 = vor.u32 %v1333_v30, %v1330_v46  ;;  %v1313_v59 = vshll.u32 %v11868_v41, 16 }
  0x71   : > { %2576 = vrot.lane.b32.xlu0 %v9840_v26, %s11429_s30  ;;  %v1339_v12 = vrot.slane %v1337_v52, 5  ;;  %v1319_v60 = vrot.slane %v1317_v50, 4  ;;  %v1323_v20 = vshll.u32 %v9680_v53, 16  ;;  %v9713_v2 = vrot.slane %v9697_v45, 9 }
  0x72   : > { %2578 = vrot.lane.b32.xlu1 %v9841_v44, %s11429_s30  ;;  %v1349_v63 = vrot.slane %v1347_v57, 5  ;;  %v1310_v0 = vor.u32 %v1309_v49, %v1306_v55  ;;  %v1335_v4 = vrot.slane %v1334_v58, 4  ;;  %v1315_v6 = vrot.slane %v1313_v59, 5  ;;  %v11944_v57 = vld [vmem:[%s11539_s27 + $0x50] sm:$0x1] }
  0x73   : > { %v1344_v5 = vor.u32 %v1343_v56, %v1339_v12  ;;  %v1692_v8 = vrot.slane %v9655_v34, 5  ;;  %v1325_v14 = vrot.slane %v1323_v20, 5  ;;  %v1695_v15 = vrot.slane %v9681_v7, 5  ;;  %v556_v7 = vld [vmem:[%s11539_s27 + $0x48] sm:$0xf] }
  0x74   : > { %v1311_v10 = vrot.slane %v1310_v0, 4  ;;  %v9712_v16 = vrot.slane %v9696_v61, 9  ;;  %v1340_v22 = vsel %vm11607_vm5, %v1335_v4, %v1339_v12  ;;  %v1320_v24 = vor.u32 %v1319_v60, %v1315_v6  ;;  %v9776_v61 = vld [vmem:[%s11539_s27 + $0x48] sm:$0xe] }
  0x75   : > { %2672 = vrot.lane.b32.xlu0 %v9856_v51, %s11427_s28  ;;  %v1345_v23 = vrot.slane %v1344_v5, 4  ;;  %v1693_v25 = vsel %vm11563_vm2, %v9713_v2, %v1692_v8  ;;  %v1694_v43 = vrot.slane %v1692_v8, 4  ;;  %v1685_v28 = vrot.slane %v11868_v41, 5 }
  0x76   : > { %2674 = vrot.lane.b32.xlu1 %v9857_v48, %s11427_s28  ;;  %v1316_v27 = vsel %vm11607_vm5, %v1311_v10, %v1315_v6  ;;  %v1688_v29 = vrot.slane %v9680_v53, 5  ;;  %v1321_v32 = vrot.slane %v1320_v24, 4  ;;  %v1937_v33 = vshrl.u32 %v11888_v21, 16  ;;  %v11939_v53 = vld [vmem:[%s11539_s27 + $0x4c] sm:$0xf] }
  0x77   : > { %v1350_v31 = vsel %vm11607_vm5, %v1345_v23, %v1349_v63  ;;  %v1940_v35 = vshll.u32 %v11888_v21, 16  ;;  %v1696_v3 = vsel %vm11563_vm2, %v1694_v43, %v1695_v15  ;;  %v1686_v37 = vsel %vm11563_vm2, %v9712_v16, %v1685_v28 }
  0x78   : > { %v9873_v34 = vcombine.low %v1340_v22, %v1350_v31  ;;  %v1687_v38 = vrot.slane %v1685_v28, 4  ;;  %v1326_v41 = vsel %vm11607_vm5, %v1321_v32, %v1325_v14  ;;  %v9889_v42 = vcombine.low %v1693_v25, %v1696_v3  ;;  %v558_v25 = vld [vmem:[%s11539_s27 + $0x54] sm:$0xf]  ;;  %v559_v31 = vld [vmem:[%s11539_s27 + $0x58] sm:$0xf] }
  0x79   : > { %v1939_v44 = vrot.slane %v1937_v33, 4  ;;  %v1942_v11 = vrot.slane %v1940_v35, 5  ;;  %v9872_v46 = vcombine.low %v1316_v27, %v1326_v41  ;;  %v1950_v47 = vshrl.u32 %v11900_v54, 16 }
  0x7a   : > { %2754 = vrot.lane.b32.xlu1 %v9873_v34, %s11431_s17  ;;  %v1689_v1 = vsel %vm11563_vm2, %v1687_v38, %v1688_v29  ;;  %v9905_v48 = vcombine.low %v11888_v21, %v11900_v54  ;;  %v1913_v40 = vshrl.u32 %v11907_v36, 16  ;;  %v1916_v13 = vshll.u32 %v11907_v36, 16  ;;  %v583_v34 = vld [vmem:[%s11539_s27 + $0x5c] sm:$0x1] }
  0x7b   : > { %v9888_v9 = vcombine.low %v1686_v37, %v1689_v1  ;;  %v1926_v50 = vshrl.u32 %v11914_v62, 16  ;;  %2752 = vrot.lane.b32.xlu0 %v9872_v46, %s11431_s17  ;;  %v9904_v26 = vcombine.low %v11907_v36, %v11914_v62  ;;  %v1943_v30 = vor.u32 %v1942_v11, %v1939_v44 }
  0x7c   : > { %v1946_v51 = vshll.u32 %v11900_v54, 16  ;;  %v1952_v52 = vrot.slane %v1950_v47, 4  ;;  %v1915_v45 = vrot.slane %v1913_v40, 4  ;;  %v1918_v55 = vrot.slane %v1916_v13, 5  ;;  %v986_v40 = vld [vmem:[%s11539_s27 + $0x54] sm:$0xe] }
  0x7d   : > { %v1956_v49 = vshll.u32 %v11917_v39, 16  ;;  %v1922_v56 = vshll.u32 %v11914_v62, 16  ;;  %v1944_v58 = vrot.slane %v1943_v30, 4  ;;  %v1928_v59 = vrot.slane %v1926_v50, 4 }
  0x7e   : > { %2834 = vrot.lane.b32.xlu1 %v9889_v42, %s11428_s29  ;;  %v1948_v12 = vrot.slane %v1946_v51, 5  ;;  %v1932_v60 = vshll.u32 %v11922_v18, 16  ;;  %v1919_v0 = vor.u32 %v1918_v55, %v1915_v45  ;;  %v740_v2 = vshrl.u32 %v556_v7, 16  ;;  %v9777_v42 = vld [vmem:[%s11539_s27 + $0x54] sm:$0xe] }
  0x7f   : > { %v1958_v63 = vrot.slane %v1956_v49, 5  ;;  %v1924_v20 = vrot.slane %v1922_v56, 5  ;;  %2832 = vrot.lane.b32.xlu0 %v9888_v9, %s11428_s29  ;;  %v743_v8 = vshll.u32 %v556_v7, 16  ;;  %v749_v16 = vshll.u32 %v11939_v53, 16  ;;  %v985_v45 = vld [vmem:[%s11539_s27 + $0x48] sm:$0xe] }
  0x80   : > { %v1949_v4 = vsel %vm11607_vm5, %v1944_v58, %v1948_v12  ;;  %v1953_v5 = vor.u32 %v1952_v52, %v1948_v12  ;;  %v1934_v6 = vrot.slane %v1932_v60, 5  ;;  %v1920_v10 = vrot.slane %v1919_v0, 4 }
  0x81   : > { %v1929_v14 = vor.u32 %v1928_v59, %v1924_v20  ;;  %v742_v15 = vrot.slane %v740_v2, 4  ;;  %v745_v22 = vrot.slane %v743_v8, 5  ;;  %v753_v23 = vshrl.u32 %v11939_v53, 16 }
  0x82   : > { %2930 = vrot.lane.b32.xlu1 %v9905_v48, %s11432_s18  ;;  %v1954_v21 = vrot.slane %v1953_v5, 4  ;;  %v759_v24 = vshll.u32 %v11944_v57, 16  ;;  %v1925_v27 = vsel %vm11607_vm5, %v1920_v10, %v1924_v20  ;;  %v751_v28 = vrot.slane %v749_v16, 5 }
  0x83   : > { %v1930_v43 = vrot.slane %v1929_v14, 4  ;;  %v9792_v29 = vrot.slane %v9776_v61, 9  ;;  %2928 = vrot.lane.b32.xlu0 %v9904_v26, %s11432_s18  ;;  %v746_v33 = vor.u32 %v745_v22, %v742_v15  ;;  %v755_v35 = vrot.slane %v753_v23, 4 }
  0x84   : > { %v1959_v32 = vsel %vm11607_vm5, %v1954_v21, %v1958_v63  ;;  %v761_v36 = vrot.slane %v759_v24, 5  ;;  %v2294_v38 = vrot.slane %v11914_v62, 5  ;;  %v2297_v41 = vrot.slane %v11922_v18, 5  ;;  %v11983_v63 = vld [vmem:[%s11539_s27 + $0x60] sm:$0xf] }
  0x85   : > { %v9921_v3 = vcombine.low %v1949_v4, %v1959_v32  ;;  %v1935_v37 = vsel %vm11607_vm5, %v1930_v43, %v1934_v6  ;;  %v747_v11 = vrot.slane %v746_v33, 4  ;;  %v756_v46 = vor.u32 %v755_v35, %v751_v28  ;;  %v12005_v43 = vld [vmem:[%s11539_s27 + $0x58] sm:$0xf] }
  0x86   : > { %v9920_v44 = vcombine.low %v1925_v27, %v1935_v37  ;;  %v764_v1 = vshrl.u32 %v558_v25, 16  ;;  %v2295_v47 = vsel %vm11563_vm2, %v9792_v29, %v2294_v38  ;;  %v2296_v48 = vrot.slane %v2294_v38, 4  ;;  %v9656_v27 = vld [vmem:[%s11539_s27 + $0x54] sm:$0xf] }
  0x87   : > { %3010 = vrot.lane.b32.xlu1 %v9921_v3, %s11433_s19  ;;  %v767_v7 = vshll.u32 %v558_v25, 16  ;;  %v773_v9 = vshll.u32 %v559_v31, 16  ;;  %v752_v62 = vsel %vm11607_vm5, %v747_v11, %v751_v28  ;;  %v757_v18 = vrot.slane %v756_v46, 4 }
  0x88   : > { %3008 = vrot.lane.b32.xlu0 %v9920_v44, %s11433_s19  ;;  %v766_v13 = vrot.slane %v764_v1, 4  ;;  %v777_v50 = vshrl.u32 %v559_v31, 16  ;;  %v2298_v26 = vsel %vm11563_vm2, %v2296_v48, %v2297_v41  ;;  %v783_v52 = vshll.u32 %v583_v34, 16  ;;  %v12023_v41 = vld [vmem:[%s11539_s27 + $0x5c] sm:$0x1] }
  0x89   : > { %v769_v30 = vrot.slane %v767_v7, 5  ;;  %v775_v51 = vrot.slane %v773_v9, 5  ;;  %v762_v55 = vsel %vm11607_vm5, %v757_v18, %v761_v36  ;;  %v9936_v49 = vcombine.low %v2295_v47, %v2298_v26  ;;  %v12015_v36 = vld [vmem:[%s11539_s27 + $0x68] sm:$0x1]  ;;  %v9699_v1 = vld [vmem:[%s11539_s27 + $0x60] sm:$0xe] }
  0x8a   : > { %v779_v56 = vrot.slane %v777_v50, 4  ;;  %v9793_v58 = vrot.slane %v9777_v42, 9  ;;  %v9826_v12 = vcombine.low %v752_v62, %v762_v55  ;;  %v785_v60 = vrot.slane %v783_v52, 5  ;;  %v11995_v21 = vpop.permute.xlu1 %2666  ;;  %v9698_v55 = vld [vmem:[%s11539_s27 + $0x54] sm:$0xe] }
  0x8b   : > { %v770_v59 = vor.u32 %v769_v30, %v766_v13  ;;  %v2301_v61 = vrot.slane %v11900_v54, 5  ;;  %v2304_v20 = vrot.slane %v11917_v39, 5  ;;  %v9635_v2 = vrot.slane %v986_v40, 9  ;;  %v11991_v54 = vld [vmem:[%s11539_s27 + $0x64] sm:$0xf]  ;;  %v12030_v47 = vpop.permute.xlu0 %2664 }
  0x8c   : > { %3088 = vrot.lane.b32.xlu0 %v9936_v49, %s11434_s24  ;;  %v780_v0 = vor.u32 %v779_v56, %v775_v51  ;;  %v1097_v4 = vrot.slane %v559_v31, 5  ;;  %2500 = vrot.lane.b32.xlu1 %v9826_v12, %s11430_s0  ;;  %v1100_v10 = vrot.slane %v583_v34, 5  ;;  %v9634_v39 = vrot.slane %v985_v45, 9 }
  0x8d   : > { %v771_v5 = vrot.slane %v770_v59, 4  ;;  %v2302_v6 = vsel %vm11563_vm2, %v9793_v58, %v2301_v61  ;;  %v2303_v8 = vrot.slane %v2301_v61, 4  ;;  %v1090_v24 = vrot.slane %v11939_v53, 5  ;;  %v12043_v59 = vld [vmem:[%s11539_s27 + $0x6c] sm:$0xf] }
  0x8e   : > { %v781_v14 = vrot.slane %v780_v0, 4  ;;  %v1098_v15 = vsel %vm11563_vm2, %v9635_v2, %v1097_v4  ;;  %v1099_v16 = vrot.slane %v1097_v4, 4  ;;  %v1093_v25 = vrot.slane %v11944_v57, 5 }
  0x8f   : > { %v776_v22 = vsel %vm11607_vm5, %v771_v5, %v775_v51  ;;  %v2305_v23 = vsel %vm11563_vm2, %v2303_v8, %v2304_v20  ;;  %v1376_v32 = vshrl.u32 %v11983_v63, 16  ;;  %v1091_v53 = vsel %vm11563_vm2, %v9634_v39, %v1090_v24 }
  0x90   : > { %v786_v28 = vsel %vm11607_vm5, %v781_v14, %v785_v60  ;;  %v9937_v29 = vcombine.low %v2302_v6, %v2305_v23  ;;  %v1101_v31 = vsel %vm11563_vm2, %v1099_v16, %v1100_v10  ;;  %v1092_v57 = vrot.slane %v1090_v24, 4  ;;  %v12057_v16 = vld [vmem:[%s11539_s27 + $0x70] sm:$0xf] }
  0x91   : > { %v9827_v33 = vcombine.low %v776_v22, %v786_v28  ;;  %v9843_v35 = vcombine.low %v1098_v15, %v1101_v31  ;;  %v1378_v34 = vrot.slane %v1376_v32, 4  ;;  %v1379_v3 = vshll.u32 %v11983_v63, 16 }
  0x92   : > { %3090 = vrot.lane.b32.xlu0 %v9937_v29, %s11434_s24  ;;  %v1389_v37 = vshrl.u32 %v11991_v54, 16  ;;  %v9859_v38 = vcombine.low %v11983_v63, %v11991_v54  ;;  %v1094_v42 = vsel %vm11563_vm2, %v1092_v57, %v1093_v25  ;;  %v1352_v44 = vshrl.u32 %v9656_v27, 16  ;;  %v12049_v8 = vpop.permute.xlu0 %2824  ;;  %v12065_v25 = vld [vmem:[%s11539_s27 + $0x60] sm:$0xf] }
  0x93   : > { %2502 = vrot.lane.b32.xlu1 %v9827_v33, %s11430_s0  ;;  %v1355_v11 = vshll.u32 %v9656_v27, 16  ;;  %v1365_v46 = vshrl.u32 %v12005_v43, 16  ;;  %v9842_v48 = vcombine.low %v1091_v53, %v1094_v42  ;;  %v1381_v7 = vrot.slane %v1379_v3, 5  ;;  %v12034_v62 = vpop.permute.xlu1 %2568 }
  0x94   : > { %v9858_v9 = vcombine.low %v9656_v27, %v12005_v43  ;;  %v1385_v40 = vshll.u32 %v11991_v54, 16  ;;  %v1354_v18 = vrot.slane %v1352_v44, 4  ;;  %v1391_v50 = vrot.slane %v1389_v37, 4  ;;  %v12068_v27 = vld [vmem:[%s11539_s27 + $0x64] sm:$0xf] }
  0x95   : > { %v1357_v13 = vrot.slane %v1355_v11, 5  ;;  %v1395_v26 = vshll.u32 %v12015_v36, 16  ;;  %v1382_v30 = vor.u32 %v1381_v7, %v1378_v34  ;;  %v1361_v52 = vshll.u32 %v12005_v43, 16  ;;  %v12081_v37 = vld [vmem:[%s11539_s27 + $0x74] sm:$0x1] }
  0x96   : > { %2580 = vrot.lane.b32.xlu0 %v9842_v48, %s11429_s30  ;;  %v1387_v51 = vrot.slane %v1385_v40, 5  ;;  %v1367_v45 = vrot.slane %v1365_v46, 4  ;;  %v1371_v58 = vshll.u32 %v12023_v41, 16  ;;  %v9715_v12 = vrot.slane %v9699_v1, 9  ;;  %v12095_v40 = vld [vmem:[%s11539_s27 + $0x68] sm:$0x1] }
  0x97   : > { %2582 = vrot.lane.b32.xlu1 %v9843_v35, %s11429_s30  ;;  %v1397_v49 = vrot.slane %v1395_v26, 5  ;;  %v1358_v56 = vor.u32 %v1357_v13, %v1354_v18  ;;  %v1383_v60 = vrot.slane %v1382_v30, 4  ;;  %v1363_v63 = vrot.slane %v1361_v52, 5  ;;  %v12046_v20 = vpop.permute.xlu1 %2570 }
  0x98   : > { %v1392_v61 = vor.u32 %v1391_v50, %v1387_v51  ;;  %v1706_v0 = vrot.slane %v11991_v54, 5  ;;  %v1373_v4 = vrot.slane %v1371_v58, 5  ;;  %v1709_v5 = vrot.slane %v12015_v36, 5 }
  0x99   : > { %v1359_v2 = vrot.slane %v1358_v56, 4  ;;  %v9714_v6 = vrot.slane %v9698_v55, 9  ;;  %v1388_v10 = vsel %vm11607_vm5, %v1383_v60, %v1387_v51  ;;  %v1368_v15 = vor.u32 %v1367_v45, %v1363_v63 }
  0x9a   : > { %2676 = vrot.lane.b32.xlu0 %v9858_v9, %s11427_s28  ;;  %v1393_v14 = vrot.slane %v1392_v61, 4  ;;  %v1707_v54 = vsel %vm11563_vm2, %v9715_v12, %v1706_v0  ;;  %v1708_v22 = vrot.slane %v1706_v0, 4  ;;  %v1699_v23 = vrot.slane %v12005_v43, 5  ;;  %v11286_v0 = vld [vmem:[%s11539_s27] sm:$0xf] }
  0x9b   : > { %2678 = vrot.lane.b32.xlu1 %v9859_v38, %s11427_s28  ;;  %v1364_v39 = vsel %vm11607_vm5, %v1359_v2, %v1363_v63  ;;  %v1702_v24 = vrot.slane %v12023_v41, 5  ;;  %v1369_v29 = vrot.slane %v1368_v15, 4  ;;  %v1985_v31 = vshrl.u32 %v12043_v59, 16  ;;  %v12083_v38 = vpop.permute.xlu1 %2826  ;;  %v11285_v63 = vld [vmem:[%s11539_s27 + $0x4] sm:$0xf] }
  0x9c   : > { %v1398_v28 = vsel %vm11607_vm5, %v1393_v14, %v1397_v49  ;;  %v1988_v32 = vshll.u32 %v12043_v59, 16  ;;  %v1710_v35 = vsel %vm11563_vm2, %v1708_v22, %v1709_v5  ;;  %v1700_v43 = vsel %vm11563_vm2, %v9714_v6, %v1699_v23  ;;  %v12116_v15 = vld [vmem:[%s11539_s27 + $0x64] sm:$0xf] }
  0x9d   : > { %v9875_v33 = vcombine.low %v1388_v10, %v1398_v28  ;;  %v1701_v53 = vrot.slane %v1699_v23, 4  ;;  %v1374_v57 = vsel %vm11607_vm5, %v1369_v29, %v1373_v4  ;;  %v9891_v36 = vcombine.low %v1707_v54, %v1710_v35  ;;  %v560_v4 = vld [vmem:[%s11539_s27 + $0x60] sm:$0xf]  ;;  %v12120_v23 = vld [vmem:[%s11539_s27 + $0x68] sm:$0x1] }
  0x9e   : > { %v1987_v34 = vrot.slane %v1985_v31, 4  ;;  %v1990_v3 = vrot.slane %v1988_v32, 5  ;;  %v9874_v41 = vcombine.low %v1364_v39, %v1374_v57  ;;  %v1998_v44 = vshrl.u32 %v12057_v16, 16  ;;  %v2489_v46 = vpop.permute.xlu0 %2488 }
  0x9f   : > { %2758 = vrot.lane.b32.xlu1 %v9875_v33, %s11431_s17  ;;  %v1703_v42 = vsel %vm11563_vm2, %v1701_v53, %v1702_v24  ;;  %v9907_v11 = vcombine.low %v12043_v59, %v12057_v16  ;;  %v1961_v48 = vshrl.u32 %v12065_v25, 16  ;;  %v1964_v7 = vshll.u32 %v12065_v25, 16  ;;  %v9778_v24 = vld [vmem:[%s11539_s27 + $0x60] sm:$0xe] }
  0xa0   : > { %v9890_v1 = vcombine.low %v1700_v43, %v1703_v42  ;;  %v1974_v9 = vshrl.u32 %v12068_v27, 16  ;;  %2756 = vrot.lane.b32.xlu0 %v9874_v41, %s11431_s17  ;;  %v9906_v18 = vcombine.low %v12065_v25, %v12068_v27  ;;  %v1991_v13 = vor.u32 %v1990_v3, %v1987_v34 }
  0xa1   : > { %v1994_v50 = vshll.u32 %v12057_v16, 16  ;;  %v2000_v26 = vrot.slane %v1998_v44, 4  ;;  %v1963_v30 = vrot.slane %v1961_v48, 4  ;;  %v1966_v51 = vrot.slane %v1964_v7, 5 }
  0xa2   : > { %v2004_v52 = vshll.u32 %v12081_v37, 16  ;;  %v1970_v45 = vshll.u32 %v12068_v27, 16  ;;  %v1992_v55 = vrot.slane %v1991_v13, 4  ;;  %v1976_v56 = vrot.slane %v1974_v9, 4 }
  0xa3   : > { %2838 = vrot.lane.b32.xlu1 %v9891_v36, %s11428_s29  ;;  %v1996_v49 = vrot.slane %v1994_v50, 5  ;;  %v1980_v58 = vshll.u32 %v12095_v40, 16  ;;  %v12105_v12 = vpop.permute.xlu0 %2490  ;;  %v1967_v60 = vor.u32 %v1966_v51, %v1963_v30  ;;  %v9804_v2 = vcombine.low %v11286_v0, %v11285_v63  ;;  %v11287_v51 = vld [vmem:[%s11539_s27 + $0x10] sm:$0xf] }
  0xa4   : > { %v2006_v59 = vrot.slane %v2004_v52, 5  ;;  %v1972_v61 = vrot.slane %v1970_v45, 5  ;;  %v12110_v5 = vpop.permute.xlu1 %2746  ;;  %2836 = vrot.lane.b32.xlu0 %v9890_v1, %s11428_s29  ;;  %v788_v29 = vshrl.u32 %v560_v4, 16  ;;  %v791_v31 = vshll.u32 %v560_v4, 16  ;;  %v12144_v1 = vld [vmem:[%s11539_s27 + $0x70] sm:$0xf] }
  0xa5   : > { %v1997_v6 = vsel %vm11607_vm5, %v1992_v55, %v1996_v49  ;;  %v2001_v10 = vor.u32 %v2000_v26, %v1996_v49  ;;  %v1982_v14 = vrot.slane %v1980_v58, 5  ;;  %v1968_v54 = vrot.slane %v1967_v60, 4  ;;  %v11288_v52 = vld [vmem:[%s11539_s27 + $0xc] sm:$0xf] }
  0xa6   : > { %v1977_v39 = vor.u32 %v1976_v56, %v1972_v61  ;;  %v3115_v22 = vsel %vm3112_vm6, %v9804_v2, %v2489_v46  ;;  %v797_v43 = vshll.u32 %v12116_v15, 16  ;;  %v801_v53 = vshrl.u32 %v12116_v15, 16  ;;  %v562_v46 = vld [vmem:[%s11539_s27 + $0x6c] sm:$0xf] }
  0xa7   : > { %2934 = vrot.lane.b32.xlu1 %v9907_v11, %s11432_s18  ;;  %v2002_v25 = vrot.slane %v2001_v10, 4  ;;  %v12126_v28 = vsel %vm3161_vm7, %v3115_v22, %v12034_v62  ;;  %v12128_v32 = vpop.permute.xlu0 %2744  ;;  %v1973_v33 = vsel %vm11607_vm5, %v1968_v54, %v1972_v61  ;;  %v790_v57 = vrot.slane %v788_v29, 4 }
  0xa8   : > { %v1978_v35 = vrot.slane %v1977_v39, 4  ;;  %2932 = vrot.lane.b32.xlu0 %v9906_v18, %s11432_s18  ;;  %v793_v36 = vrot.slane %v791_v31, 5  ;;  %v807_v34 = vshll.u32 %v12120_v23, 16  ;;  %v12138_v3 = vpop.permute.xlu1 %2922  ;;  %v799_v44 = vrot.slane %v797_v43, 5 }
  0xa9   : > { %v2007_v62 = vsel %vm11607_vm5, %v2002_v25, %v2006_v59  ;;  %v803_v11 = vrot.slane %v801_v53, 4  ;;  %v9794_v18 = vrot.slane %v9778_v24, 9  ;;  %v2308_v26 = vrot.slane %v12068_v27, 5  ;;  %v988_v53 = vld [vmem:[%s11539_s27 + $0x6c] sm:$0xe] }
  0xaa   : > { %v9923_v41 = vcombine.low %v1997_v6, %v2007_v62  ;;  %v1983_v42 = vsel %vm11607_vm5, %v1978_v35, %v1982_v14  ;;  %v794_v7 = vor.u32 %v793_v36, %v790_v57  ;;  %v809_v9 = vrot.slane %v807_v34, 5  ;;  %v9779_v6 = vld [vmem:[%s11539_s27 + $0x6c] sm:$0xe] }
  0xab   : > { %v9922_v48 = vcombine.low %v1973_v33, %v1983_v42  ;;  %v12146_v13 = vpop.permute.xlu0 %2920  ;;  %v804_v50 = vor.u32 %v803_v11, %v799_v44  ;;  %v2311_v30 = vrot.slane %v12095_v40, 5  ;;  %v9805_v45 = vcombine.low %v11288_v52, %v11287_v51  ;;  %v585_v40 = vld [vmem:[%s11539_s27 + $0x74] sm:$0x1] }
  0xac   : > { %3014 = vrot.lane.b32.xlu1 %v9923_v41, %s11433_s19  ;;  %v795_v55 = vrot.slane %v794_v7, 4  ;;  %v812_v49 = vshrl.u32 %v562_v46, 16  ;;  %v815_v56 = vshll.u32 %v562_v46, 16  ;;  %v821_v58 = vshll.u32 %v12144_v1, 16 }
  0xad   : > { %3012 = vrot.lane.b32.xlu0 %v9922_v48, %s11433_s19  ;;  %v805_v59 = vrot.slane %v804_v50, 4  ;;  %v2309_v60 = vsel %vm11563_vm2, %v9794_v18, %v2308_v26  ;;  %v2310_v61 = vrot.slane %v2308_v26, 4  ;;  %v3118_v27 = vsel %vm3112_vm6, %v9805_v45, %v12105_v12 }
  0xae   : > { %v800_v63 = vsel %vm11607_vm5, %v795_v55, %v799_v44  ;;  %v3165_v0 = vsel %vm3161_vm7, %v3118_v27, %v12046_v20  ;;  %v814_v2 = vrot.slane %v812_v49, 4  ;;  %v817_v4 = vrot.slane %v815_v56, 5  ;;  %v9662_v49 = vld [vmem:[%s11539_s27 + $0x78] sm:$0xf] }
  0xaf   : > { %v12165_v10 = vpop.permute.xlu1 %3002  ;;  %v810_v14 = vsel %vm11607_vm5, %v805_v59, %v809_v9  ;;  %v2312_v54 = vsel %vm11563_vm2, %v2310_v61, %v2311_v30  ;;  %v823_v12 = vrot.slane %v821_v58, 5  ;;  %v825_v39 = vshrl.u32 %v12144_v1, 16  ;;  %v9660_v59 = vld [vmem:[%s11539_s27 + $0x6c] sm:$0xf] }
  0xb0   : > { %v12172_v22 = vpop.permute.xlu0 %3000  ;;  %v9828_v24 = vcombine.low %v800_v63, %v810_v14  ;;  %v9938_v25 = vcombine.low %v2309_v60, %v2312_v54  ;;  %v818_v20 = vor.u32 %v817_v4, %v814_v2  ;;  %v831_v29 = vshll.u32 %v585_v40, 16 }
  0xb1   : > { %v827_v31 = vrot.slane %v825_v39, 4  ;;  %v9795_v33 = vrot.slane %v9779_v6, 9  ;;  %v2315_v35 = vrot.slane %v12057_v16, 5  ;;  %v2318_v43 = vrot.slane %v12081_v37, 5  ;;  %v987_v16 = vld [vmem:[%s11539_s27 + $0x60] sm:$0xe] }
  0xb2   : > { %2504 = vrot.lane.b32.xlu1 %v9828_v24, %s11430_s0  ;;  %3092 = vrot.lane.b32.xlu0 %v9938_v25, %s11434_s24  ;;  %v819_v62 = vrot.slane %v818_v20, 4  ;;  %v833_v57 = vrot.slane %v831_v29, 5  ;;  %v3198_v42 = vsel %vm3194_vm8, %v3165_v0, %v11995_v21  ;;  %v3196_v46 = vsel %vm3194_vm8, %v12126_v28, %v12030_v47  ;;  %v12237_v24 = vld [vmem:[%s11539_s27 + $0x80] sm:$0x1]  ;;  %v12242_v20 = vld [vmem:[%s11539_s27 + $0x74] sm:$0x1] }
  0xb3   : > { %v828_v36 = vor.u32 %v827_v31, %v823_v12  ;;  %v2316_v34 = vsel %vm11563_vm2, %v9795_v33, %v2315_v35  ;;  %v2317_v41 = vrot.slane %v2315_v35, 4  ;;  %v3231_v11 = vsel %vm3227_vm9, %v3198_v42, %v12110_v5 }
  0xb4   : > { %v12184_v44 = vpop.permute.xlu0 %3080  ;;  %v824_v37 = vsel %vm11607_vm5, %v819_v62, %v823_v12  ;;  %v9637_v48 = vrot.slane %v988_v53, 9  ;;  %v12193_v7 = vpop.permute.xlu1 %2492  ;;  %v3229_v18 = vsel %vm3227_vm9, %v3196_v46, %v12128_v32  ;;  %v1111_v50 = vrot.slane %v12144_v1, 5 }
  0xb5   : > { %v829_v9 = vrot.slane %v828_v36, 4  ;;  %v2319_v21 = vsel %vm11563_vm2, %v2317_v41, %v2318_v43  ;;  %v1114_v5 = vrot.slane %v585_v40, 5  ;;  %v9636_v30 = vrot.slane %v987_v16, 9 }
  0xb6   : > { %v9939_v26 = vcombine.low %v2316_v34, %v2319_v21  ;;  %v1104_v47 = vrot.slane %v12116_v15, 5  ;;  %v1112_v51 = vsel %vm11563_vm2, %v9637_v48, %v1111_v50  ;;  %v1113_v52 = vrot.slane %v1111_v50, 4  ;;  %v12211_v15 = vld [vmem:[%s11539_s27 + $0x7c] sm:$0xf]  ;;  %v11289_v50 = vld [vmem:[%s11539_s27 + $0x18] sm:$0xf] }
  0xb7   : > { %v834_v28 = vsel %vm11607_vm5, %v829_v9, %v833_v57  ;;  %v1107_v45 = vrot.slane %v12120_v23, 5  ;;  %v3264_v58 = vsel %vm3260_vm10, %v3231_v11, %v12083_v38  ;;  %v12219_v23 = vld [vmem:[%s11539_s27 + $0x70] sm:$0xf]  ;;  %v3262_v63 = vsel %vm3260_vm10, %v3229_v18, %v12049_v8 }
  0xb8   : > { %v9829_v32 = vcombine.low %v824_v37, %v834_v28  ;;  %3094 = vrot.lane.b32.xlu0 %v9939_v26, %s11434_s24  ;;  %v1105_v1 = vsel %vm11563_vm2, %v9636_v30, %v1104_v47  ;;  %v1106_v55 = vrot.slane %v1104_v47, 4  ;;  %v1115_v56 = vsel %vm11563_vm2, %v1113_v52, %v1114_v5  ;;  %v11071_v34 = vld [vmem:[%s16871_s2 + $0x10] ss:$0 sps:$4 sm:$0x33]   ;;  %v9701_v37 = vld [vmem:[%s11539_s27 + $0x78] sm:$0xe] }
  0xb9   : > { %v9845_v61 = vcombine.low %v1112_v51, %v1115_v56  ;;  %v3297_v40 = vsel %vm3293_vm11, %v3264_v58, %v12138_v3  ;;  %v1424_v2 = vshrl.u32 %v9662_v49, 16  ;;  %v1427_v4 = vshll.u32 %v9662_v49, 16  ;;  %v11290_v26 = vld [vmem:[%s11539_s27 + $0x1c] sm:$0xf]  ;;  %v9700_v30 = vld [vmem:[%s11539_s27 + $0x6c] sm:$0xe]  ;;  %11023 = vmatprep.subr.msk.bf16.mxu0 %vm3452_vm13, %v11071_v34 }
  0xba   : > { %v12221_v60 = vpop.permute.xlu0 %3082  ;;  %2506 = vrot.lane.b32.xlu1 %v9829_v32, %s11430_s0  ;;  %v1108_v27 = vsel %vm11563_vm2, %v1106_v55, %v1107_v45  ;;  %v1437_v6 = vshrl.u32 %v12211_v15, 16  ;;  %v3295_v14 = vsel %vm3293_vm11, %v3262_v63, %v12146_v13  ;;  %v1400_v54 = vshrl.u32 %v9660_v59, 16 }
  0xbb   : > { %v12230_v38 = vpop.permute.xlu1 %2494  ;;  %v9844_v0 = vcombine.low %v1105_v1, %v1108_v27  ;;  %v1403_v12 = vshll.u32 %v9660_v59, 16  ;;  %v1413_v39 = vshrl.u32 %v12219_v23, 16  ;;  %v1426_v8 = vrot.slane %v1424_v2, 4 }
  0xbc   : > { %v1429_v3 = vrot.slane %v1427_v4, 5  ;;  %v9860_v25 = vcombine.low %v9660_v59, %v12219_v23  ;;  %v9861_v13 = vcombine.low %v9662_v49, %v12211_v15  ;;  %v1402_v31 = vrot.slane %v1400_v54, 4 }
  0xbd   : > { %2584 = vrot.lane.b32.xlu0 %v9844_v0, %s11429_s30  ;;  %v1405_v33 = vrot.slane %v1403_v12, 5  ;;  %v12250_v35 = vsel %vm3326_vm12, %v3297_v40, %v12165_v10  ;;  %v1433_v62 = vshll.u32 %v12211_v15, 16  ;;  %v1439_v57 = vrot.slane %v1437_v6, 4  ;;  %v12293_v6 = vld [vmem:[%s11539_s27 + $0x84] sm:$0xf] }
  0xbe   : > { %v12244_v29 = vpop.permute.xlu0 %2572  ;;  %2586 = vrot.lane.b32.xlu1 %v9845_v61, %s11429_s30  ;;  %v1430_v53 = vor.u32 %v1429_v3, %v1426_v8  ;;  %v1443_v36 = vshll.u32 %v12237_v24, 16  ;;  %v1409_v42 = vshll.u32 %v12219_v23, 16  ;;  %v1415_v10 = vrot.slane %v1413_v39, 4  ;;  %v12300_v39 = vld [vmem:[%s11539_s27 + $0x88] sm:$0xf] }
  0xbf   : > { %v12252_v43 = vpop.permute.xlu1 %2574  ;;  %v1406_v41 = vor.u32 %v1405_v33, %v1402_v31  ;;  %v1419_v16 = vshll.u32 %v12242_v20, 16  ;;  %v3328_v11 = vsel %vm3326_vm12, %v3295_v14, %v12172_v22  ;;  %v1435_v48 = vrot.slane %v1433_v62, 5  ;;  %v11291_v33 = vld [vmem:[%s11539_s27 + $0x24] sm:$0xf] }
  0xc0   : > { %v1431_v46 = vrot.slane %v1430_v53, 4  ;;  %v1445_v9 = vrot.slane %v1443_v36, 5  ;;  %v1411_v18 = vrot.slane %v1409_v42, 5  ;;  %v9806_v5 = vcombine.low %v11289_v50, %v11290_v26  ;;  %v11292_v53 = vld [vmem:[%s11539_s27 + $0x28] sm:$0xf] }
  0xc1   : > { %2680 = vrot.lane.b32.xlu0 %v9860_v25, %s11427_s28  ;;  %v1407_v21 = vrot.slane %v1406_v41, 4  ;;  %v1440_v22 = vor.u32 %v1439_v57, %v1435_v48  ;;  %v1421_v52 = vrot.slane %v1419_v16, 5  ;;  %v9717_v45 = vrot.slane %v9701_v37, 9  ;;  %v12339_v50 = vld [vmem:[%s11539_s27 + $0x80] sm:$0x1] }
  0xc2   : > { %2682 = vrot.lane.b32.xlu1 %v9861_v13, %s11427_s28  ;;  %v12271_v28 = vpop.permute.xlu0 %2668  ;;  %v1436_v51 = vsel %vm11607_vm5, %v1431_v46, %v1435_v48  ;;  %v1416_v1 = vor.u32 %v1415_v10, %v1411_v18  ;;  %v1720_v55 = vrot.slane %v12211_v15, 5  ;;  %v1723_v49 = vrot.slane %v12237_v24, 5  ;;  %v9740_v24 = vld [vmem:[%s11539_s27 + $0x78] sm:$0xf]  ;;  %v12312_v13 = vld [vmem:[%s11539_s27 + $0x7c] sm:$0xf] }
  0xc3   : > { %v12269_v47 = vpop.permute.xlu1 %2670  ;;  %v1412_v32 = vsel %vm11607_vm5, %v1407_v21, %v1411_v18  ;;  %v1441_v56 = vrot.slane %v1440_v22, 4  ;;  %v9716_v58 = vrot.slane %v9700_v30, 9  ;;  %v1713_v59 = vrot.slane %v12219_v23, 5 }
  0xc4   : > { %v1716_v61 = vrot.slane %v12242_v20, 5  ;;  %v1417_v27 = vrot.slane %v1416_v1, 4  ;;  %v1721_v40 = vsel %vm11563_vm2, %v9717_v45, %v1720_v55  ;;  %v1722_v63 = vrot.slane %v1720_v55, 4  ;;  %v564_v1 = vld [vmem:[%s11539_s27 + $0x78] sm:$0xf] }
  0xc5   : > { %v1446_v15 = vsel %vm11607_vm5, %v1441_v56, %v1445_v9  ;;  %v1714_v2 = vsel %vm11563_vm2, %v9716_v58, %v1713_v59  ;;  %v1715_v23 = vrot.slane %v1713_v59, 4  ;;  %v3361_v4 = vsel %vm3359_vm14, %v3328_v11, %v12184_v44  ;;  %v12355_v58 = vld [vmem:[%s11539_s27 + $0x7c] sm:$0xf] }
  0xc6   : > { %v9877_v14 = vcombine.low %v1436_v51, %v1446_v15  ;;  %v1422_v54 = vsel %vm11607_vm5, %v1417_v27, %v1421_v52  ;;  %v1724_v12 = vsel %vm11563_vm2, %v1722_v63, %v1723_v49  ;;  %v3121_v44 = vsel %vm3112_vm6, %v9806_v5, %v12193_v7  ;;  %10869 = vmatprep.mubr.msk.bf16.mxu0 %vm3419_vm15, %v3361_v4 }
  0xc7   : > { %v12284_v0 = vpop.permute.xlu1 %2750  ;;  %v9876_v3 = vcombine.low %v1412_v32, %v1422_v54  ;;  %v1717_v25 = vsel %vm11563_vm2, %v1715_v23, %v1716_v61  ;;  %v3454_v20 = vsel %vm3452_vm13, %v11071_v34, 0  ;;  %v9893_v31 = vcombine.low %v1721_v40, %v1724_v12  ;;  %v12363_v23 = vld [vmem:[%s11539_s27 + $0x80] sm:$0x1] }
  0xc8   : > { %v12303_v8 = vpop.permute.xlu0 %2748  ;;  %2762 = vrot.lane.b32.xlu1 %v9877_v14, %s11431_s17  ;;  %10868 = vmatpush3.bf16.msra.mxu0 %v3454_v20  ;;  %v9807_v62 = vcombine.low %v11291_v33, %v11292_v53  ;;  %v3363_v7 = vsel %vm3359_vm14, %v12250_v35, %v12221_v60  ;;  %v2033_v57 = vshrl.u32 %v12293_v6, 16  ;;  %v9892_v34 = vcombine.low %v1714_v2, %v1717_v25  ;;  %v12330_v35 = vld [vmem:[%s11539_s27 + $0x8c] sm:$0x1] }
  0xc9   : > { %2760 = vrot.lane.b32.xlu0 %v9876_v3, %s11431_s17  ;;  %v2036_v41 = vshll.u32 %v12293_v6, 16  ;;  %v2046_v42 = vshrl.u32 %v12300_v39, 16  ;;  %v2009_v10 = vshrl.u32 %v9740_v24, 16  ;;  %v9909_v37 = vcombine.low %v12293_v6, %v12300_v39 }
  0xca   : > { %v2035_v16 = vrot.slane %v2033_v57, 4  ;;  %v2012_v11 = vshll.u32 %v9740_v24, 16  ;;  %v2022_v60 = vshrl.u32 %v12312_v13, 16  ;;  %v3124_v48 = vsel %vm3112_vm6, %v9807_v62, %v12230_v38 }
  0xcb   : > { %v12321_v36 = vpop.permute.xlu1 %2830  ;;  %v2038_v9 = vrot.slane %v2036_v41, 5  ;;  %v2011_v21 = vrot.slane %v2009_v10, 4  ;;  %v9908_v18 = vcombine.low %v9740_v24, %v12312_v13  ;;  %10870 = vmatmul.mubr.msk.bf16.vlgmr.msra.gmra.mrb[0].mxu0 %vm3419_vm15, %v3363_v7  ;;  %v3169_v5 = vsel %vm3161_vm7, %v3124_v48, %v12252_v43  ;;  %v9780_v24 = vld [vmem:[%s11539_s27 + $0x78] sm:$0xe]  ;;  %v567_v48 = vld [vmem:[%s11539_s27 + $0x88] sm:$0xf] }
  0xcc   : > { %v12332_v46 = vpop.permute.xlu0 %2828  ;;  %2842 = vrot.lane.b32.xlu1 %v9893_v31, %s11428_s29  ;;  %v2014_v26 = vrot.slane %v2012_v11, 5  ;;  %v2042_v30 = vshll.u32 %v12300_v39, 16  ;;  %v2048_v51 = vrot.slane %v2046_v42, 4  ;;  %v2052_v52 = vshll.u32 %v12330_v35, 16 }
  0xcd   : > { %2840 = vrot.lane.b32.xlu0 %v9892_v34, %s11428_s29  ;;  %v2039_v22 = vor.u32 %v2038_v9, %v2035_v16  ;;  %v2018_v45 = vshll.u32 %v12312_v13, 16  ;;  %v2024_v32 = vrot.slane %v2022_v60, 4  ;;  %v3167_v55 = vsel %vm3161_vm7, %v3121_v44, %v12244_v29  ;;  %v566_v60 = vld [vmem:[%s11539_s27 + $0x84] sm:$0xf] }
  0xce   : > { %v2044_v49 = vrot.slane %v2042_v30, 5  ;;  %v2015_v43 = vor.u32 %v2014_v26, %v2011_v21  ;;  %v2028_v56 = vshll.u32 %v12339_v50, 16  ;;  %v2054_v27 = vrot.slane %v2052_v52, 5 }
  0xcf   : > { %v12345_v38 = vpop.permute.xlu1 %2926  ;;  %v2040_v61 = vrot.slane %v2039_v22, 4  ;;  %v2020_v40 = vrot.slane %v2018_v45, 5  ;;  %v3202_v63 = vsel %vm3194_vm8, %v3169_v5, %v12269_v47  ;;  %v836_v4 = vshrl.u32 %v564_v1, 16  ;;  %v12388_v5 = vld [vmem:[%s11539_s27 + $0x8c] sm:$0x1] }
  0xd0   : > { %v12357_v59 = vpop.permute.xlu0 %2924  ;;  %2938 = vrot.lane.b32.xlu1 %v9909_v37, %s11432_s18  ;;  %v2049_v15 = vor.u32 %v2048_v51, %v2044_v49  ;;  %v2016_v2 = vrot.slane %v2015_v43, 4  ;;  %v2030_v29 = vrot.slane %v2028_v56, 5  ;;  %v839_v54 = vshll.u32 %v564_v1, 16 }
  0xd1   : > { %2936 = vrot.lane.b32.xlu0 %v9908_v18, %s11432_s18  ;;  %v2045_v6 = vsel %vm11607_vm5, %v2040_v61, %v2044_v49  ;;  %v2025_v14 = vor.u32 %v2024_v32, %v2020_v40  ;;  %v845_v12 = vshll.u32 %v12355_v58, 16  ;;  %v838_v25 = vrot.slane %v836_v4, 4 }
  0xd2   : > { %v2050_v47 = vrot.slane %v2049_v15, 4  ;;  %v2021_v44 = vsel %vm11607_vm5, %v2016_v2, %v2020_v40  ;;  %v849_v20 = vshrl.u32 %v12355_v58, 16  ;;  %v841_v53 = vrot.slane %v839_v54, 5  ;;  %v990_v15 = vld [vmem:[%s11539_s27 + $0x84] sm:$0xe] }
  0xd3   : > { %v2026_v33 = vrot.slane %v2025_v14, 4  ;;  %v847_v62 = vrot.slane %v845_v12, 5  ;;  %v855_v7 = vshll.u32 %v12363_v23, 16  ;;  %v9796_v41 = vrot.slane %v9780_v24, 9 }
  0xd4   : > { %v12370_v3 = vpop.permute.xlu1 %3006  ;;  %v2055_v57 = vsel %vm11607_vm5, %v2050_v47, %v2054_v27  ;;  %v851_v34 = vrot.slane %v849_v20, 4  ;;  %v2322_v42 = vrot.slane %v12312_v13, 5  ;;  %v3200_v37 = vsel %vm3194_vm8, %v3167_v55, %v12271_v28  ;;  %v989_v47 = vld [vmem:[%s11539_s27 + $0x78] sm:$0xe] }
  0xd5   : > { %v12375_v31 = vpop.permute.xlu0 %3004  ;;  %v9925_v10 = vcombine.low %v2045_v6, %v2055_v57  ;;  %v2031_v16 = vsel %vm11607_vm5, %v2026_v33, %v2030_v29  ;;  %v842_v11 = vor.u32 %v841_v53, %v838_v25  ;;  %v857_v18 = vrot.slane %v855_v7, 5 }
  0xd6   : > { %v9924_v9 = vcombine.low %v2021_v44, %v2031_v16  ;;  %v852_v21 = vor.u32 %v851_v34, %v847_v62  ;;  %v2324_v26 = vrot.slane %v2322_v42, 4  ;;  %v2323_v51 = vsel %vm11563_vm2, %v9796_v41, %v2322_v42 }
  0xd7   : > { %3018 = vrot.lane.b32.xlu1 %v9925_v10, %s11433_s19  ;;  %v843_v13 = vrot.slane %v842_v11, 4  ;;  %v2325_v28 = vrot.slane %v12339_v50, 5  ;;  %v3235_v22 = vsel %vm3227_vm9, %v3202_v63, %v12284_v0  ;;  %v860_v32 = vshrl.u32 %v566_v60, 16  ;;  %v9781_v0 = vld [vmem:[%s11539_s27 + $0x84] sm:$0xe] }
  0xd8   : > { %3016 = vrot.lane.b32.xlu0 %v9924_v9, %s11433_s19  ;;  %v853_v45 = vrot.slane %v852_v21, 4  ;;  %v863_v1 = vshll.u32 %v566_v60, 16  ;;  %v869_v55 = vshll.u32 %v567_v48, 16  ;;  %v873_v56 = vshrl.u32 %v567_v48, 16  ;;  %v12434_v11 = vld [vmem:[%s11539_s27 + $0x90] sm:$0xf] }
  0xd9   : > { %v12390_v30 = vpop.permute.xlu0 %3084  ;;  %v12398_v52 = vpop.permute.xlu1 %2496  ;;  %v848_v49 = vsel %vm11607_vm5, %v843_v13, %v847_v62  ;;  %v2326_v43 = vsel %vm11563_vm2, %v2324_v26, %v2325_v28  ;;  %v879_v50 = vshll.u32 %v12388_v5, 16  ;;  %v862_v40 = vrot.slane %v860_v32, 4  ;;  %v9664_v26 = vld [vmem:[%s11539_s27 + $0x84] sm:$0xf] }
  0xda   : > { %v858_v61 = vsel %vm11607_vm5, %v853_v45, %v857_v18  ;;  %v9940_v27 = vcombine.low %v2323_v51, %v2326_v43  ;;  %v865_v63 = vrot.slane %v863_v1, 5  ;;  %v3233_v29 = vsel %vm3227_vm9, %v3200_v37, %v12303_v8  ;;  %v12443_v18 = vld [vmem:[%s11539_s27 + $0x94] sm:$0xf] }
  0xdb   : > { %v9830_v2 = vcombine.low %v848_v49, %v858_v61  ;;  %v871_v4 = vrot.slane %v869_v55, 5  ;;  %v875_v6 = vrot.slane %v873_v56, 4  ;;  %v9797_v54 = vrot.slane %v9781_v0, 9  ;;  %v12459_v55 = vld [vmem:[%s11539_s27 + $0x88] sm:$0xf] }
  0xdc   : > { %3096 = vrot.lane.b32.xlu0 %v9940_v27, %s11434_s24  ;;  %v866_v14 = vor.u32 %v865_v63, %v862_v40  ;;  %v2329_v12 = vrot.slane %v12300_v39, 5  ;;  %v2332_v24 = vrot.slane %v12330_v35, 5  ;;  %v881_v20 = vrot.slane %v879_v50, 5  ;;  %v12468_v27 = vld [vmem:[%s11539_s27 + $0x98] sm:$0x1] }
  0xdd   : > { %2508 = vrot.lane.b32.xlu1 %v9830_v2, %s11430_s0  ;;  %v876_v25 = vor.u32 %v875_v6, %v871_v4  ;;  %v3268_v8 = vsel %vm3260_vm10, %v3235_v22, %v12321_v36  ;;  %v9639_v33 = vrot.slane %v990_v15, 9  ;;  %v1125_v35 = vrot.slane %v567_v48, 5 }
  0xde   : > { %v867_v62 = vrot.slane %v866_v14, 4  ;;  %v2330_v39 = vsel %vm11563_vm2, %v9797_v54, %v2329_v12  ;;  %v2331_v7 = vrot.slane %v2329_v12, 4  ;;  %v1128_v34 = vrot.slane %v12388_v5, 5 }
  0xdf   : > { %v12416_v44 = vpop.permute.xlu0 %3086  ;;  %v877_v57 = vrot.slane %v876_v25, 4  ;;  %v9638_v41 = vrot.slane %v989_v47, 9  ;;  %v1118_v42 = vrot.slane %v12355_v58, 5  ;;  %v1126_v16 = vsel %vm11563_vm2, %v9639_v33, %v1125_v35 }
  0xe0   : > { %v12421_v53 = vpop.permute.xlu1 %2498  ;;  %v872_v36 = vsel %vm11607_vm5, %v867_v62, %v871_v4  ;;  %v2333_v10 = vsel %vm11563_vm2, %v2331_v7, %v2332_v24  ;;  %v1127_v37 = vrot.slane %v1125_v35, 4  ;;  %v3266_v58 = vsel %vm3260_vm10, %v3233_v29, %v12332_v46  ;;  %v12479_v4 = vld [vmem:[%s11539_s27 + $0x8c] sm:$0x1] }
  0xe1   : > { %v882_v48 = vsel %vm11607_vm5, %v877_v57, %v881_v20  ;;  %v9941_v9 = vcombine.low %v2330_v39, %v2333_v10  ;;  %v1120_v21 = vrot.slane %v1118_v42, 4  ;;  %v1119_v28 = vsel %vm11563_vm2, %v9638_v41, %v1118_v42  ;;  %v9702_v42 = vld [vmem:[%s11539_s27 + $0x84] sm:$0xe] }
  0xe2   : > { %v9831_v13 = vcombine.low %v872_v36, %v882_v48  ;;  %v1129_v51 = vsel %vm11563_vm2, %v1127_v37, %v1128_v34  ;;  %v1121_v22 = vrot.slane %v12363_v23, 5  ;;  %v3301_v46 = vsel %vm3293_vm11, %v3268_v8, %v12345_v38  ;;  %v11293_v37 = vld [vmem:[%s11539_s27 + $0x30] sm:$0xf] }
  0xe3   : > { %v12436_v60 = vpop.permute.xlu0 %2576  ;;  %3098 = vrot.lane.b32.xlu0 %v9941_v9, %s11434_s24  ;;  %v9847_v45 = vcombine.low %v1126_v16, %v1129_v51  ;;  %v1472_v32 = vshrl.u32 %v12434_v11, 16  ;;  %v1475_v1 = vshll.u32 %v12434_v11, 16  ;;  %v3299_v23 = vsel %vm3293_vm11, %v3266_v58, %v12357_v59 }
  0xe4   : > { %v12446_v5 = vpop.permute.xlu1 %2578  ;;  %2510 = vrot.lane.b32.xlu1 %v9831_v13, %s11430_s0  ;;  %v1122_v49 = vsel %vm11563_vm2, %v1120_v21, %v1121_v22  ;;  %v1485_v43 = vshrl.u32 %v12443_v18, 16  ;;  %v1448_v56 = vshrl.u32 %v9664_v26, 16  ;;  %v1451_v61 = vshll.u32 %v9664_v26, 16 }
  0xe5   : > { %v9846_v50 = vcombine.low %v1119_v28, %v1122_v49  ;;  %v1474_v38 = vrot.slane %v1472_v32, 4  ;;  %v1477_v0 = vrot.slane %v1475_v1, 5  ;;  %v9863_v15 = vcombine.low %v12434_v11, %v12443_v18  ;;  %v11294_v11 = vld [vmem:[%s11539_s27 + $0x34] sm:$0xf] }
  0xe6   : > { %v1450_v2 = vrot.slane %v1448_v56, 4  ;;  %v1461_v29 = vshrl.u32 %v12459_v55, 16  ;;  %v9862_v59 = vcombine.low %v9664_v26, %v12459_v55  ;;  %v1453_v6 = vrot.slane %v1451_v61, 5 }
  0xe7   : > { %v12472_v63 = vpop.permute.xlu0 %2672  ;;  %2588 = vrot.lane.b32.xlu0 %v9846_v50, %s11429_s30  ;;  %v3332_v14 = vsel %vm3326_vm12, %v3299_v23, %v12375_v31  ;;  %v1478_v54 = vor.u32 %v1477_v0, %v1474_v38  ;;  %v1481_v12 = vshll.u32 %v12443_v18, 16  ;;  %v1487_v24 = vrot.slane %v1485_v43, 4  ;;  %v9703_v31 = vld [vmem:[%s11539_s27 + $0x90] sm:$0xe]  ;;  %v11295_v23 = vld [vmem:[%s11539_s27 + $0x3c] sm:$0xf] }
  0xe8   : > { %v12470_v40 = vpop.permute.xlu1 %2674  ;;  %2590 = vrot.lane.b32.xlu1 %v9847_v45, %s11429_s30  ;;  %v1491_v47 = vshll.u32 %v12468_v27, 16  ;;  %v1457_v25 = vshll.u32 %v12459_v55, 16  ;;  %v1463_v20 = vrot.slane %v1461_v29, 4  ;;  %v1454_v62 = vor.u32 %v1453_v6, %v1450_v2  ;;  %v11296_v43 = vld [vmem:[%s11539_s27 + $0x40] sm:$0xf] }
  0xe9   : > { %v1479_v8 = vrot.slane %v1478_v54, 4  ;;  %v1483_v33 = vrot.slane %v1481_v12, 5  ;;  %v1467_v39 = vshll.u32 %v12479_v4, 16  ;;  %v3334_v35 = vsel %vm3326_vm12, %v3301_v46, %v12370_v3  ;;  %v9746_v38 = vld [vmem:[%s11539_s27 + $0x9c] sm:$0xf] }
  0xea   : > { %v1493_v57 = vrot.slane %v1491_v47, 5  ;;  %v1459_v34 = vrot.slane %v1457_v25, 5  ;;  %v3365_v41 = vsel %vm3359_vm14, %v3332_v14, %v12390_v30  ;;  %v1455_v16 = vrot.slane %v1454_v62, 4  ;;  %v12524_v0 = vld [vmem:[%s11539_s27 + $0xa0] sm:$0xf] }
  0xeb   : > { %2684 = vrot.lane.b32.xlu0 %v9862_v59, %s11427_s28  ;;  %v1484_v36 = vsel %vm11607_vm5, %v1479_v8, %v1483_v33  ;;  %v1488_v10 = vor.u32 %v1487_v24, %v1483_v33  ;;  %v9808_v48 = vcombine.low %v11293_v37, %v11294_v11  ;;  %10873 = vmatprep.mubr.msk.bf16.mxu0 %vm3419_vm15, %v3365_v41  ;;  %v1469_v30 = vrot.slane %v1467_v39, 5  ;;  %v9744_v29 = vld [vmem:[%s11539_s27 + $0x90] sm:$0xf]  ;;  %v12536_v59 = vld [vmem:[%s11539_s27 + $0x94] sm:$0xf] }
  0xec   : > { %v12490_v7 = vpop.permute.xlu1 %2754  ;;  %2686 = vrot.lane.b32.xlu1 %v9863_v15, %s11427_s28  ;;  %v1464_v3 = vor.u32 %v1463_v20, %v1459_v34  ;;  %v9719_v58 = vrot.slane %v9703_v31, 9  ;;  %v1734_v21 = vrot.slane %v12443_v18, 5  ;;  %v1460_v13 = vsel %vm11607_vm5, %v1455_v16, %v1459_v34  ;;  %v12552_v62 = vld [vmem:[%s11539_s27 + $0xa4] sm:$0x1]  ;;  %v12558_v34 = vld [vmem:[%s11539_s27 + $0x98] sm:$0x1] }
  0xed   : > { %v12503_v9 = vpop.permute.xlu0 %2752  ;;  %v1489_v26 = vrot.slane %v1488_v10, 4  ;;  %v1737_v51 = vrot.slane %v12468_v27, 5  ;;  %v9718_v28 = vrot.slane %v9702_v42, 9  ;;  %v1727_v18 = vrot.slane %v12459_v55, 5 }
  0xee   : > { %v1465_v45 = vrot.slane %v1464_v3, 4  ;;  %v1735_v46 = vsel %vm11563_vm2, %v9719_v58, %v1734_v21  ;;  %v1736_v32 = vrot.slane %v1734_v21, 4  ;;  %v1730_v49 = vrot.slane %v12479_v4, 5 }
  0xef   : > { %v1494_v1 = vsel %vm11607_vm5, %v1489_v26, %v1493_v57  ;;  %v9809_v56 = vcombine.low %v11295_v23, %v11296_v43  ;;  %v3367_v50 = vsel %vm3359_vm14, %v3334_v35, %v12416_v44  ;;  %v3127_v15 = vsel %vm3112_vm6, %v9808_v48, %v12398_v52  ;;  %v568_v26 = vld [vmem:[%s11539_s27 + $0x90] sm:$0xf]  ;;  %v12582_v43 = vld [vmem:[%s11539_s27 + $0x98] sm:$0x1] }
  0xf0   : > { %v12510_v22 = vpop.permute.xlu1 %2834  ;;  %v9879_v27 = vcombine.low %v1484_v36, %v1494_v1  ;;  %v1470_v55 = vsel %vm11607_vm5, %v1465_v45, %v1469_v30  ;;  %v1738_v2 = vsel %vm11563_vm2, %v1736_v32, %v1737_v51  ;;  %10874 = vmatmul.mubr.msk.bf16.gmra.mrb[4].mxu0 %vm3419_vm15, %v3367_v50  ;;  %v1728_v6 = vsel %vm11563_vm2, %v9718_v28, %v1727_v18  ;;  %v12577_v32 = vld [vmem:[%s11539_s27 + $0x94] sm:$0xf] }
  0xf1   : > { %v12526_v61 = vpop.permute.xlu0 %2832  ;;  %v9878_v44 = vcombine.low %v1460_v13, %v1470_v55  ;;  %v9895_v4 = vcombine.low %v1735_v46, %v1738_v2  ;;  %v1729_v14 = vrot.slane %v1727_v18, 4  ;;  %v3130_v52 = vsel %vm3112_vm6, %v9809_v56, %v12421_v53  ;;  %v9782_v2 = vld [vmem:[%s11539_s27 + $0x90] sm:$0xe] }
  0xf2   : > { %2766 = vrot.lane.b32.xlu1 %v9879_v27, %s11431_s17  ;;  %v2081_v12 = vshrl.u32 %v9746_v38, 16  ;;  %v2084_v24 = vshll.u32 %v9746_v38, 16  ;;  %v2094_v47 = vshrl.u32 %v12524_v0, 16  ;;  %v2057_v20 = vshrl.u32 %v9744_v29, 16 }
  0xf3   : > { %2764 = vrot.lane.b32.xlu0 %v9878_v44, %s11431_s17  ;;  %v1731_v25 = vsel %vm11563_vm2, %v1729_v14, %v1730_v49  ;;  %v2060_v8 = vshll.u32 %v9744_v29, 16  ;;  %v2070_v33 = vshrl.u32 %v12536_v59, 16  ;;  %v9911_v57 = vcombine.low %v9746_v38, %v12524_v0 }
  0xf4   : > { %v12541_v54 = vpop.permute.xlu1 %2930  ;;  %v9894_v31 = vcombine.low %v1728_v6, %v1731_v25  ;;  %v2083_v35 = vrot.slane %v2081_v12, 4  ;;  %v2086_v53 = vrot.slane %v2084_v24, 5  ;;  %v2059_v41 = vrot.slane %v2057_v20, 4 }
  0xf5   : > { %v12554_v39 = vpop.permute.xlu0 %2928  ;;  %v2062_v42 = vrot.slane %v2060_v8, 5  ;;  %v9910_v36 = vcombine.low %v9744_v29, %v12536_v59  ;;  %v3173_v10 = vsel %vm3161_vm7, %v3130_v52, %v12446_v5  ;;  %v2090_v37 = vshll.u32 %v12524_v0, 16 }
  0xf6   : > { %2846 = vrot.lane.b32.xlu1 %v9895_v4, %s11428_s29  ;;  %v2087_v16 = vor.u32 %v2086_v53, %v2083_v35  ;;  %v2096_v11 = vrot.slane %v2094_v47, 4  ;;  %v2100_v48 = vshll.u32 %v12552_v62, 16  ;;  %v2066_v58 = vshll.u32 %v12536_v59, 16 }
  0xf7   : > { %2844 = vrot.lane.b32.xlu0 %v9894_v31, %s11428_s29  ;;  %v2063_v30 = vor.u32 %v2062_v42, %v2059_v41  ;;  %v2072_v21 = vrot.slane %v2070_v33, 4  ;;  %v2076_v5 = vshll.u32 %v12558_v34, 16  ;;  %v3171_v51 = vsel %vm3161_vm7, %v3127_v15, %v12436_v60  ;;  %v570_v41 = vld [vmem:[%s11539_s27 + $0x9c] sm:$0xf]  ;;  %v571_v42 = vld [vmem:[%s11539_s27 + $0xa0] sm:$0xf] }
  0xf8   : > { %v2088_v28 = vrot.slane %v2087_v16, 4  ;;  %v2092_v45 = vrot.slane %v2090_v37, 5  ;;  %v2102_v46 = vrot.slane %v2100_v48, 5  ;;  %v2068_v1 = vrot.slane %v2066_v58, 5 }
  0xf9   : > { %v12566_v3 = vpop.permute.xlu1 %3010  ;;  %v2064_v18 = vrot.slane %v2063_v30, 4  ;;  %v2078_v49 = vrot.slane %v2076_v5, 5  ;;  %v3206_v23 = vsel %vm3194_vm8, %v3173_v10, %v12470_v40  ;;  %v3204_v60 = vsel %vm3194_vm8, %v3171_v51, %v12472_v63 }
  0xfa   : > { %v12572_v13 = vpop.permute.xlu0 %3008  ;;  %2942 = vrot.lane.b32.xlu1 %v9911_v57, %s11432_s18  ;;  %v2097_v56 = vor.u32 %v2096_v11, %v2092_v45  ;;  %v884_v50 = vshrl.u32 %v568_v26, 16  ;;  %v887_v38 = vshll.u32 %v568_v26, 16  ;;  %v2093_v27 = vsel %vm11607_vm5, %v2088_v28, %v2092_v45  ;;  %v12610_v11 = vld [vmem:[%s11539_s27 + $0xa4] sm:$0x1] }
  0xfb   : > { %2940 = vrot.lane.b32.xlu0 %v9910_v36, %s11432_s18  ;;  %v2073_v55 = vor.u32 %v2072_v21, %v2068_v1  ;;  %v893_v15 = vshll.u32 %v12577_v32, 16  ;;  %v897_v40 = vshrl.u32 %v12577_v32, 16  ;;  %v903_v63 = vshll.u32 %v12582_v43, 16 }
  0xfc   : > { %v2098_v44 = vrot.slane %v2097_v56, 4  ;;  %v886_v4 = vrot.slane %v884_v50, 4  ;;  %v889_v6 = vrot.slane %v887_v38, 5  ;;  %v2069_v52 = vsel %vm11607_vm5, %v2064_v18, %v2068_v1  ;;  %v9783_v1 = vld [vmem:[%s11539_s27 + $0x9c] sm:$0xe] }
  0xfd   : > { %v2074_v12 = vrot.slane %v2073_v55, 4  ;;  %v895_v24 = vrot.slane %v893_v15, 5  ;;  %v899_v47 = vrot.slane %v897_v40, 4  ;;  %v905_v8 = vrot.slane %v903_v63, 5  ;;  %v992_v38 = vld [vmem:[%s11539_s27 + $0x9c] sm:$0xe] }
  0xfe   : > { %v12593_v29 = vpop.permute.xlu0 %3088  ;;  %v12596_v14 = vpop.permute.xlu1 %2500  ;;  %v2103_v25 = vsel %vm11607_vm5, %v2098_v44, %v2102_v46  ;;  %v890_v20 = vor.u32 %v889_v6, %v886_v4  ;;  %v9798_v33 = vrot.slane %v9782_v2, 9  ;;  %v2336_v57 = vrot.slane %v12536_v59, 5 }
  0xff   : > { %v9927_v31 = vcombine.low %v2093_v27, %v2103_v25  ;;  %v2079_v35 = vsel %vm11607_vm5, %v2074_v12, %v2078_v49  ;;  %v900_v53 = vor.u32 %v899_v47, %v895_v24  ;;  %v1135_v16 = vrot.slane %v12582_v43, 5 }
 0x100   : > { %v9926_v36 = vcombine.low %v2069_v52, %v2079_v35  ;;  %v891_v10 = vrot.slane %v890_v20, 4  ;;  %v2339_v37 = vrot.slane %v12558_v34, 5  ;;  %v2337_v30 = vsel %vm11563_vm2, %v9798_v33, %v2336_v57  ;;  %v991_v52 = vld [vmem:[%s11539_s27 + $0x90] sm:$0xe] }
 0x101   : > { %3022 = vrot.lane.b32.xlu1 %v9927_v31, %s11433_s19  ;;  %v901_v48 = vrot.slane %v900_v53, 4  ;;  %v2338_v58 = vrot.slane %v2336_v57, 4  ;;  %v3239_v59 = vsel %vm3227_vm9, %v3206_v23, %v12490_v7  ;;  %v908_v5 = vshrl.u32 %v570_v41, 16  ;;  %v12651_v53 = vld [vmem:[%s11539_s27 + $0xa8] sm:$0xf] }
 0x102   : > { %3020 = vrot.lane.b32.xlu0 %v9926_v36, %s11433_s19  ;;  %v896_v34 = vsel %vm11607_vm5, %v891_v10, %v895_v24  ;;  %v911_v26 = vshll.u32 %v570_v41, 16  ;;  %v917_v51 = vshll.u32 %v571_v42, 16  ;;  %v921_v7 = vshrl.u32 %v571_v42, 16  ;;  %v12660_v36 = vld [vmem:[%s11539_s27 + $0xac] sm:$0xf] }
 0x103   : > { %v906_v45 = vsel %vm11607_vm5, %v901_v48, %v905_v8  ;;  %v2340_v46 = vsel %vm11563_vm2, %v2338_v58, %v2339_v37  ;;  %v927_v18 = vshll.u32 %v12610_v11, 16  ;;  %v910_v56 = vrot.slane %v908_v5, 4 }
 0x104   : > { %v12617_v21 = vpop.permute.xlu0 %3090  ;;  %v9832_v49 = vcombine.low %v896_v34, %v906_v45  ;;  %v9942_v23 = vcombine.low %v2337_v30, %v2340_v46  ;;  %v913_v50 = vrot.slane %v911_v26, 5  ;;  %v3237_v27 = vsel %vm3227_vm9, %v3204_v60, %v12503_v9  ;;  %v9668_v30 = vld [vmem:[%s11539_s27 + $0x9c] sm:$0xf]  ;;  %v12677_v26 = vld [vmem:[%s11539_s27 + $0xa0] sm:$0xf] }
 0x105   : > { %v12622_v28 = vpop.permute.xlu1 %2502  ;;  %v919_v55 = vrot.slane %v917_v51, 5  ;;  %v923_v15 = vrot.slane %v921_v7, 4  ;;  %v929_v40 = vrot.slane %v927_v18, 5  ;;  %v9799_v4 = vrot.slane %v9783_v1, 9 }
 0x106   : > { %2512 = vrot.lane.b32.xlu1 %v9832_v49, %s11430_s0  ;;  %3100 = vrot.lane.b32.xlu0 %v9942_v23, %s11434_s24  ;;  %v914_v44 = vor.u32 %v913_v50, %v910_v56  ;;  %v2343_v6 = vrot.slane %v12524_v0, 5  ;;  %v2346_v63 = vrot.slane %v12552_v62, 5  ;;  %v1142_v60 = vrot.slane %v12610_v11, 5  ;;  %v12690_v23 = vld [vmem:[%s11539_s27 + $0xb0] sm:$0x1] }
 0x107   : > { %v924_v9 = vor.u32 %v923_v15, %v919_v55  ;;  %v3272_v24 = vsel %vm3260_vm10, %v3239_v59, %v12510_v22  ;;  %v9641_v47 = vrot.slane %v992_v38, 9  ;;  %v1139_v0 = vrot.slane %v571_v42, 5  ;;  %v12698_v38 = vld [vmem:[%s11539_s27 + $0xa4] sm:$0x1] }
 0x108   : > { %v12633_v2 = vpop.permute.xlu0 %2580  ;;  %v915_v25 = vrot.slane %v914_v44, 4  ;;  %v2344_v20 = vsel %vm11563_vm2, %v9799_v4, %v2343_v6  ;;  %v2345_v8 = vrot.slane %v2343_v6, 4  ;;  %v3270_v62 = vsel %vm3260_vm10, %v3237_v27, %v12526_v61 }
 0x109   : > { %v12640_v12 = vpop.permute.xlu1 %2582  ;;  %v925_v33 = vrot.slane %v924_v9, 4  ;;  %v9640_v31 = vrot.slane %v991_v52, 9  ;;  %v1132_v35 = vrot.slane %v12577_v32, 5  ;;  %v1140_v41 = vsel %vm11563_vm2, %v9641_v47, %v1139_v0  ;;  %v9705_v47 = vld [vmem:[%s11539_s27 + $0xa8] sm:$0xe] }
 0x10a   : > { %v920_v22 = vsel %vm11607_vm5, %v915_v25, %v919_v55  ;;  %v2347_v57 = vsel %vm11563_vm2, %v2345_v8, %v2346_v63  ;;  %v1141_v42 = vrot.slane %v1139_v0, 4  ;;  %v3305_v34 = vsel %vm3293_vm11, %v3272_v24, %v12541_v54 }
 0x10b   : > { %v930_v32 = vsel %vm11607_vm5, %v925_v33, %v929_v40  ;;  %v9943_v37 = vcombine.low %v2344_v20, %v2347_v57  ;;  %v1133_v11 = vsel %vm11563_vm2, %v9640_v31, %v1132_v35  ;;  %v1134_v48 = vrot.slane %v1132_v35, 4  ;;  %v11297_v35 = vld [vmem:[%s11539_s27 + $0x48] sm:$0xf] }
 0x10c   : > { %v12664_v61 = vpop.permute.xlu0 %2676  ;;  %v9833_v58 = vcombine.low %v920_v22, %v930_v32  ;;  %v1143_v59 = vsel %vm11563_vm2, %v1141_v42, %v1142_v60  ;;  %v1520_v5 = vshrl.u32 %v12651_v53, 16  ;;  %v3303_v45 = vsel %vm3293_vm11, %v3270_v62, %v12554_v39 }
 0x10d   : > { %v12662_v10 = vpop.permute.xlu1 %2678  ;;  %3102 = vrot.lane.b32.xlu0 %v9943_v37, %s11434_s24  ;;  %v1136_v51 = vsel %vm11563_vm2, %v1134_v48, %v1135_v16  ;;  %v1523_v46 = vshll.u32 %v12651_v53, 16  ;;  %v1533_v7 = vshrl.u32 %v12660_v36, 16  ;;  %v9849_v54 = vcombine.low %v1140_v41, %v1143_v59  ;;  %v9704_v41 = vld [vmem:[%s11539_s27 + $0x9c] sm:$0xe] }
 0x10e   : > { %2514 = vrot.lane.b32.xlu1 %v9833_v58, %s11430_s0  ;;  %v9848_v18 = vcombine.low %v1133_v11, %v1136_v51  ;;  %v1522_v1 = vrot.slane %v1520_v5, 4  ;;  %v1496_v49 = vshrl.u32 %v9668_v30, 16  ;;  %v9865_v16 = vcombine.low %v12651_v53, %v12660_v36  ;;  %v11298_v53 = vld [vmem:[%s11539_s27 + $0x4c] sm:$0xf] }
 0x10f   : > { %v1525_v56 = vrot.slane %v1523_v46, 5  ;;  %v1499_v50 = vshll.u32 %v9668_v30, 16  ;;  %v1509_v39 = vshrl.u32 %v12677_v26, 16  ;;  %v9864_v55 = vcombine.low %v9668_v30, %v12677_v26 }
 0x110   : > { %v1498_v27 = vrot.slane %v1496_v49, 4  ;;  %v3338_v15 = vsel %vm3326_vm12, %v3305_v34, %v12566_v3  ;;  %v1529_v40 = vshll.u32 %v12660_v36, 16  ;;  %v1535_v63 = vrot.slane %v1533_v7, 4 }
 0x111   : > { %v12692_v43 = vpop.permute.xlu1 %2758  ;;  %2592 = vrot.lane.b32.xlu0 %v9848_v18, %s11429_s30  ;;  %v1501_v4 = vrot.slane %v1499_v50, 5  ;;  %v1526_v6 = vor.u32 %v1525_v56, %v1522_v1  ;;  %v1539_v52 = vshll.u32 %v12690_v23, 16  ;;  %v1505_v60 = vshll.u32 %v12677_v26, 16  ;;  %v11299_v56 = vld [vmem:[%s11539_s27 + $0x54] sm:$0xf] }
 0x112   : > { %v12704_v44 = vpop.permute.xlu0 %2756  ;;  %2594 = vrot.lane.b32.xlu1 %v9849_v54, %s11429_s30  ;;  %v1531_v9 = vrot.slane %v1529_v40, 5  ;;  %v1511_v3 = vrot.slane %v1509_v39, 4  ;;  %v1515_v24 = vshll.u32 %v12698_v38, 16  ;;  %v3336_v20 = vsel %vm3326_vm12, %v3303_v45, %v12572_v13  ;;  %v12735_v45 = vld [vmem:[%s11539_s27 + $0xb4] sm:$0xf] }
 0x113   : > { %v1527_v8 = vrot.slane %v1526_v6, 4  ;;  %v1541_v0 = vrot.slane %v1539_v52, 5  ;;  %v1502_v33 = vor.u32 %v1501_v4, %v1498_v27  ;;  %v1507_v31 = vrot.slane %v1505_v60, 5  ;;  %v12750_v39 = vld [vmem:[%s11539_s27 + $0xb8] sm:$0xf] }
 0x114   : > { %v1536_v62 = vor.u32 %v1535_v63, %v1531_v9  ;;  %v9810_v22 = vcombine.low %v11297_v35, %v11298_v53  ;;  %v3369_v57 = vsel %vm3359_vm14, %v3336_v20, %v12593_v29  ;;  %v1517_v37 = vrot.slane %v1515_v24, 5  ;;  %v9748_v4 = vld [vmem:[%s11539_s27 + $0xa8] sm:$0xf]  ;;  %v12761_v6 = vld [vmem:[%s11539_s27 + $0xac] sm:$0xf] }
 0x115   : > { %v12712_v25 = vpop.permute.xlu1 %2838  ;;  %2688 = vrot.lane.b32.xlu0 %v9864_v55, %s11427_s28  ;;  %v1532_v13 = vsel %vm11607_vm5, %v1527_v8, %v1531_v9  ;;  %v1503_v32 = vrot.slane %v1502_v33, 4  ;;  %v9721_v11 = vrot.slane %v9705_v47, 9  ;;  %10877 = vmatprep.mubr.msk.bf16.mxu0 %vm3419_vm15, %v3369_v57  ;;  %v1512_v30 = vor.u32 %v1511_v3, %v1507_v31  ;;  %v12786_v53 = vld [vmem:[%s11539_s27 + $0xb0] sm:$0x1] }
 0x116   : > { %v12721_v42 = vpop.permute.xlu0 %2836  ;;  %2690 = vrot.lane.b32.xlu1 %v9865_v16, %s11427_s28  ;;  %v1537_v48 = vrot.slane %v1536_v62, 4  ;;  %v1748_v29 = vrot.slane %v12660_v36, 5  ;;  %v1751_v58 = vrot.slane %v12690_v23, 5  ;;  %v9720_v34 = vrot.slane %v9704_v41, 9  ;;  %v11300_v16 = vld [vmem:[%s11539_s27 + $0x58] sm:$0xf] }
 0x117   : > { %v1508_v59 = vsel %vm11607_vm5, %v1503_v32, %v1507_v31  ;;  %v1741_v5 = vrot.slane %v12677_v26, 5  ;;  %v1744_v51 = vrot.slane %v12698_v38, 5  ;;  %v1513_v7 = vrot.slane %v1512_v30, 4 }
 0x118   : > { %v1542_v46 = vsel %vm11607_vm5, %v1537_v48, %v1541_v0  ;;  %v1749_v36 = vsel %vm11563_vm2, %v9721_v11, %v1748_v29  ;;  %v1750_v54 = vrot.slane %v1748_v29, 4  ;;  %v9811_v50 = vcombine.low %v11299_v56, %v11300_v16  ;;  %v12776_v0 = vld [vmem:[%s11539_s27 + $0xbc] sm:$0x1] }
 0x119   : > { %v12741_v18 = vpop.permute.xlu1 %2934  ;;  %v9881_v49 = vcombine.low %v1532_v13, %v1542_v46  ;;  %v1742_v26 = vsel %vm11563_vm2, %v9720_v34, %v1741_v5  ;;  %v1743_v23 = vrot.slane %v1741_v5, 4  ;;  %v1518_v38 = vsel %vm11607_vm5, %v1513_v7, %v1517_v37  ;;  %v12802_v5 = vld [vmem:[%s11539_s27 + $0xac] sm:$0xf] }
 0x11a   : > { %v12743_v1 = vpop.permute.xlu0 %2932  ;;  %v1752_v27 = vsel %vm11563_vm2, %v1750_v54, %v1751_v58  ;;  %v3371_v55 = vsel %vm3359_vm14, %v3338_v15, %v12617_v21  ;;  %v2129_v40 = vshrl.u32 %v12735_v45, 16  ;;  %v9880_v63 = vcombine.low %v1508_v59, %v1518_v38 }
 0x11b   : > { %2770 = vrot.lane.b32.xlu1 %v9881_v49, %s11431_s17  ;;  %v3133_v52 = vsel %vm3112_vm6, %v9810_v22, %v12596_v14  ;;  %v9897_v9 = vcombine.low %v1749_v36, %v1752_v27  ;;  %v1745_v60 = vsel %vm11563_vm2, %v1743_v23, %v1744_v51  ;;  %v3136_v3 = vsel %vm3112_vm6, %v9811_v50, %v12622_v28 }
 0x11c   : > { %v2131_v21 = vrot.slane %v2129_v40, 4  ;;  %v2132_v15 = vshll.u32 %v12735_v45, 16  ;;  %v2142_v24 = vshrl.u32 %v12750_v39, 16  ;;  %10878 = vmatmul.mubr.msk.bf16.gmra.mrb[8].mxu0 %vm3419_vm15, %v3371_v55  ;;  %2768 = vrot.lane.b32.xlu0 %v9880_v63, %s11431_s17  ;;  %v9896_v47 = vcombine.low %v1742_v26, %v1745_v60  ;;  %v12808_v26 = vld [vmem:[%s11539_s27 + $0xb0] sm:$0x1] }
 0x11d   : > { %v2105_v20 = vshrl.u32 %v9748_v4, 16  ;;  %v2108_v14 = vshll.u32 %v9748_v4, 16  ;;  %v2118_v8 = vshrl.u32 %v12761_v6, 16  ;;  %v9913_v62 = vcombine.low %v12735_v45, %v12750_v39 }
 0x11e   : > { %v2134_v28 = vrot.slane %v2132_v15, 5  ;;  %v9912_v31 = vcombine.low %v9748_v4, %v12761_v6  ;;  %v3177_v35 = vsel %vm3161_vm7, %v3136_v3, %v12640_v12  ;;  %v12788_v22 = vpop.permute.xlu1 %3014  ;;  %v2138_v13 = vshll.u32 %v12750_v39, 16  ;;  %v12795_v12 = vld [vmem:[%s11539_s27 + $0xa8] sm:$0xf] }
 0x11f   : > { %v12778_v33 = vpop.permute.xlu0 %3012  ;;  %2850 = vrot.lane.b32.xlu1 %v9897_v9, %s11428_s29  ;;  %v2107_v57 = vrot.slane %v2105_v20, 4  ;;  %v2110_v41 = vrot.slane %v2108_v14, 5  ;;  %v2144_v32 = vrot.slane %v2142_v24, 4  ;;  %v2148_v11 = vshll.u32 %v12776_v0, 16 }
 0x120   : > { %v2135_v37 = vor.u32 %v2134_v28, %v2131_v21  ;;  %v2114_v48 = vshll.u32 %v12761_v6, 16  ;;  %v2120_v30 = vrot.slane %v2118_v8, 4  ;;  %2848 = vrot.lane.b32.xlu0 %v9896_v47, %s11428_s29  ;;  %v3175_v29 = vsel %vm3161_vm7, %v3133_v52, %v12633_v2 }
 0x121   : > { %v2140_v58 = vrot.slane %v2138_v13, 5  ;;  %v2111_v59 = vor.u32 %v2110_v41, %v2107_v57  ;;  %v2124_v34 = vshll.u32 %v12786_v53, 16  ;;  %v2150_v45 = vrot.slane %v2148_v11, 5 }
 0x122   : > { %v2136_v51 = vrot.slane %v2135_v37, 4  ;;  %v2116_v46 = vrot.slane %v2114_v48, 5  ;;  %v3210_v7 = vsel %vm3194_vm8, %v3177_v35, %v12662_v10  ;;  %v932_v2 = vshrl.u32 %v12795_v12, 16  ;;  %v9784_v10 = vld [vmem:[%s11539_s27 + $0xa8] sm:$0xe] }
 0x123   : > { %2946 = vrot.lane.b32.xlu1 %v9913_v62, %s11432_s18  ;;  %v2145_v36 = vor.u32 %v2144_v32, %v2140_v58  ;;  %v2112_v54 = vrot.slane %v2111_v59, 4  ;;  %v2126_v49 = vrot.slane %v2124_v34, 5  ;;  %v935_v50 = vshll.u32 %v12795_v12, 16  ;;  %v12833_v62 = vld [vmem:[%s11539_s27 + $0xb4] sm:$0xf] }
 0x124   : > { %v12811_v23 = vpop.permute.xlu0 %3092  ;;  %v2141_v56 = vsel %vm11607_vm5, %v2136_v51, %v2140_v58  ;;  %v2121_v16 = vor.u32 %v2120_v30, %v2116_v46  ;;  %v941_v38 = vshll.u32 %v12802_v5, 16  ;;  %v12818_v27 = vpop.permute.xlu1 %2504  ;;  %2944 = vrot.lane.b32.xlu0 %v9912_v31, %s11432_s18  ;;  %v934_v4 = vrot.slane %v932_v2, 4  ;;  %v12836_v31 = vld [vmem:[%s11539_s27 + $0xb8] sm:$0xf]  ;;  %v12839_v32 = vld [vmem:[%s11539_s27 + $0xbc] sm:$0x1] }
 0x125   : > { %v2146_v55 = vrot.slane %v2145_v36, 4  ;;  %v2117_v40 = vsel %vm11607_vm5, %v2112_v54, %v2116_v46  ;;  %v945_v63 = vshrl.u32 %v12802_v5, 16  ;;  %v937_v9 = vrot.slane %v935_v50, 5  ;;  %v9785_v46 = vld [vmem:[%s11539_s27 + $0xb4] sm:$0xe] }
 0x126   : > { %v2122_v52 = vrot.slane %v2121_v16, 4  ;;  %v943_v60 = vrot.slane %v941_v38, 5  ;;  %v951_v3 = vshll.u32 %v12808_v26, 16  ;;  %v9800_v24 = vrot.slane %v9784_v10, 9  ;;  %v994_v2 = vld [vmem:[%s11539_s27 + $0xb4] sm:$0xe] }
 0x127   : > { %v2151_v21 = vsel %vm11607_vm5, %v2146_v55, %v2150_v45  ;;  %v947_v15 = vrot.slane %v945_v63, 4  ;;  %v2350_v47 = vrot.slane %v12761_v6, 5  ;;  %v3208_v8 = vsel %vm3194_vm8, %v3175_v29, %v12664_v61 }
 0x128   : > { %v9929_v20 = vcombine.low %v2141_v56, %v2151_v21  ;;  %v2127_v14 = vsel %vm11607_vm5, %v2122_v52, %v2126_v49  ;;  %v938_v28 = vor.u32 %v937_v9, %v934_v4  ;;  %v953_v41 = vrot.slane %v951_v3, 5  ;;  %v993_v52 = vld [vmem:[%s11539_s27 + $0xa8] sm:$0xe] }
 0x129   : > { %v9928_v35 = vcombine.low %v2117_v40, %v2127_v14  ;;  %v948_v57 = vor.u32 %v947_v15, %v943_v60  ;;  %v2352_v13 = vrot.slane %v2350_v47, 4  ;;  %v2351_v61 = vsel %vm11563_vm2, %v9800_v24, %v2350_v47 }
 0x12a   : > { %v12841_v37 = vpop.permute.xlu0 %3094  ;;  %3026 = vrot.lane.b32.xlu1 %v9929_v20, %s11433_s19  ;;  %v939_v6 = vrot.slane %v938_v28, 4  ;;  %v2353_v11 = vrot.slane %v12786_v53, 5  ;;  %v3243_v48 = vsel %vm3227_vm9, %v3210_v7, %v12692_v43  ;;  %v956_v58 = vshrl.u32 %v12833_v62, 16 }
 0x12b   : > { %3024 = vrot.lane.b32.xlu0 %v9928_v35, %s11433_s19  ;;  %v949_v29 = vrot.slane %v948_v57, 4  ;;  %v959_v59 = vshll.u32 %v12833_v62, 16  ;;  %v965_v34 = vshll.u32 %v12836_v31, 16  ;;  %v969_v43 = vshrl.u32 %v12836_v31, 16 }
 0x12c   : > { %v12849_v30 = vpop.permute.xlu1 %2506  ;;  %v944_v51 = vsel %vm11607_vm5, %v939_v6, %v943_v60  ;;  %v2354_v53 = vsel %vm11563_vm2, %v2352_v13, %v2353_v11  ;;  %v975_v45 = vshll.u32 %v12839_v32, 16  ;;  %v958_v54 = vrot.slane %v956_v58, 4  ;;  %v12897_v11 = vld [vmem:[%s11539_s27 + $0xc4] sm:$0xf] }
 0x12d   : > { %v954_v7 = vsel %vm11607_vm5, %v949_v29, %v953_v41  ;;  %v9944_v36 = vcombine.low %v2351_v61, %v2354_v53  ;;  %v961_v49 = vrot.slane %v959_v59, 5  ;;  %v3241_v16 = vsel %vm3227_vm9, %v3208_v8, %v12704_v44  ;;  %v12890_v41 = vld [vmem:[%s11539_s27 + $0xc0] sm:$0xf] }
 0x12e   : > { %v9834_v56 = vcombine.low %v944_v51, %v954_v7  ;;  %v967_v50 = vrot.slane %v965_v34, 5  ;;  %v971_v38 = vrot.slane %v969_v43, 4  ;;  %v9801_v40 = vrot.slane %v9785_v46, 9  ;;  %v12915_v7 = vld [vmem:[%s11539_s27 + $0xb8] sm:$0xf] }
 0x12f   : > { %3104 = vrot.lane.b32.xlu0 %v9944_v36, %s11434_s24  ;;  %v962_v55 = vor.u32 %v961_v49, %v958_v54  ;;  %v2357_v4 = vrot.slane %v12750_v39, 5  ;;  %v2360_v63 = vrot.slane %v12776_v0, 5  ;;  %v12873_v9 = vpop.permute.xlu0 %2584  ;;  %v977_v44 = vrot.slane %v975_v45, 5 }
 0x130   : > { %v12867_v10 = vpop.permute.xlu1 %2586  ;;  %2516 = vrot.lane.b32.xlu1 %v9834_v56, %s11430_s0  ;;  %v972_v60 = vor.u32 %v971_v38, %v967_v50  ;;  %v3276_v3 = vsel %vm3260_vm10, %v3243_v48, %v12712_v25  ;;  %v9643_v21 = vrot.slane %v994_v2, 9  ;;  %v1153_v0 = vrot.slane %v12836_v31, 5  ;;  %v9672_v48 = vld [vmem:[%s11539_s27 + $0xb4] sm:$0xf] }
 0x131   : > { %v963_v15 = vrot.slane %v962_v55, 4  ;;  %v2358_v24 = vsel %vm11563_vm2, %v9801_v40, %v2357_v4  ;;  %v2359_v39 = vrot.slane %v2357_v4, 4  ;;  %v1156_v20 = vrot.slane %v12839_v32, 5 }
 0x132   : > { %v973_v47 = vrot.slane %v972_v60, 4  ;;  %v9642_v14 = vrot.slane %v993_v52, 9  ;;  %v1146_v8 = vrot.slane %v12802_v5, 5  ;;  %v1154_v35 = vsel %vm11563_vm2, %v9643_v21, %v1153_v0 }
 0x133   : > { %v968_v28 = vsel %vm11607_vm5, %v963_v15, %v967_v50  ;;  %v2361_v25 = vsel %vm11563_vm2, %v2359_v39, %v2360_v63  ;;  %v1155_v57 = vrot.slane %v1153_v0, 4  ;;  %v3274_v32 = vsel %vm3260_vm10, %v3241_v16, %v12721_v42  ;;  %v12907_v53 = vpop.permute.xlu0 %2680  ;;  %v9691_v50 = vld [vmem:[%s11539_s27 + $0xc8] sm:$0x1]  ;;  %v12929_v63 = vld [vmem:[%s11539_s27 + $0xbc] sm:$0x1] }
 0x134   : > { %v978_v13 = vsel %vm11607_vm5, %v973_v47, %v977_v44  ;;  %v9945_v6 = vcombine.low %v2358_v24, %v2361_v25  ;;  %v1148_v61 = vrot.slane %v1146_v8, 4  ;;  %v12900_v29 = vpop.permute.xlu1 %2682  ;;  %v1147_v34 = vsel %vm11563_vm2, %v9642_v14, %v1146_v8  ;;  %v9707_v8 = vld [vmem:[%s11539_s27 + $0xc0] sm:$0xe] }
 0x135   : > { %v9835_v58 = vcombine.low %v968_v28, %v978_v13  ;;  %v1157_v59 = vsel %vm11563_vm2, %v1155_v57, %v1156_v20  ;;  %v1149_v51 = vrot.slane %v12808_v26, 5  ;;  %v3309_v43 = vsel %vm3293_vm11, %v3276_v3, %v12741_v18  ;;  %v9706_v57 = vld [vmem:[%s11539_s27 + $0xb4] sm:$0xe] }
 0x136   : > { %3106 = vrot.lane.b32.xlu0 %v9945_v6, %s11434_s24  ;;  %v9851_v42 = vcombine.low %v1154_v35, %v1157_v59  ;;  %v1568_v45 = vshrl.u32 %v12890_v41, 16  ;;  %v1571_v46 = vshll.u32 %v12890_v41, 16  ;;  %v3307_v36 = vsel %vm3293_vm11, %v3274_v32, %v12743_v1  ;;  %v11301_v32 = vld [vmem:[%s11539_s27 + $0x60] sm:$0xf] }
 0x137   : > { %2518 = vrot.lane.b32.xlu1 %v9835_v58, %s11430_s0  ;;  %v1150_v26 = vsel %vm11563_vm2, %v1148_v61, %v1149_v51  ;;  %v1581_v54 = vshrl.u32 %v12897_v11, 16  ;;  %v1544_v49 = vshrl.u32 %v9672_v48, 16  ;;  %v1547_v16 = vshll.u32 %v9672_v48, 16  ;;  %v11302_v61 = vld [vmem:[%s11539_s27 + $0x64] sm:$0xf] }
 0x138   : > { %v9850_v2 = vcombine.low %v1147_v34, %v1150_v26  ;;  %v1570_v18 = vrot.slane %v1568_v45, 4  ;;  %v1573_v56 = vrot.slane %v1571_v46, 5  ;;  %v9867_v38 = vcombine.low %v12890_v41, %v12897_v11 }
 0x139   : > { %v1546_v55 = vrot.slane %v1544_v49, 4  ;;  %v1557_v40 = vshrl.u32 %v12915_v7, 16  ;;  %v9866_v4 = vcombine.low %v9672_v48, %v12915_v7  ;;  %v1549_v1 = vrot.slane %v1547_v16, 5  ;;  %v9754_v16 = vld [vmem:[%s11539_s27 + $0xcc] sm:$0xf] }
 0x13a   : > { %2596 = vrot.lane.b32.xlu0 %v9850_v2, %s11429_s30  ;;  %v3340_v52 = vsel %vm3326_vm12, %v3307_v36, %v12778_v33  ;;  %v1574_v60 = vor.u32 %v1573_v56, %v1570_v18  ;;  %v1577_v44 = vshll.u32 %v12897_v11, 16  ;;  %v12935_v3 = vpop.permute.xlu1 %2762  ;;  %v1583_v21 = vrot.slane %v1581_v54, 4 }
 0x13b   : > { %2598 = vrot.lane.b32.xlu1 %v9851_v42, %s11429_s30  ;;  %v1587_v15 = vshll.u32 %v9691_v50, 16  ;;  %v1553_v24 = vshll.u32 %v12915_v7, 16  ;;  %v1559_v39 = vrot.slane %v1557_v40, 4  ;;  %v12939_v0 = vpop.permute.xlu0 %2760  ;;  %v1550_v33 = vor.u32 %v1549_v1, %v1546_v55  ;;  %v11303_v40 = vld [vmem:[%s11539_s27 + $0x6c] sm:$0xf]  ;;  %s11439_s30 = smov 96  }
 0x13c   : > { %v1575_v47 = vrot.slane %v1574_v60, 4  ;;  %v1579_v20 = vrot.slane %v1577_v44, 5  ;;  %v1563_v14 = vshll.u32 %v12929_v63, 16  ;;  %v3342_v28 = vsel %vm3326_vm12, %v3309_v43, %v12788_v22  ;;  %v12982_v60 = vld [vmem:[%s11539_s27 + $0xc4] sm:$0xf] }
 0x13d   : > { %v1555_v25 = vrot.slane %v1553_v24, 5  ;;  %v3373_v35 = vsel %vm3359_vm14, %v3340_v52, %v12811_v23  ;;  %v1589_v13 = vrot.slane %v1587_v15, 5  ;;  %v1551_v6 = vrot.slane %v1550_v33, 4  ;;  %v9752_v52 = vld [vmem:[%s11539_s27 + $0xc0] sm:$0xf] }
 0x13e   : > { %2692 = vrot.lane.b32.xlu0 %v9866_v4, %s11427_s28  ;;  %v1584_v41 = vor.u32 %v1583_v21, %v1579_v20  ;;  %v9812_v48 = vcombine.low %v11301_v32, %v11302_v61  ;;  %10881 = vmatprep.mubr.msk.bf16.mxu0 %vm3419_vm15, %v3373_v35  ;;  %v12952_v58 = vpop.permute.xlu1 %2842  ;;  %v1565_v59 = vrot.slane %v1563_v14, 5  ;;  %v9723_v34 = vrot.slane %v9707_v8, 9  ;;  %v11304_v4 = vld [vmem:[%s11539_s27 + $0x70] sm:$0xf] }
 0x13f   : > { %2694 = vrot.lane.b32.xlu1 %v9867_v38, %s11427_s28  ;;  %v1560_v22 = vor.u32 %v1559_v39, %v1555_v25  ;;  %v1762_v23 = vrot.slane %v12897_v11, 5  ;;  %v12956_v51 = vpop.permute.xlu0 %2840  ;;  %v1580_v42 = vsel %vm11607_vm5, %v1575_v47, %v1579_v20  ;;  %v1765_v45 = vrot.slane %v9691_v50, 5  ;;  %v12972_v50 = vld [vmem:[%s11539_s27 + $0xd0] sm:$0xf] }
 0x140   : > { %v1585_v43 = vrot.slane %v1584_v41, 4  ;;  %v9722_v46 = vrot.slane %v9706_v57, 9  ;;  %v1556_v26 = vsel %vm11607_vm5, %v1551_v6, %v1555_v25  ;;  %v1755_v49 = vrot.slane %v12915_v7, 5  ;;  %v9771_v25 = vld [vmem:[%s11539_s27 + $0xd4] sm:$0x1] }
 0x141   : > { %v1561_v36 = vrot.slane %v1560_v22, 4  ;;  %v1764_v54 = vrot.slane %v1762_v23, 4  ;;  %v1763_v2 = vsel %vm11563_vm2, %v9723_v34, %v1762_v23  ;;  %v1758_v18 = vrot.slane %v12929_v63, 5  ;;  %v13003_v6 = vld [vmem:[%s11539_s27 + $0xc8] sm:$0x1] }
 0x142   : > { %v1590_v11 = vsel %vm11607_vm5, %v1585_v43, %v1589_v13  ;;  %v3375_v56 = vsel %vm3359_vm14, %v3342_v28, %v12841_v37  ;;  %v9813_v1 = vcombine.low %v11303_v40, %v11304_v4  ;;  %v3139_v37 = vsel %vm3112_vm6, %v9812_v48, %v12818_v27  ;;  %v12989_v15 = vpop.permute.xlu1 %2938  ;;  %v11099_v40 = vld [vmem:[%s16873_s4] sm:$0xff]  }
 0x143   : > { %v9883_v38 = vcombine.low %v1580_v42, %v1590_v11  ;;  %v1566_v55 = vsel %vm11607_vm5, %v1561_v36, %v1565_v59  ;;  %v1766_v7 = vsel %vm11563_vm2, %v1764_v54, %v1765_v45  ;;  %10882 = vmatmul.mubr.msk.bf16.gmra.mrb[12].mxu0 %vm3419_vm15, %v3375_v56  ;;  %v1756_v44 = vsel %vm11563_vm2, %v9722_v46, %v1755_v49  ;;  %v12991_v24 = vpop.permute.xlu0 %2936  ;;  %v9786_v56 = vld [vmem:[%s11539_s27 + $0xc0] sm:$0xe] }
 0x144   : > { %v9882_v63 = vcombine.low %v1556_v26, %v1566_v55  ;;  %v1757_v21 = vrot.slane %v1755_v49, 4  ;;  %v9899_v39 = vcombine.low %v1763_v2, %v1766_v7  ;;  %v2177_v47 = vshrl.u32 %v9754_v16, 16  ;;  %v9787_v26 = vld [vmem:[%s11539_s27 + $0xcc] sm:$0xe]  ;;  %10901 = vmatprep.subr.bf16.mxu0 %v11099_v40 }
 0x145   : > { %2774 = vrot.lane.b32.xlu1 %v9883_v38, %s11431_s17  ;;  %v2180_v20 = vshll.u32 %v9754_v16, 16  ;;  %v2190_v33 = vshrl.u32 %v12972_v50, 16  ;;  %v2153_v14 = vshrl.u32 %v9752_v52, 16  ;;  %v2156_v8 = vshll.u32 %v9752_v52, 16  ;;  %10902 = vmatpush3.bf16.msra.mxu0 %v11099_v40 }
 0x146   : > { %2772 = vrot.lane.b32.xlu0 %v9882_v63, %s11431_s17  ;;  %v1759_v27 = vsel %vm11563_vm2, %v1757_v21, %v1758_v18  ;;  %v2166_v28 = vshrl.u32 %v12982_v60, 16  ;;  %v3142_v57 = vsel %vm3112_vm6, %v9813_v1, %v12849_v30  ;;  %v2179_v41 = vrot.slane %v2177_v47, 4  ;;  %s11438_s17 = smov 64  }
 0x147   : > { %v9898_v35 = vcombine.low %v1756_v44, %v1759_v27  ;;  %v2182_v13 = vrot.slane %v2180_v20, 5  ;;  %v9915_v32 = vcombine.low %v9754_v16, %v12972_v50  ;;  %v2155_v61 = vrot.slane %v2153_v14, 4 }
 0x148   : > { %v2158_v48 = vrot.slane %v2156_v8, 5  ;;  %v9914_v22 = vcombine.low %v9752_v52, %v12982_v60  ;;  %v2186_v34 = vshll.u32 %v12972_v50, 16  ;;  %v2192_v23 = vrot.slane %v2190_v33, 4 }
 0x149   : > { %2854 = vrot.lane.b32.xlu1 %v9899_v39, %s11428_s29  ;;  %v2183_v59 = vor.u32 %v2182_v13, %v2179_v41  ;;  %v2196_v42 = vshll.u32 %v9771_v25, 16  ;;  %v2162_v43 = vshll.u32 %v12982_v60, 16  ;;  %v2168_v45 = vrot.slane %v2166_v28, 4  ;;  %v3019_v36 = vpop.permute.xlu1 %3018 }
 0x14a   : > { %2852 = vrot.lane.b32.xlu0 %v9898_v35, %s11428_s29  ;;  %v2159_v30 = vor.u32 %v2158_v48, %v2155_v61  ;;  %v2172_v46 = vshll.u32 %v13003_v6, 16  ;;  %v3017_v54 = vpop.permute.xlu0 %3016  ;;  %v3181_v49 = vsel %vm3161_vm7, %v3142_v57, %v12867_v10  ;;  %v3179_v11 = vsel %vm3161_vm7, %v3139_v37, %v12873_v9 }
 0x14b   : > { %v2184_v2 = vrot.slane %v2183_v59, 4  ;;  %v2188_v18 = vrot.slane %v2186_v34, 5  ;;  %v2198_v16 = vrot.slane %v2196_v42, 5  ;;  %v2164_v55 = vrot.slane %v2162_v43, 5 }
 0x14c   : > { %v2160_v38 = vrot.slane %v2159_v30, 4  ;;  %v3214_v7 = vsel %vm3194_vm8, %v3181_v49, %v12900_v29  ;;  %v2174_v10 = vrot.slane %v2172_v46, 5  ;;  %v9803_v1 = vrot.slane %v9787_v26, 9 }
 0x14d   : > { %2950 = vrot.lane.b32.xlu1 %v9915_v32, %s11432_s18  ;;  %v2193_v4 = vor.u32 %v2192_v23, %v2188_v18  ;;  %v2371_v9 = vrot.slane %v12972_v50, 5  ;;  %v2169_v52 = vor.u32 %v2168_v45, %v2164_v55  ;;  %v3212_v63 = vsel %vm3194_vm8, %v3179_v11, %v12907_v53  ;;  %v11100_v50 = vld [vmem:[%s16873_s4 + $0x8] sm:$0xff]  }
 0x14e   : > { %2948 = vrot.lane.b32.xlu0 %v9914_v22, %s11432_s18  ;;  %v2374_v37 = vrot.slane %v9771_v25, 5  ;;  %v9802_v44 = vrot.slane %v9786_v56, 9  ;;  %v2189_v29 = vsel %vm11607_vm5, %v2184_v2, %v2188_v18  ;;  %v2364_v47 = vrot.slane %v12982_v60, 5  ;;  %v3097_v20 = vpop.permute.xlu0 %3096  ;;  %10903 = vmatprep.subr.bf16.mxu0 %v11100_v50  ;;  %v11305_v18 = vld [vmem:[%s11539_s27 + $0x78] sm:$0xf]  ;;  %s542_s18 = scalar_lea.vmem %s16885_s16, %s17346_s22 }
 0x14f   : > { %v2194_v21 = vrot.slane %v2193_v4, 4  ;;  %v2373_v39 = vrot.slane %v2371_v9, 4  ;;  %v2165_v33 = vsel %vm11607_vm5, %v2160_v38, %v2164_v55  ;;  %v2170_v53 = vrot.slane %v2169_v52, 4  ;;  %v2509_v8 = vpop.permute.xlu1 %2508  ;;  %10904 = vmatpush3.bf16.msra.mxu0 %v11100_v50  ;;  %v11306_v56 = vld [vmem:[%s11539_s27 + $0x7c] sm:$0xf] }
 0x150   : > { %v2372_v27 = vsel %vm11563_vm2, %v9803_v1, %v2371_v9  ;;  %v2367_v14 = vrot.slane %v13003_v6, 5  ;;  %v2366_v25 = vrot.slane %v2364_v47, 4  ;;  %v3247_v35 = vsel %vm3227_vm9, %v3214_v7, %v12935_v3  ;;  %v11307_v9 = vld [vmem:[%s11539_s27 + $0x84] sm:$0xf]  ;;  %v11308_v52 = vld [vmem:[%s11539_s27 + $0x88] sm:$0xf] }
 0x151   : > { %v2199_v28 = vsel %vm11607_vm5, %v2194_v21, %v2198_v16  ;;  %v2375_v60 = vsel %vm11563_vm2, %v2373_v39, %v2374_v37  ;;  %v2175_v41 = vsel %vm11607_vm5, %v2170_v53, %v2174_v10  ;;  %v2365_v13 = vsel %vm11563_vm2, %v9802_v44, %v2364_v47 }
 0x152   : > { %v9931_v57 = vcombine.low %v2189_v29, %v2199_v28  ;;  %v3245_v6 = vsel %vm3227_vm9, %v3212_v63, %v12939_v0  ;;  %v9930_v32 = vcombine.low %v2165_v33, %v2175_v41  ;;  %v2368_v61 = vsel %vm11563_vm2, %v2366_v25, %v2367_v14 }
 0x153   : > { %v3280_v48 = vsel %vm3260_vm10, %v3247_v35, %v12952_v58  ;;  %v3278_v3 = vsel %vm3260_vm10, %v3245_v6, %v12956_v51  ;;  %v9947_v22 = vcombine.low %v2372_v27, %v2375_v60  ;;  %v9946_v34 = vcombine.low %v2365_v13, %v2368_v61 }
 0x154   : > { %3030 = vrot.lane.b32.xlu1 %v9931_v57, %s11433_s19  ;;  %v3313_v59 = vsel %vm3293_vm11, %v3280_v48, %v12989_v15  ;;  %v3311_v0 = vsel %vm3293_vm11, %v3278_v3, %v12991_v24  ;;  %3028 = vrot.lane.b32.xlu0 %v9930_v32, %s11433_s19  ;;  %v9818_v15 = vcombine.low %v12795_v12, %v12802_v5  ;;  %vm7837_vm13 = vcmask 785408  }
 0x155   : > { %v3346_v23 = vsel %vm3326_vm12, %v3313_v59, %v3019_v36  ;;  %v3344_v58 = vsel %vm3326_vm12, %v3311_v0, %v3017_v54  ;;  %v3099_v42 = vpop.permute.xlu0 %3098  ;;  %v9819_v24 = vcombine.low %v12833_v62, %v12836_v31  ;;  %v9814_v16 = vcombine.low %v11305_v18, %v11306_v56  ;;  %v11310_v59 = vld [vmem:[%s11539_s27 + $0x94] sm:$0xf] }
 0x156   : > { %v3377_v51 = vsel %vm3359_vm14, %v3344_v58, %v3097_v20  ;;  %v2511_v30 = vpop.permute.xlu1 %2510  ;;  %v3379_v43 = vsel %vm3359_vm14, %v3346_v23, %v3099_v42  ;;  %v9815_v63 = vcombine.low %v11307_v9, %v11308_v52 }
 0x157   : > { %10885 = vmatprep.mubr.msk.bf16.mxu0 %vm3419_vm15, %v3377_v51  ;;  %v3145_v7 = vsel %vm3112_vm6, %v9814_v16, %v2509_v8  ;;  %v13104_v51 = vld [vmem:[%s16872_s3] ss:$0 sm:$0xff] }
 0x158   : > { %3110 = vrot.lane.b32.xlu1 %v9947_v22, %s11434_s24  ;;  %10886 = vmatmul.mubr.msk.bf16.gmra.mrb[16].mxu0 %vm3419_vm15, %v3379_v43  ;;  %v3148_v47 = vsel %vm3112_vm6, %v9815_v63, %v2511_v30  ;;  %v11309_v22 = vld [vmem:[%s11539_s27 + $0x90] sm:$0xf] }
 0x159   : > { %3108 = vrot.lane.b32.xlu0 %v9946_v34, %s11434_s24  ;;  %v2589_v45 = vpop.permute.xlu0 %2588  ;;  %v9816_v0 = vcombine.low %v11309_v22, %v11310_v59 }
 0x15a   : > { %v2591_v46 = vpop.permute.xlu1 %2590  ;;  %v3183_v40 = vsel %vm3161_vm7, %v3145_v7, %v2589_v45 }
 0x15b   : > { %v3185_v50 = vsel %vm3161_vm7, %v3148_v47, %v2591_v46  ;;  %v11311_v46 = vld [vmem:[%s11539_s27 + $0x9c] sm:$0xf] }
 0x15d   : > { %v2685_v36 = vpop.permute.xlu0 %2684 }
 0x15e   : > { %v2687_v26 = vpop.permute.xlu1 %2686  ;;  %v3216_v4 = vsel %vm3194_vm8, %v3183_v40, %v2685_v36 }
 0x15f   : > { %v3218_v53 = vsel %vm3194_vm8, %v3185_v50, %v2687_v26  ;;  %v11312_v26 = vld [vmem:[%s11539_s27 + $0xa0] sm:$0xf] }
 0x160   : > { %v9817_v36 = vcombine.low %v11311_v46, %v11312_v26 }
 0x164   : > { %v2767_v54 = vpop.permute.xlu1 %2766 }
 0x165   : > { %v2765_v49 = vpop.permute.xlu0 %2764  ;;  %v3251_v27 = vsel %vm3227_vm9, %v3218_v53, %v2767_v54 }
 0x166   : > { %v3249_v37 = vsel %vm3227_vm9, %v3216_v4, %v2765_v49 }
 0x168   : > { %v2847_v11 = vpop.permute.xlu1 %2846 }
 0x169   : > { %v2845_v2 = vpop.permute.xlu0 %2844  ;;  %v3284_v14 = vsel %vm3260_vm10, %v3251_v27, %v2847_v11 }
 0x16a   : > { %v3282_v44 = vsel %vm3260_vm10, %v3249_v37, %v2845_v2 }
 0x16c   : > { %v2943_v38 = vpop.permute.xlu1 %2942 }
 0x16d   : > { %v2941_v55 = vpop.permute.xlu0 %2940  ;;  %v3317_v8 = vsel %vm3293_vm11, %v3284_v14, %v2943_v38 }
 0x16e   : > { %v3315_v29 = vsel %vm3293_vm11, %v3282_v44, %v2941_v55 }
 0x173   : > { %v3023_v10 = vpop.permute.xlu1 %3022 }
 0x174   : > { %v3021_v1 = vpop.permute.xlu0 %3020  ;;  %v3350_v28 = vsel %vm3326_vm12, %v3317_v8, %v3023_v10 }
 0x175   : > { %v3348_v21 = vsel %vm3326_vm12, %v3315_v29, %v3021_v1 }
 0x178   : > { %v3101_v39 = vpop.permute.xlu0 %3100  ;;  %v2513_v33 = vpop.permute.xlu1 %2512 }
 0x179   : > { %v3381_v20 = vsel %vm3359_vm14, %v3348_v21, %v3101_v39  ;;  %v3151_v58 = vsel %vm3112_vm6, %v9816_v0, %v2513_v33 }
 0x17a   : > { %10889 = vmatprep.mubr.msk.bf16.mxu0 %vm3419_vm15, %v3381_v20 }
 0x17f   : > { %v3103_v60 = vpop.permute.xlu0 %3102 }
 0x180   : > { %v2515_v25 = vpop.permute.xlu1 %2514  ;;  %v3383_v35 = vsel %vm3359_vm14, %v3350_v28, %v3103_v60 }
 0x181   : > { %10890 = vmatmul.mubr.msk.bf16.gmra.mrb[20].mxu0 %vm3419_vm15, %v3383_v35  ;;  %v3154_v10 = vsel %vm3112_vm6, %v9817_v36, %v2515_v25 }
 0x183   : > { %v2593_v57 = vpop.permute.xlu0 %2592 }
 0x184   : > { %v2595_v41 = vpop.permute.xlu1 %2594  ;;  %v3187_v42 = vsel %vm3161_vm7, %v3151_v58, %v2593_v57 }
 0x185   : > { %v3189_v52 = vsel %vm3161_vm7, %v3154_v10, %v2595_v41 }
 0x187   : > { %v2689_v6 = vpop.permute.xlu0 %2688 }
 0x188   : > { %v2691_v13 = vpop.permute.xlu1 %2690  ;;  %v3220_v30 = vsel %vm3194_vm8, %v3187_v42, %v2689_v6 }
 0x189   : > { %v3222_v29 = vsel %vm3194_vm8, %v3189_v52, %v2691_v13 }
 0x18d   : > { %v2771_v32 = vpop.permute.xlu1 %2770 }
 0x18e   : > { %v2769_v61 = vpop.permute.xlu0 %2768  ;;  %v3255_v47 = vsel %vm3227_vm9, %v3222_v29, %v2771_v32 }
 0x18f   : > { %v3253_v54 = vsel %vm3227_vm9, %v3220_v30, %v2769_v61 }
 0x191   : > { %v2851_v48 = vpop.permute.xlu1 %2850 }
 0x192   : > { %v2849_v3 = vpop.permute.xlu0 %2848  ;;  %v3288_v50 = vsel %vm3260_vm10, %v3255_v47, %v2851_v48 }
 0x193   : > { %v3286_v11 = vsel %vm3260_vm10, %v3253_v54, %v2849_v3 }
 0x195   : > { %v2947_v34 = vpop.permute.xlu1 %2946 }
 0x196   : > { %v2945_v23 = vpop.permute.xlu0 %2944  ;;  %v3321_v53 = vsel %vm3293_vm11, %v3288_v50, %v2947_v34 }
 0x197   : > { %v3319_v56 = vsel %vm3293_vm11, %v3286_v11, %v2945_v23 }
 0x19c   : > { %v3027_v43 = vpop.permute.xlu1 %3026 }
 0x19d   : > { %v3025_v45 = vpop.permute.xlu0 %3024  ;;  %v3354_v27 = vsel %vm3326_vm12, %v3321_v53, %v3027_v43 }
 0x19e   : > { %v10871_v49 = vpop.f32.mrb[0].mxu0  ;;  %v3352_v55 = vsel %vm3326_vm12, %v3319_v56, %v3025_v45 }
 0x19f   : > { %v3499_v2 = vadd.f32 %v10871_v49, %v13104_v51  ;;  %v3490_v18 = vpop.f32.mrb[1].mxu0 }
 0x1a0   : > { %v3491_v16 = vadd.f32 %v13104_v51, %v3490_v18  ;;  %v10872_v38 = vpop.f32.mrb[2].mxu0 }
 0x1a1   : > { %v3105_v7 = vpop.permute.xlu0 %3104  ;;  %v3502_v40 = vadd.f32 %v10872_v38, %v13104_v51  ;;  %v3493_v4 = vpop.f32.mrb[3].mxu0  ;;  %v3619_v37 = vmax.f32 %v3499_v2, 0.0 }
 0x1a2   : > { %v3385_v1 = vsel %vm3359_vm14, %v3352_v55, %v3105_v7  ;;  %v3494_v9 = vadd.f32 %v13104_v51, %v3493_v4  ;;  %v2517_v63 = vpop.permute.xlu1 %2516  ;;  %v3617_v21 = vmax.f32 %v3491_v16, 0.0 }
 0x1a3   : > { %10893 = vmatprep.mubr.msk.bf16.mxu0 %vm3419_vm15, %v3385_v1  ;;  %v3620_v44 = vmax.f32 %v3502_v40, 0.0  ;;  %v3157_v34 = vsel %vm3112_vm6, %v9818_v15, %v2517_v63 }
 0x1a4   : > { %v3618_v39 = vmax.f32 %v3494_v9, 0.0 }
 0x1a5   : > { %v13123_v20 = vpack.c.bf16 %v3620_v44, %v3619_v37 }
 0x1a6   : > { %v13126_v33 = vpack.c.bf16 %v3618_v39, %v3617_v21 }
 0x1a8   : > { %v3107_v14 = vpop.permute.xlu0 %3106 }
 0x1a9   : > { %v2519_v8 = vpop.permute.xlu1 %2518  ;;  %v3387_v28 = vsel %vm3359_vm14, %v3354_v27, %v3107_v14 }
 0x1aa   : > { %10894 = vmatmul.mubr.msk.bf16.gmra.mrb[24].mxu0 %vm3419_vm15, %v3387_v28  ;;  %v3160_v22 = vsel %vm3112_vm6, %v9819_v24, %v2519_v8  ;;  %vm4818_vm6 = vsmask.f32 256 }
 0x1ac   : > { %v2597_v60 = vpop.permute.xlu0 %2596 }
 0x1ad   : > { %v2599_v25 = vpop.permute.xlu1 %2598  ;;  %v3191_v30 = vsel %vm3161_vm7, %v3157_v34, %v2597_v60 }
 0x1ae   : > { %v3193_v23 = vsel %vm3161_vm7, %v3160_v22, %v2599_v25 }
 0x1b0   : > { %v2693_v57 = vpop.permute.xlu0 %2692 }
 0x1b1   : > { %v2695_v35 = vpop.permute.xlu1 %2694  ;;  %v3224_v45 = vsel %vm3194_vm8, %v3191_v30, %v2693_v57 }
 0x1b2   : > { %v3226_v43 = vsel %vm3194_vm8, %v3193_v23, %v2695_v35  ;;  %vm5143_vm8 = vsmask.f32 7938 }
 0x1b7   : > { %v2775_v41 = vpop.permute.xlu1 %2774 }
 0x1b8   : > { %v2773_v13 = vpop.permute.xlu0 %2772  ;;  %v3259_v46 = vsel %vm3227_vm9, %v3226_v43, %v2775_v41 }
 0x1b9   : > { %v3257_v15 = vsel %vm3227_vm9, %v3224_v45, %v2773_v13 }
 0x1bb   : > { %v2855_v6 = vpop.permute.xlu1 %2854 }
 0x1bc   : > { %v2853_v32 = vpop.permute.xlu0 %2852  ;;  %v3292_v26 = vsel %vm3260_vm10, %v3259_v46, %v2855_v6 }
 0x1bd   : > { %v3290_v49 = vsel %vm3260_vm10, %v3257_v15, %v2853_v32  ;;  %vm14185_vm10 = vmand %vm4146_vm0, %vm5143_vm8 }
 0x1bf   : > { %v2951_v61 = vpop.permute.xlu1 %2950 }
 0x1c0   : > { %v2949_v48 = vpop.permute.xlu0 %2948  ;;  %v3325_v11 = vsel %vm3293_vm11, %v3292_v26, %v2951_v61 }
 0x1c1   : > { %v3323_v56 = vsel %vm3293_vm11, %v3290_v49, %v2949_v48  ;;  %vm14211_vm11 = vmand %vm4685_vm1, %vm4818_vm6 }
 0x1c3   : > { %v10875_v3 = vpop.f32.mrb[4].mxu0 }
 0x1c4   : > { %v3515_v59 = vadd.f32 %v10875_v3, %v13104_v51  ;;  %v3506_v0 = vpop.f32.mrb[5].mxu0 }
 0x1c5   : > { %v3507_v58 = vadd.f32 %v13104_v51, %v3506_v0  ;;  %v10876_v42 = vpop.f32.mrb[6].mxu0 }
 0x1c6   : > { %v3031_v62 = vpop.permute.xlu1 %3030  ;;  %v3518_v31 = vadd.f32 %v10876_v42, %v13104_v51  ;;  %v3509_v24 = vpop.f32.mrb[7].mxu0  ;;  %v3623_v36 = vmax.f32 %v3515_v59, 0.0 }
 0x1c7   : > { %v3029_v12 = vpop.permute.xlu0 %3028  ;;  %v3510_v5 = vadd.f32 %v13104_v51, %v3509_v24  ;;  %v3621_v2 = vmax.f32 %v3507_v58, 0.0  ;;  %v3358_v16 = vsel %vm3326_vm12, %v3325_v11, %v3031_v62 }
 0x1c8   : > { %v3624_v54 = vmax.f32 %v3518_v31, 0.0  ;;  %v3356_v7 = vsel %vm3326_vm12, %v3323_v56, %v3029_v12  ;;  %v11435_v31 = vmov 0   ;;  %vm7804_vm12 = vcmask 523264  }
 0x1c9   : > { %v3622_v18 = vmax.f32 %v3510_v5, 0.0  ;;  %4690 = vst.msk [vmem:[#allocation2 + $0x18] sm:$0xf] %vm4146_vm0, %v11435_v31  ;;  %4683 = vst.msk [vmem:[#allocation2] sm:$0xf] %vm4146_vm0, %v11435_v31  ;;  %11047 = vset.pattern.permute.xlu1 %v11435_v31  ;;  %11046 = vset.pattern.permute.xlu0 %v11435_v31 }
 0x1ca   : > { %v3111_v38 = vpop.permute.xlu1 %3110  ;;  %v13155_v55 = vpack.c.bf16 %v3624_v54, %v3623_v36  ;;  %4684 = vst.msk [vmem:[#allocation2 + $0x4] sm:$0xf] %vm4146_vm0, %v11435_v31  ;;  %4687 = vst.msk [vmem:[#allocation2 + $0xc] sm:$0xf] %vm4146_vm0, %v11435_v31 }
 0x1cb   : > { %v3391_v40 = vsel %vm3359_vm14, %v3358_v16, %v3111_v38  ;;  %v3109_v4 = vpop.permute.xlu0 %3108  ;;  %v13159_v10 = vpack.c.bf16 %v3622_v18, %v3621_v2  ;;  %4688 = vst.msk [vmem:[#allocation2 + $0x10] sm:$0xf] %vm4146_vm0, %v11435_v31  ;;  %4691 = vst.msk [vmem:[#allocation2 + $0x1c] sm:$0xf] %vm4146_vm0, %v11435_v31 }
 0x1cc   : > { %v3389_v1 = vsel %vm3359_vm14, %v3356_v7, %v3109_v4  ;;  %4693 = vst.msk [vmem:[#allocation2 + $0x24] sm:$0xf] %vm4146_vm0, %v11435_v31  ;;  %4694 = vst.msk [vmem:[#allocation2 + $0x28] sm:$0xf] %vm4146_vm0, %v11435_v31 }
 0x1cd   : > { %10897 = vmatprep.mubr.msk.bf16.mxu0 %vm3419_vm15, %v3389_v1  ;;  %4696 = vst.msk [vmem:[#allocation2 + $0x30] sm:$0xf] %vm4146_vm0, %v11435_v31  ;;  %4697 = vst.msk [vmem:[#allocation2 + $0x34] sm:$0xf] %vm4146_vm0, %v11435_v31 }
 0x1ce   : > { %10898 = vmatmul.mubr.msk.bf16.gmra.mrb[28].mxu0 %vm3419_vm15, %v3391_v40  ;;  %4699 = vst.msk [vmem:[#allocation2 + $0x3c] sm:$0xf] %vm4146_vm0, %v11435_v31  ;;  %4700 = vst.msk [vmem:[#allocation2 + $0x40] sm:$0xf] %vm4146_vm0, %v11435_v31 }
 0x1cf   : > { %10905 = vmatprep.mubr.msk.bf16.mxu0 %vm3359_vm14, %v13126_v33  ;;  %4702 = vst.msk [vmem:[#allocation2 + $0x48] sm:$0xf] %vm4146_vm0, %v11435_v31  ;;  %4703 = vst.msk [vmem:[#allocation2 + $0x4c] sm:$0xf] %vm4146_vm0, %v11435_v31 }
 0x1d0   : > { %4705 = vst.msk [vmem:[#allocation2 + $0x54] sm:$0xf] %vm4146_vm0, %v11435_v31  ;;  %4706 = vst.msk [vmem:[#allocation2 + $0x58] sm:$0xf] %vm4146_vm0, %v11435_v31 }
 0x1d1   : > { %4708 = vst.msk [vmem:[#allocation2 + $0x60] sm:$0xf] %vm4146_vm0, %v11435_v31  ;;  %4709 = vst.msk [vmem:[#allocation2 + $0x64] sm:$0xf] %vm4146_vm0, %v11435_v31 }
 0x1d2   : > { %4711 = vst.msk [vmem:[#allocation2 + $0x6c] sm:$0xf] %vm4146_vm0, %v11435_v31  ;;  %4712 = vst.msk [vmem:[#allocation2 + $0x70] sm:$0xf] %vm4146_vm0, %v11435_v31 }
 0x1d3   : > { %4714 = vst.msk [vmem:[#allocation2 + $0x78] sm:$0xf] %vm4146_vm0, %v11435_v31  ;;  %4715 = vst.msk [vmem:[#allocation2 + $0x7c] sm:$0xf] %vm4146_vm0, %v11435_v31 }
 0x1d4   : > { %4717 = vst.msk [vmem:[#allocation2 + $0x84] sm:$0xf] %vm4146_vm0, %v11435_v31  ;;  %4718 = vst.msk [vmem:[#allocation2 + $0x88] sm:$0xf] %vm4146_vm0, %v11435_v31 }
 0x1d5   : > { %4720 = vst.msk [vmem:[#allocation2 + $0x90] sm:$0xf] %vm4146_vm0, %v11435_v31  ;;  %4721 = vst.msk [vmem:[#allocation2 + $0x94] sm:$0xf] %vm4146_vm0, %v11435_v31 }
 0x1d6   : > { %10906 = vmatmul.mubr.msk.bf16.vlgmr.msra.gmra.mrb[32].mxu0 %vm3359_vm14, %v13123_v20  ;;  %4723 = vst.msk [vmem:[#allocation2 + $0x9c] sm:$0xf] %vm4146_vm0, %v11435_v31  ;;  %4724 = vst.msk [vmem:[#allocation2 + $0xa0] sm:$0xf] %vm4146_vm0, %v11435_v31 }
 0x1d7   : > { %10909 = vmatprep.mubr.msk.bf16.mxu0 %vm3359_vm14, %v13159_v10  ;;  %4726 = vst.msk [vmem:[#allocation2 + $0xa8] sm:$0xf] %vm4146_vm0, %v11435_v31  ;;  %4727 = vst.msk [vmem:[#allocation2 + $0xac] sm:$0xf] %vm4146_vm0, %v11435_v31 }
 0x1d8   : > { %4729 = vst.msk [vmem:[#allocation2 + $0xb4] sm:$0xf] %vm4146_vm0, %v11435_v31  ;;  %4730 = vst.msk [vmem:[#allocation2 + $0xb8] sm:$0xf] %vm4146_vm0, %v11435_v31 }
 0x1d9   : > { %4732 = vst.msk [vmem:[#allocation2 + $0xc0] sm:$0xf] %vm4146_vm0, %v11435_v31  ;;  %4733 = vst.msk [vmem:[#allocation2 + $0xc4] sm:$0xf] %vm4146_vm0, %v11435_v31 }
 0x1da   : > { %4735 = vst.msk [vmem:[#allocation2 + $0xcc] sm:$0xf] %vm4146_vm0, %v11435_v31  ;;  %4736 = vst.msk [vmem:[#allocation2 + $0xd0] sm:$0xf] %vm4146_vm0, %v11435_v31 }
 0x1db   : > { %4692 = vst.msk [vmem:[#allocation2 + $0x20] sm:$0x1] %vm4685_vm1, %v11435_v31  ;;  %4686 = vst.msk [vmem:[#allocation2 + $0x8] sm:$0x1] %vm4685_vm1, %v11435_v31 }
 0x1dc   : > { %4689 = vst.msk [vmem:[#allocation2 + $0x14] sm:$0x1] %vm4685_vm1, %v11435_v31  ;;  %4695 = vst.msk [vmem:[#allocation2 + $0x2c] sm:$0x1] %vm4685_vm1, %v11435_v31 }
 0x1dd   : > { %4698 = vst.msk [vmem:[#allocation2 + $0x38] sm:$0x1] %vm4685_vm1, %v11435_v31  ;;  %4701 = vst.msk [vmem:[#allocation2 + $0x44] sm:$0x1] %vm4685_vm1, %v11435_v31 }
 0x1de   : > { %10910 = vmatmul.mubr.msk.bf16.gmra.mrb[36].mxu0 %vm3359_vm14, %v13155_v55  ;;  %4704 = vst.msk [vmem:[#allocation2 + $0x50] sm:$0x1] %vm4685_vm1, %v11435_v31  ;;  %4707 = vst.msk [vmem:[#allocation2 + $0x5c] sm:$0x1] %vm4685_vm1, %v11435_v31 }
 0x1df   : > { %4710 = vst.msk [vmem:[#allocation2 + $0x68] sm:$0x1] %vm4685_vm1, %v11435_v31  ;;  %4713 = vst.msk [vmem:[#allocation2 + $0x74] sm:$0x1] %vm4685_vm1, %v11435_v31 }
 0x1e0   : > { %4716 = vst.msk [vmem:[#allocation2 + $0x80] sm:$0x1] %vm4685_vm1, %v11435_v31  ;;  %4719 = vst.msk [vmem:[#allocation2 + $0x8c] sm:$0x1] %vm4685_vm1, %v11435_v31 }
 0x1e1   : > { %4722 = vst.msk [vmem:[#allocation2 + $0x98] sm:$0x1] %vm4685_vm1, %v11435_v31  ;;  %4725 = vst.msk [vmem:[#allocation2 + $0xa4] sm:$0x1] %vm4685_vm1, %v11435_v31 }
 0x1e2   : > { %4728 = vst.msk [vmem:[#allocation2 + $0xb0] sm:$0x1] %vm4685_vm1, %v11435_v31  ;;  %4731 = vst.msk [vmem:[#allocation2 + $0xbc] sm:$0x1] %vm4685_vm1, %v11435_v31 }
 0x1e3   : > { %4734 = vst.msk [vmem:[#allocation2 + $0xc8] sm:$0x1] %vm4685_vm1, %v11435_v31  ;;  %4737 = vst.msk [vmem:[#allocation2 + $0xd4] sm:$0x1] %vm4685_vm1, %v11435_v31 }
 0x1ef   : > { %v10879_v9 = vpop.f32.mrb[8].mxu0 }
 0x1f0   : > { %v3531_v52 = vadd.f32 %v10879_v9, %v13104_v51  ;;  %v3522_v63 = vpop.f32.mrb[9].mxu0 }
 0x1f1   : > { %v3523_v37 = vadd.f32 %v13104_v51, %v3522_v63  ;;  %v10880_v44 = vpop.f32.mrb[10].mxu0 }
 0x1f2   : > { %v3534_v29 = vadd.f32 %v10880_v44, %v13104_v51  ;;  %v3525_v21 = vpop.f32.mrb[11].mxu0  ;;  %v3627_v47 = vmax.f32 %v3531_v52, 0.0 }
 0x1f3   : > { %v3526_v39 = vadd.f32 %v13104_v51, %v3525_v21  ;;  %v3625_v53 = vmax.f32 %v3523_v37, 0.0 }
 0x1f4   : > { %v3628_v50 = vmax.f32 %v3534_v29, 0.0 }
 0x1f5   : > { %v3626_v27 = vmax.f32 %v3526_v39, 0.0 }
 0x1f6   : > { %v13176_v14 = vpack.c.bf16 %v3628_v50, %v3627_v47 }
 0x1f7   : > { %v13178_v8 = vpack.c.bf16 %v3626_v27, %v3625_v53 }
 0x1f9   : > { %10913 = vmatprep.mubr.msk.bf16.mxu0 %vm3359_vm14, %v13178_v8 }
 0x1fa   : > { %10914 = vmatmul.mubr.msk.bf16.gmra.mrb[40].mxu0 %vm3359_vm14, %v13176_v14 }
 0x216   : > { %v10883_v28 = vpop.f32.mrb[12].mxu0 }
 0x217   : > { %v3547_v60 = vadd.f32 %v10883_v28, %v13104_v51  ;;  %v3538_v25 = vpop.f32.mrb[13].mxu0 }
 0x218   : > { %v3539_v35 = vadd.f32 %v13104_v51, %v3538_v25  ;;  %v10884_v57 = vpop.f32.mrb[14].mxu0 }
 0x219   : > { %v3550_v41 = vadd.f32 %v10884_v57, %v13104_v51  ;;  %v3541_v13 = vpop.f32.mrb[15].mxu0  ;;  %v3631_v32 = vmax.f32 %v3547_v60, 0.0 }
 0x21a   : > { %v3542_v6 = vadd.f32 %v13104_v51, %v3541_v13  ;;  %v3629_v48 = vmax.f32 %v3539_v35, 0.0 }
 0x21b   : > { %v3632_v61 = vmax.f32 %v3550_v41, 0.0 }
 0x21c   : > { %v3630_v3 = vmax.f32 %v3542_v6, 0.0 }
 0x21d   : > { %v13188_v22 = vpack.c.bf16 %v3632_v61, %v3631_v32 }
 0x21e   : > { %v13190_v59 = vpack.c.bf16 %v3630_v3, %v3629_v48 }
 0x220   : > { %10917 = vmatprep.mubr.msk.bf16.mxu0 %vm3359_vm14, %v13190_v59 }
 0x221   : > { %10918 = vmatmul.mubr.msk.bf16.gmra.mrb[44].mxu0 %vm3359_vm14, %v13188_v22 }
 0x22b   : > { %v10887_v0 = vpop.f32.mrb[16].mxu0 }
 0x22c   : > { %v13197_v34 = vadd.f32 %v10887_v0, %v13104_v51  ;;  %v3554_v23 = vpop.f32.mrb[17].mxu0 }
 0x22d   : > { %v13200_v58 = vadd.f32 %v13104_v51, %v3554_v23  ;;  %v10888_v42 = vpop.f32.mrb[18].mxu0 }
 0x22e   : > { %v13203_v30 = vadd.f32 %v10888_v42, %v13104_v51  ;;  %v3557_v43 = vpop.f32.mrb[19].mxu0  ;;  %v3635_v24 = vmax.f32 %v13197_v34, 0.0 }
 0x22f   : > { %v13206_v62 = vadd.f32 %v13104_v51, %v3557_v43  ;;  %v3633_v46 = vmax.f32 %v13200_v58, 0.0  ;;  %v11436_v43 = vmov 0.0  }
 0x230   : > { %v3636_v45 = vmax.f32 %v13203_v30, 0.0  ;;  %v11101_v30 = vld [vmem:[%s16875_s6] sm:$0xff]   ;;  %10937 = vmatprep.subr.bf16.mxu0 %v11436_v43 }
 0x231   : > { %v3634_v12 = vmax.f32 %v13206_v62, 0.0  ;;  %10938 = vmatpush3.bf16.msra.mxu0 %v11101_v30 }
 0x232   : > { %v3658_v5 = vpack.c.bf16 %v3636_v45, %v3635_v24  ;;  %10939 = vmatprep.subr.bf16.mxu0 %v11436_v43 }
 0x233   : > { %v3657_v15 = vpack.c.bf16 %v3634_v12, %v3633_v46 }
 0x235   : > { %10580 = vmatprep.subr.bf16.mxu1 %v3657_v15  ;;  %10921 = vmatprep.mubr.msk.bf16.mxu0 %vm3359_vm14, %v3657_v15 }
 0x236   : > { %10581 = vmatpush3.bf16.msra.mxu1 %v13126_v33  ;;  %10922 = vmatmul.mubr.msk.bf16.gmra.mrb[48].mxu0 %vm3359_vm14, %v3658_v5 }
 0x237   : > { %10582 = vmatprep.subr.bf16.mxu1 %v3658_v5 }
 0x23a   : > { %10583 = vmatpush3.bf16.msra.mxu1 %v13123_v20 }
 0x254   : > { %v10891_v26 = vpop.f32.mrb[20].mxu0 }
 0x255   : > { %v3579_v36 = vadd.f32 %v10891_v26, %v13104_v51  ;;  %v3570_v54 = vpop.f32.mrb[21].mxu0 }
 0x256   : > { %v3571_v49 = vadd.f32 %v13104_v51, %v3570_v54  ;;  %v10892_v11 = vpop.f32.mrb[22].mxu0 }
 0x257   : > { %v3582_v2 = vadd.f32 %v10892_v11, %v13104_v51  ;;  %v3573_v18 = vpop.f32.mrb[23].mxu0  ;;  %v3639_v16 = vmax.f32 %v3579_v36, 0.0 }
 0x258   : > { %v3574_v56 = vadd.f32 %v13104_v51, %v3573_v18  ;;  %v3637_v33 = vmax.f32 %v3571_v49, 0.0  ;;  %v13318_v49 = vld [vmem:[%s16874_s5] ss:$0 sm:$0xff] }
 0x259   : > { %v3640_v38 = vmax.f32 %v3582_v2, 0.0 }
 0x25a   : > { %v3638_v7 = vmax.f32 %v3574_v56, 0.0 }
 0x25b   : > { %v3660_v40 = vpack.c.bf16 %v3640_v38, %v3639_v16 }
 0x25c   : > { %v3659_v4 = vpack.c.bf16 %v3638_v7, %v3637_v33 }
 0x25e   : > { %10584 = vmatprep.subr.bf16.mxu1 %v3659_v4  ;;  %10925 = vmatprep.mubr.msk.bf16.mxu0 %vm3359_vm14, %v3659_v4 }
 0x25f   : > { %10585 = vmatpush3.bf16.msra.mxu1 %v13159_v10  ;;  %10926 = vmatmul.mubr.msk.bf16.gmra.mrb[52].mxu0 %vm3359_vm14, %v3660_v40 }
 0x260   : > { %10586 = vmatprep.subr.bf16.mxu1 %v3660_v40 }
 0x263   : > { %10587 = vmatpush3.bf16.msra.mxu1 %v13155_v55 }
 0x27d   : > { %v10895_v20 = vpop.f32.mrb[24].mxu0 }
 0x27e   : > { %v3595_v1 = vadd.f32 %v10895_v20, %v13104_v51  ;;  %v3586_v9 = vpop.f32.mrb[25].mxu0 }
 0x27f   : > { %v3587_v52 = vadd.f32 %v13104_v51, %v3586_v9  ;;  %v10896_v63 = vpop.f32.mrb[26].mxu0 }
 0x280   : > { %v3598_v37 = vadd.f32 %v10896_v63, %v13104_v51  ;;  %v3589_v44 = vpop.f32.mrb[27].mxu0  ;;  %v3643_v21 = vmax.f32 %v3595_v1, 0.0 }
 0x281   : > { %v3590_v29 = vadd.f32 %v13104_v51, %v3589_v44  ;;  %v3641_v10 = vmax.f32 %v3587_v52, 0.0 }
 0x282   : > { %v3644_v39 = vmax.f32 %v3598_v37, 0.0 }
 0x283   : > { %v3642_v47 = vmax.f32 %v3590_v29, 0.0 }
 0x284   : > { %v3662_v50 = vpack.c.bf16 %v3644_v39, %v3643_v21 }
 0x285   : > { %v3661_v53 = vpack.c.bf16 %v3642_v47, %v3641_v10 }
 0x287   : > { %10588 = vmatprep.subr.bf16.mxu1 %v3661_v53  ;;  %10929 = vmatprep.mubr.msk.bf16.mxu0 %vm3359_vm14, %v3661_v53 }
 0x288   : > { %10589 = vmatpush3.bf16.msra.mxu1 %v13178_v8  ;;  %10930 = vmatmul.mubr.msk.bf16.gmra.mrb[56].mxu0 %vm3359_vm14, %v3662_v50 }
 0x289   : > { %10590 = vmatprep.subr.bf16.mxu1 %v3662_v50 }
 0x28c   : > { %10591 = vmatpush3.bf16.msra.mxu1 %v13176_v14 }
 0x2a1   : > { %v10899_v55 = vpop.f32.mrb[28].mxu0 }
 0x2a2   : > { %v3611_v27 = vadd.f32 %v10899_v55, %v13104_v51  ;;  %v3602_v28 = vpop.f32.mrb[29].mxu0 }
 0x2a3   : > { %v3603_v60 = vadd.f32 %v13104_v51, %v3602_v28  ;;  %v10900_v25 = vpop.f32.mrb[30].mxu0 }
 0x2a4   : > { %v3614_v35 = vadd.f32 %v10900_v25, %v13104_v51  ;;  %v3605_v57 = vpop.f32.mrb[31].mxu0  ;;  %v3647_v13 = vmax.f32 %v3611_v27, 0.0 }
 0x2a5   : > { %v3606_v41 = vadd.f32 %v13104_v51, %v3605_v57  ;;  %v3645_v8 = vmax.f32 %v3603_v60, 0.0 }
 0x2a6   : > { %v3648_v6 = vmax.f32 %v3614_v35, 0.0 }
 0x2a7   : > { %v3646_v32 = vmax.f32 %v3606_v41, 0.0 }
 0x2a8   : > { %v3664_v61 = vpack.c.bf16 %v3648_v6, %v3647_v13 }
 0x2a9   : > { %v3663_v48 = vpack.c.bf16 %v3646_v32, %v3645_v8  ;;  %v10907_v3 = vpop.f32.mrb[32].mxu0 }
 0x2aa   : > { %v4284_v14 = vpop.f32.mrb[33].mxu0  ;;  %v13330_v56 = vadd.f32 %v10907_v3, %v13318_v49 }
 0x2ab   : > { %10592 = vmatprep.subr.bf16.mxu1 %v3663_v48  ;;  %v10908_v0 = vpop.f32.mrb[34].mxu0  ;;  %10933 = vmatprep.mubr.msk.bf16.mxu0 %vm3359_vm14, %v3663_v48  ;;  %v13326_v2 = vadd.f32 %v13318_v49, %v4284_v14 }
 0x2ac   : > { %10593 = vmatpush3.bf16.msra.mxu1 %v13190_v59  ;;  %v4287_v34 = vpop.f32.mrb[35].mxu0  ;;  %10934 = vmatmul.mubr.msk.bf16.gmra.mrb[60].mxu0 %vm3359_vm14, %v3664_v61  ;;  %v4413_v33 = vmax.f32 %v13330_v56, 0.0  ;;  %v13341_v40 = vadd.f32 %v10908_v0, %v13318_v49 }
 0x2ad   : > { %10594 = vmatprep.subr.bf16.mxu1 %v3664_v61  ;;  %v13321_v11 = vadd.f32 %v13318_v49, %v4287_v34  ;;  %10941 = vmatprep.mubr.msk.bf16.mxu0 %vm11437_vm3, %v11436_v43  ;;  %v4411_v16 = vmax.f32 %v13326_v2, 0.0 }
 0x2ae   : > { %v4446_v1 = vsel %vm3359_vm14, %v4413_v33, 0.0  ;;  %v4414_v9 = vmax.f32 %v13341_v40, 0.0 }
 0x2af   : > { %v4412_v18 = vmax.f32 %v13321_v11, 0.0  ;;  %v4443_v7 = vsel %vm3359_vm14, %v4411_v16, 0.0 }
 0x2b0   : > { %10595 = vmatpush3.bf16.msra.mxu1 %v13188_v22  ;;  %v11102_v22 = vld [vmem:[%s16875_s6 + $0x8] sm:$0xff]   ;;  %v4448_v44 = vsel %vm3359_vm14, %v4414_v9, 0.0 }
 0x2b1   : > { %v10911_v51 = vpop.f32.mrb[36].mxu0  ;;  %10940 = vmatpush3.bf16.msra.mxu0 %v11102_v22  ;;  %v4444_v38 = vsel %vm3359_vm14, %v4412_v18, 0.0 }
 0x2b2   : > { %v4300_v23 = vpop.f32.mrb[37].mxu0  ;;  %10945 = vmatprep.subr.bf16.mxu0 %v11436_v43  ;;  %v4445_v20 = vadd.f32 %v4444_v38, %v4443_v7  ;;  %v13362_v10 = vadd.f32 %v10911_v51, %v13318_v49 }
 0x2b3   : > { %v10912_v58 = vpop.f32.mrb[38].mxu0  ;;  %v13344_v4 = vadd.f32 %v13318_v49, %v4300_v23 }
 0x2b4   : > { %v4303_v42 = vpop.f32.mrb[39].mxu0  ;;  %v4447_v37 = vadd.f32 %v4446_v1, %v4445_v20  ;;  %v4417_v28 = vmax.f32 %v13362_v10, 0.0  ;;  %v13373_v60 = vadd.f32 %v10912_v58, %v13318_v49 }
 0x2b5   : > { %v4415_v52 = vmax.f32 %v13344_v4, 0.0  ;;  %v13352_v63 = vadd.f32 %v13318_v49, %v4303_v42 }
 0x2b6   : > { %v4449_v39 = vadd.f32 %v4448_v44, %v4447_v37  ;;  %v4454_v41 = vsel %vm3359_vm14, %v4417_v28, 0.0  ;;  %v4418_v13 = vmax.f32 %v13373_v60, 0.0 }
 0x2b7   : > { %v4450_v29 = vsel %vm3359_vm14, %v4415_v52, 0.0  ;;  %v4416_v21 = vmax.f32 %v13352_v63, 0.0 }
 0x2b8   : > { %v4451_v47 = vadd.f32 %v4450_v29, %v4449_v39  ;;  %v4456_v61 = vsel %vm3359_vm14, %v4418_v13, 0.0 }
 0x2b9   : > { %v4452_v53 = vsel %vm3359_vm14, %v4416_v21, 0.0 }
 0x2ba   : > { %v4453_v57 = vadd.f32 %v4452_v53, %v4451_v47 }
 0x2bc   : > { %v4455_v32 = vadd.f32 %v4454_v41, %v4453_v57 }
 0x2be   : > { %v4457_v14 = vadd.f32 %v4456_v61, %v4455_v32 }
 0x2cd   : > { %v10915_v59 = vpop.f32.mrb[40].mxu0 }
 0x2ce   : > { %v4316_v62 = vpop.f32.mrb[41].mxu0  ;;  %v13394_v0 = vadd.f32 %v10915_v59, %v13318_v49 }
 0x2cf   : > { %v10916_v31 = vpop.f32.mrb[42].mxu0  ;;  %v13376_v25 = vadd.f32 %v13318_v49, %v4316_v62 }
 0x2d0   : > { %v4319_v24 = vpop.f32.mrb[43].mxu0  ;;  %v16907_v23 = vmax.f32 %v13394_v0, 0.0  ;;  %v13401_v58 = vadd.f32 %v10916_v31, %v13318_v49 }
 0x2d1   : > { %v4419_v6 = vmax.f32 %v13376_v25, 0.0  ;;  %v13384_v8 = vadd.f32 %v13318_v49, %v4319_v24 }
 0x2d2   : > { %v4462_v62 = vsel %vm3359_vm14, %v16907_v23, 0.0  ;;  %v16906_v59 = vmax.f32 %v13401_v58, 0.0  ;;  %v16987_v4 = vmax.f32 %v13401_v58, 0.0 }
 0x2d3   : > { %v4458_v48 = vsel %vm3359_vm14, %v4419_v6, 0.0  ;;  %v4420_v3 = vmax.f32 %v13384_v8, 0.0 }
 0x2d4   : > { %v4459_v34 = vadd.f32 %v4458_v48, %v4457_v14  ;;  %v4464_v31 = vsel %vm3359_vm14, %v16906_v59, 0.0  ;;  %v5291_v59 = vld [vmem:[#allocation2 + $0x8] sm:$0x1] }
 0x2d5   : > { %v4460_v51 = vsel %vm3359_vm14, %v4420_v3, 0.0 }
 0x2d6   : > { %v4461_v30 = vadd.f32 %v4460_v51, %v4459_v34 }
 0x2d8   : > { %v4463_v38 = vadd.f32 %v4462_v62, %v4461_v30 }
 0x2da   : > { %v4465_v20 = vadd.f32 %v4464_v31, %v4463_v38 }
 0x2f4   : > { %v13303_v45 = vpop.f32.mrb[44].mxu0 }
 0x2f5   : > { %v4332_v46 = vpop.f32.mrb[45].mxu0  ;;  %v13423_v1 = vadd.f32 %v13303_v45, %v13318_v49 }
 0x2f6   : > { %v13305_v12 = vpop.f32.mrb[46].mxu0  ;;  %v13404_v42 = vadd.f32 %v13318_v49, %v4332_v46 }
 0x2f7   : > { %v4335_v5 = vpop.f32.mrb[47].mxu0  ;;  %v16900_v44 = vmax.f32 %v13423_v1, 0.0  ;;  %v13431_v29 = vadd.f32 %v13305_v12, %v13318_v49 }
 0x2f8   : > { %v16905_v24 = vmax.f32 %v13404_v42, 0.0  ;;  %v13412_v22 = vadd.f32 %v13318_v49, %v4335_v5 }
 0x2f9   : > { %v4470_v45 = vsel %vm3359_vm14, %v16900_v44, 0.0  ;;  %v16899_v53 = vmax.f32 %v13431_v29, 0.0  ;;  %v16995_v25 = vmax.f32 %v13431_v29, 0.0 }
 0x2fa   : > { %v4466_v46 = vsel %vm3359_vm14, %v16905_v24, 0.0  ;;  %v16901_v7 = vmax.f32 %v13412_v22, 0.0 }
 0x2fb   : > { %v4467_v37 = vadd.f32 %v4466_v46, %v4465_v20  ;;  %v4472_v12 = vsel %vm3359_vm14, %v16899_v53, 0.0 }
 0x2fc   : > { %v4468_v5 = vsel %vm3359_vm14, %v16901_v7, 0.0 }
 0x2fd   : > { %v4469_v47 = vadd.f32 %v4468_v5, %v4467_v37 }
 0x2ff   : > { %v4471_v32 = vadd.f32 %v4470_v45, %v4469_v47 }
 0x301   : > { %v4473_v48 = vadd.f32 %v4472_v12, %v4471_v32 }
 0x309   : > { %v13307_v15 = vpop.f32.mrb[48].mxu0 }
 0x30a   : > { %v13309_v26 = vpop.f32.mrb[49].mxu0  ;;  %v13455_v14 = vadd.f32 %v13307_v15, %v13318_v49 }
 0x30b   : > { %v13311_v36 = vpop.f32.mrb[50].mxu0  ;;  %v13435_v39 = vadd.f32 %v13318_v49, %v13309_v26 }
 0x30c   : > { %v13313_v54 = vpop.f32.mrb[51].mxu0  ;;  %v16893_v31 = vmax.f32 %v13455_v14, 0.0  ;;  %v13463_v46 = vadd.f32 %v13311_v36, %v13318_v49  ;;  %v17001_v58 = vmax.f32 %v13455_v14, 0.0 }
 0x30d   : > { %v16897_v57 = vmax.f32 %v13435_v39, 0.0  ;;  %v13444_v41 = vadd.f32 %v13318_v49, %v13313_v54 }
 0x30e   : > { %v4478_v37 = vsel %vm3359_vm14, %v16893_v31, 0.0  ;;  %v16891_v5 = vmax.f32 %v13463_v46, 0.0 }
 0x30f   : > { %v4474_v26 = vsel %vm3359_vm14, %v16897_v57, 0.0  ;;  %v16895_v61 = vmax.f32 %v13444_v41, 0.0 }
 0x310   : > { %v4475_v51 = vadd.f32 %v4474_v26, %v4473_v48  ;;  %v4480_v36 = vsel %vm3359_vm14, %v16891_v5, 0.0 }
 0x311   : > { %v4476_v30 = vsel %vm3359_vm14, %v16895_v61, 0.0 }
 0x312   : > { %v4477_v15 = vadd.f32 %v4476_v30, %v4475_v51 }
 0x314   : > { %v4479_v32 = vadd.f32 %v4478_v37, %v4477_v15 }
 0x316   : > { %v4481_v26 = vadd.f32 %v4480_v36, %v4479_v32 }
 0x332   : > { %v13364_v50 = vpop.f32.mrb[52].mxu0 }
 0x333   : > { %v4364_v55 = vpop.f32.mrb[53].mxu0  ;;  %v13485_v48 = vadd.f32 %v13364_v50, %v13318_v49 }
 0x334   : > { %v13369_v27 = vpop.f32.mrb[54].mxu0  ;;  %v13466_v20 = vadd.f32 %v13318_v49, %v4364_v55 }
 0x335   : > { %v4367_v35 = vpop.f32.mrb[55].mxu0  ;;  %v16887_v30 = vmax.f32 %v13485_v48, 0.0  ;;  %v13493_v15 = vadd.f32 %v13369_v27, %v13318_v49 }
 0x336   : > { %v16886_v47 = vmax.f32 %v13466_v20, 0.0  ;;  %v13474_v45 = vadd.f32 %v13318_v49, %v4367_v35  ;;  %v17005_v29 = vmax.f32 %v13466_v20, 0.0 }
 0x337   : > { %v4486_v50 = vsel %vm3359_vm14, %v16887_v30, 0.0  ;;  %v16889_v32 = vmax.f32 %v13493_v15, 0.0  ;;  %v17011_v14 = vmax.f32 %v13493_v15, 0.0 }
 0x338   : > { %v4482_v55 = vsel %vm3359_vm14, %v16886_v47, 0.0  ;;  %v16888_v12 = vmax.f32 %v13474_v45, 0.0 }
 0x339   : > { %v4483_v51 = vadd.f32 %v4482_v55, %v4481_v26  ;;  %v4488_v27 = vsel %vm3359_vm14, %v16889_v32, 0.0 }
 0x33a   : > { %v4484_v35 = vsel %vm3359_vm14, %v16888_v12, 0.0 }
 0x33b   : > { %v4485_v47 = vadd.f32 %v4484_v35, %v4483_v51 }
 0x33d   : > { %v4487_v26 = vadd.f32 %v4486_v50, %v4485_v47 }
 0x33f   : > { %v4489_v35 = vadd.f32 %v4488_v27, %v4487_v26 }
 0x35b   : > { %v10931_v34 = vpop.f32.mrb[56].mxu0 }
 0x35c   : > { %v4380_v54 = vpop.f32.mrb[57].mxu0  ;;  %v13514_v30 = vadd.f32 %v10931_v34, %v13318_v49 }
 0x35d   : > { %v10932_v62 = vpop.f32.mrb[58].mxu0  ;;  %v13496_v37 = vadd.f32 %v13318_v49, %v4380_v54 }
 0x35e   : > { %v4383_v38 = vpop.f32.mrb[59].mxu0  ;;  %v16894_v47 = vmax.f32 %v13514_v30, 0.0  ;;  %v13521_v50 = vadd.f32 %v10932_v62, %v13318_v49 }
 0x35f   : > { %v16890_v36 = vmax.f32 %v13496_v37, 0.0  ;;  %v13504_v55 = vadd.f32 %v13318_v49, %v4383_v38 }
 0x360   : > { %v16896_v26 = vmax.f32 %v13521_v50, 0.0 }
 0x361   : > { %v4490_v54 = vsel %vm3359_vm14, %v16890_v36, 0.0  ;;  %v16892_v51 = vmax.f32 %v13504_v55, 0.0  ;;  %v4494_v36 = vsel %vm3359_vm14, %v16894_v47, 0.0  ;;  %v17015_v20 = vmax.f32 %v13504_v55, 0.0 }
 0x362   : > { %v4491_v12 = vadd.f32 %v4490_v54, %v4489_v35  ;;  %v4496_v62 = vsel %vm3359_vm14, %v16896_v26, 0.0 }
 0x363   : > { %v4492_v38 = vsel %vm3359_vm14, %v16892_v51, 0.0 }
 0x364   : > { %v4493_v32 = vadd.f32 %v4492_v38, %v4491_v12 }
 0x366   : > { %v4495_v34 = vadd.f32 %v4494_v36, %v4493_v32 }
 0x368   : > { %v4497_v36 = vadd.f32 %v4496_v62, %v4495_v34 }
 0x37f   : > { %v10935_v27 = vpop.f32.mrb[60].mxu0 }
 0x380   : > { %v4396_v5 = vpop.f32.mrb[61].mxu0  ;;  %v13528_v54 = vadd.f32 %v10935_v27, %v13318_v49 }
 0x381   : > { %v13531_v35 = vadd.f32 %v13318_v49, %v4396_v5  ;;  %v10936_v51 = vpop.f32.mrb[62].mxu0 }
 0x382   : > { %v4399_v31 = vpop.f32.mrb[63].mxu0  ;;  %v13538_v38 = vadd.f32 %v10936_v51, %v13318_v49  ;;  %v16903_v27 = vmax.f32 %v13528_v54, 0.0  ;;  %v17025_v55 = vmax.f32 %v13528_v54, 0.0 }
 0x383   : > { %v16898_v12 = vmax.f32 %v13531_v35, 0.0  ;;  %v13541_v32 = vadd.f32 %v13318_v49, %v4399_v31  ;;  %v17021_v15 = vmax.f32 %v13531_v35, 0.0 }
 0x384   : > { %v16904_v26 = vmax.f32 %v13538_v38, 0.0  ;;  %v4502_v49 = vsel %vm3359_vm14, %v16903_v27, 0.0 }
 0x385   : > { %v4498_v5 = vsel %vm3359_vm14, %v16898_v12, 0.0  ;;  %v16902_v47 = vmax.f32 %v13541_v32, 0.0 }
 0x386   : > { %v4499_v61 = vadd.f32 %v4498_v5, %v4497_v36  ;;  %v4504_v34 = vsel %vm3359_vm14, %v16904_v26, 0.0 }
 0x387   : > { %v4500_v51 = vsel %vm3359_vm14, %v16902_v47, 0.0 }
 0x388   : > { %v4501_v57 = vadd.f32 %v4500_v51, %v4499_v61  ;;  %v4576_v61 = vld [vmem:[%s16877_s8] sm:$0xf] }
 0x389   : > { %v4583_v27 = vsel %vm4581_vm4, %v4576_v61, 0 }
 0x38a   : > { %v4503_v31 = vadd.f32 %v4502_v49, %v4501_v57 }
 0x38c   : > { %v4505_v62 = vadd.f32 %v4504_v34, %v4503_v31 }
 0x38e   : > { %v4506_v12 = vrot.slane %v4505_v62, 4 }
 0x390   : > { %v4507_v53 = vadd.f32 %v4506_v12, %v4505_v62 }
 0x392   : > { %v4508_v36 = vrot.slane %v4507_v53, 2 }
 0x394   : > { %v4509_v5 = vadd.f32 %v4508_v36, %v4507_v53  ;;  %v4518_v53 = vld [vmem:[%s16876_s7] sm:$0x1]  ;;  %v5260_v36 = vld [vmem:[#allocation2 + $0x4] sm:$0xf] }
 0x395   : > { %v5321_v61 = vshrl.u32 %v5260_v36, 16 }
 0x396   : > { %v4510_v44 = vrot.slane %v4509_v5, 1 }
 0x397   : > { %v5323_v24 = vrot.slane %v5321_v61, 4 }
 0x398   : > { %v4511_v7 = vadd.f32 %v4510_v44, %v4509_v5  ;;  %v5317_v5 = vshll.u32 %v5260_v36, 16 }
 0x39a   : > { %v4512_v51 = vmul.f32 0.00390625, %v4511_v7  ;;  %v5259_v7 = vld [vmem:[#allocation2] sm:$0xf]  ;;  %v5319_v26 = vrot.slane %v5317_v5, 5 }
 0x39c   : > { %v4513_v47 = vpack.c.bf16 %v4512_v51, %v4512_v51 }
 0x39e   : > { %10942 = vmatmul.mubr.msk.bf16.vlgmr.msra.gmra.mrb[64].mxu0 %vm3359_vm14, %v4513_v47  ;;  %v5308_v47 = vshrl.u32 %v5259_v7, 16 }
 0x39f   : > { %10946 = vmatpush3.bf16.msra.mxu0 %v4583_v27  ;;  %10947 = vmatprep.mubr.msk.bf16.mxu0 %vm11437_vm3, %v11436_v43  ;;  %v5311_v27 = vshll.u32 %v5259_v7, 16  ;;  %v5691_v7 = vld [vmem:[#allocation2] sm:$0xe] }
 0x3a0   : > { %v5310_v43 = vrot.slane %v5308_v47, 4  ;;  %v5757_v47 = vrot.slane %v5260_v36, 5  ;;  %v10088_v5 = vrot.slane %v5691_v7, 9  ;;  %v4577_v36 = vld [vmem:[%s16878_s9] sm:$0x1] }
 0x3a1   : > { %v5313_v51 = vrot.slane %v5311_v27, 5  ;;  %v5760_v27 = vrot.slane %v5291_v59, 5 }
 0x3a2   : > { %v5759_v61 = vrot.slane %v5757_v47, 4 }
 0x3a3   : > { %v5314_v23 = vor.u32 %v5313_v51, %v5310_v43 }
 0x471   : > { %v4568_v57 = vpop.f32.mrb[64].mxu0 }
 0x472   : > { %v4569_v44 = vadd.f32 %v4568_v57, %v4518_v53  ;;  %v10943_v12 = vpop.f32.mrb[65].mxu0  ;;  %v5324_v53 = vor.u32 %v5323_v24, %v5319_v26  ;;  %v5327_v57 = vshll.u32 %v5291_v59, 16  ;;  %v5758_v24 = vsel %vm11563_vm2, %v10088_v5, %v5757_v47  ;;  %v11106_v59 = vld [vmem:[%s16879_s10 + $0x88] sm:$0xff]  }
 0x473   : > { %v4571_v49 = vpop.f32.mrb[66].mxu0  ;;  %v5315_v12 = vrot.slane %v5314_v23, 4  ;;  %v5761_v23 = vsel %vm11563_vm2, %v5759_v61, %v5760_v27 }
 0x474   : > { %v4574_v31 = vmax.f32 %v4569_v44, 0.0  ;;  %v10944_v34 = vpop.f32.mrb[67].mxu0  ;;  %v5325_v44 = vrot.slane %v5324_v53, 4  ;;  %v5329_v49 = vrot.slane %v5327_v57, 5  ;;  %v10168_v43 = vcombine.low %v5758_v24, %v5761_v23 }
 0x476   : > { %v4575_v62 = vpack.c.bf16 %v4574_v31, %v4574_v31  ;;  %v5320_v31 = vsel %vm11607_vm5, %v5315_v12, %v5319_v26  ;;  %v5330_v34 = vsel %vm11607_vm5, %v5325_v44, %v5329_v49  ;;  %v11103_v26 = vld [vmem:[%s16879_s10 + $0x80] sm:$0xff]  }
 0x477   : > { %10951 = vmatprep.subr.bf16.mxu0 %v11103_v26 }
 0x478   : > { %10948 = vmatmul.mubr.msk.bf16.vlgmr.msra.gmra.mrb[68].mxu0 %vm3161_vm7, %v4575_v62  ;;  %v10152_v62 = vcombine.low %v5320_v31, %v5330_v34  ;;  %vm4819_vm7 = vsmask.f32 4368 }
 0x479   : > { %10952 = vmatpush3.bf16.msra.mxu0 %v11103_v26  ;;  %vm14169_vm9 = vmor %vm4818_vm6, %vm4819_vm7 }
 0x47a   : > { %7196 = vrot.lane.b32.xlu1 %v10152_v62, %s11434_s24  ;;  %10953 = vmatprep.subr.bf16.mxu0 %v11106_v59  ;;  %v4631_v62 = vlaneseq }
 0x47c   : > { %v4632_v7 = vshrl.u32 %v4631_v62, 7 }
 0x47d   : > { %10954 = vmatpush3.bf16.msra.mxu0 %v11106_v59 }
 0x47e   : > { %7276 = vrot.lane.b32.xlu1 %v10168_v43, %s11438_s17  ;;  %v4633_v47 = vsub.s32 0, %v4632_v7 }
 0x54b   : > { %v4619_v51 = vpop.f32.mrb[68].mxu0 }
 0x54c   : > { %v4620_v53 = vadd.f32 %v4619_v51, %v4577_v36  ;;  %v10949_v57 = vpop.f32.mrb[69].mxu0 }
 0x54d   : > { %v4622_v12 = vpop.f32.mrb[70].mxu0 }
 0x54e   : > { %v10055_v44 = vmul.f32 -1.442695, %v4620_v53  ;;  %v10950_v49 = vpop.f32.mrb[71].mxu0 }
 0x550   : > { %11215 = vpow2.f32 %v10055_v44 }
 0x55a   : > { %v11216_v31 = vpop.eup %11215 }
 0x55b   : > { %v4628_v34 = vadd.f32 1.0, %v11216_v31 }
 0x55d   : > { %11217 = vrcp.f32 %v4628_v34 }
 0x567   : > { %v11218_v27 = vpop.eup %11217 }
 0x568   : > { %v4634_v5 = vrot.slane %v11218_v27, %v4633_v47 }
 0x56a   : > { %v13589_v61 = vmul.f32 %v4634_v5, %v4411_v16  ;;  %v13593_v24 = vmul.f32 %v4634_v5, %v4412_v18  ;;  %v13597_v23 = vmul.f32 %v4634_v5, %v4413_v33  ;;  %v13601_v43 = vmul.f32 %v4634_v5, %v4414_v9 }
 0x56b   : > { %v13605_v26 = vmul.f32 %v4634_v5, %v4415_v52  ;;  %v13609_v2 = vmul.f32 %v4634_v5, %v4416_v21  ;;  %v13613_v11 = vmul.f32 %v4634_v5, %v4417_v28  ;;  %v13617_v18 = vmul.f32 %v4634_v5, %v4418_v13 }
 0x56c   : > { %16975 = vst [vmem:[#allocation5_spill] sm:$0xff] %v13589_v61  ;;  %16976 = vst [vmem:[#allocation6_spill] sm:$0xff] %v13593_v24  ;;  %v13621_v56 = vmul.f32 %v4634_v5, %v4419_v6  ;;  %v13625_v16 = vmul.f32 %v4634_v5, %v4420_v3  ;;  %v16985_v33 = vmax.f32 %v13394_v0, 0.0  ;;  %v13633_v9 = vmul.f32 %v4634_v5, %v16987_v4  ;;  %v11123_v4 = vld [vmem:[%s16870_s1 + $0x4] ss:$8 sps:$4 sm:$0xff]  }
 0x56d   : > { %16977 = vst [vmem:[#allocation7_spill] sm:$0xff] %v13597_v23  ;;  %16978 = vst [vmem:[#allocation8_spill] sm:$0xff] %v13601_v43  ;;  %v16989_v52 = vmax.f32 %v13404_v42, 0.0  ;;  %v16991_v21 = vmax.f32 %v13412_v22, 0.0  ;;  %v16993_v28 = vmax.f32 %v13423_v1, 0.0  ;;  %v13649_v13 = vmul.f32 %v4634_v5, %v16995_v25  ;;  %3889 = vmatprep.mubr.bf16.mxu1 %v11123_v4 }
 0x56e   : > { %16979 = vst [vmem:[#allocation9_spill] sm:$0xff] %v13605_v26  ;;  %16980 = vst [vmem:[#allocation10_spill] sm:$0xff] %v13609_v2  ;;  %v13629_v40 = vmul.f32 %v4634_v5, %v16985_v33  ;;  %v16997_v6 = vmax.f32 %v13435_v39, 0.0  ;;  %v16999_v3 = vmax.f32 %v13444_v41, 0.0  ;;  %v13661_v42 = vmul.f32 %v4634_v5, %v17001_v58  ;;  %v11121_v33 = vld [vmem:[%s16870_s1] ss:$8 sps:$4 sm:$0xff]  }
 0x56f   : > { %16981 = vst [vmem:[#allocation11_spill] sm:$0xff] %v13613_v11  ;;  %16982 = vst [vmem:[#allocation12_spill] sm:$0xff] %v13617_v18  ;;  %v13637_v63 = vmul.f32 %v4634_v5, %v16989_v52  ;;  %v13641_v10 = vmul.f32 %v4634_v5, %v16991_v21  ;;  %v13645_v60 = vmul.f32 %v4634_v5, %v16993_v28  ;;  %v17003_v22 = vmax.f32 %v13463_v46, 0.0 }
 0x570   : > { %16983 = vst [vmem:[#allocation13_spill] sm:$0xff] %v13621_v56  ;;  %16984 = vst [vmem:[#allocation14_spill] sm:$0xff] %v13625_v16  ;;  %v13653_v8 = vmul.f32 %v4634_v5, %v16997_v6  ;;  %v13657_v0 = vmul.f32 %v4634_v5, %v16999_v3  ;;  %v13669_v59 = vmul.f32 %v4634_v5, %v17005_v29  ;;  %v17007_v39 = vmax.f32 %v13474_v45, 0.0 }
 0x571   : > { %16986 = vst [vmem:[#allocation15_spill] sm:$0xff] %v13629_v40  ;;  %16988 = vst [vmem:[#allocation16_spill] sm:$0xff] %v13633_v9  ;;  %v13665_v1 = vmul.f32 %v4634_v5, %v17003_v22  ;;  %v17009_v41 = vmax.f32 %v13485_v48, 0.0  ;;  %v13681_v53 = vmul.f32 %v4634_v5, %v17011_v14  ;;  %v17013_v46 = vmax.f32 %v13496_v37, 0.0  ;;  %3890 = vmatmul.mubr.bf16.vlgmr.msra.gmra.mrb[0].mxu1 %v11121_v33 }
 0x572   : > { %16990 = vst [vmem:[#allocation17_spill] sm:$0xff] %v13637_v63  ;;  %16992 = vst [vmem:[#allocation18_spill] sm:$0xff] %v13641_v10  ;;  %v13673_v36 = vmul.f32 %v4634_v5, %v17007_v39  ;;  %v13689_v12 = vmul.f32 %v4634_v5, %v17015_v20  ;;  %v17017_v45 = vmax.f32 %v13514_v30, 0.0  ;;  %v17019_v48 = vmax.f32 %v13521_v50, 0.0 }
 0x573   : > { %16994 = vst [vmem:[#allocation19_spill] sm:$0xff] %v13645_v60  ;;  %16996 = vst [vmem:[#allocation20_spill] sm:$0xff] %v13649_v13  ;;  %v13677_v51 = vmul.f32 %v4634_v5, %v17009_v41  ;;  %v13685_v57 = vmul.f32 %v4634_v5, %v17013_v46  ;;  %v13701_v31 = vmul.f32 %v4634_v5, %v17021_v15  ;;  %v17023_v37 = vmax.f32 %v13541_v32, 0.0 }
 0x574   : > { %16998 = vst [vmem:[#allocation21_spill] sm:$0xff] %v13653_v8  ;;  %17000 = vst [vmem:[#allocation22_spill] sm:$0xff] %v13657_v0  ;;  %v13693_v44 = vmul.f32 %v4634_v5, %v17017_v45  ;;  %v13697_v49 = vmul.f32 %v4634_v5, %v17019_v48  ;;  %v13709_v62 = vmul.f32 %v4634_v5, %v17025_v55  ;;  %v17027_v30 = vmax.f32 %v13538_v38, 0.0 }
 0x575   : > { %17002 = vst [vmem:[#allocation23_spill] sm:$0xff] %v13661_v42  ;;  %17004 = vst [vmem:[#allocation24_spill] sm:$0xff] %v13665_v1  ;;  %v13705_v34 = vmul.f32 %v4634_v5, %v17023_v37  ;;  %v13717_v50 = vpack.c.bf16 %v13589_v61, %v13589_v61  ;;  %v13721_v35 = vpack.c.bf16 %v13593_v24, %v13593_v24 }
 0x576   : > { %17006 = vst [vmem:[#allocation25_spill] sm:$0xff] %v13669_v59  ;;  %17008 = vst [vmem:[#allocation26_spill] sm:$0xff] %v13673_v36  ;;  %v13713_v7 = vmul.f32 %v4634_v5, %v17027_v30  ;;  %v13725_v32 = vpack.c.bf16 %v13597_v23, %v13597_v23  ;;  %v13729_v54 = vpack.c.bf16 %v13601_v43, %v13601_v43 }
 0x577   : > { %17010 = vst [vmem:[#allocation27_spill] sm:$0xff] %v13677_v51  ;;  %17012 = vst [vmem:[#allocation28_spill] sm:$0xff] %v13681_v53  ;;  %v13733_v38 = vpack.c.bf16 %v13605_v26, %v13605_v26  ;;  %v13737_v47 = vpack.c.bf16 %v13609_v2, %v13609_v2  ;;  %v13741_v27 = vpack.c.bf16 %v13613_v11, %v13613_v11  ;;  %v17040_v17 = vshrl.u32 %v13717_v50, 16 }
 0x578   : > { %17014 = vst [vmem:[#allocation29_spill] sm:$0xff] %v13685_v57  ;;  %17016 = vst [vmem:[#allocation30_spill] sm:$0xff] %v13689_v12  ;;  %v13745_v5 = vpack.c.bf16 %v13617_v18, %v13617_v18  ;;  %v13755_v52 = vpack.c.bf16 %v13621_v56, %v13621_v56  ;;  %v13759_v21 = vpack.c.bf16 %v13625_v16, %v13625_v16 }
 0x579   : > { %17018 = vst [vmem:[#allocation31_spill] sm:$0xff] %v13693_v44  ;;  %17020 = vst [vmem:[#allocation32_spill] sm:$0xff] %v13697_v49  ;;  %v13763_v28 = vpack.c.bf16 %v13629_v40, %v13629_v40  ;;  %v13767_v25 = vpack.c.bf16 %v13633_v9, %v13633_v9  ;;  %v13771_v6 = vpack.c.bf16 %v13637_v63, %v13637_v63  ;;  %v17041_v9 = vshrl.u32 %v13721_v35, 16 }
 0x57a   : > { %17022 = vst [vmem:[#allocation33_spill] sm:$0xff] %v13701_v31  ;;  %17024 = vst [vmem:[#allocation34_spill] sm:$0xff] %v13705_v34  ;;  %v13775_v3 = vpack.c.bf16 %v13641_v10, %v13641_v10  ;;  %v13779_v58 = vpack.c.bf16 %v13645_v60, %v13645_v60  ;;  %v13783_v22 = vpack.c.bf16 %v13649_v13, %v13649_v13  ;;  %v17045_v63 = vshrl.u32 %v13737_v47, 16 }
 0x57b   : > { %17026 = vst [vmem:[#allocation35_spill] sm:$0xff] %v13709_v62  ;;  %17028 = vst [vmem:[#allocation36_spill] sm:$0xff] %v13713_v7  ;;  %v13787_v29 = vpack.c.bf16 %v13653_v8, %v13653_v8  ;;  %v13791_v39 = vpack.c.bf16 %v13657_v0, %v13657_v0  ;;  %v13795_v41 = vpack.c.bf16 %v13661_v42, %v13661_v42  ;;  %v17043_v42 = vshrl.u32 %v13729_v54, 16 }
 0x57c   : > { %v13799_v14 = vpack.c.bf16 %v13665_v1, %v13665_v1  ;;  %v13803_v46 = vpack.c.bf16 %v13669_v59, %v13669_v59  ;;  %v13807_v20 = vpack.c.bf16 %v13673_v36, %v13673_v36  ;;  %v13811_v45 = vpack.c.bf16 %v13677_v51, %v13677_v51 }
 0x57d   : > { %v13815_v48 = vpack.c.bf16 %v13681_v53, %v13681_v53  ;;  %v13819_v15 = vpack.c.bf16 %v13685_v57, %v13685_v57  ;;  %v13823_v37 = vpack.c.bf16 %v13689_v12, %v13689_v12  ;;  %v13827_v55 = vpack.c.bf16 %v13693_v44, %v13693_v44  ;;  %v11128_v53 = vld [vmem:[%s16870_s1 + $0x10] ss:$8 sps:$4 sm:$0xff]  }
 0x57e   : > { %17029 = vst [vmem:[#allocation37_spill] sm:$0xff] %v13807_v20  ;;  %17030 = vst [vmem:[#allocation38_spill] sm:$0xff] %v13811_v45  ;;  %v13831_v30 = vpack.c.bf16 %v13697_v49, %v13697_v49  ;;  %v13835_v33 = vpack.c.bf16 %v13701_v31, %v13701_v31  ;;  %v13839_v4 = vpack.c.bf16 %v13705_v34, %v13705_v34  ;;  %v11124_v34 = vld [vmem:[%s16879_s10 + $0x40] sm:$0xff]   ;;  %v4873_v1 = vshrl.u32 %v13741_v27, 16 }
 0x57f   : > { %17031 = vst [vmem:[#allocation39_spill] sm:$0xff] %v13815_v48  ;;  %17032 = vst [vmem:[#allocation40_spill] sm:$0xff] %v13819_v15  ;;  %v13843_v12 = vpack.c.bf16 %v13709_v62, %v13709_v62  ;;  %v13847_v44 = vpack.c.bf16 %v13713_v7, %v13713_v7  ;;  %v11125_v62 = vld [vmem:[%s16879_s10] sm:$0xff]   ;;  %10715 = vmatprep.subr.bf16.mxu1 %v11124_v34  ;;  %v4881_v51 = vshrl.u32 %v13745_v5, 16  ;;  %v4890_v49 = vshrl.u32 %v13755_v52, 16 }
 0x580   : > { %17033 = vst [vmem:[#allocation41_spill] sm:$0xff] %v13823_v37  ;;  %17034 = vst [vmem:[#allocation42_spill] sm:$0xff] %v13827_v55  ;;  %10716 = vmatpush3.bf16.msra.mxu1 %v11125_v62  ;;  %v4898_v31 = vshrl.u32 %v13759_v21, 16  ;;  %v11126_v34 = vld [vmem:[%s16870_s1 + $0x14] ss:$8 sps:$4 sm:$0xff]   ;;  %v4907_v59 = vshrl.u32 %v13763_v28, 16 }
 0x581   : > { %17035 = vst [vmem:[#allocation43_spill] sm:$0xff] %v13831_v30  ;;  %17036 = vst [vmem:[#allocation44_spill] sm:$0xff] %v13835_v33  ;;  %v4915_v57 = vshrl.u32 %v13767_v25, 16  ;;  %v4924_v7 = vshrl.u32 %v13771_v6, 16  ;;  %v4932_v0 = vshrl.u32 %v13775_v3, 16  ;;  %3897 = vmatprep.mubr.bf16.mxu1 %v11126_v34  ;;  %v4941_v13 = vshrl.u32 %v13779_v58, 16 }
 0x582   : > { %17037 = vst [vmem:[#allocation45_spill] sm:$0xff] %v13839_v4  ;;  %17038 = vst [vmem:[#allocation46_spill] sm:$0xff] %v13843_v12  ;;  %v4949_v60 = vshrl.u32 %v13783_v22, 16  ;;  %3898 = vmatmul.mubr.bf16.gmra.mrb[4].mxu1 %v11128_v53  ;;  %v4958_v10 = vshrl.u32 %v13787_v29, 16  ;;  %v4966_v36 = vshrl.u32 %v13791_v39, 16  ;;  %v4975_v8 = vshrl.u32 %v13795_v41, 16 }
 0x583   : > { %17039 = vst [vmem:[#allocation47_spill] sm:$0xff] %v13847_v44  ;;  %v4983_v40 = vshrl.u32 %v13799_v14, 16  ;;  %v4992_v16 = vshrl.u32 %v13803_v46, 16  ;;  %v5000_v62 = vshrl.u32 %v13807_v20, 16  ;;  %v5009_v56 = vshrl.u32 %v13811_v45, 16 }
 0x584   : > { %v5017_v18 = vshrl.u32 %v13815_v48, 16  ;;  %v5026_v11 = vshrl.u32 %v13819_v15, 16  ;;  %v5034_v2 = vshrl.u32 %v13823_v37, 16  ;;  %v5043_v26 = vshrl.u32 %v13827_v55, 16 }
 0x585   : > { %v5051_v43 = vshrl.u32 %v13831_v30, 16  ;;  %v5060_v23 = vshrl.u32 %v13835_v33, 16  ;;  %v5068_v61 = vshrl.u32 %v13839_v4, 16  ;;  %v5077_v24 = vshrl.u32 %v13843_v12, 16 }
 0x586   : > { %v5085_v19 = vshrl.u32 %v13847_v44, 16  ;;  %v13927_v55 = vrot.slane %v17040_v17, 7  ;;  %v13931_v30 = vrot.slane %v17041_v9, 7  ;;  %v17042_v34 = vshrl.u32 %v13725_v32, 16 }
 0x587   : > { %v13939_v4 = vrot.slane %v17043_v42, 7  ;;  %v17044_v53 = vshrl.u32 %v13733_v38, 16  ;;  %v13947_v17 = vrot.slane %v17045_v63, 7  ;;  %v13949_v44 = vrot.slane %v4873_v1, 7  ;;  %v11132_v63 = vld [vmem:[%s16870_s1 + $0x20] ss:$8 sps:$4 sm:$0xff]  }
 0x588   : > { %v13935_v33 = vrot.slane %v17042_v34, 7  ;;  %v13951_v9 = vrot.slane %v4881_v51, 7  ;;  %v11130_v34 = vld [vmem:[%s16870_s1 + $0x24] ss:$8 sps:$4 sm:$0xff]   ;;  %v13956_v37 = vrot.slane %v4890_v49, 7  ;;  %v13958_v42 = vrot.slane %v4898_v31, 7 }
 0x589   : > { %v13943_v12 = vrot.slane %v17044_v53, 7  ;;  %v13960_v15 = vrot.slane %v4907_v59, 7  ;;  %v13962_v53 = vrot.slane %v4915_v57, 7  ;;  %v13967_v1 = vrot.slane %v4924_v7, 7  ;;  %3905 = vmatprep.mubr.bf16.mxu1 %v11130_v34 }
 0x58a   : > { %v13969_v51 = vrot.slane %v4932_v0, 7  ;;  %v13971_v48 = vrot.slane %v4941_v13, 7  ;;  %v13973_v45 = vrot.slane %v4949_v60, 7  ;;  %v13975_v49 = vrot.slane %v4958_v10, 7  ;;  %3906 = vmatmul.mubr.bf16.gmra.mrb[8].mxu1 %v11132_v63 }
 0x58b   : > { %17046 = vst [vmem:[#allocation48_spill] sm:$0xff] %v13962_v53  ;;  %v13977_v31 = vrot.slane %v4966_v36, 7  ;;  %v13979_v59 = vrot.slane %v4975_v8, 7  ;;  %v13981_v57 = vrot.slane %v4983_v40, 7  ;;  %v13983_v20 = vrot.slane %v4992_v16, 7 }
 0x58c   : > { %17047 = vst [vmem:[#allocation49_spill] sm:$0xff] %v13969_v51  ;;  %17048 = vst [vmem:[#allocation50_spill] sm:$0xff] %v13973_v45  ;;  %v13985_v7 = vrot.slane %v5000_v62, 7  ;;  %v13987_v0 = vrot.slane %v5009_v56, 7  ;;  %v13989_v13 = vrot.slane %v5017_v18, 7  ;;  %v13991_v60 = vrot.slane %v5026_v11, 7 }
 0x58d   : > { %17049 = vst [vmem:[#allocation51_spill] sm:$0xff] %v13977_v31  ;;  %17050 = vst [vmem:[#allocation52_spill] sm:$0xff] %v13981_v57  ;;  %v13993_v34 = vrot.slane %v5034_v2, 7  ;;  %v13995_v10 = vrot.slane %v5043_v26, 7  ;;  %v13997_v36 = vrot.slane %v5051_v43, 7  ;;  %v13999_v8 = vrot.slane %v5060_v23, 7 }
 0x58e   : > { %17051 = vst [vmem:[#allocation53_spill] sm:$0xff] %v13985_v7  ;;  %17052 = vst [vmem:[#allocation54_spill] sm:$0xff] %v13989_v13  ;;  %v14001_v40 = vrot.slane %v5068_v61, 7  ;;  %v14003_v16 = vrot.slane %v5077_v24, 7  ;;  %v14005_v62 = vrot.slane %v5085_v19, 7  ;;  %v17057_v18 = vshll.u32 %v13717_v50, 16 }
 0x58f   : > { %17053 = vst [vmem:[#allocation55_spill] sm:$0xff] %v13993_v34  ;;  %17054 = vst [vmem:[#allocation56_spill] sm:$0xff] %v13997_v36  ;;  %v17058_v26 = vshll.u32 %v13721_v35, 16  ;;  %v11134_v61 = vld [vmem:[%s16879_s10 + $0x48] sm:$0xff]   ;;  %v17059_v24 = vshll.u32 %v13725_v32, 16  ;;  %v17060_v35 = vshll.u32 %v13729_v54, 16 }
 0x590   : > { %17055 = vst [vmem:[#allocation57_spill] sm:$0xff] %v14001_v40  ;;  %17056 = vst [vmem:[#allocation58_spill] sm:$0xff] %v14005_v62  ;;  %v14010_v56 = vor.u32 %v17057_v18, %v13927_v55  ;;  %v11135_v19 = vld [vmem:[%s16879_s10 + $0x8] sm:$0xff]   ;;  %10717 = vmatprep.subr.bf16.mxu1 %v11134_v61  ;;  %v5015_v2 = vrot.slane %v13987_v0, 4 }
 0x591   : > { %v14016_v43 = vor.u32 %v17058_v26, %v13931_v30  ;;  %v14028_v11 = vor.u32 %v17059_v24, %v13935_v33  ;;  %v14034_v63 = vor.u32 %v17060_v35, %v13939_v4  ;;  %v17061_v26 = vshll.u32 %v13733_v38, 16  ;;  %10718 = vmatpush3.bf16.msra.mxu1 %v11135_v19  ;;  %v11138_v19 = vld [vmem:[%s16870_s1 + $0x30] ss:$8 sps:$4 sm:$0xff]  }
 0x592   : > { %v17062_v24 = vshll.u32 %v13737_v47, 16  ;;  %v17063_v35 = vshll.u32 %v13741_v27, 16  ;;  %v17066_v27 = vshll.u32 %v13759_v21, 16  ;;  %v17068_v21 = vshll.u32 %v13767_v25, 16 }
 0x593   : > { %v14040_v23 = vor.u32 %v17061_v26, %v13943_v12  ;;  %v17064_v26 = vshll.u32 %v13745_v5, 16  ;;  %v11136_v5 = vld [vmem:[%s16870_s1 + $0x34] ss:$8 sps:$4 sm:$0xff]   ;;  %v17069_v47 = vshll.u32 %v13771_v6, 16  ;;  %v17072_v25 = vshll.u32 %v13779_v58, 16 }
 0x594   : > { %v14046_v50 = vor.u32 %v17062_v24, %v13947_v17  ;;  %v14052_v18 = vor.u32 %v17063_v35, %v13949_v44  ;;  %v17065_v24 = vshll.u32 %v13755_v52, 16  ;;  %v14070_v35 = vor.u32 %v17066_v27, %v13958_v42  ;;  %3913 = vmatprep.mubr.bf16.mxu1 %v11136_v5  ;;  %v17085_v5 = vld [vmem:[#allocation38_spill] sm:$0xff] }
 0x595   : > { %v14058_v32 = vor.u32 %v17064_v26, %v13951_v9  ;;  %v17067_v52 = vshll.u32 %v13763_v28, 16  ;;  %v14088_v27 = vor.u32 %v17068_v21, %v13962_v53  ;;  %v14094_v54 = vor.u32 %v17069_v47, %v13967_v1  ;;  %3914 = vmatmul.mubr.bf16.gmra.mrb[12].mxu1 %v11138_v19  ;;  %v17093_v19 = vld [vmem:[#allocation41_spill] sm:$0xff] }
 0x596   : > { %v14064_v61 = vor.u32 %v17065_v24, %v13956_v37  ;;  %v17071_v28 = vshll.u32 %v13775_v3, 16  ;;  %v14106_v21 = vor.u32 %v17072_v25, %v13971_v48  ;;  %v4947_v38 = vrot.slane %v13971_v48, 4  ;;  %v5165_v53 = vld [vmem:[#allocation2 + $0x2c] sm:$0x1] }
 0x597   : > { %v14082_v26 = vor.u32 %v17067_v52, %v13960_v15  ;;  %17070 = vst [vmem:[#allocation59_spill] sm:$0xff] %v14094_v54  ;;  %v17074_v6 = vshll.u32 %v13783_v22, 16  ;;  %v17075_v3 = vshll.u32 %v13787_v29, 16  ;;  %v17077_v58 = vshll.u32 %v13791_v39, 16  ;;  %v14229_v54 = vld [vmem:[#allocation2 + $0x38] sm:$0x1] }
 0x598   : > { %v14100_v52 = vor.u32 %v17071_v28, %v13969_v51  ;;  %17073 = vst [vmem:[#allocation60_spill] sm:$0xff] %v14106_v21  ;;  %v17078_v22 = vshll.u32 %v13795_v41, 16  ;;  %v17080_v29 = vshll.u32 %v13799_v14, 16  ;;  %v17081_v39 = vshll.u32 %v13803_v46, 16  ;;  %v17083_v41 = vld [vmem:[#allocation37_spill] sm:$0xff] }
 0x599   : > { %v4954_v47 = vor.u32 %v17074_v6, %v13973_v45  ;;  %v14116_v28 = vor.u32 %v17075_v3, %v13975_v49  ;;  %v14122_v25 = vor.u32 %v17077_v58, %v13977_v31  ;;  %v4998_v48 = vrot.slane %v13983_v20, 4  ;;  %v14225_v21 = vld [vmem:[#allocation2 + $0x30] sm:$0xf]  ;;  %v14227_v51 = vld [vmem:[#allocation2 + $0x24] sm:$0xf] }
 0x59a   : > { %v14128_v6 = vor.u32 %v17078_v22, %v13979_v59  ;;  %v14134_v3 = vor.u32 %v17080_v29, %v13981_v57  ;;  %v14140_v58 = vor.u32 %v17081_v39, %v13983_v20  ;;  %v17084_v22 = vshll.u32 %v17083_v41, 16  ;;  %v17088_v57 = vld [vmem:[#allocation39_spill] sm:$0xff]  ;;  %v17090_v20 = vld [vmem:[#allocation40_spill] sm:$0xff] }
 0x59b   : > { %17076 = vst [vmem:[#allocation61_spill] sm:$0xff] %v14116_v28  ;;  %v17086_v14 = vshll.u32 %v17085_v5, 16  ;;  %v17089_v46 = vshll.u32 %v17088_v57, 16  ;;  %v17094_v5 = vshll.u32 %v17093_v19, 16 }
 0x59c   : > { %17079 = vst [vmem:[#allocation62_spill] sm:$0xff] %v14128_v6  ;;  %17082 = vst [vmem:[#allocation63_spill] sm:$0xff] %v14140_v58  ;;  %v5005_v24 = vor.u32 %v17084_v22, %v13985_v7  ;;  %v17091_v6 = vshll.u32 %v17090_v20, 16  ;;  %v5032_v22 = vrot.slane %v13991_v60, 4  ;;  %v17113_v7 = vld [vmem:[#allocation47_spill] sm:$0xff] }
 0x59d   : > { %v14150_v29 = vor.u32 %v17086_v14, %v13987_v0  ;;  %v5022_v39 = vor.u32 %v17089_v46, %v13989_v13  ;;  %v5039_v14 = vor.u32 %v17094_v5, %v13993_v34  ;;  %v17097_v0 = vld [vmem:[#allocation42_spill] sm:$0xff]  ;;  %v17104_v34 = vld [vmem:[#allocation44_spill] sm:$0xff]  ;;  %v14205_v13 = vld [vmem:[#allocation2 + $0x18] sm:$0xf]  ;;  %v17114_v31 = vshll.u32 %v17113_v7, 16 }
 0x59e   : > { %v14160_v41 = vor.u32 %v17091_v6, %v13991_v60  ;;  %v17098_v46 = vshll.u32 %v17097_v0, 16  ;;  %v5049_v6 = vrot.slane %v13995_v10, 4  ;;  %v17100_v60 = vld [vmem:[#allocation43_spill] sm:$0xff]  ;;  %v11140_v5 = vld [vmem:[%s16870_s1 + $0x44] ss:$8 sps:$4 sm:$0xff]   ;;  %v17117_v7 = vrot.slane %v13943_v12, 4 }
 0x59f   : > { %17087 = vst [vmem:[#allocation37_spill] sm:$0xff] %v14150_v29  ;;  %v17101_v58 = vshll.u32 %v17100_v60, 16  ;;  %v5090_v28 = vor.u32 %v17114_v31, %v14005_v62  ;;  %v17118_v62 = vrot.slane %v13949_v44, 4  ;;  %3921 = vmatprep.mubr.bf16.mxu1 %v11140_v5  ;;  %v17119_v12 = vrot.slane %v13956_v37, 4  ;;  %v14282_v37 = vld [vmem:[#allocation2 + $0x54] sm:$0xf] }
 0x5a0   : > { %17092 = vst [vmem:[#allocation38_spill] sm:$0xff] %v14160_v41  ;;  %v14176_v20 = vor.u32 %v17098_v46, %v13995_v10  ;;  %v17105_v41 = vshll.u32 %v17104_v34, 16  ;;  %v5066_v46 = vrot.slane %v13999_v8, 4  ;;  %v17107_v10 = vld [vmem:[#allocation45_spill] sm:$0xff]  ;;  %v4870_v45 = vsel %vm14169_vm9, %v17117_v7, %v14046_v50 }
 0x5a1   : > { %v5056_v19 = vor.u32 %v17101_v58, %v13997_v36  ;;  %v11142_v36 = vld [vmem:[%s16870_s1 + $0x40] ss:$8 sps:$4 sm:$0xff]   ;;  %v14207_v34 = vld [vmem:[#allocation2 + $0xc] sm:$0xf]  ;;  %v4904_v50 = vsel %vm14169_vm9, %v17119_v12, %v14070_v35  ;;  %v17120_v44 = vrot.slane %v13960_v15, 4 }
 0x5a2   : > { %17099 = vst [vmem:[#allocation39_spill] sm:$0xff] %v14176_v20  ;;  %v14192_v0 = vor.u32 %v17105_v41, %v13999_v8  ;;  %v17108_v20 = vshll.u32 %v17107_v10, 16  ;;  %v5158_v41 = vld [vmem:[#allocation2 + $0x20] sm:$0x1]  ;;  %v17111_v10 = vld [vmem:[#allocation46_spill] sm:$0xff]  ;;  %3922 = vmatmul.mubr.bf16.gmra.mrb[16].mxu1 %v11142_v36  ;;  %v5006_v36 = vsel %vm14169_vm9, %v4998_v48, %v5005_v24  ;;  %v5040_v24 = vsel %vm14169_vm9, %v5032_v22, %v5039_v14 }
 0x5a3   : > { %v17112_v58 = vshll.u32 %v17111_v10, 16  ;;  %v17115_v10 = vrot.slane %v13927_v55, 4  ;;  %v4887_v55 = vsel %vm14169_vm9, %v17118_v62, %v14058_v32  ;;  %v4921_v62 = vsel %vm14169_vm9, %v17120_v44, %v14088_v27  ;;  %5164 = vst.msk [vmem:[#allocation2 + $0x28] sm:$0xf] %vm4146_vm0, %v4870_v45  ;;  %v14280_v15 = vld [vmem:[#allocation2 + $0x60] sm:$0xf] }
 0x5a4   : > { %17106 = vst [vmem:[#allocation40_spill] sm:$0xff] %v14192_v0  ;;  %v5073_v60 = vor.u32 %v17108_v20, %v14001_v40  ;;  %v5151_v20 = vld [vmem:[#allocation2 + $0x14] sm:$0x1]  ;;  %v5083_v0 = vrot.slane %v14003_v16, 4  ;;  %v17121_v32 = vrot.slane %v13967_v1, 4  ;;  %v17122_v27 = vrot.slane %v13975_v49, 4 }
 0x5a5   : > { %v14218_v40 = vor.u32 %v17112_v58, %v14003_v16  ;;  %v4836_v58 = vsel %vm14169_vm9, %v17115_v10, %v14016_v43  ;;  %v17116_v16 = vrot.slane %v13935_v33, 4  ;;  %v14251_v43 = vld [vmem:[#allocation2 + $0x48] sm:$0xf]  ;;  %v14253_v10 = vld [vmem:[#allocation2 + $0x3c] sm:$0xf]  ;;  %v11145_v22 = vld [vmem:[%s16879_s10 + $0x10] sm:$0xff]   ;;  %v5146_v57 = vsel %vm14185_vm10, %v14010_v56, %v14207_v34 }
 0x5a6   : > { %v14255_v33 = vld [vmem:[#allocation2 + $0x50] sm:$0x1]  ;;  %v4938_v5 = vsel %vm14169_vm9, %v17121_v32, %v14100_v52  ;;  %5148 = vst.msk [vmem:[#allocation2 + $0x10] sm:$0xf] %vm4146_vm0, %v4836_v58  ;;  %5171 = vst.msk [vmem:[#allocation2 + $0x34] sm:$0xf] %vm4146_vm0, %v4887_v55  ;;  %v5074_v48 = vsel %vm14169_vm9, %v5066_v46, %v5073_v60  ;;  %v5155_v46 = vsel %vm14185_vm10, %v14028_v11, %v14205_v13 }
 0x5a7   : > { %v4853_v31 = vsel %vm14169_vm9, %v17116_v16, %v14034_v63  ;;  %v14257_v63 = vld [vmem:[#allocation2 + $0x44] sm:$0x1]  ;;  %v4955_v16 = vsel %vm14169_vm9, %v4947_v38, %v4954_v47  ;;  %v14284_v1 = vld [vmem:[#allocation2 + $0x68] sm:$0x1]  ;;  %v5193_v35 = vld [vmem:[#allocation2 + $0x5c] sm:$0x1]  ;;  %v4972_v38 = vsel %vm14169_vm9, %v17122_v27, %v14122_v25  ;;  %v5023_v47 = vsel %vm14169_vm9, %v5015_v2, %v5022_v39 }
 0x5a8   : > { %5157 = vst.msk [vmem:[#allocation2 + $0x1c] sm:$0xf] %vm4146_vm0, %v4853_v31  ;;  %v17123_v52 = vrot.slane %v13979_v59, 4  ;;  %5178 = vst.msk [vmem:[#allocation2 + $0x40] sm:$0xf] %vm4146_vm0, %v4904_v50  ;;  %v5057_v2 = vsel %vm14169_vm9, %v5049_v6, %v5056_v19  ;;  %v11144_v39 = vld [vmem:[%s16879_s10 + $0x50] sm:$0xff]  }
 0x5a9   : > { %5185 = vst.msk [vmem:[#allocation2 + $0x4c] sm:$0xf] %vm4146_vm0, %v4921_v62  ;;  %5192 = vst.msk [vmem:[#allocation2 + $0x58] sm:$0xf] %vm4146_vm0, %v4938_v5  ;;  %v14304_v49 = vld [vmem:[#allocation2 + $0x78] sm:$0xf]  ;;  %10719 = vmatprep.subr.bf16.mxu1 %v11144_v39 }
 0x5aa   : > { %v4989_v45 = vsel %vm14169_vm9, %v17123_v52, %v14134_v3  ;;  %5199 = vst.msk [vmem:[#allocation2 + $0x64] sm:$0xf] %vm4146_vm0, %v4955_v16  ;;  %v14306_v59 = vld [vmem:[#allocation2 + $0x6c] sm:$0xf]  ;;  %v14308_v25 = vld [vmem:[#allocation2 + $0x80] sm:$0x1]  ;;  %v5091_v3 = vsel %vm14169_vm9, %v5083_v0, %v5090_v28  ;;  %10720 = vmatpush3.bf16.msra.mxu1 %v11145_v22 }
 0x5ab   : > { %5206 = vst.msk [vmem:[#allocation2 + $0x70] sm:$0xf] %vm4146_vm0, %v4972_v38  ;;  %5213 = vst.msk [vmem:[#allocation2 + $0x7c] sm:$0xf] %vm4146_vm0, %v4989_v45  ;;  %v5207_v14 = vld [vmem:[#allocation2 + $0x74] sm:$0x1] }
 0x5ac   : > { %5220 = vst.msk [vmem:[#allocation2 + $0x88] sm:$0xf] %vm4146_vm0, %v5006_v36  ;;  %5227 = vst.msk [vmem:[#allocation2 + $0x94] sm:$0xf] %vm4146_vm0, %v5023_v47  ;;  %v14328_v6 = vld [vmem:[#allocation2 + $0x90] sm:$0xf] }
 0x5ad   : > { %v14330_v28 = vld [vmem:[#allocation2 + $0x84] sm:$0xf]  ;;  %v17124_v19 = vrot.slane %v13931_v30, 4  ;;  %v17125_v60 = vrot.slane %v13939_v4, 4  ;;  %5234 = vst.msk [vmem:[#allocation2 + $0xa0] sm:$0xf] %vm4146_vm0, %v5040_v24  ;;  %v5162_v4 = vsel %vm14185_vm10, %v14040_v23, %v14227_v51 }
 0x5ae   : > { %5241 = vst.msk [vmem:[#allocation2 + $0xac] sm:$0xf] %vm4146_vm0, %v5057_v2  ;;  %5248 = vst.msk [vmem:[#allocation2 + $0xb8] sm:$0xf] %vm4146_vm0, %v5074_v48  ;;  %v5228_v30 = vld [vmem:[#allocation2 + $0x98] sm:$0x1] }
 0x5af   : > { %v5152_v0 = vsel %vm14211_vm11, %v17124_v19, %v5151_v20  ;;  %v5159_v58 = vsel %vm14211_vm11, %v17125_v60, %v5158_v41  ;;  %5255 = vst.msk [vmem:[#allocation2 + $0xc4] sm:$0xf] %vm4146_vm0, %v5091_v3  ;;  %v5221_v56 = vld [vmem:[#allocation2 + $0x8c] sm:$0x1]  ;;  %v14352_v34 = vld [vmem:[#allocation2 + $0xa8] sm:$0xf]  ;;  %v5169_v41 = vsel %vm14185_vm10, %v14052_v18, %v14225_v21 }
 0x5b0   : > { %v17126_v13 = vrot.slane %v13947_v17, 4  ;;  %v17127_v20 = vrot.slane %v13951_v9, 4  ;;  %5147 = vst [vmem:[#allocation2 + $0xc] sm:$0xf] %v5146_v57  ;;  %5153 = vst [vmem:[#allocation2 + $0x14] sm:$0x1] %v5152_v0 }
 0x5b1   : > { %5156 = vst [vmem:[#allocation2 + $0x18] sm:$0xf] %v5155_v46  ;;  %5160 = vst [vmem:[#allocation2 + $0x20] sm:$0x1] %v5159_v58  ;;  %v5231_v17 = vld [vmem:[#allocation2 + $0x9c] sm:$0xf] }
 0x5b2   : > { %v5166_v11 = vsel %vm14211_vm11, %v17126_v13, %v5165_v53  ;;  %v5173_v31 = vsel %vm14211_vm11, %v17127_v20, %v14229_v54  ;;  %v5242_v51 = vld [vmem:[#allocation2 + $0xb0] sm:$0x1]  ;;  %v5235_v23 = vld [vmem:[#allocation2 + $0xa4] sm:$0x1]  ;;  %v5176_v53 = vsel %vm14185_vm10, %v14064_v61, %v14253_v10  ;;  %v17128_v18 = vrot.slane %v13958_v42, 4  ;;  %v17131_v61 = vld [vmem:[#allocation59_spill] sm:$0xff] }
 0x5b3   : > { %v5183_v54 = vsel %vm14185_vm10, %v14082_v26, %v14251_v43  ;;  %v17129_v21 = vld [vmem:[#allocation48_spill] sm:$0xff]  ;;  %5163 = vst [vmem:[#allocation2 + $0x24] sm:$0xf] %v5162_v4  ;;  %5167 = vst [vmem:[#allocation2 + $0x2c] sm:$0x1] %v5166_v11  ;;  %v5190_v10 = vsel %vm14185_vm10, %v17131_v61, %v14282_v37  ;;  %v17135_v50 = vld [vmem:[#allocation50_spill] sm:$0xff] }
 0x5b4   : > { %v5180_v9 = vsel %vm14211_vm11, %v17128_v18, %v14257_v63  ;;  %v17130_v7 = vrot.slane %v17129_v21, 4  ;;  %5170 = vst [vmem:[#allocation2 + $0x30] sm:$0xf] %v5169_v41  ;;  %5174 = vst [vmem:[#allocation2 + $0x38] sm:$0x1] %v5173_v31  ;;  %v17132_v63 = vld [vmem:[#allocation49_spill] sm:$0xff] }
 0x5b5   : > { %v5252_v42 = vld [vmem:[#allocation2 + $0xc0] sm:$0xf]  ;;  %v17133_v12 = vrot.slane %v17132_v63, 4  ;;  %v17136_v44 = vrot.slane %v17135_v50, 4  ;;  %5177 = vst [vmem:[#allocation2 + $0x3c] sm:$0xf] %v5176_v53 }
 0x5b6   : > { %v5187_v55 = vsel %vm14211_vm11, %v17130_v7, %v14255_v33  ;;  %v17134_v43 = vld [vmem:[#allocation60_spill] sm:$0xff]  ;;  %5181 = vst [vmem:[#allocation2 + $0x44] sm:$0x1] %v5180_v9  ;;  %5184 = vst [vmem:[#allocation2 + $0x48] sm:$0xf] %v5183_v54  ;;  %v17138_v27 = vld [vmem:[#allocation51_spill] sm:$0xff] }
 0x5b7   : > { %v5194_v26 = vsel %vm14211_vm11, %v17133_v12, %v5193_v35  ;;  %v5197_v33 = vsel %vm14185_vm10, %v17134_v43, %v14280_v15  ;;  %v5201_v62 = vsel %vm14211_vm11, %v17136_v44, %v14284_v1  ;;  %5188 = vst [vmem:[#allocation2 + $0x50] sm:$0x1] %v5187_v55  ;;  %v11146_v32 = vld [vmem:[%s16870_s1 + $0x54] ss:$8 sps:$4 sm:$0xff]   ;;  %v11148_v5 = vld [vmem:[%s16870_s1 + $0x50] ss:$8 sps:$4 sm:$0xff]  }
 0x5b8   : > { %v5245_v16 = vld [vmem:[#allocation2 + $0xb4] sm:$0xf]  ;;  %v5256_v15 = vld [vmem:[#allocation2 + $0xc8] sm:$0x1]  ;;  %v5249_v37 = vld [vmem:[#allocation2 + $0xbc] sm:$0x1]  ;;  %3929 = vmatprep.mubr.bf16.mxu1 %v11146_v32 }
 0x5b9   : > { %v17137_v35 = vld [vmem:[#allocation61_spill] sm:$0xff]  ;;  %v17139_v38 = vrot.slane %v17138_v27, 4  ;;  %v17140_v45 = vld [vmem:[#allocation62_spill] sm:$0xff]  ;;  %v17141_v47 = vld [vmem:[#allocation52_spill] sm:$0xff]  ;;  %5191 = vst [vmem:[#allocation2 + $0x54] sm:$0xf] %v5190_v10  ;;  %3930 = vmatmul.mubr.bf16.gmra.mrb[20].mxu1 %v11148_v5 }
 0x5ba   : > { %v5204_v1 = vsel %vm14185_vm10, %v17137_v35, %v14306_v59  ;;  %v5211_v36 = vsel %vm14185_vm10, %v17140_v45, %v14304_v49  ;;  %v17142_v24 = vrot.slane %v17141_v47, 4  ;;  %5195 = vst [vmem:[#allocation2 + $0x5c] sm:$0x1] %v5194_v26  ;;  %5198 = vst [vmem:[#allocation2 + $0x60] sm:$0xf] %v5197_v33  ;;  %v17143_v59 = vld [vmem:[#allocation63_spill] sm:$0xff] }
 0x5bb   : > { %v5208_v52 = vsel %vm14211_vm11, %v17139_v38, %v5207_v14  ;;  %5202 = vst [vmem:[#allocation2 + $0x68] sm:$0x1] %v5201_v62  ;;  %v5218_v48 = vsel %vm14185_vm10, %v17143_v59, %v14330_v28  ;;  %v17144_v3 = vld [vmem:[#allocation53_spill] sm:$0xff]  ;;  %5205 = vst [vmem:[#allocation2 + $0x6c] sm:$0xf] %v5204_v1  ;;  %v17149_v28 = vld [vmem:[#allocation38_spill] sm:$0xff] }
 0x5bc   : > { %v5215_v2 = vsel %vm14211_vm11, %v17142_v24, %v14308_v25  ;;  %v17145_v39 = vrot.slane %v17144_v3, 4  ;;  %v17146_v22 = vld [vmem:[#allocation37_spill] sm:$0xff]  ;;  %v17147_v25 = vld [vmem:[#allocation54_spill] sm:$0xff]  ;;  %5209 = vst [vmem:[#allocation2 + $0x74] sm:$0x1] %v5208_v52  ;;  %v5232_v0 = vsel %vm14185_vm10, %v17149_v28, %v5231_v17  ;;  %v17150_v46 = vld [vmem:[#allocation55_spill] sm:$0xff] }
 0x5bd   : > { %v5225_v14 = vsel %vm14185_vm10, %v17146_v22, %v14328_v6  ;;  %v17148_v57 = vrot.slane %v17147_v25, 4  ;;  %5212 = vst [vmem:[#allocation2 + $0x78] sm:$0xf] %v5211_v36  ;;  %5216 = vst [vmem:[#allocation2 + $0x80] sm:$0x1] %v5215_v2  ;;  %v17151_v60 = vrot.slane %v17150_v46, 4 }
 0x5be   : > { %v5222_v49 = vsel %vm14211_vm11, %v17145_v39, %v5221_v56  ;;  %v17152_v6 = vld [vmem:[#allocation39_spill] sm:$0xff]  ;;  %5219 = vst [vmem:[#allocation2 + $0x84] sm:$0xf] %v5218_v48  ;;  %5226 = vst [vmem:[#allocation2 + $0x90] sm:$0xf] %v5225_v14  ;;  %v17155_v20 = vld [vmem:[#allocation40_spill] sm:$0xff] }
 0x5bf   : > { %v5229_v19 = vsel %vm14211_vm11, %v17148_v57, %v5228_v30  ;;  %v5236_v58 = vsel %vm14211_vm11, %v17151_v60, %v5235_v23  ;;  %v5239_v56 = vsel %vm14185_vm10, %v17152_v6, %v14352_v34  ;;  %v17153_v30 = vld [vmem:[#allocation56_spill] sm:$0xff]  ;;  %5223 = vst [vmem:[#allocation2 + $0x8c] sm:$0x1] %v5222_v49  ;;  %v14460_v11 = vld [vmem:[#allocation2 + $0x1c] sm:$0xf]  ;;  %v5246_v31 = vsel %vm14185_vm10, %v17155_v20, %v5245_v16  ;;  %v17156_v17 = vld [vmem:[#allocation57_spill] sm:$0xff] }
 0x5c0   : > { %v17154_v4 = vrot.slane %v17153_v30, 4  ;;  %5230 = vst [vmem:[#allocation2 + $0x98] sm:$0x1] %v5229_v19  ;;  %v14462_v41 = vld [vmem:[#allocation2 + $0x10] sm:$0xf]  ;;  %v17157_v34 = vrot.slane %v17156_v17, 4 }
 0x5c1   : > { %v17158_v53 = vld [vmem:[#allocation58_spill] sm:$0xff]  ;;  %5233 = vst [vmem:[#allocation2 + $0x9c] sm:$0xf] %v5232_v0  ;;  %5237 = vst [vmem:[#allocation2 + $0xa4] sm:$0x1] %v5236_v58  ;;  %v6974_v62 = vrot.slane %v14460_v11, 5 }
 0x5c2   : > { %v5243_v13 = vsel %vm14211_vm11, %v17154_v4, %v5242_v51  ;;  %v5250_v23 = vsel %vm14211_vm11, %v17157_v34, %v5249_v37  ;;  %v5253_v51 = vsel %vm14185_vm10, %v14218_v40, %v5252_v42  ;;  %v17159_v18 = vrot.slane %v17158_v53, 4  ;;  %5240 = vst [vmem:[#allocation2 + $0xa8] sm:$0xf] %v5239_v56  ;;  %5247 = vst [vmem:[#allocation2 + $0xb4] sm:$0xf] %v5246_v31  ;;  %v11154_v0 = vld [vmem:[%s16879_s10 + $0x58] sm:$0xff]  }
 0x5c3   : > { %5244 = vst [vmem:[#allocation2 + $0xb0] sm:$0x1] %v5243_v13  ;;  %5251 = vst [vmem:[#allocation2 + $0xbc] sm:$0x1] %v5250_v23  ;;  %v14478_v54 = vld [vmem:[#allocation2 + $0x18] sm:$0xf]  ;;  %10721 = vmatprep.subr.bf16.mxu1 %v11154_v0 }
 0x5c4   : > { %v5257_v9 = vsel %vm14211_vm11, %v17159_v18, %v5256_v15  ;;  %5254 = vst [vmem:[#allocation2 + $0xc0] sm:$0xf] %v5253_v51  ;;  %v5867_v21 = vld [vmem:[#allocation2 + $0xc] sm:$0xf]  ;;  %v14480_v7 = vld [vmem:[#allocation2 + $0x28] sm:$0xf]  ;;  %v10232_v40 = vcombine.low %v14478_v54, %v14460_v11 }
 0x5c5   : > { %5258 = vst [vmem:[#allocation2 + $0xc8] sm:$0x1] %v5257_v9  ;;  %v10184_v29 = vcombine.low %v5867_v21, %v14462_v41  ;;  %v14485_v8 = vld [vmem:[#allocation2 + $0x24] sm:$0xf]  ;;  %v5869_v55 = vld [vmem:[#allocation2 + $0x18] sm:$0xf] }
 0x5c6   : > { %v14487_v42 = vld [vmem:[#allocation2 + $0x1c] sm:$0xf]  ;;  %7596 = vrot.lane.b32.xlu0 %v10232_v40, %s11438_s17  ;;  %v6981_v61 = vrot.slane %v14480_v7, 5  ;;  %v6908_v10 = vld [vmem:[#allocation2 + $0x18] sm:$0xe]  ;;  %v10233_v26 = vcombine.low %v14485_v8, %v14480_v7  ;;  %v6976_v1 = vrot.slane %v6974_v62, 4 }
 0x5c7   : > { %7372 = vrot.lane.b32.xlu1 %v10184_v29, %s11439_s30  ;;  %v14492_v63 = vld [vmem:[#allocation2 + $0x2c] sm:$0x1]  ;;  %v6481_v12 = vld [vmem:[#allocation2 + $0x34] sm:$0xf]  ;;  %v10185_v43 = vcombine.low %v5869_v55, %v14487_v42  ;;  %v14497_v33 = vld [vmem:[#allocation2 + $0x20] sm:$0x1] }
 0x5c8   : > { %v6909_v50 = vld [vmem:[#allocation2 + $0x24] sm:$0xe]  ;;  %v10120_v44 = vrot.slane %v6908_v10, 9  ;;  %v6983_v5 = vrot.slane %v6981_v61, 4  ;;  %v6510_v16 = vld [vmem:[#allocation2 + $0x38] sm:$0x1] }
 0x5c9   : > { %v10121_v32 = vrot.slane %v6909_v50, 9  ;;  %v6984_v15 = vrot.slane %v14492_v63, 5  ;;  %v6910_v37 = vld [vmem:[#allocation2 + $0x30] sm:$0xe]  ;;  %v6988_v35 = vrot.slane %v6481_v12, 5  ;;  %v6977_v27 = vrot.slane %v14497_v33, 5 }
 0x5ca   : > { %7598 = vrot.lane.b32.xlu0 %v10233_v26, %s11438_s17  ;;  %v10122_v38 = vrot.slane %v6910_v37, 9  ;;  %v14504_v52 = vld [vmem:[#allocation2 + $0x30] sm:$0xf]  ;;  %v6991_v2 = vrot.slane %v6510_v16, 5  ;;  %v6975_v59 = vsel %vm11563_vm2, %v10120_v44, %v6974_v62  ;;  %v5871_v39 = vld [vmem:[#allocation2 + $0x24] sm:$0xf] }
 0x5cb   : > { %7374 = vrot.lane.b32.xlu1 %v10185_v43, %s11439_s30  ;;  %v6982_v36 = vsel %vm11563_vm2, %v10121_v32, %v6981_v61  ;;  %v6985_v47 = vsel %vm11563_vm2, %v6983_v5, %v6984_v15  ;;  %v6990_v24 = vrot.slane %v6988_v35, 4  ;;  %v6978_v48 = vsel %vm11563_vm2, %v6976_v1, %v6977_v27  ;;  %v14514_v49 = vld [vmem:[#allocation2 + $0x28] sm:$0xf]  ;;  %v14521_v19 = vld [vmem:[#allocation2 + $0x3c] sm:$0xf] }
 0x5cc   : > { %v10265_v3 = vcombine.low %v6982_v36, %v6985_v47  ;;  %v10264_v22 = vcombine.low %v6975_v59, %v6978_v48  ;;  %v10234_v25 = vcombine.low %v14504_v52, %v6481_v12  ;;  %v6989_v57 = vsel %vm11563_vm2, %v10122_v38, %v6988_v35  ;;  %v14523_v28 = vld [vmem:[#allocation2 + $0x40] sm:$0xf]  ;;  %v14531_v58 = vld [vmem:[#allocation2 + $0x34] sm:$0xf]  ;;  %v6911_v6 = vld [vmem:[#allocation2 + $0x3c] sm:$0xe] }
 0x5cd   : > { %v6992_v14 = vsel %vm11563_vm2, %v6990_v24, %v6991_v2  ;;  %v10186_v60 = vcombine.low %v5871_v39, %v14514_v49  ;;  %v11155_v56 = vld [vmem:[%s16879_s10 + $0x18] sm:$0xff]   ;;  %v5873_v30 = vld [vmem:[#allocation2 + $0x30] sm:$0xf]  ;;  %v6485_v4 = vld [vmem:[#allocation2 + $0x4c] sm:$0xf]  ;;  %v10235_v20 = vcombine.low %v14521_v19, %v14523_v28  ;;  %v10123_v17 = vrot.slane %v6911_v6, 9 }
 0x5ce   : > { %10955 = vmatprep.mubr.msk.bf16.mxu0 %vm3359_vm14, %v10264_v22  ;;  %v10266_v46 = vcombine.low %v6989_v57, %v6992_v14  ;;  %7600 = vrot.lane.b32.xlu0 %v10234_v25, %s11438_s17  ;;  %v6912_v13 = vld [vmem:[#allocation2 + $0x48] sm:$0xe]  ;;  %v6511_v31 = vld [vmem:[#allocation2 + $0x44] sm:$0x1]  ;;  %v6995_v34 = vrot.slane %v14523_v28, 5  ;;  %v10187_v53 = vcombine.low %v5873_v30, %v14531_v58  ;;  %v7002_v9 = vrot.slane %v6485_v4, 5 }
 0x5cf   : > { %10956 = vmatmul.mubr.msk.bf16.vlgmr.msra.gmra.mrb[72].mxu0 %vm3359_vm14, %v10265_v3  ;;  %7376 = vrot.lane.b32.xlu1 %v10186_v60, %s11439_s30  ;;  %v6512_v23 = vld [vmem:[#allocation2 + $0x50] sm:$0x1]  ;;  %v14542_v51 = vld [vmem:[#allocation2 + $0x48] sm:$0xf]  ;;  %v10124_v18 = vrot.slane %v6912_v13, 9  ;;  %v6998_v40 = vrot.slane %v6511_v31, 5 }
 0x5d0   : > { %10959 = vmatprep.mubr.msk.bf16.mxu0 %vm3359_vm14, %v10266_v46  ;;  %10722 = vmatpush3.bf16.msra.mxu1 %v11155_v56  ;;  %v6997_v21 = vrot.slane %v6995_v34, 4  ;;  %v5875_v29 = vld [vmem:[#allocation2 + $0x3c] sm:$0xf]  ;;  %v14546_v55 = vld [vmem:[#allocation2 + $0x40] sm:$0xf]  ;;  %v7004_v61 = vrot.slane %v7002_v9, 4  ;;  %v10236_v12 = vcombine.low %v14542_v51, %v6485_v4  ;;  %v6996_v26 = vsel %vm11563_vm2, %v10123_v17, %v6995_v34 }
 0x5d1   : > { %v7005_v10 = vrot.slane %v6512_v23, 5  ;;  %v14554_v50 = vld [vmem:[#allocation2 + $0x54] sm:$0xf]  ;;  %v6487_v44 = vld [vmem:[#allocation2 + $0x58] sm:$0xf]  ;;  %v7003_v32 = vsel %vm11563_vm2, %v10124_v18, %v7002_v9  ;;  %v10188_v16 = vcombine.low %v5875_v29, %v14546_v55  ;;  %v6538_v27 = vshrl.u32 %v14460_v11, 16 }
 0x5d2   : > { %7602 = vrot.lane.b32.xlu0 %v10235_v20, %s11438_s17  ;;  %v6999_v43 = vsel %vm11563_vm2, %v6997_v21, %v6998_v40  ;;  %v5877_v37 = vld [vmem:[#allocation2 + $0x48] sm:$0xf]  ;;  %v14562_v35 = vld [vmem:[#allocation2 + $0x4c] sm:$0xf]  ;;  %v6913_v1 = vld [vmem:[#allocation2 + $0x54] sm:$0xe]  ;;  %v10237_v36 = vcombine.low %v14554_v50, %v6487_v44 }
 0x5d3   : > { %7378 = vrot.lane.b32.xlu1 %v10187_v53, %s11439_s30  ;;  %v10267_v62 = vcombine.low %v6996_v26, %v6999_v43  ;;  %v7006_v5 = vsel %vm11563_vm2, %v7004_v61, %v7005_v10  ;;  %v6562_v38 = vshrl.u32 %v14480_v7, 16  ;;  %v6489_v47 = vld [vmem:[#allocation2 + $0x64] sm:$0xf]  ;;  %v6914_v24 = vld [vmem:[#allocation2 + $0x60] sm:$0xe]  ;;  %v6525_v2 = vshrl.u32 %v14478_v54, 16 }
 0x5d4   : > { %v10268_v15 = vcombine.low %v7003_v32, %v7006_v5  ;;  %v6528_v59 = vshll.u32 %v14478_v54, 16  ;;  %v6513_v48 = vld [vmem:[#allocation2 + $0x5c] sm:$0x1]  ;;  %v6488_v3 = vld [vmem:[#allocation2 + $0x60] sm:$0xf]  ;;  %v6549_v39 = vshrl.u32 %v14485_v8, 16  ;;  %v10189_v22 = vcombine.low %v5877_v37, %v14562_v35 }
 0x5d5   : > { %v10125_v14 = vrot.slane %v6913_v1, 9  ;;  %v7009_v25 = vrot.slane %v6487_v44, 5  ;;  %v6514_v57 = vld [vmem:[#allocation2 + $0x68] sm:$0x1]  ;;  %v10126_v0 = vrot.slane %v6914_v24, 9  ;;  %v7016_v46 = vrot.slane %v6489_v47, 5 }
 0x5d6   : > { %7604 = vrot.lane.b32.xlu0 %v10236_v12, %s11438_s17  ;;  %v5879_v60 = vld [vmem:[#allocation2 + $0x54] sm:$0xf]  ;;  %v14575_v6 = vld [vmem:[#allocation2 + $0x58] sm:$0xf]  ;;  %v6552_v54 = vshll.u32 %v14485_v8, 16  ;;  %v7012_v30 = vrot.slane %v6513_v48, 5  ;;  %v10238_v4 = vcombine.low %v6488_v3, %v6489_v47 }
 0x5d7   : > { %10960 = vmatmul.mubr.msk.bf16.gmra.mrb[76].mxu0 %vm3359_vm14, %v10267_v62  ;;  %7380 = vrot.lane.b32.xlu1 %v10188_v16, %s11439_s30  ;;  %v7011_v56 = vrot.slane %v7009_v25, 4  ;;  %v14579_v13 = vrot.slane %v6525_v2, 4  ;;  %v14581_v20 = vrot.slane %v6528_v59, 5  ;;  %v7018_v31 = vrot.slane %v7016_v46, 4  ;;  %v6490_v18 = vld [vmem:[#allocation2 + $0x6c] sm:$0xf] }
 0x5d8   : > { %10963 = vmatprep.mubr.msk.bf16.mxu0 %vm3359_vm14, %v10268_v15  ;;  %v7019_v17 = vrot.slane %v6514_v57, 5  ;;  %v6573_v34 = vshrl.u32 %v14504_v52, 16  ;;  %v7010_v23 = vsel %vm11563_vm2, %v10125_v14, %v7009_v25  ;;  %v10190_v8 = vcombine.low %v5879_v60, %v14575_v6  ;;  %v6491_v9 = vld [vmem:[#allocation2 + $0x70] sm:$0xf]  ;;  %v5881_v61 = vld [vmem:[#allocation2 + $0x60] sm:$0xf] }
 0x5d9   : > { %v7013_v53 = vsel %vm11563_vm2, %v7011_v56, %v7012_v30  ;;  %v7017_v40 = vsel %vm11563_vm2, %v10126_v0, %v7016_v46  ;;  %v14594_v10 = vld [vmem:[#allocation2 + $0x64] sm:$0xf]  ;;  %v6915_v12 = vld [vmem:[#allocation2 + $0x6c] sm:$0xe]  ;;  %v14596_v26 = vrot.slane %v6549_v39, 4  ;;  %v14598_v43 = vrot.slane %v6552_v54, 5 }
 0x5da   : > { %7606 = vrot.lane.b32.xlu0 %v10237_v36, %s11438_s17  ;;  %v10269_v21 = vcombine.low %v7010_v23, %v7013_v53  ;;  %v7020_v29 = vsel %vm11563_vm2, %v7018_v31, %v7019_v17  ;;  %v6576_v44 = vshll.u32 %v14504_v52, 16  ;;  %v6916_v32 = vld [vmem:[#allocation2 + $0x78] sm:$0xe]  ;;  %v10239_v5 = vcombine.low %v6490_v18, %v6491_v9  ;;  %v6515_v16 = vld [vmem:[#allocation2 + $0x74] sm:$0x1]  ;;  %v11164_v46 = vld [vmem:[%s16879_s10 + $0x60] sm:$0xff]  }
 0x5db   : > { %7382 = vrot.lane.b32.xlu1 %v10189_v22, %s11439_s30  ;;  %v10270_v62 = vcombine.low %v7017_v40, %v7020_v29  ;;  %v14603_v15 = vld [vmem:[#allocation2 + $0x7c] sm:$0xf]  ;;  %v6516_v37 = vld [vmem:[#allocation2 + $0x80] sm:$0x1]  ;;  %v10191_v1 = vcombine.low %v5881_v61, %v14594_v10  ;;  %v10127_v36 = vrot.slane %v6915_v12, 9  ;;  %v7023_v47 = vrot.slane %v6491_v9, 5  ;;  %10723 = vmatprep.subr.bf16.mxu1 %v11164_v46 }
 0x5dc   : > { %v6299_v24 = vld [vmem:[#allocation2 + $0xc] sm:$0xe]  ;;  %v14607_v59 = vrot.slane %v6573_v34, 4  ;;  %v10128_v48 = vrot.slane %v6916_v32, 9  ;;  %v5899_v3 = vld [vmem:[#allocation2 + $0x14] sm:$0x1] }
 0x5dd   : > { %v5692_v2 = vld [vmem:[#allocation2 + $0xc] sm:$0xe]  ;;  %v14610_v39 = vld [vmem:[#allocation2 + $0x10] sm:$0xf]  ;;  %v7024_v22 = vsel %vm11563_vm2, %v10127_v36, %v7023_v47  ;;  %v7025_v14 = vrot.slane %v7023_v47, 4  ;;  %v7026_v25 = vrot.slane %v6515_v16, 5 }
 0x5de   : > { %7608 = vrot.lane.b32.xlu0 %v10238_v4, %s11438_s17  ;;  %v7030_v57 = vrot.slane %v14603_v15, 5  ;;  %v14616_v0 = vld [vmem:[#allocation2 + $0x14] sm:$0x1]  ;;  %v7033_v60 = vrot.slane %v6516_v37, 5  ;;  %v10104_v54 = vrot.slane %v6299_v24, 9  ;;  %v6365_v56 = vrot.slane %v14462_v41, 5 }
 0x5df   : > { %7384 = vrot.lane.b32.xlu1 %v10190_v8, %s11439_s30  ;;  %10964 = vmatmul.mubr.msk.bf16.gmra.mrb[80].mxu0 %vm3359_vm14, %v10269_v21  ;;  %v10089_v30 = vrot.slane %v5692_v2, 9  ;;  %v6300_v4 = vld [vmem:[#allocation2 + $0x18] sm:$0xe]  ;;  %v7027_v31 = vsel %vm11563_vm2, %v7025_v14, %v7026_v25  ;;  %v6368_v34 = vrot.slane %v5899_v3, 5  ;;  %v5764_v23 = vrot.slane %v14610_v39, 5  ;;  %v11185_v52 = vld [vmem:[%s16879_s10 + $0x30] sm:$0xff]  }
 0x5e0   : > { %10967 = vmatprep.mubr.msk.bf16.mxu0 %vm3359_vm14, %v10270_v62  ;;  %v7032_v17 = vrot.slane %v7030_v57, 4  ;;  %v5900_v53 = vld [vmem:[#allocation2 + $0x20] sm:$0x1]  ;;  %v10271_v8 = vcombine.low %v7024_v22, %v7027_v31  ;;  %v7031_v18 = vsel %vm11563_vm2, %v10128_v48, %v7030_v57  ;;  %v6366_v9 = vsel %vm11563_vm2, %v10104_v54, %v6365_v56  ;;  %v14629_v41 = vld [vmem:[#allocation2 + $0x1c] sm:$0xf] }
 0x5e1   : > { %v6367_v21 = vrot.slane %v6365_v56, 4  ;;  %v5693_v40 = vld [vmem:[#allocation2 + $0x18] sm:$0xe]  ;;  %v5766_v61 = vrot.slane %v5764_v23, 4  ;;  %v5767_v12 = vrot.slane %v14616_v0, 5  ;;  %v10105_v62 = vrot.slane %v6300_v4, 9 }
 0x5e2   : > { %7610 = vrot.lane.b32.xlu0 %v10239_v5, %s11438_s17  ;;  %v7034_v29 = vsel %vm11563_vm2, %v7032_v17, %v7033_v60  ;;  %v14634_v32 = vld [vmem:[#allocation2 + $0x20] sm:$0x1]  ;;  %v5765_v37 = vsel %vm11563_vm2, %v10089_v30, %v5764_v23  ;;  %v14642_v36 = vld [vmem:[#allocation2 + $0x88] sm:$0xf]  ;;  %v6917_v47 = vld [vmem:[#allocation2 + $0x84] sm:$0xe] }
 0x5e3   : > { %7386 = vrot.lane.b32.xlu1 %v10191_v1, %s11439_s30  ;;  %v10272_v5 = vcombine.low %v7031_v18, %v7034_v29  ;;  %v6369_v16 = vsel %vm11563_vm2, %v6367_v21, %v6368_v34  ;;  %v6372_v1 = vrot.slane %v14487_v42, 5  ;;  %v5768_v2 = vsel %vm11563_vm2, %v5766_v61, %v5767_v12  ;;  %v6497_v22 = vld [vmem:[#allocation2 + $0x94] sm:$0xf]  ;;  %v6918_v14 = vld [vmem:[#allocation2 + $0x90] sm:$0xe]  ;;  %v11165_v17 = vld [vmem:[%s16879_s10 + $0x20] sm:$0xff]  }
 0x5e4   : > { %v10216_v24 = vcombine.low %v6366_v9, %v6369_v16  ;;  %v10090_v48 = vrot.slane %v5693_v40, 9  ;;  %v5771_v3 = vrot.slane %v14629_v41, 5  ;;  %v10169_v25 = vcombine.low %v5765_v37, %v5768_v2  ;;  %v6517_v60 = vld [vmem:[#allocation2 + $0x8c] sm:$0x1]  ;;  %v6518_v54 = vld [vmem:[#allocation2 + $0x98] sm:$0x1]  ;;  %10724 = vmatpush3.bf16.msra.mxu1 %v11165_v17 }
 0x5e5   : > { %v6373_v57 = vsel %vm11563_vm2, %v10105_v62, %v6372_v1  ;;  %v6374_v46 = vrot.slane %v6372_v1, 4  ;;  %v6375_v42 = vrot.slane %v5900_v53, 5  ;;  %v5774_v30 = vrot.slane %v14634_v32, 5  ;;  %v6301_v18 = vld [vmem:[#allocation2 + $0x24] sm:$0xe] }
 0x5e6   : > { %7500 = vrot.lane.b32.xlu0 %v10216_v24, %s11434_s24  ;;  %v5773_v56 = vrot.slane %v5771_v3, 4  ;;  %v10129_v4 = vrot.slane %v6917_v47, 9  ;;  %v7037_v31 = vrot.slane %v14642_v36, 5  ;;  %v5772_v23 = vsel %vm11563_vm2, %v10090_v48, %v5771_v3  ;;  %v14663_v61 = vld [vmem:[#allocation2 + $0x28] sm:$0xf] }
 0x5e7   : > { %10968 = vmatmul.mubr.msk.bf16.gmra.mrb[84].mxu0 %vm3359_vm14, %v10271_v8  ;;  %7278 = vrot.lane.b32.xlu1 %v10169_v25, %s11438_s17  ;;  %v6376_v34 = vsel %vm11563_vm2, %v6374_v46, %v6375_v42  ;;  %v10130_v53 = vrot.slane %v6918_v14, 9  ;;  %v7044_v8 = vrot.slane %v6497_v22, 5  ;;  %v7040_v29 = vrot.slane %v6517_v60, 5  ;;  %v5694_v12 = vld [vmem:[#allocation2 + $0x24] sm:$0xe] }
 0x5e8   : > { %10971 = vmatprep.mubr.msk.bf16.mxu0 %vm3359_vm14, %v10272_v5  ;;  %v10217_v9 = vcombine.low %v6373_v57, %v6376_v34  ;;  %v5775_v21 = vsel %vm11563_vm2, %v5773_v56, %v5774_v30  ;;  %v7039_v40 = vrot.slane %v7037_v31, 4  ;;  %v7038_v5 = vsel %vm11563_vm2, %v10129_v4, %v7037_v31  ;;  %v5901_v1 = vld [vmem:[#allocation2 + $0x2c] sm:$0x1]  ;;  %v6302_v22 = vld [vmem:[#allocation2 + $0x30] sm:$0xe] }
 0x5e9   : > { %v10170_v62 = vcombine.low %v5772_v23, %v5775_v21  ;;  %v7046_v16 = vrot.slane %v7044_v8, 4  ;;  %v7047_v37 = vrot.slane %v6518_v54, 5  ;;  %v7045_v24 = vsel %vm11563_vm2, %v10130_v53, %v7044_v8  ;;  %v14673_v3 = vld [vmem:[#allocation2 + $0x2c] sm:$0x1]  ;;  %v14679_v42 = vld [vmem:[#allocation2 + $0x34] sm:$0xf] }
 0x5ea   : > { %7502 = vrot.lane.b32.xlu0 %v10217_v9, %s11434_s24  ;;  %v7041_v47 = vsel %vm11563_vm2, %v7039_v40, %v7040_v29  ;;  %v10106_v2 = vrot.slane %v6301_v18, 9  ;;  %v6379_v48 = vrot.slane %v14514_v49, 5  ;;  %v10091_v57 = vrot.slane %v5694_v12, 9  ;;  %v5695_v60 = vld [vmem:[#allocation2 + $0x30] sm:$0xe] }
 0x5eb   : > { %7280 = vrot.lane.b32.xlu1 %v10170_v62, %s11438_s17  ;;  %v10273_v14 = vcombine.low %v7038_v5, %v7041_v47  ;;  %v7048_v25 = vsel %vm11563_vm2, %v7046_v16, %v7047_v37  ;;  %v5778_v46 = vrot.slane %v14663_v61, 5  ;;  %v6382_v30 = vrot.slane %v5901_v1, 5  ;;  %v5902_v4 = vld [vmem:[#allocation2 + $0x38] sm:$0x1]  ;;  %v6499_v8 = vld [vmem:[#allocation2 + $0xa0] sm:$0xf] }
 0x5ec   : > { %v10274_v54 = vcombine.low %v7045_v24, %v7048_v25  ;;  %v6380_v56 = vsel %vm11563_vm2, %v10106_v2, %v6379_v48  ;;  %v6381_v49 = vrot.slane %v6379_v48, 4  ;;  %v14683_v31 = vld [vmem:[#allocation2 + $0x38] sm:$0x1]  ;;  %v5781_v34 = vrot.slane %v14673_v3, 5  ;;  %v6519_v29 = vld [vmem:[#allocation2 + $0xa4] sm:$0x1] }
 0x5ed   : > { %v5780_v17 = vrot.slane %v5778_v46, 4  ;;  %v10107_v23 = vrot.slane %v6302_v22, 9  ;;  %v6386_v53 = vrot.slane %v14531_v58, 5  ;;  %v5779_v9 = vsel %vm11563_vm2, %v10091_v57, %v5778_v46  ;;  %v6919_v12 = vld [vmem:[#allocation2 + $0x9c] sm:$0xe] }
 0x5ee   : > { %v6383_v18 = vsel %vm11563_vm2, %v6381_v49, %v6382_v30  ;;  %v10092_v21 = vrot.slane %v5695_v60, 9  ;;  %v5785_v40 = vrot.slane %v14679_v42, 5  ;;  %v6389_v58 = vrot.slane %v5902_v4, 5  ;;  %v6501_v37 = vld [vmem:[#allocation2 + $0xac] sm:$0xf] }
 0x5ef   : > { %10972 = vmatmul.mubr.msk.bf16.gmra.mrb[88].mxu0 %vm3359_vm14, %v10273_v14  ;;  %v10218_v62 = vcombine.low %v6380_v56, %v6383_v18  ;;  %v5782_v5 = vsel %vm11563_vm2, %v5780_v17, %v5781_v34  ;;  %v6388_v16 = vrot.slane %v6386_v53, 4  ;;  %v6920_v1 = vld [vmem:[#allocation2 + $0xa8] sm:$0xe]  ;;  %v6387_v24 = vsel %vm11563_vm2, %v10107_v23, %v6386_v53  ;;  %v6520_v22 = vld [vmem:[#allocation2 + $0xb0] sm:$0x1] }
 0x5f0   : > { %10975 = vmatprep.mubr.msk.bf16.mxu0 %vm3359_vm14, %v10274_v54  ;;  %v10171_v47 = vcombine.low %v5779_v9, %v5782_v5  ;;  %v5787_v2 = vrot.slane %v5785_v40, 4  ;;  %v5788_v48 = vrot.slane %v14683_v31, 5  ;;  %v5786_v25 = vsel %vm11563_vm2, %v10092_v21, %v5785_v40  ;;  %v6303_v60 = vld [vmem:[#allocation2 + $0x3c] sm:$0xe]  ;;  %v14704_v54 = vld [vmem:[#allocation2 + $0x40] sm:$0xf] }
 0x5f1   : > { %7504 = vrot.lane.b32.xlu0 %v10218_v62, %s11434_s24  ;;  %v6390_v14 = vsel %vm11563_vm2, %v6388_v16, %v6389_v58  ;;  %v10131_v57 = vrot.slane %v6919_v12, 9  ;;  %v7051_v46 = vrot.slane %v6499_v8, 5  ;;  %v7054_v49 = vrot.slane %v6519_v29, 5  ;;  %v5696_v17 = vld [vmem:[#allocation2 + $0x3c] sm:$0xe]  ;;  %v11174_v29 = vld [vmem:[%s16879_s10 + $0x68] sm:$0xff]  }
 0x5f2   : > { %7282 = vrot.lane.b32.xlu1 %v10171_v47, %s11438_s17  ;;  %v5789_v56 = vsel %vm11563_vm2, %v5787_v2, %v5788_v48  ;;  %v10132_v30 = vrot.slane %v6920_v1, 9  ;;  %v7058_v4 = vrot.slane %v6501_v37, 5  ;;  %v10219_v34 = vcombine.low %v6387_v24, %v6390_v14  ;;  %v5903_v9 = vld [vmem:[#allocation2 + $0x44] sm:$0x1]  ;;  %v6304_v1 = vld [vmem:[#allocation2 + $0x48] sm:$0xe]  ;;  %10725 = vmatprep.subr.bf16.mxu1 %v11174_v29 }
 0x5f3   : > { %v10172_v23 = vcombine.low %v5786_v25, %v5789_v56  ;;  %v7052_v53 = vsel %vm11563_vm2, %v10131_v57, %v7051_v46  ;;  %v7053_v18 = vrot.slane %v7051_v46, 4  ;;  %v14711_v8 = vld [vmem:[#allocation2 + $0x44] sm:$0x1]  ;;  %v7061_v40 = vrot.slane %v6520_v22, 5  ;;  %v14729_v22 = vld [vmem:[#allocation2 + $0x4c] sm:$0xf] }
 0x5f4   : > { %v7060_v21 = vrot.slane %v7058_v4, 4  ;;  %v10108_v12 = vrot.slane %v6303_v60, 9  ;;  %v6393_v62 = vrot.slane %v14546_v55, 5  ;;  %v7059_v16 = vsel %vm11563_vm2, %v10132_v30, %v7058_v4  ;;  %v11175_v55 = vld [vmem:[%s16879_s10 + $0x28] sm:$0xff]   ;;  %v5904_v56 = vld [vmem:[#allocation2 + $0x50] sm:$0x1] }
 0x5f5   : > { %7506 = vrot.lane.b32.xlu0 %v10219_v34, %s11434_s24  ;;  %v7055_v5 = vsel %vm11563_vm2, %v7053_v18, %v7054_v49  ;;  %v10093_v58 = vrot.slane %v5696_v17, 9  ;;  %v5792_v37 = vrot.slane %v14704_v54, 5  ;;  %v6396_v48 = vrot.slane %v5903_v9, 5  ;;  %v5697_v14 = vld [vmem:[#allocation2 + $0x48] sm:$0xe]  ;;  %10726 = vmatpush3.bf16.msra.mxu1 %v11175_v55 }
 0x5f6   : > { %7284 = vrot.lane.b32.xlu1 %v10172_v23, %s11438_s17  ;;  %v10275_v47 = vcombine.low %v7052_v53, %v7055_v5  ;;  %v7062_v24 = vsel %vm11563_vm2, %v7060_v21, %v7061_v40  ;;  %v6395_v2 = vrot.slane %v6393_v62, 4  ;;  %v6394_v57 = vsel %vm11563_vm2, %v10108_v12, %v6393_v62  ;;  %v14734_v49 = vld [vmem:[#allocation2 + $0x50] sm:$0x1]  ;;  %v6503_v23 = vld [vmem:[#allocation2 + $0xb8] sm:$0xf] }
 0x5f7   : > { %v10276_v25 = vcombine.low %v7059_v16, %v7062_v24  ;;  %v5794_v46 = vrot.slane %v5792_v37, 4  ;;  %v5795_v60 = vrot.slane %v14711_v8, 5  ;;  %v5793_v4 = vsel %vm11563_vm2, %v10093_v58, %v5792_v37  ;;  %v6921_v53 = vld [vmem:[#allocation2 + $0xb4] sm:$0xe]  ;;  %v6505_v12 = vld [vmem:[#allocation2 + $0xc4] sm:$0xf] }
 0x5f8   : > { %10976 = vmatmul.mubr.msk.bf16.gmra.mrb[92].mxu0 %vm3359_vm14, %v10275_v47  ;;  %v6397_v30 = vsel %vm11563_vm2, %v6395_v2, %v6396_v48  ;;  %v10109_v17 = vrot.slane %v6304_v1, 9  ;;  %v6400_v34 = vrot.slane %v14562_v35, 5  ;;  %v10094_v21 = vrot.slane %v5697_v14, 9  ;;  %v6922_v62 = vld [vmem:[#allocation2 + $0xc0] sm:$0xe] }
 0x5f9   : > { %10979 = vmatprep.mubr.msk.bf16.mxu0 %vm3359_vm14, %v10276_v25  ;;  %v10220_v18 = vcombine.low %v6394_v57, %v6397_v30  ;;  %v5796_v9 = vsel %vm11563_vm2, %v5794_v46, %v5795_v60  ;;  %v5799_v40 = vrot.slane %v14729_v22, 5  ;;  %v6403_v58 = vrot.slane %v5904_v56, 5  ;;  %v6521_v35 = vld [vmem:[#allocation2 + $0xbc] sm:$0x1]  ;;  %v6522_v24 = vld [vmem:[#allocation2 + $0xc8] sm:$0x1] }
 0x5fa   : > { %v10173_v29 = vcombine.low %v5793_v4, %v5796_v9  ;;  %v6401_v5 = vsel %vm11563_vm2, %v10109_v17, %v6400_v34  ;;  %v6402_v16 = vrot.slane %v6400_v34, 4  ;;  %v5802_v1 = vrot.slane %v14734_v49, 5  ;;  %v6305_v57 = vld [vmem:[#allocation2 + $0x54] sm:$0xe]  ;;  %v14757_v4 = vld [vmem:[#allocation2 + $0x58] sm:$0xf] }
 0x5fb   : > { %7508 = vrot.lane.b32.xlu0 %v10220_v18, %s11434_s24  ;;  %v5801_v37 = vrot.slane %v5799_v40, 4  ;;  %v10133_v55 = vrot.slane %v6921_v53, 9  ;;  %v7065_v47 = vrot.slane %v6503_v23, 5  ;;  %v5800_v48 = vsel %vm11563_vm2, %v10094_v21, %v5799_v40  ;;  %v5698_v17 = vld [vmem:[#allocation2 + $0x54] sm:$0xe] }
 0x5fc   : > { %7286 = vrot.lane.b32.xlu1 %v10173_v29, %s11438_s17  ;;  %v6404_v2 = vsel %vm11563_vm2, %v6402_v16, %v6403_v58  ;;  %v10134_v14 = vrot.slane %v6922_v62, 9  ;;  %v7072_v25 = vrot.slane %v6505_v12, 5  ;;  %v7068_v30 = vrot.slane %v6521_v35, 5  ;;  %v5905_v9 = vld [vmem:[#allocation2 + $0x5c] sm:$0x1] }
 0x5fd   : > { %v10221_v46 = vcombine.low %v6401_v5, %v6404_v2  ;;  %v5803_v60 = vsel %vm11563_vm2, %v5801_v37, %v5802_v1  ;;  %v7067_v56 = vrot.slane %v7065_v47, 4  ;;  %v7066_v23 = vsel %vm11563_vm2, %v10133_v55, %v7065_v47  ;;  %v14767_v29 = vld [vmem:[#allocation2 + $0x5c] sm:$0x1]  ;;  %v6306_v5 = vld [vmem:[#allocation2 + $0x60] sm:$0xe] }
 0x5fe   : > { %v10174_v34 = vcombine.low %v5800_v48, %v5803_v60  ;;  %v7074_v53 = vrot.slane %v7072_v25, 4  ;;  %v7075_v18 = vrot.slane %v6522_v24, 5  ;;  %v7073_v40 = vsel %vm11563_vm2, %v10134_v14, %v7072_v25  ;;  %v14773_v1 = vld [vmem:[#allocation2 + $0x64] sm:$0xf]  ;;  %v5699_v55 = vld [vmem:[#allocation2 + $0x60] sm:$0xe] }
 0x5ff   : > { %7510 = vrot.lane.b32.xlu0 %v10221_v46, %s11434_s24  ;;  %v7069_v21 = vsel %vm11563_vm2, %v7067_v56, %v7068_v30  ;;  %v10110_v12 = vrot.slane %v6305_v57, 9  ;;  %v6407_v62 = vrot.slane %v14575_v6, 5  ;;  %v10095_v35 = vrot.slane %v5698_v17, 9  ;;  %v5906_v48 = vld [vmem:[#allocation2 + $0x68] sm:$0x1] }
 0x600   : > { %7288 = vrot.lane.b32.xlu1 %v10174_v34, %s11438_s17  ;;  %v10277_v16 = vcombine.low %v7066_v23, %v7069_v21  ;;  %v7076_v58 = vsel %vm11563_vm2, %v7074_v53, %v7075_v18  ;;  %v5806_v37 = vrot.slane %v14757_v4, 5  ;;  %v6410_v2 = vrot.slane %v5905_v9, 5  ;;  %v14780_v60 = vld [vmem:[#allocation2 + $0x68] sm:$0x1]  ;;  %v14788_v23 = vld [vmem:[#allocation2 + $0x70] sm:$0xf] }
 0x601   : > { %v10278_v47 = vcombine.low %v7073_v40, %v7076_v58  ;;  %v6408_v24 = vsel %vm11563_vm2, %v10110_v12, %v6407_v62  ;;  %v6409_v6 = vrot.slane %v6407_v62, 4  ;;  %v5809_v25 = vrot.slane %v14767_v29, 5  ;;  %v6307_v53 = vld [vmem:[#allocation2 + $0x6c] sm:$0xe]  ;;  %v5907_v40 = vld [vmem:[#allocation2 + $0x74] sm:$0x1] }
 0x602   : > { %10980 = vmatmul.mubr.msk.bf16.gmra.mrb[96].mxu0 %vm3359_vm14, %v10277_v16  ;;  %v5808_v14 = vrot.slane %v5806_v37, 4  ;;  %v10111_v57 = vrot.slane %v6306_v5, 9  ;;  %v6414_v46 = vrot.slane %v14594_v10, 5  ;;  %v5807_v30 = vsel %vm11563_vm2, %v10095_v35, %v5806_v37  ;;  %v5261_v12 = vld [vmem:[#allocation2 + $0xc] sm:$0xf] }
 0x603   : > { %10983 = vmatprep.mubr.msk.bf16.mxu0 %vm3359_vm14, %v10278_v47  ;;  %v6411_v56 = vsel %vm11563_vm2, %v6409_v6, %v6410_v2  ;;  %v10096_v17 = vrot.slane %v5699_v55, 9  ;;  %v5813_v34 = vrot.slane %v14773_v1, 5  ;;  %v6417_v21 = vrot.slane %v5906_v48, 5 }
 0x604   : > { %v10222_v18 = vcombine.low %v6408_v24, %v6411_v56  ;;  %v5810_v10 = vsel %vm11563_vm2, %v5808_v14, %v5809_v25  ;;  %v6416_v9 = vrot.slane %v6414_v46, 4  ;;  %v6415_v5 = vsel %vm11563_vm2, %v10111_v57, %v6414_v46 }
 0x605   : > { %v10175_v62 = vcombine.low %v5807_v30, %v5810_v10  ;;  %v5815_v16 = vrot.slane %v5813_v34, 4  ;;  %v5816_v58 = vrot.slane %v14780_v60, 5  ;;  %v5814_v37 = vsel %vm11563_vm2, %v10096_v17, %v5813_v34 }
 0x606   : > { %7512 = vrot.lane.b32.xlu0 %v10222_v18, %s11434_s24  ;;  %v6418_v35 = vsel %vm11563_vm2, %v6416_v9, %v6417_v21  ;;  %v10112_v55 = vrot.slane %v6307_v53, 9  ;;  %v6421_v47 = vrot.slane %v14788_v23, 5  ;;  %v6424_v6 = vrot.slane %v5907_v40, 5 }
 0x607   : > { %7290 = vrot.lane.b32.xlu1 %v10175_v62, %s11438_s17  ;;  %v5817_v24 = vsel %vm11563_vm2, %v5815_v16, %v5816_v58  ;;  %v5332_v2 = vshrl.u32 %v5261_v12, 16  ;;  %v5335_v48 = vshll.u32 %v5261_v12, 16  ;;  %v10223_v14 = vcombine.low %v6415_v5, %v6418_v35 }
 0x608   : > { %v10176_v25 = vcombine.low %v5814_v37, %v5817_v24  ;;  %v6423_v57 = vrot.slane %v6421_v47, 4  ;;  %v5341_v46 = vshll.u32 %v14610_v39, 16  ;;  %v6422_v56 = vsel %vm11563_vm2, %v10112_v55, %v6421_v47  ;;  %v11184_v55 = vld [vmem:[%s16879_s10 + $0x70] sm:$0xff]  }
 0x609   : > { %v5334_v30 = vrot.slane %v5332_v2, 4  ;;  %v5337_v17 = vrot.slane %v5335_v48, 5  ;;  %v5345_v34 = vshrl.u32 %v14610_v39, 16  ;;  %v6531_v10 = vor.u32 %v14581_v20, %v14579_v13  ;;  %v5883_v2 = vld [vmem:[#allocation2 + $0x6c] sm:$0xf]  ;;  %10727 = vmatprep.subr.bf16.mxu1 %v11184_v55 }
 0x60a   : > { %7514 = vrot.lane.b32.xlu0 %v10223_v14, %s11434_s24  ;;  %v6425_v53 = vsel %vm11563_vm2, %v6423_v57, %v6424_v6  ;;  %v5343_v18 = vrot.slane %v5341_v46, 5  ;;  %v6534_v9 = vshll.u32 %v14460_v11, 16  ;;  %v5351_v62 = vshll.u32 %v14616_v0, 16  ;;  %v11152_v48 = vld [vmem:[%s16870_s1 + $0x60] ss:$8 sps:$4 sm:$0xff]   ;;  %10728 = vmatpush3.bf16.msra.mxu1 %v11185_v52 }
 0x60b   : > { %7292 = vrot.lane.b32.xlu1 %v10176_v25, %s11438_s17  ;;  %v10224_v21 = vcombine.low %v6422_v56, %v6425_v53  ;;  %v5338_v40 = vor.u32 %v5337_v17, %v5334_v30  ;;  %v5347_v12 = vrot.slane %v5345_v34, 4  ;;  %v6532_v5 = vrot.slane %v6531_v10, 4  ;;  %v6308_v52 = vld [vmem:[#allocation2 + $0x78] sm:$0xe] }
 0x60c   : > { %v6536_v39 = vrot.slane %v6534_v9, 5  ;;  %v6540_v16 = vrot.slane %v6538_v27, 4  ;;  %v6544_v58 = vshll.u32 %v14497_v33, 16  ;;  %v14821_v35 = vrot.slane %v6576_v44, 5  ;;  %v5263_v27 = vld [vmem:[#allocation2 + $0x18] sm:$0xf] }
 0x60d   : > { %v6597_v13 = vshrl.u32 %v14521_v19, 16  ;;  %v5339_v20 = vrot.slane %v5338_v40, 4  ;;  %v5348_v37 = vor.u32 %v5347_v12, %v5343_v18  ;;  %v6600_v0 = vshll.u32 %v14521_v19, 16  ;;  %v11150_v33 = vld [vmem:[%s16870_s1 + $0x64] ss:$8 sps:$4 sm:$0xff]  }
 0x60e   : > { %7516 = vrot.lane.b32.xlu0 %v10224_v21, %s11434_s24  ;;  %v6541_v11 = vor.u32 %v6540_v16, %v6536_v39  ;;  %v5353_v6 = vrot.slane %v5351_v62, 5  ;;  %v6621_v14 = vshrl.u32 %v14542_v51, 16  ;;  %v6537_v25 = vsel %vm11607_vm5, %v6532_v5, %v6536_v39  ;;  %3937 = vmatprep.mubr.bf16.mxu1 %v11150_v33  ;;  %v14850_v21 = vld [vmem:[#allocation2 + $0x78] sm:$0xf]  ;;  %v14852_v40 = vld [vmem:[#allocation2 + $0x70] sm:$0xf] }
 0x60f   : > { %v5344_v47 = vsel %vm11607_vm5, %v5339_v20, %v5343_v18  ;;  %v5349_v24 = vrot.slane %v5348_v37, 4  ;;  %v6546_v46 = vrot.slane %v6544_v58, 5  ;;  %v5356_v30 = vshrl.u32 %v5263_v27, 16  ;;  %3938 = vmatmul.mubr.bf16.gmra.mrb[24].mxu1 %v11152_v48  ;;  %v14854_v16 = vld [vmem:[#allocation2 + $0x74] sm:$0x1] }
 0x610   : > { %v6542_v57 = vrot.slane %v6541_v11, 4  ;;  %v5359_v17 = vshll.u32 %v5263_v27, 16  ;;  %v5365_v34 = vshll.u32 %v14629_v41, 16  ;;  %v6624_v53 = vshll.u32 %v14542_v51, 16  ;;  %v5700_v58 = vld [vmem:[#allocation2 + $0x6c] sm:$0xe] }
 0x611   : > { %v5354_v56 = vsel %vm11607_vm5, %v5349_v24, %v5353_v6  ;;  %v10192_v9 = vcombine.low %v5883_v2, %v14788_v23  ;;  %v5358_v62 = vrot.slane %v5356_v30, 4  ;;  %v5369_v20 = vshrl.u32 %v14629_v41, 16  ;;  %v11156_v11 = vld [vmem:[%s16870_s1 + $0x74] ss:$8 sps:$4 sm:$0xff]  }
 0x612   : > { %v10153_v18 = vcombine.low %v5344_v47, %v5354_v56  ;;  %v6547_v10 = vsel %vm11607_vm5, %v6542_v57, %v6546_v46  ;;  %v5361_v5 = vrot.slane %v5359_v17, 5  ;;  %v5367_v39 = vrot.slane %v5365_v34, 5  ;;  %v14874_v2 = vld [vmem:[#allocation2 + $0x7c] sm:$0xf]  ;;  %3945 = vmatprep.mubr.bf16.mxu1 %v11156_v11  ;;  %v5908_v56 = vld [vmem:[#allocation2 + $0x80] sm:$0x1] }
 0x613   : > { %v10248_v12 = vcombine.low %v6537_v25, %v6547_v10  ;;  %v5375_v37 = vshll.u32 %v14634_v32, 16  ;;  %v6555_v23 = vor.u32 %v14598_v43, %v14596_v26  ;;  %v6558_v55 = vshll.u32 %v14480_v7, 16  ;;  %v11158_v26 = vld [vmem:[%s16870_s1 + $0x70] ss:$8 sps:$4 sm:$0xff]  }
 0x614   : > { %7198 = vrot.lane.b32.xlu1 %v10153_v18, %s11434_s24  ;;  %v10240_v27 = vcombine.low %v14850_v21, %v14603_v15  ;;  %v5362_v33 = vor.u32 %v5361_v5, %v5358_v62  ;;  %v6564_v41 = vrot.slane %v6562_v38, 4  ;;  %v6568_v32 = vshll.u32 %v14492_v63, 16  ;;  %v5265_v38 = vld [vmem:[#allocation2 + $0x24] sm:$0xf] }
 0x615   : > { %7676 = vrot.lane.b32.xlu0 %v10248_v12, %s11439_s30  ;;  %v5371_v43 = vrot.slane %v5369_v20, 4  ;;  %v6556_v47 = vrot.slane %v6555_v23, 4  ;;  %v6560_v24 = vrot.slane %v6558_v55, 5  ;;  %v10097_v6 = vrot.slane %v5700_v58, 9 }
 0x616   : > { %v5363_v48 = vrot.slane %v5362_v33, 4  ;;  %v5377_v15 = vrot.slane %v5375_v37, 5  ;;  %v6570_v25 = vrot.slane %v6568_v32, 5  ;;  %v5820_v7 = vrot.slane %v14852_v40, 5 }
 0x617   : > { %v5372_v63 = vor.u32 %v5371_v43, %v5367_v39  ;;  %v6565_v57 = vor.u32 %v6564_v41, %v6560_v24  ;;  %v5823_v46 = vrot.slane %v14854_v16, 5  ;;  %v10113_v30 = vrot.slane %v6308_v52, 9  ;;  %3946 = vmatmul.mubr.bf16.gmra.mrb[28].mxu1 %v11158_v26  ;;  %v11162_v43 = vld [vmem:[%s16870_s1 + $0x80] ss:$8 sps:$4 sm:$0xff]  }
 0x618   : > { %7388 = vrot.lane.b32.xlu1 %v10192_v9, %s11439_s30  ;;  %v5368_v17 = vsel %vm11607_vm5, %v5363_v48, %v5367_v39  ;;  %v6561_v34 = vsel %vm11607_vm5, %v6556_v47, %v6560_v24  ;;  %v5822_v18 = vrot.slane %v5820_v7, 4  ;;  %v6428_v10 = vrot.slane %v14874_v2, 5  ;;  %v11160_v9 = vld [vmem:[%s16870_s1 + $0x84] ss:$8 sps:$4 sm:$0xff]  }
 0x619   : > { %7612 = vrot.lane.b32.xlu0 %v10240_v27, %s11438_s17  ;;  %v5373_v12 = vrot.slane %v5372_v63, 4  ;;  %v6566_v62 = vrot.slane %v6565_v57, 4  ;;  %v5821_v5 = vsel %vm11563_vm2, %v10097_v6, %v5820_v7  ;;  %v5380_v58 = vshrl.u32 %v5265_v38, 16  ;;  %3953 = vmatprep.mubr.bf16.mxu1 %v11160_v9 }
 0x61a   : > { %v5824_v39 = vsel %vm11563_vm2, %v5822_v18, %v5823_v46  ;;  %v6430_v20 = vrot.slane %v6428_v10, 4  ;;  %v6431_v37 = vrot.slane %v5908_v56, 5  ;;  %v5383_v23 = vshll.u32 %v5265_v38, 16  ;;  %v11313_v38 = vld [vmem:[#allocation2 + $0x34] sm:$0xf] }
 0x61b   : > { %v5378_v55 = vsel %vm11607_vm5, %v5373_v12, %v5377_v15  ;;  %v6571_v11 = vsel %vm11607_vm5, %v6566_v62, %v6570_v25  ;;  %v6429_v27 = vsel %vm11563_vm2, %v10113_v30, %v6428_v10  ;;  %v5382_v33 = vrot.slane %v5380_v58, 4  ;;  %v11166_v15 = vld [vmem:[%s16870_s1 + $0x94] ss:$8 sps:$4 sm:$0xff]   ;;  %v5267_v58 = vld [vmem:[#allocation2 + $0x30] sm:$0xf] }
 0x61c   : > { %v10154_v41 = vcombine.low %v5368_v17, %v5378_v55  ;;  %v10249_v32 = vcombine.low %v6561_v34, %v6571_v11  ;;  %v6432_v52 = vsel %vm11563_vm2, %v6430_v20, %v6431_v37  ;;  %v5385_v26 = vrot.slane %v5383_v23, 5  ;;  %v11168_v55 = vld [vmem:[%s16870_s1 + $0x90] ss:$8 sps:$4 sm:$0xff]  }
 0x61d   : > { %v10177_v47 = vcombine.low %v5821_v5, %v5824_v39  ;;  %v10225_v24 = vcombine.low %v6429_v27, %v6432_v52  ;;  %v5389_v6 = vshll.u32 %v14663_v61, 16  ;;  %v5393_v48 = vshrl.u32 %v14663_v61, 16  ;;  %v11314_v61 = vld [vmem:[#allocation2 + $0x38] sm:$0x1] }
 0x61e   : > { %7200 = vrot.lane.b32.xlu1 %v10154_v41, %s11434_s24  ;;  %7678 = vrot.lane.b32.xlu0 %v10249_v32, %s11439_s30  ;;  %v5386_v25 = vor.u32 %v5385_v26, %v5382_v33  ;;  %v6579_v7 = vor.u32 %v14821_v35, %v14607_v59  ;;  %v6582_v63 = vshll.u32 %v11313_v38, 16  ;;  %v6586_v57 = vshrl.u32 %v11313_v38, 16  ;;  %v11170_v33 = vld [vmem:[%s16870_s1 + $0xa4] ss:$8 sps:$4 sm:$0xff]  }
 0x61f   : > { %v5391_v46 = vrot.slane %v5389_v6, 5  ;;  %v5395_v56 = vrot.slane %v5393_v48, 4  ;;  %v5399_v30 = vshll.u32 %v14673_v3, 16  ;;  %v6592_v17 = vshll.u32 %v11314_v61, 16  ;;  %3954 = vmatmul.mubr.bf16.gmra.mrb[32].mxu1 %v11162_v43  ;;  %v14945_v26 = vld [vmem:[#allocation2 + $0x84] sm:$0xf] }
 0x620   : > { %v5387_v34 = vrot.slane %v5386_v25, 4  ;;  %v6580_v18 = vrot.slane %v6579_v7, 4  ;;  %v6584_v10 = vrot.slane %v6582_v63, 5  ;;  %v6588_v9 = vrot.slane %v6586_v57, 4  ;;  %3961 = vmatprep.mubr.bf16.mxu1 %v11166_v15  ;;  %v5701_v25 = vld [vmem:[#allocation2 + $0x78] sm:$0xe] }
 0x621   : > { %v6610_v12 = vshrl.u32 %v14523_v28, 16  ;;  %v5396_v62 = vor.u32 %v5395_v56, %v5391_v46  ;;  %v6599_v59 = vrot.slane %v6597_v13, 4  ;;  %v6602_v35 = vrot.slane %v6600_v0, 5  ;;  %v5885_v0 = vld [vmem:[#allocation2 + $0x78] sm:$0xf] }
 0x622   : > { %v14920_v3 = vrot.slane %v6621_v14, 4  ;;  %7294 = vrot.lane.b32.xlu1 %v10177_v47, %s11438_s17  ;;  %7518 = vrot.lane.b32.xlu0 %v10225_v24, %s11434_s24  ;;  %v6589_v5 = vor.u32 %v6588_v9, %v6584_v10  ;;  %v14926_v28 = vrot.slane %v6624_v53, 5  ;;  %v5392_v13 = vsel %vm11607_vm5, %v5387_v34, %v5391_v46  ;;  %v14948_v47 = vld [vmem:[#allocation2 + $0x7c] sm:$0xf]  ;;  %v11315_v57 = vld [vmem:[#allocation2 + $0x40] sm:$0xf] }
 0x623   : > { %v5397_v39 = vrot.slane %v5396_v62, 4  ;;  %v5401_v19 = vrot.slane %v5399_v30, 5  ;;  %v6645_v20 = vshrl.u32 %v14554_v50, 16  ;;  %v6585_v14 = vsel %vm11607_vm5, %v6580_v18, %v6584_v10  ;;  %v11316_v61 = vld [vmem:[#allocation2 + $0x44] sm:$0x1]  ;;  %v14959_v10 = vpop.permute.xlu1 %7196 }
 0x624   : > { %v6590_v37 = vrot.slane %v6589_v5, 4  ;;  %v6594_v23 = vrot.slane %v6592_v17, 5  ;;  %v5404_v53 = vshrl.u32 %v5267_v58, 16  ;;  %v5407_v11 = vshll.u32 %v5267_v58, 16  ;;  %v14957_v34 = vld [vmem:[#allocation2 + $0x88] sm:$0xf] }
 0x625   : > { %v5402_v51 = vsel %vm11607_vm5, %v5397_v39, %v5401_v19  ;;  %v5413_v27 = vshll.u32 %v14679_v42, 16  ;;  %v10193_v52 = vcombine.low %v5885_v0, %v14874_v2  ;;  %v5417_v43 = vshrl.u32 %v14679_v42, 16  ;;  %v14952_v2 = vld [vmem:[#allocation2 + $0x80] sm:$0x1]  ;;  %v6309_v18 = vld [vmem:[#allocation2 + $0x84] sm:$0xe] }
 0x626   : > { %v10155_v41 = vcombine.low %v5392_v13, %v5402_v51  ;;  %v6595_v32 = vsel %vm11607_vm5, %v6590_v37, %v6594_v23  ;;  %v5406_v6 = vrot.slane %v5404_v53, 4  ;;  %v5409_v48 = vrot.slane %v5407_v11, 5  ;;  %v5269_v39 = vld [vmem:[#allocation2 + $0x3c] sm:$0xf]  ;;  %v11172_v37 = vld [vmem:[%s16870_s1 + $0xa0] ss:$8 sps:$4 sm:$0xff]  }
 0x627   : > { %v10250_v24 = vcombine.low %v6585_v14, %v6595_v32  ;;  %v5415_v15 = vrot.slane %v5413_v27, 5  ;;  %v5419_v7 = vrot.slane %v5417_v43, 4  ;;  %v5423_v38 = vshll.u32 %v14683_v31, 16  ;;  %3962 = vmatmul.mubr.bf16.gmra.mrb[36].mxu1 %v11168_v55  ;;  %v11176_v11 = vld [vmem:[%s16870_s1 + $0xb4] ss:$8 sps:$4 sm:$0xff]  }
 0x628   : > { %7202 = vrot.lane.b32.xlu1 %v10155_v41, %s11434_s24  ;;  %v6603_v63 = vor.u32 %v6602_v35, %v6599_v59  ;;  %v6606_v46 = vshll.u32 %v11315_v57, 16  ;;  %v10241_v42 = vcombine.low %v14945_v26, %v14642_v36  ;;  %v5410_v56 = vor.u32 %v5409_v48, %v5406_v6  ;;  %3969 = vmatprep.mubr.bf16.mxu1 %v11170_v33  ;;  %v5909_v35 = vld [vmem:[#allocation2 + $0x8c] sm:$0x1]  ;;  %v14982_v48 = vpop.permute.xlu1 %7276 }
 0x629   : > { %7680 = vrot.lane.b32.xlu0 %v10250_v24, %s11439_s30  ;;  %v6612_v30 = vrot.slane %v6610_v12, 4  ;;  %v6616_v17 = vshll.u32 %v11316_v61, 16  ;;  %v5420_v31 = vor.u32 %v5419_v7, %v5415_v15  ;;  %v10098_v59 = vrot.slane %v5701_v25, 9  ;;  %v11194_v25 = vld [vmem:[%s16879_s10 + $0x78] sm:$0xff]  }
 0x62a   : > { %v6604_v9 = vrot.slane %v6603_v63, 4  ;;  %v6608_v62 = vrot.slane %v6606_v46, 5  ;;  %v5411_v5 = vrot.slane %v5410_v56, 4  ;;  %v5425_v58 = vrot.slane %v5423_v38, 5  ;;  %10729 = vmatprep.subr.bf16.mxu1 %v11194_v25 }
 0x62b   : > { %v6618_v13 = vrot.slane %v6616_v17, 5  ;;  %v5827_v36 = vrot.slane %v14948_v47, 5  ;;  %v5421_v12 = vrot.slane %v5420_v31, 4  ;;  %v5830_v0 = vrot.slane %v14952_v2, 5 }
 0x62c   : > { %7390 = vrot.lane.b32.xlu1 %v10193_v52, %s11439_s30  ;;  %v6613_v19 = vor.u32 %v6612_v30, %v6608_v62  ;;  %v10114_v14 = vrot.slane %v6309_v18, 9  ;;  %v5416_v23 = vsel %vm11607_vm5, %v5411_v5, %v5415_v15  ;;  %v6609_v55 = vsel %vm11607_vm5, %v6604_v9, %v6608_v62 }
 0x62d   : > { %7614 = vrot.lane.b32.xlu0 %v10241_v42, %s11438_s17  ;;  %v5829_v51 = vrot.slane %v5827_v36, 4  ;;  %v6435_v53 = vrot.slane %v14957_v34, 5  ;;  %v5426_v27 = vsel %vm11607_vm5, %v5421_v12, %v5425_v58  ;;  %v5828_v41 = vsel %vm11563_vm2, %v10098_v59, %v5827_v36  ;;  %v11317_v59 = vld [vmem:[#allocation2 + $0x4c] sm:$0xf]  ;;  %v11319_v12 = vld [vmem:[#allocation2 + $0x50] sm:$0x1] }
 0x62e   : > { %v6614_v33 = vrot.slane %v6613_v19, 4  ;;  %v5428_v32 = vshrl.u32 %v5269_v39, 16  ;;  %v10156_v52 = vcombine.low %v5416_v23, %v5426_v27  ;;  %v6438_v6 = vrot.slane %v5909_v35, 5 }
 0x62f   : > { %v5831_v43 = vsel %vm11563_vm2, %v5829_v51, %v5830_v0  ;;  %v6437_v24 = vrot.slane %v6435_v53, 4  ;;  %v6436_v38 = vsel %vm11563_vm2, %v10114_v14, %v6435_v53  ;;  %v5431_v57 = vshll.u32 %v5269_v39, 16  ;;  %3970 = vmatmul.mubr.bf16.gmra.mrb[40].mxu1 %v11172_v37  ;;  %v11320_v51 = vld [vmem:[#allocation2 + $0x60] sm:$0xf] }
 0x630   : > { %v6619_v7 = vsel %vm11607_vm5, %v6614_v33, %v6618_v13  ;;  %v5430_v63 = vrot.slane %v5428_v32, 4  ;;  %7204 = vrot.lane.b32.xlu1 %v10156_v52, %s11434_s24  ;;  %v5437_v56 = vshll.u32 %v14704_v54, 16  ;;  %v5441_v30 = vshrl.u32 %v14704_v54, 16  ;;  %3977 = vmatprep.mubr.bf16.mxu1 %v11176_v11  ;;  %v11318_v13 = vld [vmem:[#allocation2 + $0x54] sm:$0xf] }
 0x631   : > { %v10251_v46 = vcombine.low %v6609_v55, %v6619_v7  ;;  %v6439_v42 = vsel %vm11563_vm2, %v6437_v24, %v6438_v6  ;;  %v10178_v61 = vcombine.low %v5828_v41, %v5831_v43  ;;  %v5433_v17 = vrot.slane %v5431_v57, 5  ;;  %v11180_v55 = vld [vmem:[%s16870_s1 + $0xc4] ss:$8 sps:$4 sm:$0xff]   ;;  %v5271_v33 = vld [vmem:[#allocation2 + $0x48] sm:$0xf] }
 0x632   : > { %v5447_v18 = vshll.u32 %v14711_v8, 16  ;;  %v6627_v31 = vor.u32 %v14926_v28, %v14920_v3  ;;  %v5439_v9 = vrot.slane %v5437_v56, 5  ;;  %v5443_v62 = vrot.slane %v5441_v30, 4  ;;  %v11178_v8 = vld [vmem:[%s16870_s1 + $0xb0] ss:$8 sps:$4 sm:$0xff]  }
 0x633   : > { %7682 = vrot.lane.b32.xlu0 %v10251_v46, %s11439_s30  ;;  %v6630_v35 = vshll.u32 %v11317_v59, 16  ;;  %v6634_v5 = vshrl.u32 %v11317_v59, 16  ;;  %v6648_v54 = vshll.u32 %v11318_v13, 16  ;;  %v10226_v36 = vcombine.low %v6436_v38, %v6439_v42  ;;  %v11195_v3 = vld [vmem:[%s16879_s10 + $0x38] sm:$0xff]  }
 0x634   : > { %v5434_v39 = vor.u32 %v5433_v17, %v5430_v63  ;;  %v6640_v19 = vshll.u32 %v11319_v12, 16  ;;  %7296 = vrot.lane.b32.xlu1 %v10178_v61, %s11438_s17  ;;  %v5444_v28 = vor.u32 %v5443_v62, %v5439_v9  ;;  %v6628_v0 = vrot.slane %v6627_v31, 4  ;;  %10730 = vmatpush3.bf16.msra.mxu1 %v11195_v3  ;;  %v11321_v41 = vld [vmem:[#allocation2 + $0x58] sm:$0xf]  ;;  %v5887_v61 = vld [vmem:[#allocation2 + $0x84] sm:$0xf] }
 0x635   : > { %v6632_v14 = vrot.slane %v6630_v35, 5  ;;  %v6636_v37 = vrot.slane %v6634_v5, 4  ;;  %v6669_v53 = vshrl.u32 %v11320_v51, 16  ;;  %v6672_v11 = vshll.u32 %v11320_v51, 16  ;;  %v15033_v31 = vld [vmem:[#allocation2 + $0x90] sm:$0xf] }
 0x636   : > { %v5435_v27 = vrot.slane %v5434_v39, 4  ;;  %v6658_v32 = vshrl.u32 %v11321_v41, 16  ;;  %v5445_v52 = vrot.slane %v5444_v28, 4  ;;  %v5449_v43 = vrot.slane %v5447_v18, 5  ;;  %v11182_v39 = vld [vmem:[%s16870_s1 + $0xc0] ss:$8 sps:$4 sm:$0xff]  }
 0x637   : > { %7520 = vrot.lane.b32.xlu0 %v10226_v36, %s11434_s24  ;;  %v6637_v24 = vor.u32 %v6636_v37, %v6632_v14  ;;  %v6647_v6 = vrot.slane %v6645_v20, 4  ;;  %v6650_v25 = vrot.slane %v6648_v54, 5  ;;  %v6642_v38 = vrot.slane %v6640_v19, 5  ;;  %3978 = vmatmul.mubr.bf16.gmra.mrb[44].mxu1 %v11178_v8  ;;  %v15041_v36 = vld [vmem:[#allocation2 + $0x88] sm:$0xf] }
 0x638   : > { %v14984_v15 = vpop.permute.xlu0 %7596  ;;  %v5440_v7 = vsel %vm11607_vm5, %v5435_v27, %v5439_v9  ;;  %v5450_v63 = vsel %vm11607_vm5, %v5445_v52, %v5449_v43  ;;  %v6633_v57 = vsel %vm11607_vm5, %v6628_v0, %v6632_v14  ;;  %v5452_v42 = vshrl.u32 %v5271_v33, 16  ;;  %3985 = vmatprep.mubr.bf16.mxu1 %v11180_v55  ;;  %v15051_v0 = vld [vmem:[#allocation2 + $0x6c] sm:$0xf]  ;;  %v5702_v52 = vld [vmem:[#allocation2 + $0x84] sm:$0xe] }
 0x639   : > { %v15011_v23 = vpop.permute.xlu1 %7372  ;;  %v6638_v46 = vrot.slane %v6637_v24, 4  ;;  %v15027_v30 = vrot.slane %v6669_v53, 4  ;;  %v15029_v50 = vrot.slane %v6672_v11, 5  ;;  %v10157_v20 = vcombine.low %v5440_v7, %v5450_v63  ;;  %v15056_v51 = vld [vmem:[#allocation2 + $0x8c] sm:$0x1] }
 0x63a   : > { %v5455_v17 = vshll.u32 %v5271_v33, 16  ;;  %v5454_v9 = vrot.slane %v5452_v42, 4  ;;  %v5461_v62 = vshll.u32 %v14729_v22, 16  ;;  %v5465_v59 = vshrl.u32 %v14729_v22, 16  ;;  %v11186_v22 = vld [vmem:[%s16870_s1 + $0xd4] ss:$8 sps:$4 sm:$0xff]  }
 0x63b   : > { %v6643_v18 = vsel %vm11607_vm5, %v6638_v46, %v6642_v38  ;;  %7206 = vrot.lane.b32.xlu1 %v10157_v20, %s11434_s24  ;;  %v5471_v54 = vshll.u32 %v14734_v49, 16  ;;  %v6651_v8 = vor.u32 %v6650_v25, %v6647_v6  ;;  %v6654_v3 = vshll.u32 %v11321_v41, 16  ;;  %v11323_v33 = vld [vmem:[#allocation2 + $0x5c] sm:$0x1]  ;;  %v15060_v24 = vld [vmem:[#allocation2 + $0x94] sm:$0xf] }
 0x63c   : > { %v15002_v58 = vpop.permute.xlu0 %7598  ;;  %v10252_v5 = vcombine.low %v6633_v57, %v6643_v18  ;;  %v5457_v13 = vrot.slane %v5455_v17, 5  ;;  %v5463_v12 = vrot.slane %v5461_v62, 5  ;;  %v5467_v19 = vrot.slane %v5465_v59, 4  ;;  %v15065_v63 = vld [vmem:[#allocation2 + $0x94] sm:$0xf] }
 0x63d   : > { %v15037_v35 = vpop.permute.xlu1 %7374  ;;  %v6693_v49 = vshrl.u32 %v15051_v0, 16  ;;  %v10194_v14 = vcombine.low %v5887_v61, %v14957_v34  ;;  %v6660_v55 = vrot.slane %v6658_v32, 4  ;;  %v6652_v11 = vrot.slane %v6651_v8, 4  ;;  %v6310_v57 = vld [vmem:[#allocation2 + $0x90] sm:$0xe] }
 0x63e   : > { %7684 = vrot.lane.b32.xlu0 %v10252_v5, %s11439_s30  ;;  %v5458_v37 = vor.u32 %v5457_v13, %v5454_v9  ;;  %v5468_v53 = vor.u32 %v5467_v19, %v5463_v12  ;;  %v6656_v27 = vrot.slane %v6654_v3, 5  ;;  %v6664_v41 = vshll.u32 %v11323_v33, 16  ;;  %v5273_v9 = vld [vmem:[#allocation2 + $0x54] sm:$0xf]  ;;  %v11188_v3 = vld [vmem:[%s16870_s1 + $0xd0] ss:$8 sps:$4 sm:$0xff]  }
 0x63f   : > { %v6696_v43 = vshll.u32 %v15051_v0, 16  ;;  %7392 = vrot.lane.b32.xlu1 %v10194_v14, %s11439_s30  ;;  %v10242_v6 = vcombine.low %v15033_v31, %v15060_v24  ;;  %v5834_v32 = vrot.slane %v15041_v36, 5  ;;  %3986 = vmatmul.mubr.bf16.gmra.mrb[48].mxu1 %v11182_v39  ;;  %v5473_v7 = vrot.slane %v5471_v54, 5  ;;  %v5910_v54 = vld [vmem:[#allocation2 + $0x98] sm:$0x1] }
 0x640   : > { %v15025_v56 = vpop.permute.xlu0 %7600  ;;  %v5459_v34 = vrot.slane %v5458_v37, 4  ;;  %v5469_v25 = vrot.slane %v5468_v53, 4  ;;  %v6661_v38 = vor.u32 %v6660_v55, %v6656_v27  ;;  %3993 = vmatprep.mubr.bf16.mxu1 %v11186_v22  ;;  %v10099_v61 = vrot.slane %v5702_v52, 9 }
 0x641   : > { %v15067_v46 = vpop.permute.xlu1 %7376  ;;  %v5836_v17 = vrot.slane %v5834_v32, 4  ;;  %v5837_v18 = vrot.slane %v15056_v51, 5  ;;  %v6657_v59 = vsel %vm11607_vm5, %v6652_v11, %v6656_v27  ;;  %v6666_v13 = vrot.slane %v6664_v41, 5  ;;  %v11190_v11 = vld [vmem:[%s16870_s1 + $0xe4] ss:$8 sps:$4 sm:$0xff]  }
 0x642   : > { %7616 = vrot.lane.b32.xlu0 %v10242_v6, %s11438_s17  ;;  %v5464_v20 = vsel %vm11607_vm5, %v5459_v34, %v5463_v12  ;;  %v5474_v62 = vsel %vm11607_vm5, %v5469_v25, %v5473_v7  ;;  %v6662_v5 = vrot.slane %v6661_v38, 4  ;;  %v6717_v39 = vshrl.u32 %v14850_v21, 16 }
 0x643   : > { %v10158_v19 = vcombine.low %v5464_v20, %v5474_v62  ;;  %v10115_v8 = vrot.slane %v6310_v57, 9  ;;  %v6442_v12 = vrot.slane %v15065_v63, 5  ;;  %v5838_v14 = vsel %vm11563_vm2, %v5836_v17, %v5837_v18 }
 0x644   : > { %v15046_v28 = vpop.permute.xlu0 %7602  ;;  %v6667_v22 = vsel %vm11607_vm5, %v6662_v5, %v6666_v13  ;;  %v5476_v37 = vshrl.u32 %v5273_v9, 16  ;;  %v5479_v55 = vshll.u32 %v5273_v9, 16  ;;  %v6445_v41 = vrot.slane %v5910_v54, 5  ;;  %v11325_v5 = vld [vmem:[#allocation2 + $0x64] sm:$0xf] }
 0x645   : > { %7208 = vrot.lane.b32.xlu1 %v10158_v19, %s11434_s24  ;;  %v10253_v27 = vcombine.low %v6657_v59, %v6667_v22  ;;  %v6444_v33 = vrot.slane %v6442_v12, 4  ;;  %v5485_v52 = vshll.u32 %v14757_v4, 16  ;;  %v5835_v6 = vsel %vm11563_vm2, %v10099_v61, %v5834_v32  ;;  %v15098_v38 = vpop.permute.xlu1 %7378 }
 0x646   : > { %v5478_v34 = vrot.slane %v5476_v37, 4  ;;  %v5481_v25 = vrot.slane %v5479_v55, 5  ;;  %v5489_v7 = vshrl.u32 %v14757_v4, 16  ;;  %17164 = vst [vmem:[#allocation43_spill] sm:$0xff] %v15098_v38  ;;  %v10179_v57 = vcombine.low %v5835_v6, %v5838_v14  ;;  %v11192_v55 = vld [vmem:[%s16870_s1 + $0xe0] ss:$8 sps:$4 sm:$0xff]  }
 0x647   : > { %7686 = vrot.lane.b32.xlu0 %v10253_v27, %s11439_s30  ;;  %v6446_v20 = vsel %vm11563_vm2, %v6444_v33, %v6445_v41  ;;  %v5487_v17 = vrot.slane %v5485_v52, 5  ;;  %v6675_v18 = vor.u32 %v15029_v50, %v15027_v30  ;;  %3994 = vmatmul.mubr.bf16.gmra.mrb[52].mxu1 %v11188_v3  ;;  %v6443_v32 = vsel %vm11563_vm2, %v10115_v8, %v6442_v12  ;;  %v11326_v30 = vld [vmem:[#allocation2 + $0x68] sm:$0x1]  ;;  %v5275_v3 = vld [vmem:[#allocation2 + $0x60] sm:$0xf] }
 0x648   : > { %v15069_v42 = vpop.permute.xlu0 %7604  ;;  %v5482_v61 = vor.u32 %v5481_v25, %v5478_v34  ;;  %v5491_v9 = vrot.slane %v5489_v7, 4  ;;  %v5495_v4 = vshll.u32 %v14767_v29, 16  ;;  %4001 = vmatprep.mubr.bf16.mxu1 %v11190_v11  ;;  %v6720_v62 = vshll.u32 %v14850_v21, 16  ;;  %v11327_v8 = vld [vmem:[#allocation2 + $0x70] sm:$0xf] }
 0x649   : > { %17162 = vst [vmem:[#allocation41_spill] sm:$0xff] %v15069_v42  ;;  %7298 = vrot.lane.b32.xlu1 %v10179_v57, %s11438_s17  ;;  %v10227_v59 = vcombine.low %v6443_v32, %v6446_v20  ;;  %v6678_v13 = vshll.u32 %v11325_v5, 16  ;;  %v6682_v54 = vshrl.u32 %v11325_v5, 16  ;;  %v6688_v50 = vshll.u32 %v11326_v30, 16  ;;  %v15120_v52 = vpop.permute.xlu1 %7380  ;;  %v11196_v6 = vld [vmem:[%s16870_s1 + $0xf4] ss:$8 sps:$4 sm:$0xff]  }
 0x64a   : > { %v5483_v19 = vrot.slane %v5482_v61, 4  ;;  %v5492_v22 = vor.u32 %v5491_v9, %v5487_v17  ;;  %v6706_v12 = vshrl.u32 %v11327_v8, 16  ;;  %v6676_v29 = vrot.slane %v6675_v18, 4  ;;  %17166 = vst [vmem:[#allocation45_spill] sm:$0xff] %v15120_v52  ;;  %v11349_v42 = vld [vmem:[#allocation2 + $0x14] sm:$0x1] }
 0x64b   : > { %7522 = vrot.lane.b32.xlu0 %v10227_v59, %s11434_s24  ;;  %v6680_v37 = vrot.slane %v6678_v13, 5  ;;  %v6684_v21 = vrot.slane %v6682_v54, 4  ;;  %v6695_v11 = vrot.slane %v6693_v49, 4  ;;  %v5497_v41 = vrot.slane %v5495_v4, 5  ;;  %v5889_v49 = vld [vmem:[#allocation2 + $0x90] sm:$0xf] }
 0x64c   : > { %v15088_v53 = vpop.permute.xlu0 %7606  ;;  %v5488_v27 = vsel %vm11607_vm5, %v5483_v19, %v5487_v17  ;;  %v5493_v33 = vrot.slane %v5492_v22, 4  ;;  %v6698_v34 = vrot.slane %v6696_v43, 5  ;;  %v15127_v25 = vrot.slane %v6717_v39, 4  ;;  %v15137_v39 = vld [vmem:[#allocation2 + $0x9c] sm:$0xf] }
 0x64d   : > { %17163 = vst [vmem:[#allocation42_spill] sm:$0xff] %v15088_v53  ;;  %v15129_v7 = vrot.slane %v6720_v62, 5  ;;  %v6685_v57 = vor.u32 %v6684_v21, %v6680_v37  ;;  %v6741_v20 = vshrl.u32 %v14945_v26, 16  ;;  %v6690_v18 = vrot.slane %v6688_v50, 5  ;;  %v5703_v50 = vld [vmem:[#allocation2 + $0x90] sm:$0xe] }
 0x64e   : > { %v5498_v17 = vsel %vm11607_vm5, %v5493_v33, %v5497_v41  ;;  %v5500_v32 = vshrl.u32 %v5275_v3, 16  ;;  %v6681_v9 = vsel %vm11607_vm5, %v6676_v29, %v6680_v37  ;;  %v5503_v0 = vshll.u32 %v5275_v3, 16 }
 0x64f   : > { %v10159_v61 = vcombine.low %v5488_v27, %v5498_v17  ;;  %v6686_v4 = vrot.slane %v6685_v57, 4  ;;  %4002 = vmatmul.mubr.bf16.gmra.mrb[56].mxu1 %v11192_v55  ;;  %v10195_v43 = vcombine.low %v5889_v49, %v15065_v63  ;;  %v5509_v59 = vshll.u32 %v14773_v1, 16  ;;  %v15147_v63 = vld [vmem:[#allocation2 + $0x94] sm:$0xf]  ;;  %v15151_v55 = vpop.permute.xlu1 %7382  ;;  %v15153_v27 = vld [vmem:[#allocation2 + $0xa0] sm:$0xf] }
 0x650   : > { %v15110_v14 = vpop.permute.xlu0 %7608  ;;  %v5502_v62 = vrot.slane %v5500_v32, 4  ;;  %v5513_v5 = vshrl.u32 %v14773_v1, 16  ;;  %4009 = vmatprep.mubr.bf16.mxu1 %v11196_v6  ;;  %v5505_v19 = vrot.slane %v5503_v0, 5  ;;  %v5519_v22 = vshll.u32 %v14780_v60, 16  ;;  %v15149_v1 = vld [vmem:[#allocation2 + $0x98] sm:$0x1] }
 0x651   : > { %17165 = vst [vmem:[#allocation44_spill] sm:$0xff] %v15110_v14  ;;  %7210 = vrot.lane.b32.xlu1 %v10159_v61, %s11434_s24  ;;  %v6691_v54 = vsel %vm11607_vm5, %v6686_v4, %v6690_v18  ;;  %v6699_v30 = vor.u32 %v6698_v34, %v6695_v11  ;;  %v5511_v29 = vrot.slane %v5509_v59, 5  ;;  %v6702_v21 = vshll.u32 %v11327_v8, 16  ;;  %17168 = vst [vmem:[#allocation47_spill] sm:$0xff] %v15151_v55  ;;  %v6311_v11 = vld [vmem:[#allocation2 + $0x9c] sm:$0xe] }
 0x652   : > { %v10254_v3 = vcombine.low %v6681_v9, %v6691_v54  ;;  %v5515_v37 = vrot.slane %v5513_v5, 4  ;;  %v10243_v33 = vcombine.low %v15137_v39, %v15153_v27  ;;  %v5506_v41 = vor.u32 %v5505_v19, %v5502_v62  ;;  %v11198_v34 = vld [vmem:[%s16870_s1 + $0xf0] ss:$8 sps:$4 sm:$0xff]   ;;  %v11329_v49 = vld [vmem:[#allocation2 + $0x74] sm:$0x1] }
 0x653   : > { %v6700_v6 = vrot.slane %v6699_v30, 4  ;;  %v6708_v60 = vrot.slane %v6706_v12, 4  ;;  %v6704_v57 = vrot.slane %v6702_v21, 5  ;;  %v6712_v17 = vshll.u32 %v11329_v49, 16  ;;  %v15161_v32 = vld [vmem:[#allocation2 + $0xa0] sm:$0xf] }
 0x654   : > { %v15141_v13 = vpop.permute.xlu0 %7610  ;;  %7688 = vrot.lane.b32.xlu0 %v10254_v3, %s11439_s30  ;;  %v5516_v8 = vor.u32 %v5515_v37, %v5511_v29  ;;  %v10100_v18 = vrot.slane %v5703_v50, 9  ;;  %v5507_v61 = vrot.slane %v5506_v41, 4  ;;  %v5521_v9 = vrot.slane %v5519_v22, 5  ;;  %v5277_v0 = vld [vmem:[#allocation2 + $0x6c] sm:$0xf] }
 0x655   : > { %17167 = vst [vmem:[#allocation46_spill] sm:$0xff] %v15141_v13  ;;  %7394 = vrot.lane.b32.xlu1 %v10195_v43, %s11439_s30  ;;  %v5841_v12 = vrot.slane %v15147_v63, 5  ;;  %v5844_v4 = vrot.slane %v15149_v1, 5  ;;  %v6705_v59 = vsel %vm11607_vm5, %v6700_v6, %v6704_v57  ;;  %v6709_v5 = vor.u32 %v6708_v60, %v6704_v57  ;;  %v5911_v54 = vld [vmem:[#allocation2 + $0xa4] sm:$0x1]  ;;  %v15178_v60 = vpop.permute.xlu1 %7384 }
 0x656   : > { %v5517_v62 = vrot.slane %v5516_v8, 4  ;;  %v10116_v19 = vrot.slane %v6311_v11, 9  ;;  %v5512_v50 = vsel %vm11607_vm5, %v5507_v61, %v5511_v29  ;;  %v6714_v43 = vrot.slane %v6712_v17, 5  ;;  %17169 = vst [vmem:[#allocation48_spill] sm:$0xff] %v15178_v60 }
 0x657   : > { %v5843_v3 = vrot.slane %v5841_v12, 4  ;;  %v6449_v22 = vrot.slane %v15161_v32, 5  ;;  %4010 = vmatmul.mubr.bf16.gmra.mrb[60].mxu1 %v11198_v34  ;;  %v6710_v21 = vrot.slane %v6709_v5, 4  ;;  %v5842_v41 = vsel %vm11563_vm2, %v10100_v18, %v5841_v12 }
 0x658   : > { %v15168_v30 = vpop.permute.xlu0 %7500  ;;  %7618 = vrot.lane.b32.xlu0 %v10243_v33, %s11438_s17  ;;  %v5522_v37 = vsel %vm11607_vm5, %v5517_v62, %v5521_v9  ;;  %v5524_v6 = vshrl.u32 %v5277_v0, 16  ;;  %v6452_v57 = vrot.slane %v5911_v54, 5  ;;  %v5527_v17 = vshll.u32 %v5277_v0, 16 }
 0x659   : > { %v10160_v11 = vcombine.low %v5512_v50, %v5522_v37  ;;  %v5845_v29 = vsel %vm11563_vm2, %v5843_v3, %v5844_v4  ;;  %v6451_v8 = vrot.slane %v6449_v22, 4  ;;  %v6715_v34 = vsel %vm11607_vm5, %v6710_v21, %v6714_v43  ;;  %v11330_v50 = vld [vmem:[#allocation2 + $0x7c] sm:$0xf]  ;;  %v11331_v21 = vld [vmem:[#allocation2 + $0x80] sm:$0x1] }
 0x65a   : > { %v6450_v33 = vsel %vm11563_vm2, %v10116_v19, %v6449_v22  ;;  %v5526_v49 = vrot.slane %v5524_v6, 4  ;;  %v10255_v18 = vcombine.low %v6705_v59, %v6715_v34  ;;  %v5533_v9 = vshll.u32 %v14852_v40, 16 }
 0x65b   : > { %7212 = vrot.lane.b32.xlu1 %v10160_v11, %s11434_s24  ;;  %v6453_v61 = vsel %vm11563_vm2, %v6451_v8, %v6452_v57  ;;  %v5537_v12 = vshrl.u32 %v14852_v40, 16  ;;  %v10180_v62 = vcombine.low %v5842_v41, %v5845_v29  ;;  %v5529_v5 = vrot.slane %v5527_v17, 5  ;;  %v15198_v41 = vpop.permute.xlu1 %7386  ;;  %v5279_v8 = vld [vmem:[#allocation2 + $0x78] sm:$0xf] }
 0x65c   : > { %v15191_v4 = vpop.permute.xlu0 %7502  ;;  %v5543_v54 = vshll.u32 %v14854_v16, 16  ;;  %v6723_v19 = vor.u32 %v15129_v7, %v15127_v25  ;;  %7690 = vrot.lane.b32.xlu0 %v10255_v18, %s11439_s30  ;;  %v5535_v0 = vrot.slane %v5533_v9, 5  ;;  %v6726_v43 = vshll.u32 %v11330_v50, 16  ;;  %17170 = vst [vmem:[#allocation59_spill] sm:$0xff] %v15198_v41 }
 0x65d   : > { %v5539_v59 = vrot.slane %v5537_v12, 4  ;;  %v6730_v3 = vshrl.u32 %v11330_v50, 16  ;;  %v6744_v22 = vshll.u32 %v14945_v26, 16  ;;  %v10228_v37 = vcombine.low %v6450_v33, %v6453_v61 }
 0x65e   : > { %v5530_v40 = vor.u32 %v5529_v5, %v5526_v49  ;;  %v6736_v6 = vshll.u32 %v11331_v21, 16  ;;  %v6724_v11 = vrot.slane %v6723_v19, 4  ;;  %v6728_v25 = vrot.slane %v6726_v43, 5  ;;  %v5891_v43 = vld [vmem:[#allocation2 + $0x9c] sm:$0xf] }
 0x65f   : > { %7300 = vrot.lane.b32.xlu1 %v10180_v62, %s11438_s17  ;;  %v5540_v16 = vor.u32 %v5539_v59, %v5535_v0  ;;  %v6732_v7 = vrot.slane %v6730_v3, 4  ;;  %v5545_v34 = vrot.slane %v5543_v54, 5  ;;  %v6743_v33 = vrot.slane %v6741_v20, 4  ;;  %v15214_v20 = vpop.permute.xlu1 %7278 }
 0x660   : > { %v5531_v29 = vrot.slane %v5530_v40, 4  ;;  %7524 = vrot.lane.b32.xlu0 %v10228_v37, %s11434_s24  ;;  %v6746_v49 = vrot.slane %v6744_v22, 5  ;;  %v6738_v9 = vrot.slane %v6736_v6, 5  ;;  %v6729_v62 = vsel %vm11607_vm5, %v6724_v11, %v6728_v25  ;;  %v15223_v6 = vld [vmem:[#allocation2 + $0xa8] sm:$0xf] }
 0x661   : > { %v5541_v57 = vrot.slane %v5540_v16, 4  ;;  %v6733_v17 = vor.u32 %v6732_v7, %v6728_v25  ;;  %v5548_v19 = vshrl.u32 %v5279_v8, 16  ;;  %v6765_v54 = vshrl.u32 %v15033_v31, 16  ;;  %v15226_v7 = vld [vmem:[#allocation2 + $0xa0] sm:$0xf] }
 0x662   : > { %v5536_v61 = vsel %vm11607_vm5, %v5531_v29, %v5535_v0  ;;  %v5551_v26 = vshll.u32 %v5279_v8, 16  ;;  %v5557_v22 = vshll.u32 %v14948_v47, 16  ;;  %v5561_v37 = vshrl.u32 %v14948_v47, 16 }
 0x663   : > { %v15202_v18 = vpop.permute.xlu0 %7504  ;;  %v5546_v12 = vsel %vm11607_vm5, %v5541_v57, %v5545_v34  ;;  %v6734_v5 = vrot.slane %v6733_v17, 4  ;;  %v5550_v3 = vrot.slane %v5548_v19, 4  ;;  %v5567_v11 = vshll.u32 %v14952_v2, 16  ;;  %v11332_v57 = vld [vmem:[#allocation2 + $0x88] sm:$0xf] }
 0x664   : > { %v10161_v50 = vcombine.low %v5536_v61, %v5546_v12  ;;  %v5553_v16 = vrot.slane %v5551_v26, 5  ;;  %v6747_v25 = vor.u32 %v6746_v49, %v6743_v33  ;;  %v5559_v29 = vrot.slane %v5557_v22, 5  ;;  %v15228_v61 = vld [vmem:[#allocation2 + $0xa4] sm:$0x1]  ;;  %v5704_v2 = vld [vmem:[#allocation2 + $0x9c] sm:$0xe] }
 0x665   : > { %v6739_v0 = vsel %vm11607_vm5, %v6734_v5, %v6738_v9  ;;  %v5563_v8 = vrot.slane %v5561_v37, 4  ;;  %v6750_v34 = vshll.u32 %v11332_v57, 16  ;;  %v6754_v17 = vshrl.u32 %v11332_v57, 16  ;;  %v15234_v33 = vld [vmem:[#allocation2 + $0xac] sm:$0xf] }
 0x666   : > { %7214 = vrot.lane.b32.xlu1 %v10161_v50, %s11434_s24  ;;  %v10256_v21 = vcombine.low %v6729_v62, %v6739_v0  ;;  %v15230_v47 = vrot.slane %v6765_v54, 4  ;;  %v10196_v9 = vcombine.low %v5891_v43, %v15161_v32  ;;  %v5554_v12 = vor.u32 %v5553_v16, %v5550_v3  ;;  %v11333_v62 = vld [vmem:[#allocation2 + $0x8c] sm:$0x1]  ;;  %v5912_v0 = vld [vmem:[#allocation2 + $0xb0] sm:$0x1] }
 0x667   : > { %v15220_v40 = vpop.permute.xlu0 %7506  ;;  %v6760_v5 = vshll.u32 %v11333_v62, 16  ;;  %v5564_v49 = vor.u32 %v5563_v8, %v5559_v29  ;;  %v6748_v19 = vrot.slane %v6747_v25, 4  ;;  %v6752_v50 = vrot.slane %v6750_v34, 5  ;;  %v15237_v22 = vld [vmem:[#allocation2 + $0xac] sm:$0xf] }
 0x668   : > { %7692 = vrot.lane.b32.xlu0 %v10256_v21, %s11439_s30  ;;  %v6756_v26 = vrot.slane %v6754_v17, 4  ;;  %v10244_v54 = vcombine.low %v15223_v6, %v15237_v22  ;;  %v5555_v37 = vrot.slane %v5554_v12, 4  ;;  %v5569_v32 = vrot.slane %v5567_v11, 5  ;;  %v5281_v3 = vld [vmem:[#allocation2 + $0x84] sm:$0xf]  ;;  %v15242_v21 = vpop.permute.xlu1 %7280 }
 0x669   : > { %v5848_v43 = vrot.slane %v15226_v7, 5  ;;  %v5565_v16 = vrot.slane %v5564_v49, 4  ;;  %v6762_v25 = vrot.slane %v6760_v5, 5  ;;  %v10101_v57 = vrot.slane %v5704_v2, 9  ;;  %v6312_v34 = vld [vmem:[#allocation2 + $0xa8] sm:$0xe] }
 0x66a   : > { %7396 = vrot.lane.b32.xlu1 %v10196_v9, %s11439_s30  ;;  %v6757_v8 = vor.u32 %v6756_v26, %v6752_v50  ;;  %v5560_v9 = vsel %vm11607_vm5, %v5555_v37, %v5559_v29  ;;  %v5851_v11 = vrot.slane %v15228_v61, 5  ;;  %v6456_v12 = vrot.slane %v15234_v33, 5 }
 0x66b   : > { %v5850_v62 = vrot.slane %v5848_v43, 4  ;;  %v5570_v59 = vsel %vm11607_vm5, %v5565_v16, %v5569_v32  ;;  %v6753_v5 = vsel %vm11607_vm5, %v6748_v19, %v6752_v50  ;;  %v5572_v49 = vshrl.u32 %v5281_v3, 16 }
 0x66c   : > { %7620 = vrot.lane.b32.xlu0 %v10244_v54, %s11438_s17  ;;  %v6758_v2 = vrot.slane %v6757_v8, 4  ;;  %v10162_v26 = vcombine.low %v5560_v9, %v5570_v59  ;;  %v10117_v41 = vrot.slane %v6312_v34, 9  ;;  %v6458_v13 = vrot.slane %v6456_v12, 4  ;;  %v15264_v16 = vpop.permute.xlu1 %7282 }
 0x66d   : > { %v15244_v17 = vpop.permute.xlu0 %7508  ;;  %v6459_v54 = vrot.slane %v5912_v0, 5  ;;  %v5852_v37 = vsel %vm11563_vm2, %v5850_v62, %v5851_v11  ;;  %v5574_v60 = vrot.slane %v5572_v49, 4  ;;  %v5575_v55 = vshll.u32 %v5281_v3, 16  ;;  %17173 = vst [vmem:[#allocation60_spill] sm:$0xff] %v15264_v16 }
 0x66e   : > { %17171 = vst [vmem:[#allocation49_spill] sm:$0xff] %v15244_v17  ;;  %v6763_v29 = vsel %vm11607_vm5, %v6758_v2, %v6762_v25  ;;  %v17172_v14 = vshll.u32 %v15033_v31, 16  ;;  %7216 = vrot.lane.b32.xlu1 %v10162_v26, %s11434_s24  ;;  %v5581_v50 = vshll.u32 %v15041_v36, 16  ;;  %v5585_v59 = vshrl.u32 %v15041_v36, 16  ;;  %v11350_v17 = vld [vmem:[#allocation2 + $0xb0] sm:$0x1] }
 0x66f   : > { %v10257_v19 = vcombine.low %v6753_v5, %v6763_v29  ;;  %v5849_v0 = vsel %vm11563_vm2, %v10101_v57, %v5848_v43  ;;  %v6460_v8 = vsel %vm11563_vm2, %v6458_v13, %v6459_v54  ;;  %v5577_v25 = vrot.slane %v5575_v55, 5  ;;  %v11335_v54 = vld [vmem:[#allocation2 + $0x98] sm:$0x1] }
 0x670   : > { %v6770_v32 = vrot.slane %v17172_v14, 5  ;;  %v10181_v31 = vcombine.low %v5849_v0, %v5852_v37  ;;  %v5583_v14 = vrot.slane %v5581_v50, 5  ;;  %v5587_v34 = vrot.slane %v5585_v59, 4  ;;  %v15281_v26 = vpop.permute.xlu1 %7284 }
 0x671   : > { %v15270_v3 = vpop.permute.xlu0 %7510  ;;  %7694 = vrot.lane.b32.xlu0 %v10257_v19, %s11439_s30  ;;  %v5591_v9 = vshll.u32 %v15056_v51, 16  ;;  %v6457_v36 = vsel %vm11563_vm2, %v10117_v41, %v6456_v12  ;;  %v5578_v62 = vor.u32 %v5577_v25, %v5574_v60  ;;  %v6774_v11 = vshll.u32 %v15060_v24, 16  ;;  %17175 = vst [vmem:[#allocation61_spill] sm:$0xff] %v15281_v26  ;;  %v5893_v19 = vld [vmem:[#allocation2 + $0xa8] sm:$0xf] }
 0x672   : > { %17174 = vst [vmem:[#allocation50_spill] sm:$0xff] %v15270_v3  ;;  %7302 = vrot.lane.b32.xlu1 %v10181_v31, %s11438_s17  ;;  %v10229_v43 = vcombine.low %v6457_v36, %v6460_v8  ;;  %v5588_v57 = vor.u32 %v5587_v34, %v5583_v14  ;;  %v6771_v13 = vor.u32 %v6770_v32, %v15230_v47  ;;  %v6778_v5 = vshrl.u32 %v15060_v24, 16  ;;  %v5283_v8 = vld [vmem:[#allocation2 + $0x90] sm:$0xf] }
 0x673   : > { %v5579_v55 = vrot.slane %v5578_v62, 4  ;;  %v5593_v49 = vrot.slane %v5591_v9, 5  ;;  %v6776_v41 = vrot.slane %v6774_v11, 5  ;;  %v6784_v29 = vshll.u32 %v11335_v54, 16 }
 0x674   : > { %v5589_v2 = vrot.slane %v5588_v57, 4  ;;  %v6772_v51 = vrot.slane %v6771_v13, 4  ;;  %v6780_v12 = vrot.slane %v6778_v5, 4  ;;  %v15292_v25 = vpop.permute.xlu1 %7286  ;;  %v6789_v31 = vshrl.u32 %v15137_v39, 16  ;;  %v11336_v57 = vld [vmem:[#allocation2 + $0xc] sm:$0xf] }
 0x675   : > { %7526 = vrot.lane.b32.xlu0 %v10229_v43, %s11434_s24  ;;  %v5584_v60 = vsel %vm11607_vm5, %v5579_v55, %v5583_v14  ;;  %v6786_v0 = vrot.slane %v6784_v29, 5  ;;  %17177 = vst [vmem:[#allocation62_spill] sm:$0xff] %v15292_v25  ;;  %v6792_v14 = vshll.u32 %v15137_v39, 16  ;;  %v10197_v9 = vcombine.low %v5893_v19, %v15234_v33  ;;  %v15301_v43 = vld [vmem:[#allocation2 + $0xb4] sm:$0xf] }
 0x676   : > { %v5594_v37 = vsel %vm11607_vm5, %v5589_v2, %v5593_v49  ;;  %v6781_v32 = vor.u32 %v6780_v12, %v6776_v41  ;;  %v6777_v50 = vsel %vm11607_vm5, %v6772_v51, %v6776_v41  ;;  %v5916_v13 = vshrl.u32 %v11336_v57, 16  ;;  %v11337_v5 = vld [vmem:[#allocation2 + $0x18] sm:$0xf] }
 0x677   : > { %v10163_v24 = vcombine.low %v5584_v60, %v5594_v37  ;;  %v5919_v55 = vshll.u32 %v11336_v57, 16  ;;  %v5596_v11 = vshrl.u32 %v5283_v8, 16  ;;  %v5940_v2 = vshrl.u32 %v11337_v5, 16  ;;  %v15307_v41 = vld [vmem:[#allocation2 + $0xb8] sm:$0xf] }
 0x678   : > { %v15285_v47 = vpop.permute.xlu0 %7512  ;;  %v6782_v59 = vrot.slane %v6781_v32, 4  ;;  %v5599_v39 = vshll.u32 %v5283_v8, 16  ;;  %v5605_v49 = vshll.u32 %v15147_v63, 16  ;;  %v5609_v33 = vshrl.u32 %v15147_v63, 16  ;;  %v15312_v19 = vpop.permute.xlu1 %7288 }
 0x679   : > { %17176 = vst [vmem:[#allocation51_spill] sm:$0xff] %v15285_v47  ;;  %7218 = vrot.lane.b32.xlu1 %v10163_v24, %s11434_s24  ;;  %v6791_v51 = vrot.slane %v6789_v31, 4  ;;  %v6794_v60 = vrot.slane %v6792_v14, 5  ;;  %v10245_v12 = vcombine.low %v15301_v43, %v15307_v41  ;;  %v5598_v54 = vrot.slane %v5596_v11, 4  ;;  %17179 = vst [vmem:[#allocation63_spill] sm:$0xff] %v15312_v19 }
 0x67a   : > { %v6787_v34 = vsel %vm11607_vm5, %v6782_v59, %v6786_v0  ;;  %v5601_v29 = vrot.slane %v5599_v39, 5  ;;  %v5607_v37 = vrot.slane %v5605_v49, 5  ;;  %v5611_v24 = vrot.slane %v5609_v33, 4  ;;  %v5705_v33 = vld [vmem:[#allocation2 + $0xa8] sm:$0xe] }
 0x67b   : > { %v10258_v62 = vcombine.low %v6777_v50, %v6787_v34  ;;  %v5615_v32 = vshll.u32 %v15149_v1, 16  ;;  %v15316_v59 = vrot.slane %v5916_v13, 4  ;;  %v15318_v63 = vrot.slane %v5919_v55, 5  ;;  %v11339_v34 = vld [vmem:[#allocation2 + $0x24] sm:$0xf] }
 0x67c   : > { %v15299_v36 = vpop.permute.xlu0 %7514  ;;  %v5602_v0 = vor.u32 %v5601_v29, %v5598_v54  ;;  %v5612_v8 = vor.u32 %v5611_v24, %v5607_v37  ;;  %v15321_v31 = vrot.slane %v5940_v2, 4  ;;  %v5943_v14 = vshll.u32 %v11337_v5, 16  ;;  %v15325_v55 = vld [vmem:[#allocation2 + $0xac] sm:$0xf]  ;;  %v15334_v54 = vpop.permute.xlu1 %7290 }
 0x67d   : > { %17178 = vst [vmem:[#allocation52_spill] sm:$0xff] %v15299_v36  ;;  %7398 = vrot.lane.b32.xlu1 %v10197_v9, %s11439_s30  ;;  %7696 = vrot.lane.b32.xlu0 %v10258_v62, %s11439_s30  ;;  %v5964_v9 = vshrl.u32 %v11339_v34, 16  ;;  %v6795_v62 = vor.u32 %v6794_v60, %v6791_v51  ;;  %v5617_v11 = vrot.slane %v5615_v32, 5  ;;  %v6798_v39 = vshll.u32 %v15153_v27, 16  ;;  %17180 = vst [vmem:[#allocation53_spill] sm:$0xff] %v15334_v54 }
 0x67e   : > { %v5603_v57 = vrot.slane %v5602_v0, 4  ;;  %v5613_v1 = vrot.slane %v5612_v8, 4  ;;  %v5967_v49 = vshll.u32 %v11339_v34, 16  ;;  %v6802_v13 = vshrl.u32 %v15153_v27, 16  ;;  %v11341_v27 = vld [vmem:[#allocation2 + $0xa4] sm:$0x1] }
 0x67f   : > { %v6800_v60 = vrot.slane %v6798_v39, 5  ;;  %v6796_v24 = vrot.slane %v6795_v62, 4  ;;  %v6808_v0 = vshll.u32 %v11341_v27, 16  ;;  %v15336_v8 = vld [vmem:[#allocation2 + $0xb0] sm:$0x1]  ;;  %v15340_v19 = vrot.slane %v5943_v14, 5 }
 0x680   : > { %v15314_v50 = vpop.permute.xlu0 %7516  ;;  %v5608_v5 = vsel %vm11607_vm5, %v5603_v57, %v5607_v37  ;;  %v5618_v51 = vsel %vm11607_vm5, %v5613_v1, %v5617_v11  ;;  %v6804_v32 = vrot.slane %v6802_v13, 4  ;;  %v15342_v25 = vrot.slane %v5964_v9, 4  ;;  %v15355_v54 = vld [vmem:[#allocation2 + $0xb8] sm:$0xf]  ;;  %v15362_v52 = vpop.permute.xlu1 %7292 }
 0x681   : > { %7622 = vrot.lane.b32.xlu0 %v10245_v12, %s11438_s17  ;;  %v15327_v12 = vld [vmem:[#allocation2 + $0x30] sm:$0xf]  ;;  %v10164_v29 = vcombine.low %v5608_v5, %v5618_v51  ;;  %v10102_v37 = vrot.slane %v5705_v33, 9  ;;  %v5855_v57 = vrot.slane %v15325_v55, 5  ;;  %v15345_v1 = vrot.slane %v5967_v49, 5  ;;  %17181 = vst [vmem:[#allocation37_spill] sm:$0xff] %v15362_v52 }
 0x682   : > { %v5988_v2 = vshrl.u32 %v15327_v12, 16  ;;  %v5991_v11 = vshll.u32 %v15327_v12, 16  ;;  %v6813_v62 = vshrl.u32 %v15223_v6, 16  ;;  %v6805_v39 = vor.u32 %v6804_v32, %v6800_v60  ;;  %v11342_v5 = vld [vmem:[#allocation2 + $0x3c] sm:$0xf] }
 0x683   : > { %7220 = vrot.lane.b32.xlu1 %v10164_v29, %s11434_s24  ;;  %v6012_v51 = vshrl.u32 %v11342_v5, 16  ;;  %v5857_v14 = vrot.slane %v5855_v57, 4  ;;  %v5858_v9 = vrot.slane %v15336_v8, 5  ;;  %v6801_v33 = vsel %vm11607_vm5, %v6796_v24, %v6800_v60  ;;  %v6313_v12 = vld [vmem:[#allocation2 + $0xb4] sm:$0xe] }
 0x684   : > { %v15350_v13 = vrot.slane %v5988_v2, 4  ;;  %v6806_v27 = vrot.slane %v6805_v39, 4  ;;  %v6810_v49 = vrot.slane %v6808_v0, 5  ;;  %v6015_v36 = vshll.u32 %v11342_v5, 16  ;;  %v5285_v32 = vld [vmem:[#allocation2 + $0x9c] sm:$0xf] }
 0x685   : > { %v6816_v47 = vshll.u32 %v15223_v6, 16  ;;  %v5856_v2 = vsel %vm11563_vm2, %v10102_v37, %v5855_v57  ;;  %v5859_v29 = vsel %vm11563_vm2, %v5857_v14, %v5858_v9  ;;  %v15364_v53 = vrot.slane %v6813_v62, 4  ;;  %v11343_v60 = vld [vmem:[#allocation2 + $0x10] sm:$0xf]  ;;  %v5913_v5 = vld [vmem:[#allocation2 + $0xbc] sm:$0x1] }
 0x686   : > { %v5925_v24 = vshll.u32 %v11343_v60, 16  ;;  %v6811_v0 = vsel %vm11607_vm5, %v6806_v27, %v6810_v49  ;;  %v10182_v39 = vcombine.low %v5856_v2, %v5859_v29  ;;  %v5929_v6 = vshrl.u32 %v11343_v60, 16  ;;  %v15371_v14 = vpop.f32.mrb[0].mxu1 }
 0x687   : > { %v15338_v34 = vpop.permute.xlu0 %7676  ;;  %v10259_v3 = vcombine.low %v6801_v33, %v6811_v0  ;;  %v10118_v37 = vrot.slane %v6313_v12, 9  ;;  %v6463_v57 = vrot.slane %v15355_v54, 5  ;;  %17183 = vst [vmem:[#allocation38_spill] sm:$0xff] %v15371_v14  ;;  %v5620_v62 = vshrl.u32 %v5285_v32, 16 }
 0x688   : > { %7304 = vrot.lane.b32.xlu1 %v10182_v39, %s11438_s17  ;;  %v5623_v9 = vshll.u32 %v5285_v32, 16  ;;  %v5629_v52 = vshll.u32 %v15226_v7, 16  ;;  %v5633_v38 = vshrl.u32 %v15226_v7, 16  ;;  %v6818_v27 = vrot.slane %v6816_v47, 5  ;;  %v15384_v47 = vpop.permute.xlu1 %7198 }
 0x689   : > { %7698 = vrot.lane.b32.xlu0 %v10259_v3, %s11439_s30  ;;  %v6465_v49 = vrot.slane %v6463_v57, 4  ;;  %v6466_v2 = vrot.slane %v5913_v5, 5  ;;  %v5639_v33 = vshll.u32 %v15228_v61, 16  ;;  %v5622_v12 = vrot.slane %v5620_v62, 4 }
 0x68a   : > { %v5625_v29 = vrot.slane %v5623_v9, 5  ;;  %v5631_v60 = vrot.slane %v5629_v52, 5  ;;  %v5635_v0 = vrot.slane %v5633_v38, 4  ;;  %v5931_v39 = vrot.slane %v5929_v6, 4  ;;  %v15400_v9 = vpop.f32.mrb[1].mxu1 }
 0x68b   : > { %v15368_v26 = vpop.permute.xlu0 %7612  ;;  %v6464_v32 = vsel %vm11563_vm2, %v10118_v37, %v6463_v57  ;;  %v6467_v7 = vsel %vm11563_vm2, %v6465_v49, %v6466_v2  ;;  %v15386_v3 = vrot.slane %v5991_v11, 5  ;;  %v15390_v52 = vrot.slane %v6012_v51, 4  ;;  %v15397_v37 = vld [vmem:[#allocation2 + $0x6c] sm:$0xf]  ;;  %17184 = vst [vmem:[#allocation55_spill] sm:$0xff] %v15400_v9 }
 0x68c   : > { %17182 = vst [vmem:[#allocation54_spill] sm:$0xff] %v15368_v26  ;;  %v15378_v26 = vrot.slane %v5925_v24, 5  ;;  %v10230_v5 = vcombine.low %v6464_v32, %v6467_v7  ;;  %v5626_v14 = vor.u32 %v5625_v29, %v5622_v12  ;;  %v5636_v61 = vor.u32 %v5635_v0, %v5631_v60  ;;  %v15394_v24 = vld [vmem:[#allocation2 + $0x48] sm:$0xf]  ;;  %v15404_v12 = vpop.f32.mrb[2].mxu1 }
 0x68d   : > { %v15392_v38 = vrot.slane %v6015_v36, 5  ;;  %v6108_v57 = vshrl.u32 %v15397_v37, 16  ;;  %v5641_v2 = vrot.slane %v5639_v33, 5  ;;  %v6819_v51 = vor.u32 %v6818_v27, %v15364_v53  ;;  %17185 = vst [vmem:[#allocation39_spill] sm:$0xff] %v15404_v12  ;;  %v11346_v36 = vld [vmem:[#allocation2] sm:$0xf]  ;;  %v15420_v12 = vpop.permute.xlu1 %7388 }
 0x68e   : > { %7528 = vrot.lane.b32.xlu0 %v10230_v5, %s11434_s24  ;;  %v5627_v11 = vrot.slane %v5626_v14, 4  ;;  %v5637_v49 = vrot.slane %v5636_v61, 4  ;;  %v11347_v29 = vld [vmem:[#allocation2 + $0x4] sm:$0xf]  ;;  %v5932_v32 = vor.u32 %v5931_v39, %v15378_v26  ;;  %v5922_v7 = vor.u32 %v15318_v63, %v15316_v59  ;;  %v15410_v9 = vpop.f32.mrb[3].mxu1  ;;  %17188 = vst [vmem:[#allocation57_spill] sm:$0xff] %v15420_v12 }
 0x68f   : > { %v10136_v0 = vcombine.low %v11346_v36, %v11347_v29  ;;  %v6822_v6 = vshll.u32 %v15237_v22, 16  ;;  %17186 = vst [vmem:[#allocation56_spill] sm:$0xff] %v15410_v9  ;;  %v11348_v5 = vld [vmem:[#allocation2 + $0x1c] sm:$0xf]  ;;  %v6826_v27 = vshrl.u32 %v15237_v22, 16  ;;  %v15417_v61 = vpop.f32.mrb[4].mxu1 }
 0x690   : > { %v15388_v62 = vpop.permute.xlu0 %7678  ;;  %v5949_v14 = vshll.u32 %v11348_v5, 16  ;;  %v5632_v33 = vsel %vm11607_vm5, %v5627_v11, %v5631_v60  ;;  %v5642_v53 = vsel %vm11607_vm5, %v5637_v49, %v5641_v2  ;;  %17187 = vst [vmem:[#allocation40_spill] sm:$0xff] %v15417_v61  ;;  %v5953_v36 = vshrl.u32 %v11348_v5, 16  ;;  %v5895_v29 = vld [vmem:[#allocation2 + $0xb4] sm:$0xf] }
 0x691   : > { %v10165_v59 = vcombine.low %v5632_v33, %v5642_v53  ;;  %v6824_v63 = vrot.slane %v6822_v6, 5  ;;  %v5935_v16 = vshll.u32 %v11349_v42, 16  ;;  %v6820_v60 = vrot.slane %v6819_v51, 4  ;;  %v11351_v39 = vld [vmem:[#allocation2 + $0x28] sm:$0xf] }
 0x692   : > { %v6828_v11 = vrot.slane %v6826_v27, 4  ;;  %v6832_v49 = vshll.u32 %v11350_v17, 16  ;;  %v15428_v61 = vrot.slane %v6108_v57, 4  ;;  %v7758_v6 = vsel %vm3359_vm14, %v10136_v0, %v14959_v10 }
 0x693   : > { %v15432_v5 = vrot.slane %v5922_v7, 4  ;;  %7222 = vrot.lane.b32.xlu1 %v10165_v59, %s11434_s24  ;;  %v15437_v42 = vrot.slane %v5932_v32, 4  ;;  %v5946_v17 = vor.u32 %v15340_v19, %v15321_v31  ;;  %v15441_v51 = vrot.slane %v5949_v14, 5 }
 0x694   : > { %v15424_v2 = vpop.permute.xlu0 %7518  ;;  %v6829_v53 = vor.u32 %v6828_v11, %v6824_v63  ;;  %v5955_v27 = vrot.slane %v5953_v36, 4  ;;  %v5973_v10 = vshll.u32 %v11351_v39, 16  ;;  %v5977_v0 = vshrl.u32 %v11351_v39, 16  ;;  %v15457_v36 = vpop.permute.xlu1 %7200 }
 0x695   : > { %17190 = vst [vmem:[#allocation4_spill] sm:$0xff] %v15424_v2  ;;  %v10198_v7 = vcombine.low %v5895_v29, %v15355_v54  ;;  %v5937_v59 = vrot.slane %v5935_v16, 5  ;;  %v6825_v32 = vsel %vm11607_vm5, %v6820_v60, %v6824_v63  ;;  %v7806_v31 = vsel %vm7804_vm12, %v7758_v6, %v14982_v48  ;;  %v5287_v54 = vld [vmem:[#allocation2 + $0xa8] sm:$0xf] }
 0x696   : > { %v6837_v14 = vshrl.u32 %v15301_v43, 16  ;;  %v6840_v39 = vshll.u32 %v15301_v43, 16  ;;  %v5928_v48 = vsel %vm11607_vm5, %v15432_v5, %v15378_v26  ;;  %v15468_v29 = vrot.slane %v5946_v17, 4 }
 0x697   : > { %7400 = vrot.lane.b32.xlu1 %v10198_v7, %s11439_s30  ;;  %v5938_v63 = vsel %vm11607_vm5, %v15437_v42, %v5937_v59  ;;  %v15477_v6 = vrot.slane %v5973_v10, 5  ;;  %v15479_v7 = vld [vmem:[#allocation2 + $0xc0] sm:$0xf]  ;;  %v5644_v59 = vshrl.u32 %v5287_v54, 16  ;;  %v5653_v26 = vshll.u32 %v15325_v55, 16 }
 0x698   : > { %v5657_v5 = vshrl.u32 %v15325_v55, 16  ;;  %v6839_v12 = vrot.slane %v6837_v14, 4  ;;  %v6842_v2 = vrot.slane %v6840_v39, 5  ;;  %v17199_v55 = vshll.u32 %v15397_v37, 16 }
 0x699   : > { %v15497_v14 = vsel %vm7837_vm13, %v7806_v31, %v15011_v23  ;;  %v10200_v31 = vcombine.low %v5928_v48, %v5938_v63 }
 0x69b   : > { %v15472_v60 = vpop.permute.xlu0 %7680 }
 0x6a2   : > { %v15422_v9 = vpop.f32.mrb[72].mxu0 }
 0x6a3   : > { %17189 = vst [vmem:[#allocation58_spill] sm:$0xff] %v15422_v9  ;;  %v15426_v22 = vpop.f32.mrb[73].mxu0  ;;  %v15446_v9 = vpop.f32.mrb[5].mxu1 }
 0x6a4   : > { %17191 = vst [vmem:[#allocation64_spill] sm:$0xff] %v15426_v22  ;;  %v15435_v33 = vpop.f32.mrb[74].mxu0  ;;  %v6834_v22 = vrot.slane %v6832_v49, 5  ;;  %v15450_v19 = vpop.f32.mrb[6].mxu1  ;;  %v5956_v49 = vor.u32 %v5955_v27, %v15441_v51  ;;  %v5663_v27 = vshll.u32 %v15336_v8, 16 }
 0x6a5   : > { %17192 = vst [vmem:[#allocation65_spill] sm:$0xff] %v15435_v33  ;;  %v15443_v57 = vpop.f32.mrb[75].mxu0  ;;  %v6830_v33 = vrot.slane %v6829_v53, 4  ;;  %v15459_v16 = vpop.f32.mrb[7].mxu1  ;;  %v5979_v53 = vrot.slane %v5977_v0, 4  ;;  %v5646_v0 = vrot.slane %v5644_v59, 4 }
 0x6a6   : > { %17193 = vst [vmem:[#allocation66_spill] sm:$0xff] %v15443_v57  ;;  %17194 = vst [vmem:[#allocation67_spill] sm:$0xff] %v15459_v16  ;;  %v15474_v11 = vpop.f32.mrb[8].mxu1  ;;  %v5647_v57 = vshll.u32 %v5287_v54, 16  ;;  %v5659_v54 = vrot.slane %v5657_v5, 4  ;;  %v15493_v16 = vrot.slane %v17199_v55, 5  ;;  %v15503_v59 = vpop.permute.xlu1 %7294 }
 0x6a7   : > { %v6835_v43 = vsel %vm11607_vm5, %v6830_v33, %v6834_v22  ;;  %17195 = vst [vmem:[#allocation68_spill] sm:$0xff] %v15474_v11  ;;  %v11352_v22 = vld [vmem:[#allocation2 + $0x20] sm:$0x1]  ;;  %v5957_v39 = vrot.slane %v5956_v49, 4  ;;  %17200 = vst [vmem:[#allocation72_spill] sm:$0xff] %v15503_v59  ;;  %v5980_v37 = vor.u32 %v5979_v53, %v15477_v6  ;;  %v15510_v55 = vpop.permute.xlu0 %7614  ;;  %v15512_v23 = vpop.f32.mrb[9].mxu1 }
 0x6a8   : > { %v10260_v42 = vcombine.low %v6825_v32, %v6835_v43  ;;  %v5959_v33 = vshll.u32 %v11352_v22, 16  ;;  %v5649_v32 = vrot.slane %v5647_v57, 5  ;;  %v5655_v43 = vrot.slane %v5653_v26, 5  ;;  %17202 = vst [vmem:[#allocation74_spill] sm:$0xff] %v15510_v55 }
 0x6a9   : > { %v5970_v26 = vor.u32 %v15345_v1, %v15342_v25  ;;  %v5952_v25 = vsel %vm11607_vm5, %v15468_v29, %v15441_v51  ;;  %v15533_v51 = vrot.slane %v5980_v37, 4 }
 0x6aa   : > { %v15483_v17 = vpop.f32.mrb[76].mxu0  ;;  %7700 = vrot.lane.b32.xlu0 %v10260_v42, %s11439_s30  ;;  %v15499_v42 = vld [vmem:[#allocation2 + $0xc4] sm:$0xf]  ;;  %v5650_v5 = vor.u32 %v5649_v32, %v5646_v0  ;;  %v5660_v22 = vor.u32 %v5659_v54, %v5655_v43  ;;  %v5961_v49 = vrot.slane %v5959_v33, 5  ;;  %v5665_v0 = vrot.slane %v5663_v27, 5 }
 0x6ab   : > { %17196 = vst [vmem:[#allocation69_spill] sm:$0xff] %v15483_v17  ;;  %v15487_v10 = vpop.f32.mrb[77].mxu0  ;;  %v10246_v8 = vcombine.low %v15479_v7, %v15499_v42  ;;  %v6846_v17 = vshll.u32 %v15307_v41, 16  ;;  %v15522_v32 = vld [vmem:[#allocation2 + $0xb8] sm:$0xf]  ;;  %v6850_v33 = vshrl.u32 %v15307_v41, 16  ;;  %v15541_v41 = vpop.permute.xlu1 %7202 }
 0x6ac   : > { %17197 = vst [vmem:[#allocation70_spill] sm:$0xff] %v15487_v10  ;;  %v15489_v11 = vpop.f32.mrb[78].mxu0  ;;  %v15516_v10 = vpop.f32.mrb[10].mxu1  ;;  %v5651_v1 = vrot.slane %v5650_v5, 4  ;;  %v5661_v53 = vrot.slane %v5660_v22, 4  ;;  %v5962_v63 = vsel %vm11607_vm5, %v5957_v39, %v5961_v49  ;;  %v15531_v59 = vrot.slane %v5970_v26, 4 }
 0x6ad   : > { %17198 = vst [vmem:[#allocation71_spill] sm:$0xff] %v15489_v11  ;;  %v15505_v57 = vpop.f32.mrb[79].mxu0  ;;  %v6843_v11 = vor.u32 %v6842_v2, %v6839_v12  ;;  %v15524_v54 = vpop.f32.mrb[11].mxu1  ;;  %v11354_v12 = vld [vmem:[#allocation2 + $0x2c] sm:$0x1]  ;;  %v6848_v48 = vrot.slane %v6846_v17, 5  ;;  %v15547_v26 = vsel %vm3359_vm14, %v10200_v31, %v15168_v30  ;;  %v10201_v37 = vcombine.low %v5952_v25, %v5962_v63 }
 0x6ae   : > { %17201 = vst [vmem:[#allocation73_spill] sm:$0xff] %v15505_v57  ;;  %7624 = vrot.lane.b32.xlu0 %v10246_v8, %s11438_s17  ;;  %17203 = vst [vmem:[#allocation75_spill] sm:$0xff] %v15524_v54  ;;  %v5983_v2 = vshll.u32 %v11354_v12, 16  ;;  %v5706_v8 = vld [vmem:[#allocation2 + $0xb4] sm:$0xe]  ;;  %v15529_v57 = vpop.f32.mrb[12].mxu1  ;;  %v5656_v29 = vsel %vm11607_vm5, %v5651_v1, %v5655_v43  ;;  %v5666_v27 = vsel %vm11607_vm5, %v5661_v53, %v5665_v0  ;;  %v15550_v53 = vpop.permute.xlu0 %7682 }
 0x6af   : > { %17204 = vst [vmem:[#allocation76_spill] sm:$0xff] %v15529_v57  ;;  %v10166_v5 = vcombine.low %v5656_v29, %v5666_v27  ;;  %v6844_v39 = vrot.slane %v6843_v11, 4  ;;  %v6852_v22 = vrot.slane %v6850_v33, 4  ;;  %v11355_v49 = vld [vmem:[#allocation2 + $0xbc] sm:$0x1]  ;;  %v10103_v43 = vrot.slane %v5706_v8, 9 }
 0x6b0   : > { %v6856_v17 = vshll.u32 %v11355_v49, 16  ;;  %v15539_v12 = vld [vmem:[#allocation2 + $0xbc] sm:$0x1]  ;;  %v5862_v1 = vrot.slane %v15522_v32, 5  ;;  %v5985_v0 = vrot.slane %v5983_v2, 5  ;;  %v15559_v30 = vsel %vm3359_vm14, %v10201_v37, %v15191_v4 }
 0x6b1   : > { %v11356_v33 = vld [vmem:[#allocation2 + $0x34] sm:$0xf]  ;;  %7224 = vrot.lane.b32.xlu1 %v10166_v5, %s11434_s24  ;;  %v6853_v49 = vor.u32 %v6852_v22, %v6848_v48  ;;  %v5976_v31 = vsel %vm11607_vm5, %v15531_v59, %v15477_v6  ;;  %v5865_v63 = vrot.slane %v15539_v12, 5  ;;  %v6849_v5 = vsel %vm11607_vm5, %v6844_v39, %v6848_v48  ;;  %v15573_v37 = vld [vmem:[#allocation2 + $0xc4] sm:$0xf]  ;;  %v15590_v6 = vpop.f32.mrb[13].mxu1 }
 0x6b2   : > { %v15543_v55 = vpop.f32.mrb[80].mxu0  ;;  %v5997_v29 = vshll.u32 %v11356_v33, 16  ;;  %v6001_v27 = vshrl.u32 %v11356_v33, 16  ;;  %v5864_v25 = vrot.slane %v5862_v1, 4  ;;  %v5986_v8 = vsel %vm11607_vm5, %v15533_v51, %v5985_v0  ;;  %v6314_v33 = vld [vmem:[#allocation2 + $0xc0] sm:$0xe] }
 0x6b3   : > { %17205 = vst [vmem:[#allocation77_spill] sm:$0xff] %v15543_v55  ;;  %v15552_v11 = vpop.f32.mrb[81].mxu0  ;;  %v6854_v22 = vrot.slane %v6853_v49, 4  ;;  %v6858_v4 = vrot.slane %v6856_v17, 5  ;;  %v6861_v59 = vshrl.u32 %v15479_v7, 16  ;;  %17210 = vst [vmem:[#allocation82_spill] sm:$0xff] %v15590_v6 }
 0x6b4   : > { %17206 = vst [vmem:[#allocation78_spill] sm:$0xff] %v15552_v11  ;;  %v15555_v55 = vpop.f32.mrb[82].mxu0  ;;  %v5289_v51 = vld [vmem:[#allocation2 + $0xb4] sm:$0xf]  ;;  %v15582_v0 = vrot.slane %v5997_v29, 5  ;;  %v6003_v48 = vrot.slane %v6001_v27, 4  ;;  %v15588_v11 = vpop.permute.xlu1 %7390 }
 0x6b5   : > { %17207 = vst [vmem:[#allocation79_spill] sm:$0xff] %v15555_v55  ;;  %v15566_v2 = vpop.f32.mrb[83].mxu0  ;;  %v5863_v55 = vsel %vm11563_vm2, %v10103_v43, %v5862_v1  ;;  %v6859_v39 = vsel %vm11607_vm5, %v6854_v22, %v6858_v4  ;;  %v15586_v49 = vld [vmem:[#allocation2 + $0xc8] sm:$0x1]  ;;  %17209 = vst [vmem:[#allocation81_spill] sm:$0xff] %v15588_v11  ;;  %v6864_v57 = vshll.u32 %v15479_v7, 16 }
 0x6b6   : > { %17208 = vst [vmem:[#allocation80_spill] sm:$0xff] %v15566_v2  ;;  %v5866_v2 = vsel %vm11563_vm2, %v5864_v25, %v5865_v63  ;;  %v10261_v43 = vcombine.low %v6849_v5, %v6859_v39  ;;  %v10119_v1 = vrot.slane %v6314_v33, 9  ;;  %v6470_v25 = vrot.slane %v15573_v37, 5  ;;  %v15594_v63 = vpop.permute.xlu0 %7520  ;;  %v15596_v29 = vpop.f32.mrb[14].mxu1 }
 0x6b7   : > { %v10183_v17 = vcombine.low %v5863_v55, %v5866_v2  ;;  %17211 = vst [vmem:[#allocation83_spill] sm:$0xff] %v15594_v63  ;;  %17212 = vst [vmem:[#allocation84_spill] sm:$0xff] %v15596_v29  ;;  %v5668_v27 = vshrl.u32 %v5289_v51, 16  ;;  %v5671_v55 = vshll.u32 %v5289_v51, 16  ;;  %v5677_v2 = vshll.u32 %v15522_v32, 16  ;;  %v15603_v11 = vpop.f32.mrb[15].mxu1 }
 0x6b8   : > { %v5681_v22 = vshrl.u32 %v15522_v32, 16  ;;  %17214 = vst [vmem:[#allocation86_spill] sm:$0xff] %v15603_v11  ;;  %v6863_v7 = vrot.slane %v6861_v59, 4  ;;  %7702 = vrot.lane.b32.xlu0 %v10261_v43, %s11439_s30  ;;  %v6472_v5 = vrot.slane %v6470_v25, 4  ;;  %v6473_v33 = vrot.slane %v15586_v49, 5 }
 0x6b9   : > { %7306 = vrot.lane.b32.xlu1 %v10183_v17, %s11438_s17  ;;  %v5687_v39 = vshll.u32 %v15539_v12, 16  ;;  %v5670_v17 = vrot.slane %v5668_v27, 4  ;;  %v5673_v51 = vrot.slane %v5671_v55, 5  ;;  %v5679_v29 = vrot.slane %v5677_v2, 5 }
 0x6ba   : > { %v15601_v4 = vpop.f32.mrb[84].mxu0  ;;  %v5683_v6 = vrot.slane %v5681_v22, 4  ;;  %v6866_v32 = vrot.slane %v6864_v57, 5  ;;  %v6474_v59 = vsel %vm11563_vm2, %v6472_v5, %v6473_v33  ;;  %v6114_v43 = vor.u32 %v15493_v16, %v15428_v61  ;;  %v15622_v22 = vpop.permute.xlu1 %7204 }
 0x6bb   : > { %17213 = vst [vmem:[#allocation85_spill] sm:$0xff] %v15601_v4  ;;  %v15608_v63 = vpop.f32.mrb[85].mxu0  ;;  %v6471_v4 = vsel %vm11563_vm2, %v10119_v1, %v6470_v25  ;;  %v15620_v12 = vcombine.low %v5976_v31, %v5986_v8  ;;  %v5674_v55 = vor.u32 %v5673_v51, %v5670_v17  ;;  %v6004_v57 = vor.u32 %v6003_v48, %v15582_v0  ;;  %v11358_v1 = vld [vmem:[#allocation2 + $0x70] sm:$0xf]  ;;  %v15625_v5 = vpop.permute.xlu0 %7684  ;;  %v11359_v8 = vld [vmem:[#allocation2 + $0x74] sm:$0x1] }
 0x6bc   : > { %17215 = vst [vmem:[#allocation87_spill] sm:$0xff] %v15608_v63  ;;  %v15610_v54 = vpop.f32.mrb[86].mxu0  ;;  %v10231_v27 = vcombine.low %v6471_v4, %v6474_v59  ;;  %v5684_v2 = vor.u32 %v5683_v6, %v5679_v29  ;;  %v6117_v25 = vshll.u32 %v11358_v1, 16  ;;  %v6121_v45 = vshrl.u32 %v11358_v1, 16 }
 0x6bd   : > { %17216 = vst [vmem:[#allocation88_spill] sm:$0xff] %v15610_v54  ;;  %v15618_v11 = vpop.f32.mrb[87].mxu0  ;;  %v11357_v54 = vld [vmem:[#allocation2 + $0x38] sm:$0x1]  ;;  %v5675_v61 = vrot.slane %v5674_v55, 4  ;;  %v5689_v31 = vrot.slane %v5687_v39, 5  ;;  %v6867_v51 = vor.u32 %v6866_v32, %v6863_v7  ;;  %v17218_v48 = vor.u32 %v15386_v3, %v15350_v13 }
 0x6be   : > { %17217 = vst [vmem:[#allocation89_spill] sm:$0xff] %v15618_v11  ;;  %v6007_v63 = vshll.u32 %v11357_v54, 16  ;;  %7530 = vrot.lane.b32.xlu0 %v10231_v27, %s11434_s24  ;;  %v5685_v16 = vrot.slane %v5684_v2, 4  ;;  %v6127_v4 = vshll.u32 %v11359_v8, 16  ;;  %v6115_v33 = vrot.slane %v6114_v43, 4  ;;  %v15646_v13 = vpop.f32.mrb[16].mxu1 }
 0x6bf   : > { %v6119_v6 = vrot.slane %v6117_v25, 5  ;;  %v6123_v17 = vrot.slane %v6121_v45, 4  ;;  %v15631_v54 = vrot.slane %v17218_v48, 4  ;;  %v5680_v59 = vsel %vm11607_vm5, %v5675_v61, %v5679_v29  ;;  %v15638_v39 = vld [vmem:[#allocation2 + $0xcc] sm:$0xf]  ;;  %17219 = vst [vmem:[#allocation90_spill] sm:$0xff] %v15646_v13  ;;  %v15649_v61 = vpop.permute.xlu1 %7296 }
 0x6c0   : > { %v5690_v27 = vsel %vm11607_vm5, %v5685_v16, %v5689_v31  ;;  %v6870_v55 = vshll.u32 %v15499_v42, 16  ;;  %v15640_v2 = vrot.slane %v6004_v57, 4  ;;  %v15642_v43 = vrot.slane %v6007_v63, 5  ;;  %v15644_v32 = vld [vmem:[#allocation2 + $0xc0] sm:$0xf]  ;;  %17220 = vst [vmem:[#allocation91_spill] sm:$0xff] %v15649_v61 }
 0x6c1   : > { %v10167_v45 = vcombine.low %v5680_v59, %v5690_v27  ;;  %v6124_v7 = vor.u32 %v6123_v17, %v6119_v6  ;;  %v6129_v3 = vrot.slane %v6127_v4, 5  ;;  %v6868_v1 = vrot.slane %v6867_v51, 4  ;;  %v11360_v31 = vld [vmem:[#allocation2 + $0xc8] sm:$0x1]  ;;  %v15656_v17 = vld [vmem:[#allocation2 + $0xd0] sm:$0xf]  ;;  %v15659_v51 = vpop.permute.xlu0 %7616 }
 0x6c2   : > { %v6872_v29 = vrot.slane %v6870_v55, 5  ;;  %v6874_v25 = vshrl.u32 %v15499_v42, 16  ;;  %v15651_v16 = vpop.f32.mrb[88].mxu0  ;;  %v6120_v63 = vsel %vm11607_vm5, %v6115_v33, %v6119_v6  ;;  %v6880_v8 = vshll.u32 %v11360_v31, 16  ;;  %17222 = vst [vmem:[#allocation93_spill] sm:$0xff] %v15659_v51  ;;  %v15665_v33 = vpop.f32.mrb[17].mxu1 }
 0x6c3   : > { %17221 = vst [vmem:[#allocation92_spill] sm:$0xff] %v15651_v16  ;;  %7226 = vrot.lane.b32.xlu1 %v10167_v45, %s11434_s24  ;;  %v6125_v57 = vrot.slane %v6124_v7, 4  ;;  %v6885_v4 = vshrl.u32 %v15638_v39, 16  ;;  %v15661_v48 = vpop.f32.mrb[89].mxu0  ;;  %v11361_v42 = vld [vmem:[#allocation2 + $0x40] sm:$0xf]  ;;  %v10199_v7 = vcombine.low %v15644_v32, %v15573_v37 }
 0x6c4   : > { %17223 = vst [vmem:[#allocation94_spill] sm:$0xff] %v15661_v48  ;;  %v6021_v59 = vshll.u32 %v11361_v42, 16  ;;  %v6025_v27 = vshrl.u32 %v11361_v42, 16  ;;  %v11362_v55 = vld [vmem:[#allocation2 + $0x10] sm:$0xf]  ;;  %v6876_v11 = vrot.slane %v6874_v25, 4  ;;  %v6873_v25 = vsel %vm11607_vm5, %v6868_v1, %v6872_v29 }
 0x6c5   : > { %v11363_v16 = vld [vmem:[#allocation2 + $0xc] sm:$0xf]  ;;  %v15663_v61 = vpop.f32.mrb[90].mxu0  ;;  %v6130_v6 = vsel %vm11607_vm5, %v6125_v57, %v6129_v3  ;;  %v6887_v31 = vrot.slane %v6885_v4, 4  ;;  %v6888_v48 = vshll.u32 %v15638_v39, 16  ;;  %v15674_v42 = vpop.f32.mrb[18].mxu1  ;;  %v7935_v4 = vsel %vm7804_vm12, %v15547_v26, %v14984_v15 }
 0x6c6   : > { %v10137_v45 = vcombine.low %v11363_v16, %v11362_v55  ;;  %17224 = vst [vmem:[#allocation95_spill] sm:$0xff] %v15663_v61  ;;  %v15672_v51 = vpop.f32.mrb[91].mxu0  ;;  %17226 = vst [vmem:[#allocation97_spill] sm:$0xff] %v15674_v42  ;;  %v10208_v13 = vcombine.low %v6120_v63, %v6130_v6  ;;  %v6877_v16 = vor.u32 %v6876_v11, %v6872_v29  ;;  %v6898_v55 = vshrl.u32 %v15656_v17, 16  ;;  %v15679_v61 = vpop.f32.mrb[19].mxu1  ;;  %s10368_s24 = sshll.u32 %s17346_s22, 7 }
 0x6c7   : > { %17225 = vst [vmem:[#allocation96_spill] sm:$0xff] %v15672_v51  ;;  %17227 = vst [vmem:[#allocation98_spill] sm:$0xff] %v15679_v61  ;;  %v6882_v3 = vrot.slane %v6880_v8, 5  ;;  %7402 = vrot.lane.b32.xlu1 %v10199_v7, %s11439_s30  ;;  %v6890_v57 = vrot.slane %v6888_v48, 5  ;;  %v15685_v51 = vld [vmem:[#allocation2 + $0xd4] sm:$0x1]  ;;  %v7967_v29 = vsel %vm7837_vm13, %v7935_v4, %v15338_v34  ;;  %v15694_v6 = vpop.permute.xlu1 %7206  ;;  %v15700_v61 = vpop.permute.xlu0 %7686  ;;  %v6010_v4 = vsel %vm11607_vm5, %v15640_v2, %v15642_v43  ;;  %s15898_s0 = scalar_lea.vmem %s16883_s14, %s10368_s24 }
 0x6c8   : > { %v6894_v63 = vshll.u32 %v15656_v17, 16  ;;  %v15690_v1 = vsel %vm3359_vm14, %v10208_v13, %v15314_v50  ;;  %v6878_v11 = vrot.slane %v6877_v16, 4  ;;  %v6900_v8 = vrot.slane %v6898_v55, 4  ;;  %8245 = vmatprep.mubr.bf16.mxu1 %v7967_v29  ;;  %v15702_v42 = vpop.f32.mrb[20].mxu1 }
 0x6c9   : > { %v15696_v48 = vrot.slane %v6021_v59, 5  ;;  %v15698_v7 = vrot.slane %v6025_v27, 4  ;;  %v6891_v15 = vor.u32 %v6890_v57, %v6887_v31  ;;  %v7761_v50 = vsel %vm3359_vm14, %v10137_v45, %v15384_v47  ;;  %8246 = vmatmul.mubr.bf16.vlgmr.msra.gmra.mrb[64].mxu1 %v15497_v14  ;;  %v15713_v27 = vpop.f32.mrb[21].mxu1 }
 0x6ca   : > { %v6896_v26 = vrot.slane %v6894_v63, 5  ;;  %v6883_v34 = vsel %vm11607_vm5, %v6878_v11, %v6882_v3  ;;  %v6904_v13 = vshll.u32 %v15685_v51, 16  ;;  %v7937_v59 = vsel %vm7804_vm12, %v15559_v30, %v15002_v58  ;;  %v15717_v47 = vpop.f32.mrb[22].mxu1  ;;  %v11364_v63 = vld [vmem:[#allocation2 + $0x4c] sm:$0xf] }
 0x6cb   : > { %v10262_v31 = vcombine.low %v6873_v25, %v6883_v34  ;;  %v6892_v16 = vrot.slane %v6891_v15, 4  ;;  %v7970_v57 = vsel %vm7837_vm13, %v7937_v59, %v15388_v62  ;;  %v17228_v45 = vshrl.u32 %v15394_v24, 16  ;;  %v15727_v25 = vpop.f32.mrb[23].mxu1 }
 0x6cc   : > { %v6901_v55 = vor.u32 %v6900_v8, %v6896_v26  ;;  %v6039_v14 = vshll.u32 %v15394_v24, 16  ;;  %v7894_v58 = vsel %vm3359_vm14, %v15620_v12, %v15202_v18  ;;  %v6906_v30 = vrot.slane %v6904_v13, 5  ;;  %8253 = vmatprep.mubr.bf16.mxu1 %v7970_v57  ;;  %v15740_v12 = vpop.f32.mrb[92].mxu0  ;;  %v11368_v57 = vld [vmem:[#allocation2 + $0x18] sm:$0xf] }
 0x6cd   : > { %v15721_v3 = vrot.slane %v17228_v45, 4  ;;  %v6000_v62 = vsel %vm11607_vm5, %v15631_v54, %v15582_v0  ;;  %7704 = vrot.lane.b32.xlu0 %v10262_v31, %s11439_s30  ;;  %v10247_v24 = vcombine.low %v15638_v39, %v15656_v17  ;;  %17229 = vst [vmem:[#allocation99_spill] sm:$0xff] %v15740_v12  ;;  %v6045_v11 = vshll.u32 %v11364_v63, 16  ;;  %v15746_v54 = vpop.permute.xlu1 %7392  ;;  %v15748_v2 = vpop.f32.mrb[93].mxu0 }
 0x6ce   : > { %v6902_v18 = vrot.slane %v6901_v55, 4  ;;  %v6049_v29 = vshrl.u32 %v11364_v63, 16  ;;  %v6897_v8 = vsel %vm11607_vm5, %v6892_v16, %v6896_v26  ;;  %v7808_v0 = vsel %vm7804_vm12, %v7761_v50, %v15214_v20  ;;  %v15758_v26 = vpop.permute.xlu0 %7522  ;;  %v15760_v13 = vpop.f32.mrb[94].mxu0  ;;  %v11365_v50 = vld [vmem:[#allocation2 + $0x54] sm:$0xf] }
 0x6cf   : > { %v6018_v43 = vor.u32 %v15392_v38, %v15390_v52  ;;  %v6028_v39 = vor.u32 %v15698_v7, %v15696_v48  ;;  %v7939_v34 = vsel %vm7804_vm12, %v7894_v58, %v15025_v56  ;;  %17230 = vst [vmem:[#allocation100_spill] sm:$0xff] %v15760_v13  ;;  %v6041_v20 = vrot.slane %v6039_v14, 5  ;;  %v15764_v38 = vpop.f32.mrb[95].mxu0  ;;  %v11366_v7 = vld [vmem:[#allocation2 + $0x44] sm:$0x1]  ;;  %v17265_v13 = vld [vmem:[#allocation90_spill] sm:$0xff] }
 0x6d0   : > { %v6907_v15 = vsel %vm11607_vm5, %v6902_v18, %v6906_v30  ;;  %v6060_v59 = vshrl.u32 %v11365_v50, 16  ;;  %v6063_v31 = vshll.u32 %v11365_v50, 16  ;;  %v7973_v52 = vsel %vm7837_vm13, %v7939_v34, %v15472_v60  ;;  %17231 = vst [vmem:[#allocation101_spill] sm:$0xff] %v15764_v38  ;;  %v11367_v55 = vld [vmem:[#allocation2 + $0x1c] sm:$0xf] }
 0x6d1   : > { %v6031_v16 = vshll.u32 %v11366_v7, 16  ;;  %7626 = vrot.lane.b32.xlu0 %v10247_v24, %s11438_s17  ;;  %v10138_v56 = vcombine.low %v11368_v57, %v11367_v55  ;;  %v10263_v45 = vcombine.low %v6897_v8, %v6907_v15  ;;  %v7842_v58 = vsel %vm7837_vm13, %v7808_v0, %v15037_v35  ;;  %v11369_v63 = vld [vmem:[#allocation2 + $0x60] sm:$0xf]  ;;  %v11370_v15 = vld [vmem:[#allocation2 + $0x58] sm:$0xf] }
 0x6d2   : > { %v10203_v14 = vcombine.low %v6000_v62, %v6010_v4  ;;  %v15769_v30 = vrot.slane %v6045_v11, 5  ;;  %v6051_v18 = vrot.slane %v6049_v29, 4  ;;  %8254 = vmatmul.mubr.bf16.gmra.mrb[68].mxu1 %v7842_v58  ;;  %v6084_v60 = vshrl.u32 %v11369_v63, 16  ;;  %v15777_v4 = vpop.permute.xlu1 %7208 }
 0x6d3   : > { %v6019_v34 = vrot.slane %v6018_v43, 4  ;;  %v6029_v50 = vrot.slane %v6028_v39, 4  ;;  %v7764_v7 = vsel %vm3359_vm14, %v10138_v56, %v15457_v36  ;;  %8261 = vmatprep.mubr.bf16.mxu1 %v7973_v52  ;;  %v15773_v24 = vrot.slane %v6060_v59, 4  ;;  %v15781_v39 = vpop.permute.xlu0 %7688  ;;  %v11371_v59 = vld [vmem:[#allocation2 + $0x64] sm:$0xf] }
 0x6d4   : > { %v7897_v8 = vsel %vm3359_vm14, %v10203_v14, %v15220_v40  ;;  %v6069_v35 = vshll.u32 %v11370_v15, 16  ;;  %v6073_v62 = vshrl.u32 %v11370_v15, 16  ;;  %v6065_v11 = vrot.slane %v6063_v31, 5  ;;  %v11372_v56 = vld [vmem:[#allocation2 + $0x50] sm:$0x1] }
 0x6d5   : > { %v6087_v29 = vshll.u32 %v11369_v63, 16  ;;  %v6033_v0 = vrot.slane %v6031_v16, 5  ;;  %v6042_v43 = vor.u32 %v6041_v20, %v15721_v3  ;;  %7706 = vrot.lane.b32.xlu0 %v10263_v45, %s11439_s30  ;;  %v6052_v36 = vor.u32 %v6051_v18, %v15769_v30  ;;  %v15793_v16 = vpop.f32.mrb[96].mxu0  ;;  %s16344_s30 = scalar_lea.vmem %s16884_s15, %s10368_s24 }
 0x6d6   : > { %v6093_v52 = vshll.u32 %v11371_v59, 16  ;;  %v6097_v55 = vshrl.u32 %v11371_v59, 16  ;;  %v7810_v40 = vsel %vm7804_vm12, %v7764_v7, %v15242_v21  ;;  %v6086_v57 = vrot.slane %v6084_v60, 4  ;;  %17232 = vst [vmem:[#allocation102_spill] sm:$0xff] %v15793_v16  ;;  %v15799_v18 = vpop.f32.mrb[97].mxu0  ;;  %v17236_v59 = vld [vmem:[#allocation49_spill] sm:$0xff] }
 0x6d7   : > { %v6024_v31 = vsel %vm11607_vm5, %v6019_v34, %v15696_v48  ;;  %v6034_v3 = vsel %vm11607_vm5, %v6029_v50, %v6033_v0  ;;  %v7941_v20 = vsel %vm7804_vm12, %v7897_v8, %v15046_v28  ;;  %v6055_v45 = vshll.u32 %v11372_v56, 16  ;;  %17233 = vst [vmem:[#allocation103_spill] sm:$0xff] %v15799_v18  ;;  %v11373_v60 = vld [vmem:[#allocation2 + $0x28] sm:$0xf]  ;;  %v11374_v34 = vld [vmem:[#allocation2 + $0x24] sm:$0xf]  ;;  %v15807_v0 = vpop.permute.xlu1 %7298 }
 0x6d8   : > { %v15795_v58 = vrot.slane %v6069_v35, 5  ;;  %v6075_v14 = vrot.slane %v6073_v62, 4  ;;  %v7976_v21 = vsel %vm7837_vm13, %v7941_v20, %v15550_v53  ;;  %v6089_v63 = vrot.slane %v6087_v29, 5  ;;  %v15803_v7 = vpop.f32.mrb[98].mxu0  ;;  %v6923_v18 = vld [vmem:[#allocation2 + $0xcc] sm:$0xe] }
 0x6d9   : > { %v6043_v48 = vrot.slane %v6042_v43, 4  ;;  %v10139_v50 = vcombine.low %v11374_v34, %v11373_v60  ;;  %v7845_v28 = vsel %vm7837_vm13, %v7810_v40, %v15067_v46  ;;  %17234 = vst [vmem:[#allocation104_spill] sm:$0xff] %v15803_v7  ;;  %v10204_v8 = vcombine.low %v6024_v31, %v6034_v3  ;;  %v15809_v53 = vpop.f32.mrb[99].mxu0  ;;  %v15813_v43 = vpop.permute.xlu0 %7618 }
 0x6da   : > { %v6053_v15 = vrot.slane %v6052_v36, 4  ;;  %v15805_v35 = vrot.slane %v6093_v52, 5  ;;  %v6099_v62 = vrot.slane %v6097_v55, 4  ;;  %8262 = vmatmul.mubr.bf16.gmra.mrb[72].mxu1 %v7845_v28  ;;  %17235 = vst [vmem:[#allocation105_spill] sm:$0xff] %v15809_v53  ;;  %v6057_v40 = vrot.slane %v6055_v45, 5 }
 0x6db   : > { %v7767_v29 = vsel %vm3359_vm14, %v10139_v50, %v15541_v41  ;;  %8269 = vmatprep.mubr.bf16.mxu1 %v7976_v21  ;;  %v7900_v46 = vsel %vm3359_vm14, %v10204_v8, %v17236_v59  ;;  %v6066_v36 = vor.u32 %v6065_v11, %v15773_v24  ;;  %v6076_v52 = vor.u32 %v6075_v14, %v15795_v58  ;;  %v11375_v41 = vld [vmem:[#allocation2 + $0x5c] sm:$0x1]  ;;  %v17237_v21 = vld [vmem:[#allocation60_spill] sm:$0xff]  ;;  %v11376_v45 = vld [vmem:[#allocation2 + $0x78] sm:$0xf] }
 0x6dc   : > { %v6048_v55 = vsel %vm11607_vm5, %v6043_v48, %v15769_v30  ;;  %v6090_v31 = vor.u32 %v6089_v63, %v6086_v57  ;;  %v6058_v3 = vsel %vm11607_vm5, %v6053_v15, %v6057_v40  ;;  %v6079_v20 = vshll.u32 %v11375_v41, 16  ;;  %v11377_v11 = vld [vmem:[#allocation2 + $0x84] sm:$0xf]  ;;  %v17238_v50 = vld [vmem:[#allocation41_spill] sm:$0xff]  ;;  %v15831_v15 = vpop.permute.xlu1 %7210  ;;  %v11380_v40 = vld [vmem:[#allocation2 + $0x30] sm:$0xf] }
 0x6dd   : > { %v6100_v56 = vor.u32 %v6099_v62, %v15805_v35  ;;  %v7812_v60 = vsel %vm7804_vm12, %v7767_v29, %v17237_v21  ;;  %v6132_v34 = vshrl.u32 %v11376_v45, 16  ;;  %v6135_v24 = vshll.u32 %v11376_v45, 16  ;;  %v11378_v63 = vld [vmem:[#allocation2 + $0x68] sm:$0x1]  ;;  %v11379_v29 = vld [vmem:[#allocation2 + $0x34] sm:$0xf]  ;;  %v15835_v7 = vpop.permute.xlu0 %7690 }
 0x6de   : > { %v6156_v14 = vshrl.u32 %v11377_v11, 16  ;;  %v7943_v28 = vsel %vm7804_vm12, %v7900_v46, %v17238_v50  ;;  %v6067_v30 = vrot.slane %v6066_v36, 4  ;;  %v6077_v57 = vrot.slane %v6076_v52, 4  ;;  %v17239_v21 = vld [vmem:[#allocation43_spill] sm:$0xff] }
 0x6df   : > { %v6103_v48 = vshll.u32 %v11378_v63, 16  ;;  %v7979_v8 = vsel %vm7837_vm13, %v7943_v28, %v15625_v5  ;;  %v10205_v62 = vcombine.low %v6048_v55, %v6058_v3  ;;  %v6091_v59 = vrot.slane %v6090_v31, 4  ;;  %v11381_v52 = vld [vmem:[#allocation2 + $0x7c] sm:$0xf]  ;;  %v17240_v55 = vld [vmem:[#allocation50_spill] sm:$0xff] }
 0x6e0   : > { %v10140_v41 = vcombine.low %v11380_v40, %v11379_v29  ;;  %v7848_v45 = vsel %vm7837_vm13, %v7812_v60, %v17239_v21  ;;  %v6081_v46 = vrot.slane %v6079_v20, 5  ;;  %v6101_v36 = vrot.slane %v6100_v56, 4  ;;  %v17241_v40 = vld [vmem:[#allocation61_spill] sm:$0xff] }
 0x6e1   : > { %v6141_v50 = vshll.u32 %v11381_v52, 16  ;;  %v6145_v63 = vshrl.u32 %v11381_v52, 16  ;;  %v6159_v16 = vshll.u32 %v11377_v11, 16  ;;  %v7903_v31 = vsel %vm3359_vm14, %v10205_v62, %v17240_v55  ;;  %v11384_v52 = vld [vmem:[#allocation2 + $0x3c] sm:$0xf] }
 0x6e2   : > { %8270 = vmatmul.mubr.bf16.gmra.mrb[76].mxu1 %v7848_v45  ;;  %v7770_v5 = vsel %vm3359_vm14, %v10140_v41, %v15622_v22  ;;  %v6072_v3 = vsel %vm11607_vm5, %v6067_v30, %v15795_v58  ;;  %v6082_v20 = vsel %vm11607_vm5, %v6077_v57, %v6081_v46  ;;  %v6105_v56 = vrot.slane %v6103_v48, 5  ;;  %v15857_v30 = vpop.permute.xlu1 %7394  ;;  %v17242_v48 = vld [vmem:[#allocation42_spill] sm:$0xff]  ;;  %v15868_v41 = vpop.permute.xlu0 %7524 }
 0x6e3   : > { %8277 = vmatprep.mubr.bf16.mxu1 %v7979_v8  ;;  %v6134_v60 = vrot.slane %v6132_v34, 4  ;;  %v6137_v28 = vrot.slane %v6135_v24, 5  ;;  %v15846_v29 = vrot.slane %v6156_v14, 4  ;;  %v6096_v22 = vsel %vm11607_vm5, %v6091_v59, %v15805_v35  ;;  %v15859_v34 = vpop.f32.mrb[24].mxu1  ;;  %v15863_v14 = vld [vmem:[#allocation2 + $0x90] sm:$0xf] }
 0x6e4   : > { %v6106_v11 = vsel %vm11607_vm5, %v6101_v36, %v6105_v56  ;;  %v15853_v8 = vrot.slane %v6141_v50, 5  ;;  %v6147_v62 = vrot.slane %v6145_v63, 4  ;;  %v7814_v58 = vsel %vm7804_vm12, %v7770_v5, %v17241_v40  ;;  %v15870_v21 = vpop.f32.mrb[25].mxu1  ;;  %v11383_v36 = vld [vmem:[#allocation2 + $0x40] sm:$0xf]  ;;  %v17251_v35 = vld [vmem:[#allocation62_spill] sm:$0xff] }
 0x6e5   : > { %v15861_v24 = vrot.slane %v6159_v16, 5  ;;  %v10206_v57 = vcombine.low %v6072_v3, %v6082_v20  ;;  %v7945_v59 = vsel %vm7804_vm12, %v7903_v31, %v17242_v48  ;;  %v6276_v45 = vshrl.u32 %v15644_v32, 16  ;;  %v15877_v63 = vpop.f32.mrb[26].mxu1  ;;  %v11385_v31 = vld [vmem:[#allocation2 + $0x80] sm:$0x1]  ;;  %v17243_v20 = vld [vmem:[#allocation45_spill] sm:$0xff] }
 0x6e6   : > { %v6279_v46 = vshll.u32 %v15644_v32, 16  ;;  %v10141_v16 = vcombine.low %v11384_v52, %v11383_v36  ;;  %v7982_v50 = vsel %vm7837_vm13, %v7945_v59, %v15700_v61  ;;  %v10207_v5 = vcombine.low %v6096_v22, %v6106_v11  ;;  %v15881_v40 = vpop.f32.mrb[27].mxu1  ;;  %v11386_v48 = vld [vmem:[#allocation2 + $0x88] sm:$0xf]  ;;  %v17244_v59 = vld [vmem:[#allocation38_spill] sm:$0xff]  ;;  %v17245_v52 = vld [vmem:[#allocation55_spill] sm:$0xff] }
 0x6e7   : > { %v6138_v55 = vor.u32 %v6137_v28, %v6134_v60  ;;  %v6151_v3 = vshll.u32 %v11385_v31, 16  ;;  %v7851_v56 = vsel %vm7837_vm13, %v7814_v58, %v17243_v20  ;;  %v6148_v32 = vor.u32 %v6147_v62, %v15853_v8  ;;  %v17246_v28 = vld [vmem:[#allocation51_spill] sm:$0xff]  ;;  %v17247_v31 = vld [vmem:[#allocation52_spill] sm:$0xff] }
 0x6e8   : > { %v6165_v36 = vshll.u32 %v11386_v48, 16  ;;  %v7773_v61 = vsel %vm3359_vm14, %v10141_v16, %v15694_v6  ;;  %v10598_v22 = vadd.f32 %v17245_v52, %v17244_v59  ;;  %v7906_v11 = vsel %vm3359_vm14, %v10206_v57, %v17246_v28  ;;  %v17248_v6 = vld [vmem:[#allocation39_spill] sm:$0xff]  ;;  %v17249_v62 = vld [vmem:[#allocation56_spill] sm:$0xff]  ;;  %v15902_v52 = vpop.permute.xlu1 %7212  ;;  %v17250_v28 = vld [vmem:[#allocation54_spill] sm:$0xff] }
 0x6e9   : > { %v7909_v58 = vsel %vm3359_vm14, %v10207_v5, %v17247_v31  ;;  %v10601_v16 = vadd.f32 %v17249_v62, %v17248_v6  ;;  %v6278_v20 = vrot.slane %v6276_v45, 4  ;;  %v6169_v59 = vshrl.u32 %v11386_v48, 16  ;;  %v11387_v5 = vld [vmem:[#allocation2 + $0x4c] sm:$0xf]  ;;  %v11388_v31 = vld [vmem:[#allocation2 + $0x48] sm:$0xf]  ;;  %v15911_v6 = vpop.permute.xlu0 %7692 }
 0x6ea   : > { %8278 = vmatmul.mubr.bf16.gmra.mrb[80].mxu1 %v7851_v56  ;;  %v6281_v56 = vrot.slane %v6279_v46, 5  ;;  %v10370_v57 = vpack.c.bf16 %v10598_v22, %v10598_v22  ;;  %v10142_v60 = vcombine.low %v11388_v31, %v11387_v5  ;;  %v7816_v53 = vsel %vm7804_vm12, %v7773_v61, %v17251_v35  ;;  %v17252_v5 = vld [vmem:[#allocation44_spill] sm:$0xff] }
 0x6eb   : > { %8285 = vmatprep.mubr.bf16.mxu1 %v7982_v50  ;;  %v15907_v50 = vsel %vm7804_vm12, %v15690_v1, %v17250_v28  ;;  %v10371_v45 = vpack.c.bf16 %v10601_v16, %v10601_v16  ;;  %v15913_v46 = vrot.slane %v6138_v55, 4  ;;  %v15915_v48 = vrot.slane %v6148_v32, 4  ;;  %v15923_v1 = vpop.f32.mrb[28].mxu1  ;;  %v17253_v55 = vld [vmem:[#allocation40_spill] sm:$0xff] }
 0x6ec   : > { %v15917_v22 = vrot.slane %v6151_v3, 5  ;;  %v15919_v62 = vrot.slane %v6165_v36, 5  ;;  %4147 = vst.msk [vmem:[%s15898_s0] sm:$0xf] %vm4146_vm0, %v10370_v57  ;;  %v7776_v28 = vsel %vm3359_vm14, %v10142_v60, %v15777_v4  ;;  %v7947_v35 = vsel %vm7804_vm12, %v7906_v11, %v17252_v5  ;;  %v17254_v3 = vld [vmem:[#allocation67_spill] sm:$0xff]  ;;  %v15935_v36 = vpop.f32.mrb[29].mxu1 }
 0x6ed   : > { %4148 = vst.msk [vmem:[%s15898_s0 + $0x4] sm:$0xf] %vm4146_vm0, %v10371_v45  ;;  %v10604_v32 = vadd.f32 %v15446_v9, %v17253_v55  ;;  %v10607_v61 = vadd.f32 %v17254_v3, %v15450_v19  ;;  %v15937_v16 = vrot.slane %v6169_v59, 4  ;;  %v17255_v57 = vld [vmem:[#allocation47_spill] sm:$0xff]  ;;  %v7985_v4 = vsel %vm7837_vm13, %v7947_v35, %v15781_v39  ;;  %v17256_v60 = vld [vmem:[#allocation68_spill] sm:$0xff]  ;;  %v15945_v45 = vpop.f32.mrb[30].mxu1 }
 0x6ee   : > { %v7854_v31 = vsel %vm7837_vm13, %v7816_v53, %v17255_v57  ;;  %v10610_v11 = vadd.f32 %v15512_v23, %v17256_v60  ;;  %v17257_v19 = vld [vmem:[#allocation75_spill] sm:$0xff]  ;;  %v6282_v59 = vor.u32 %v6281_v56, %v6278_v20  ;;  %v15949_v3 = vpop.f32.mrb[31].mxu1  ;;  %v15965_v20 = vpop.permute.xlu0 %7620  ;;  %v17259_v23 = vld [vmem:[#allocation48_spill] sm:$0xff] }
 0x6ef   : > { %v10372_v9 = vpack.c.bf16 %v10604_v32, %v10604_v32  ;;  %v10373_v5 = vpack.c.bf16 %v10607_v61, %v10607_v61  ;;  %v10613_v55 = vadd.f32 %v17257_v19, %v15516_v10  ;;  %v17258_v53 = vld [vmem:[#allocation63_spill] sm:$0xff]  ;;  %v15959_v32 = vpop.permute.xlu1 %7300  ;;  %v17261_v39 = vld [vmem:[#allocation76_spill] sm:$0xff] }
 0x6f0   : > { %v7818_v35 = vsel %vm7804_vm12, %v7776_v28, %v17258_v53  ;;  %v10374_v61 = vpack.c.bf16 %v10610_v11, %v10610_v11  ;;  %v6283_v57 = vrot.slane %v6282_v59, 4  ;;  %v6285_v28 = vshll.u32 %v15573_v37, 16  ;;  %v11389_v60 = vld [vmem:[#allocation2 + $0x58] sm:$0xf]  ;;  %v11390_v11 = vld [vmem:[#allocation2 + $0x54] sm:$0xf] }
 0x6f1   : > { %4149 = vst.msk [vmem:[%s15898_s0 + $0x8] sm:$0xf] %vm4146_vm0, %v10372_v9  ;;  %4150 = vst.msk [vmem:[%s15898_s0 + $0xc] sm:$0xf] %vm4146_vm0, %v10373_v5  ;;  %v10375_v56 = vpack.c.bf16 %v10613_v55, %v10613_v55  ;;  %v10143_v19 = vcombine.low %v11390_v11, %v11389_v60  ;;  %v6295_v53 = vshll.u32 %v15586_v49, 16  ;;  %v7857_v9 = vsel %vm7837_vm13, %v7818_v35, %v17259_v23  ;;  %v17260_v5 = vld [vmem:[#allocation46_spill] sm:$0xff] }
 0x6f2   : > { %8286 = vmatmul.mubr.bf16.gmra.mrb[84].mxu1 %v7854_v31  ;;  %4151 = vst.msk [vmem:[%s15898_s0 + $0x10] sm:$0xf] %vm4146_vm0, %v10374_v61  ;;  %v7949_v55 = vsel %vm7804_vm12, %v7909_v58, %v17260_v5  ;;  %v6287_v59 = vrot.slane %v6285_v28, 5  ;;  %v17262_v31 = vld [vmem:[#allocation82_spill] sm:$0xff]  ;;  %v10622_v23 = vadd.f32 %v15665_v33, %v17265_v13  ;;  %v10644_v35 = vpop.f32.mrb[32].mxu1  ;;  %v17266_v5 = vld [vmem:[#allocation97_spill] sm:$0xff]  ;;  %v15998_v33 = vpop.permute.xlu0 %7694 }
 0x6f3   : > { %8293 = vmatprep.mubr.bf16.mxu1 %v7985_v4  ;;  %v6289_v4 = vshrl.u32 %v15573_v37, 16  ;;  %4152 = vst.msk [vmem:[%s15898_s0 + $0x14] sm:$0xf] %vm4146_vm0, %v10375_v56  ;;  %v10616_v10 = vadd.f32 %v17262_v31, %v17261_v39  ;;  %v7988_v61 = vsel %vm7837_vm13, %v7949_v55, %v15835_v7  ;;  %v17263_v37 = vld [vmem:[#allocation84_spill] sm:$0xff]  ;;  %v17264_v11 = vld [vmem:[#allocation86_spill] sm:$0xff]  ;;  %v6297_v56 = vrot.slane %v6295_v53, 5  ;;  %v15996_v7 = vpop.permute.xlu1 %7214 }
 0x6f4   : > { %v10619_v49 = vadd.f32 %v17264_v11, %v17263_v37  ;;  %v6288_v58 = vsel %vm11607_vm5, %v6283_v57, %v6287_v59  ;;  %v17267_v39 = vld [vmem:[#allocation98_spill] sm:$0xff]  ;;  %v10645_v12 = vpop.f32.mrb[33].mxu1  ;;  %v10378_v37 = vpack.c.bf16 %v10622_v23, %v10622_v23  ;;  %v10135_v11 = vrot.slane %v6923_v18, 9 }
 0x6f5   : > { %v6291_v60 = vrot.slane %v6289_v4, 4  ;;  %v10376_v28 = vpack.c.bf16 %v10616_v10, %v10616_v10  ;;  %v10625_v31 = vadd.f32 %v17267_v39, %v17266_v5  ;;  %v10647_v38 = vpop.f32.mrb[34].mxu1  ;;  %v7079_v10 = vrot.slane %v15656_v17, 5 }
 0x6f6   : > { %v10377_v55 = vpack.c.bf16 %v10619_v49, %v10619_v49  ;;  %v7082_v57 = vrot.slane %v15685_v51, 5  ;;  %v10628_v53 = vadd.f32 %v15713_v27, %v15702_v42  ;;  %v10648_v5 = vpop.f32.mrb[35].mxu1  ;;  %4155 = vst.msk [vmem:[%s15898_s0 + $0x20] sm:$0xf] %vm4146_vm0, %v10378_v37  ;;  %v10631_v18 = vadd.f32 %v15727_v25, %v15717_v47  ;;  %v17269_v49 = vld [vmem:[#allocation53_spill] sm:$0xff] }
 0x6f7   : > { %v6292_v4 = vor.u32 %v6291_v60, %v6287_v59  ;;  %4153 = vst.msk [vmem:[%s15898_s0 + $0x18] sm:$0xf] %vm4146_vm0, %v10376_v28  ;;  %v10379_v13 = vpack.c.bf16 %v10625_v31, %v10625_v31  ;;  %v10634_v60 = vadd.f32 %v15870_v21, %v15859_v34  ;;  %v10637_v17 = vadd.f32 %v15881_v40, %v15877_v63 }
 0x6f8   : > { %4154 = vst.msk [vmem:[%s15898_s0 + $0x1c] sm:$0xf] %vm4146_vm0, %v10377_v55  ;;  %v7779_v51 = vsel %vm3359_vm14, %v10143_v19, %v15831_v15  ;;  %v7080_v27 = vsel %vm11563_vm2, %v10135_v11, %v7079_v10  ;;  %v10380_v47 = vpack.c.bf16 %v10628_v53, %v10628_v53  ;;  %v10381_v34 = vpack.c.bf16 %v10631_v18, %v10631_v18 }
 0x6f9   : > { %v6293_v59 = vrot.slane %v6292_v4, 4  ;;  %4156 = vst.msk [vmem:[%s15898_s0 + $0x24] sm:$0xf] %vm4146_vm0, %v10379_v13  ;;  %v10382_v21 = vpack.c.bf16 %v10634_v60, %v10634_v60  ;;  %v10383_v63 = vpack.c.bf16 %v10637_v17, %v10637_v17  ;;  %v10640_v19 = vadd.f32 %v15935_v36, %v15923_v1  ;;  %v11391_v4 = vld [vmem:[#allocation2 + $0x94] sm:$0xf] }
 0x6fa   : > { %8294 = vmatmul.mubr.bf16.gmra.mrb[88].mxu1 %v7857_v9  ;;  %v7081_v9 = vrot.slane %v7079_v10, 4  ;;  %4157 = vst.msk [vmem:[%s15898_s0 + $0x28] sm:$0xf] %vm4146_vm0, %v10380_v47  ;;  %v7820_v23 = vsel %vm7804_vm12, %v7779_v51, %v17269_v49  ;;  %4158 = vst.msk [vmem:[%s15898_s0 + $0x2c] sm:$0xf] %vm4146_vm0, %v10381_v34  ;;  %v10649_v39 = vadd.f32 %v10648_v5, %v10647_v38  ;;  %v10650_v31 = vpop.f32.mrb[36].mxu1 }
 0x6fb   : > { %8301 = vmatprep.mubr.bf16.mxu1 %v7988_v61  ;;  %v6298_v25 = vsel %vm11607_vm5, %v6293_v59, %v6297_v56  ;;  %v10643_v61 = vadd.f32 %v15949_v3, %v15945_v45  ;;  %v16036_v56 = vpop.permute.xlu1 %7396  ;;  %4159 = vst.msk [vmem:[%s15898_s0 + $0x30] sm:$0xf] %vm4146_vm0, %v10382_v21  ;;  %4160 = vst.msk [vmem:[%s15898_s0 + $0x34] sm:$0xf] %vm4146_vm0, %v10383_v63  ;;  %v6189_v1 = vshll.u32 %v11391_v4, 16  ;;  %v6193_v36 = vshrl.u32 %v11391_v4, 16  ;;  %v16044_v45 = vpop.permute.xlu0 %7526 }
 0x6fc   : > { %v16024_v40 = vcombine.low %v6288_v58, %v6298_v25  ;;  %v7083_v15 = vsel %vm11563_vm2, %v7081_v9, %v7082_v57  ;;  %v10646_v58 = vadd.f32 %v10645_v12, %v10644_v35  ;;  %v10384_v3 = vpack.c.bf16 %v10640_v19, %v10640_v19  ;;  %v10651_v37 = vpop.f32.mrb[37].mxu1  ;;  %v11392_v10 = vld [vmem:[#allocation2 + $0x64] sm:$0xf]  ;;  %v11393_v57 = vld [vmem:[#allocation2 + $0x60] sm:$0xf]  ;;  %v17270_v5 = vld [vmem:[#allocation59_spill] sm:$0xff] }
 0x6fd   : > { %v10279_v28 = vcombine.low %v7080_v27, %v7083_v15  ;;  %v10385_v55 = vpack.c.bf16 %v10643_v61, %v10643_v61  ;;  %v7991_v11 = vsel %vm7837_vm13, %v15907_v50, %v15911_v6  ;;  %v10387_v38 = vpack.c.bf16 %v10649_v39, %v10649_v39  ;;  %v10653_v13 = vpop.f32.mrb[38].mxu1  ;;  %v11394_v60 = vld [vmem:[#allocation2 + $0x8c] sm:$0x1]  ;;  %v17277_v49 = vld [vmem:[#allocation4_spill] sm:$0xff] }
 0x6fe   : > { %v10386_v12 = vpack.c.bf16 %v10646_v58, %v10646_v58  ;;  %v10652_v35 = vadd.f32 %v10651_v37, %v10650_v31  ;;  %v10144_v53 = vcombine.low %v11393_v57, %v11392_v10  ;;  %v7860_v59 = vsel %vm7837_vm13, %v7820_v23, %v17270_v5  ;;  %4161 = vst.msk [vmem:[%s15898_s0 + $0x38] sm:$0xf] %vm4146_vm0, %v10384_v3  ;;  %v10654_v18 = vpop.f32.mrb[39].mxu1  ;;  %v17279_v31 = vld [vmem:[#allocation74_spill] sm:$0xff] }
 0x6ff   : > { %10984 = vmatmul.mubr.msk.bf16.gmra.mrb[100].mxu0 %vm3359_vm14, %v10279_v28  ;;  %4162 = vst.msk [vmem:[%s15898_s0 + $0x3c] sm:$0xf] %vm4146_vm0, %v10385_v55  ;;  %v17271_v50 = vshrl.u32 %v15863_v14, 16  ;;  %v6175_v17 = vshll.u32 %v11394_v60, 16  ;;  %4164 = vst.msk [vmem:[%s15898_s0 + $0x44] sm:$0xf] %vm4146_vm0, %v10387_v38  ;;  %v10655_v42 = vadd.f32 %v10654_v18, %v10653_v13  ;;  %v17273_v47 = vsel %vm11607_vm5, %v15915_v48, %v15917_v22  ;;  %v16084_v61 = vpop.permute.xlu1 %7216 }
 0x700   : > { %4163 = vst.msk [vmem:[%s15898_s0 + $0x40] sm:$0xf] %vm4146_vm0, %v10386_v12  ;;  %v10388_v51 = vpack.c.bf16 %v10652_v35, %v10652_v35  ;;  %v17272_v27 = vshll.u32 %v15863_v14, 16  ;;  %v17274_v25 = vsel %vm11607_vm5, %v15913_v46, %v15853_v8  ;;  %v17275_v21 = vor.u32 %v15861_v24, %v15846_v29  ;;  %v7697_v46 = vpop.permute.xlu0 %7696  ;;  %v11395_v29 = vld [vmem:[#allocation2 + $0x9c] sm:$0xf]  ;;  %v17278_v28 = vld [vmem:[#allocation37_spill] sm:$0xff] }
 0x701   : > { %v6182_v6 = vrot.slane %v17271_v50, 4  ;;  %v10209_v34 = vcombine.low %v17274_v25, %v17273_v47  ;;  %v7782_v14 = vsel %vm3359_vm14, %v10144_v53, %v15902_v52  ;;  %v17276_v15 = vor.u32 %v15937_v16, %v15919_v62  ;;  %v11396_v35 = vld [vmem:[#allocation2 + $0xa0] sm:$0xf]  ;;  %v11397_v57 = vld [vmem:[#allocation2 + $0x70] sm:$0xf] }
 0x702   : > { %8302 = vmatmul.mubr.bf16.gmra.mrb[92].mxu1 %v7860_v59  ;;  %v6185_v9 = vrot.slane %v17272_v27, 5  ;;  %v6163_v63 = vrot.slane %v17275_v21, 4  ;;  %v16082_v48 = vrot.slane %v6189_v1, 5  ;;  %v6195_v22 = vrot.slane %v6193_v36, 4  ;;  %4165 = vst.msk [vmem:[%s15898_s0 + $0x48] sm:$0xf] %vm4146_vm0, %v10388_v51 }
 0x703   : > { %8309 = vmatprep.mubr.bf16.mxu1 %v7991_v11  ;;  %v6173_v19 = vrot.slane %v17276_v15, 4  ;;  %v10389_v8 = vpack.c.bf16 %v10655_v42, %v10655_v42  ;;  %v6204_v24 = vshrl.u32 %v11395_v29, 16  ;;  %v7915_v23 = vsel %vm3359_vm14, %v10209_v34, %v17277_v49  ;;  %v10656_v16 = vpop.f32.mrb[40].mxu1  ;;  %v11398_v53 = vld [vmem:[#allocation2 + $0x6c] sm:$0xf]  ;;  %v16106_v50 = vpop.permute.xlu1 %7302  ;;  %v17281_v15 = vld [vmem:[#allocation83_spill] sm:$0xff] }
 0x704   : > { %v6177_v52 = vrot.slane %v6175_v17, 5  ;;  %v7822_v58 = vsel %vm7804_vm12, %v7782_v14, %v17278_v28  ;;  %v6207_v39 = vshll.u32 %v11395_v29, 16  ;;  %v7953_v4 = vsel %vm7804_vm12, %v7915_v23, %v17279_v31  ;;  %v10657_v3 = vpop.f32.mrb[41].mxu1  ;;  %v17280_v59 = vld [vmem:[#allocation57_spill] sm:$0xff]  ;;  %v16110_v27 = vpop.permute.xlu0 %7622 }
 0x705   : > { %4166 = vst.msk [vmem:[%s15898_s0 + $0x4c] sm:$0xf] %vm4146_vm0, %v10389_v8  ;;  %v6168_v1 = vsel %vm11607_vm5, %v6163_v63, %v15919_v62  ;;  %v6186_v36 = vor.u32 %v6185_v9, %v6182_v6  ;;  %v6196_v37 = vor.u32 %v6195_v22, %v16082_v48  ;;  %v7994_v11 = vsel %vm7837_vm13, %v7953_v4, %v15998_v33  ;;  %v10659_v38 = vpop.f32.mrb[42].mxu1  ;;  %v11399_v33 = vld [vmem:[#allocation2 + $0x98] sm:$0x1]  ;;  %v17282_v22 = vld [vmem:[#allocation72_spill] sm:$0xff] }
 0x706   : > { %v6178_v55 = vsel %vm11607_vm5, %v6173_v19, %v6177_v52  ;;  %v10658_v12 = vadd.f32 %v10657_v3, %v10656_v16  ;;  %v6213_v13 = vshll.u32 %v11396_v35, 16  ;;  %v6217_v10 = vshrl.u32 %v11396_v35, 16  ;;  %v10660_v18 = vpop.f32.mrb[43].mxu1  ;;  %v17283_v29 = vld [vmem:[#allocation93_spill] sm:$0xff]  ;;  %v11401_v3 = vld [vmem:[#allocation2 + $0x78] sm:$0xf] }
 0x707   : > { %v10145_v5 = vcombine.low %v11398_v53, %v11397_v57  ;;  %v7863_v62 = vsel %vm7837_vm13, %v7822_v58, %v17280_v59  ;;  %v10661_v60 = vadd.f32 %v10660_v18, %v10659_v38  ;;  %v6206_v17 = vrot.slane %v6204_v24, 4  ;;  %v7219_v58 = vpop.permute.xlu1 %7218  ;;  %v11403_v57 = vld [vmem:[#allocation2 + $0xa4] sm:$0x1]  ;;  %v11404_v18 = vld [vmem:[#allocation2 + $0xac] sm:$0xf] }
 0x708   : > { %v10390_v6 = vpack.c.bf16 %v10658_v12, %v10658_v12  ;;  %v6199_v51 = vshll.u32 %v11399_v33, 16  ;;  %v6209_v9 = vrot.slane %v6207_v39, 5  ;;  %v10210_v47 = vcombine.low %v6168_v1, %v6178_v55  ;;  %v7699_v12 = vpop.permute.xlu0 %7698 }
 0x709   : > { %v7785_v42 = vsel %vm3359_vm14, %v10145_v5, %v15996_v7  ;;  %v6187_v25 = vrot.slane %v6186_v36, 4  ;;  %v10391_v34 = vpack.c.bf16 %v10661_v60, %v10661_v60  ;;  %v6197_v21 = vrot.slane %v6196_v37, 4  ;;  %v11400_v36 = vld [vmem:[#allocation2 + $0x7c] sm:$0xf]  ;;  %v17284_v37 = vld [vmem:[#allocation81_spill] sm:$0xff] }
 0x70a   : > { %8310 = vmatmul.mubr.bf16.gmra.mrb[96].mxu1 %v7863_v62  ;;  %4167 = vst.msk [vmem:[%s15898_s0 + $0x50] sm:$0xf] %vm4146_vm0, %v10390_v6  ;;  %v16114_v63 = vrot.slane %v6213_v13, 5  ;;  %v6219_v14 = vrot.slane %v6217_v10, 4  ;;  %v7918_v19 = vsel %vm3359_vm14, %v10210_v47, %v17281_v15  ;;  %v7824_v8 = vsel %vm7804_vm12, %v7785_v42, %v17282_v22  ;;  %v10662_v7 = vpop.f32.mrb[44].mxu1 }
 0x70b   : > { %8317 = vmatprep.mubr.bf16.mxu1 %v7994_v11  ;;  %4168 = vst.msk [vmem:[%s15898_s0 + $0x54] sm:$0xf] %vm4146_vm0, %v10391_v34  ;;  %v7955_v24 = vsel %vm7804_vm12, %v7918_v19, %v17283_v29  ;;  %v6201_v49 = vrot.slane %v6199_v51, 5  ;;  %v10663_v23 = vpop.f32.mrb[45].mxu1  ;;  %v6192_v52 = vsel %vm11607_vm5, %v6187_v25, %v16082_v48  ;;  %v6210_v28 = vor.u32 %v6209_v9, %v6206_v17  ;;  %v16139_v42 = vpop.permute.xlu1 %7398  ;;  %v17285_v9 = vld [vmem:[#allocation91_spill] sm:$0xff] }
 0x70c   : > { %v7997_v16 = vsel %vm7837_vm13, %v7955_v24, %v7697_v46  ;;  %v10664_v39 = vadd.f32 %v10663_v23, %v10662_v7  ;;  %v10665_v31 = vpop.f32.mrb[46].mxu1  ;;  %v6220_v1 = vor.u32 %v6219_v14, %v16114_v63  ;;  %v10146_v55 = vcombine.low %v11401_v3, %v11400_v36  ;;  %v11402_v46 = vld [vmem:[#allocation2 + $0xa8] sm:$0xf]  ;;  %v16147_v15 = vpop.permute.xlu0 %7528 }
 0x70d   : > { %v6202_v4 = vsel %vm11607_vm5, %v6197_v21, %v6201_v49  ;;  %v7866_v11 = vsel %vm7837_vm13, %v7824_v8, %v17284_v37  ;;  %v10666_v48 = vpop.f32.mrb[47].mxu1  ;;  %v6228_v13 = vshrl.u32 %v11402_v46, 16  ;;  %v6231_v10 = vshll.u32 %v11402_v46, 16  ;;  %v11405_v23 = vld [vmem:[#allocation2 + $0x88] sm:$0xf] }
 0x70e   : > { %v10392_v38 = vpack.c.bf16 %v10664_v39, %v10664_v39  ;;  %v10667_v35 = vadd.f32 %v10666_v48, %v10665_v31  ;;  %v6223_v53 = vshll.u32 %v11403_v57, 16  ;;  %v7788_v5 = vsel %vm3359_vm14, %v10146_v55, %v16084_v61  ;;  %v11407_v48 = vld [vmem:[#allocation2 + $0xb0] sm:$0x1] }
 0x70f   : > { %v10211_v59 = vcombine.low %v6192_v52, %v6202_v4  ;;  %v6211_v62 = vrot.slane %v6210_v28, 4  ;;  %v6237_v6 = vshll.u32 %v11404_v18, 16  ;;  %v6221_v17 = vrot.slane %v6220_v1, 4  ;;  %v7221_v1 = vpop.permute.xlu1 %7220 }
 0x710   : > { %4169 = vst.msk [vmem:[%s15898_s0 + $0x58] sm:$0xf] %vm4146_vm0, %v10392_v38  ;;  %v10393_v60 = vpack.c.bf16 %v10667_v35, %v10667_v35  ;;  %v6241_v33 = vshrl.u32 %v11404_v18, 16  ;;  %v7826_v47 = vsel %vm7804_vm12, %v7788_v5, %v17285_v9  ;;  %v6230_v25 = vrot.slane %v6228_v13, 4  ;;  %v11409_v5 = vld [vmem:[#allocation2 + $0x90] sm:$0xf] }
 0x711   : > { %v7921_v51 = vsel %vm3359_vm14, %v10211_v59, %v15758_v26  ;;  %v6233_v34 = vrot.slane %v6231_v10, 5  ;;  %v6225_v14 = vrot.slane %v6223_v53, 5  ;;  %v6216_v26 = vsel %vm11607_vm5, %v6211_v62, %v16114_v63 }
 0x712   : > { %8318 = vmatmul.mubr.bf16.gmra.mrb[100].mxu1 %v7866_v11  ;;  %4170 = vst.msk [vmem:[%s15898_s0 + $0x5c] sm:$0xf] %vm4146_vm0, %v10393_v60  ;;  %v10668_v61 = vpop.f32.mrb[48].mxu1  ;;  %v7957_v21 = vsel %vm7804_vm12, %v7921_v51, %v15813_v43  ;;  %v6239_v22 = vrot.slane %v6237_v6, 5  ;;  %v6243_v49 = vrot.slane %v6241_v33, 4  ;;  %v7869_v28 = vsel %vm7837_vm13, %v7826_v47, %v15746_v54 }
 0x713   : > { %8325 = vmatprep.mubr.bf16.mxu1 %v7997_v16  ;;  %v10669_v19 = vpop.f32.mrb[49].mxu1  ;;  %v8000_v8 = vsel %vm7837_vm13, %v7957_v21, %v7699_v12  ;;  %v6226_v24 = vsel %vm11607_vm5, %v6221_v17, %v6225_v14  ;;  %v11406_v43 = vld [vmem:[#allocation2 + $0x84] sm:$0xf]  ;;  %v6234_v3 = vor.u32 %v6233_v34, %v6230_v25  ;;  %v6247_v38 = vshll.u32 %v11407_v48, 16  ;;  %v16171_v18 = vpop.permute.xlu1 %7304  ;;  %v11410_v34 = vld [vmem:[#allocation2 + $0xb4] sm:$0xf] }
 0x714   : > { %v10670_v7 = vadd.f32 %v10669_v19, %v10668_v61  ;;  %v10671_v29 = vpop.f32.mrb[50].mxu1  ;;  %v10147_v52 = vcombine.low %v11406_v43, %v11405_v23  ;;  %v10212_v4 = vcombine.low %v6216_v26, %v6226_v24  ;;  %v6244_v55 = vor.u32 %v6243_v49, %v6239_v22  ;;  %v11412_v49 = vld [vmem:[#allocation2 + $0xa0] sm:$0xf]  ;;  %v11413_v23 = vld [vmem:[#allocation2 + $0x9c] sm:$0xf] }
 0x715   : > { %v10672_v16 = vpop.f32.mrb[51].mxu1  ;;  %v6235_v57 = vrot.slane %v6234_v3, 4  ;;  %v6249_v60 = vrot.slane %v6247_v38, 5  ;;  %v6252_v21 = vshrl.u32 %v11410_v34, 16  ;;  %v6255_v14 = vshll.u32 %v11410_v34, 16 }
 0x716   : > { %v10394_v63 = vpack.c.bf16 %v10670_v7, %v10670_v7  ;;  %v10673_v39 = vadd.f32 %v10672_v16, %v10671_v29  ;;  %v7791_v31 = vsel %vm3359_vm14, %v10147_v52, %v7219_v58  ;;  %v7924_v11 = vsel %vm3359_vm14, %v10212_v4, %v15868_v41  ;;  %v11408_v41 = vld [vmem:[#allocation2 + $0x94] sm:$0xf] }
 0x717   : > { %v7828_v54 = vsel %vm7804_vm12, %v7791_v31, %v15807_v0  ;;  %v7959_v58 = vsel %vm7804_vm12, %v7924_v11, %v15965_v20  ;;  %v6245_v53 = vrot.slane %v6244_v55, 4  ;;  %v10148_v59 = vcombine.low %v11409_v5, %v11408_v41  ;;  %v7223_v26 = vpop.permute.xlu1 %7222 }
 0x718   : > { %4171 = vst.msk [vmem:[%s15898_s0 + $0x60] sm:$0xf] %vm4146_vm0, %v10394_v63  ;;  %v10395_v36 = vpack.c.bf16 %v10673_v39, %v10673_v39  ;;  %v7872_v0 = vsel %vm7837_vm13, %v7828_v54, %v15857_v30  ;;  %v6240_v51 = vsel %vm11607_vm5, %v6235_v57, %v6239_v22  ;;  %v11411_v22 = vld [vmem:[#allocation2 + $0xb8] sm:$0xf]  ;;  %v10149_v43 = vcombine.low %v11413_v23, %v11412_v49  ;;  %v11414_v57 = vld [vmem:[#allocation2 + $0xbc] sm:$0x1] }
 0x719   : > { %v7794_v17 = vsel %vm3359_vm14, %v10148_v59, %v7221_v1  ;;  %v6250_v9 = vsel %vm11607_vm5, %v6245_v53, %v6249_v60  ;;  %v6261_v29 = vshll.u32 %v11411_v22, 16  ;;  %v6265_v24 = vshrl.u32 %v11411_v22, 16  ;;  %v11415_v60 = vld [vmem:[#allocation2 + $0xac] sm:$0xf] }
 0x71a   : > { %8326 = vmatmul.mubr.bf16.gmra.mrb[104].mxu1 %v7869_v28  ;;  %4172 = vst.msk [vmem:[%s15898_s0 + $0x64] sm:$0xf] %vm4146_vm0, %v10395_v36  ;;  %v10674_v12 = vpop.f32.mrb[52].mxu1  ;;  %v7830_v47 = vsel %vm7804_vm12, %v7794_v17, %v15959_v32  ;;  %v10213_v19 = vcombine.low %v6240_v51, %v6250_v9  ;;  %v7797_v31 = vsel %vm3359_vm14, %v10149_v43, %v7223_v26  ;;  %v6257_v3 = vrot.slane %v6255_v14, 5  ;;  %v11416_v17 = vld [vmem:[#allocation2 + $0xa8] sm:$0xf] }
 0x71b   : > { %8333 = vmatprep.mubr.bf16.mxu1 %v8000_v8  ;;  %v10675_v35 = vpop.f32.mrb[53].mxu1  ;;  %v7875_v32 = vsel %vm7837_vm13, %v7830_v47, %v16036_v56  ;;  %v6254_v56 = vrot.slane %v6252_v21, 4  ;;  %v6263_v55 = vrot.slane %v6261_v29, 5  ;;  %v7832_v11 = vsel %vm7804_vm12, %v7797_v31, %v16106_v50 }
 0x71c   : > { %v7701_v37 = vpop.permute.xlu0 %7700  ;;  %v10676_v13 = vadd.f32 %v10675_v35, %v10674_v12  ;;  %v10677_v10 = vpop.f32.mrb[54].mxu1  ;;  %v7927_v28 = vsel %vm3359_vm14, %v10213_v19, %v16044_v45  ;;  %v7878_v35 = vsel %vm7837_vm13, %v7832_v11, %v16139_v42  ;;  %v6271_v53 = vshll.u32 %v11414_v57, 16  ;;  %v11214_v42 = vld [vmem:[%s16881_s12 + $0x8] sm:$0xff]  }
 0x71d   : > { %v8003_v46 = vsel %vm7837_vm13, %v7959_v58, %v7701_v37  ;;  %v10678_v62 = vpop.f32.mrb[55].mxu1  ;;  %v7961_v39 = vsel %vm7804_vm12, %v7927_v28, %v16110_v27  ;;  %v6267_v37 = vrot.slane %v6265_v24, 4  ;;  %v7401_v45 = vpop.permute.xlu1 %7400  ;;  %v6258_v48 = vor.u32 %v6257_v3, %v6254_v56  ;;  %v16235_v28 = vld [vmem:[%s16880_s11] ss:$0 sm:$0xff]  ;;  %v17287_v3 = vld [vmem:[#allocation66_spill] sm:$0xff] }
 0x71e   : > { %v10396_v20 = vpack.c.bf16 %v10676_v13, %v10676_v13  ;;  %v10679_v6 = vadd.f32 %v10678_v62, %v10677_v10  ;;  %v11213_v13 = vld [vmem:[%s16881_s12] sm:$0xff]   ;;  %v6273_v62 = vrot.slane %v6271_v53, 5  ;;  %vm8975_vm2 = vcmask 7168  }
 0x71f   : > { %v6268_v38 = vor.u32 %v6267_v37, %v6263_v55  ;;  %10987 = vmatprep.subr.bf16.mxu0 %v11213_v13  ;;  %v6259_v59 = vrot.slane %v6258_v48, 4 }
 0x720   : > { %4173 = vst.msk [vmem:[%s15898_s0 + $0x68] sm:$0xf] %vm4146_vm0, %v10396_v20  ;;  %v10397_v33 = vpack.c.bf16 %v10679_v6, %v10679_v6  ;;  %v16180_v30 = vpop.permute.xlu0 %7624  ;;  %10988 = vmatpush3.bf16.msra.mxu0 %v11213_v13 }
 0x721   : > { %10989 = vmatprep.subr.bf16.mxu0 %v11214_v42  ;;  %v6264_v20 = vsel %vm11607_vm5, %v6259_v59, %v6263_v55 }
 0x722   : > { %8334 = vmatmul.mubr.bf16.gmra.mrb[108].mxu1 %v7872_v0  ;;  %4174 = vst.msk [vmem:[%s15898_s0 + $0x6c] sm:$0xf] %vm4146_vm0, %v10397_v33  ;;  %v10680_v61 = vpop.f32.mrb[56].mxu1  ;;  %v6269_v0 = vrot.slane %v6268_v38, 4  ;;  %v10150_v33 = vcombine.low %v11416_v17, %v11415_v60  ;;  %v17290_v17 = vld [vmem:[#allocation70_spill] sm:$0xff] }
 0x723   : > { %8341 = vmatprep.mubr.bf16.mxu1 %v8003_v46  ;;  %v10681_v25 = vpop.f32.mrb[57].mxu1  ;;  %v7225_v41 = vpop.permute.xlu1 %7224 }
 0x724   : > { %v10682_v8 = vadd.f32 %v10681_v25, %v10680_v61  ;;  %v10683_v7 = vpop.f32.mrb[58].mxu1  ;;  %10990 = vmatpush3.bf16.msra.mxu0 %v11214_v42  ;;  %v6274_v6 = vsel %vm11607_vm5, %v6269_v0, %v6273_v62  ;;  %v7800_v47 = vsel %vm3359_vm14, %v10150_v33, %v7225_v41 }
 0x725   : > { %v10684_v52 = vpop.f32.mrb[59].mxu1  ;;  %v10214_v61 = vcombine.low %v6264_v20, %v6274_v6  ;;  %v7834_v34 = vsel %vm7804_vm12, %v7800_v47, %v16171_v18 }
 0x726   : > { %v10398_v16 = vpack.c.bf16 %v10682_v8, %v10682_v8  ;;  %v10685_v63 = vadd.f32 %v10684_v52, %v10683_v7  ;;  %v7881_v26 = vsel %vm7837_vm13, %v7834_v34, %v7401_v45  ;;  %v11417_v8 = vld [vmem:[#allocation2 + $0xb8] sm:$0xf]  ;;  %v11418_v7 = vld [vmem:[#allocation2 + $0xb4] sm:$0xf] }
 0x727   : > { %v7930_v25 = vsel %vm3359_vm14, %v10214_v61, %v16147_v15  ;;  %v10151_v22 = vcombine.low %v11418_v7, %v11417_v8 }
 0x728   : > { %4175 = vst.msk [vmem:[%s15898_s0 + $0x70] sm:$0xf] %vm4146_vm0, %v10398_v16  ;;  %v10399_v36 = vpack.c.bf16 %v10685_v63, %v10685_v63  ;;  %v7963_v21 = vsel %vm7804_vm12, %v7930_v25, %v16180_v30 }
 0x72a   : > { %8342 = vmatmul.mubr.bf16.gmra.mrb[112].mxu1 %v7875_v32  ;;  %v7703_v4 = vpop.permute.xlu0 %7702  ;;  %4176 = vst.msk [vmem:[%s15898_s0 + $0x74] sm:$0xf] %vm4146_vm0, %v10399_v36  ;;  %v10686_v27 = vpop.f32.mrb[60].mxu1 }
 0x72b   : > { %v8006_v1 = vsel %vm7837_vm13, %v7961_v39, %v7703_v4  ;;  %v10687_v54 = vpop.f32.mrb[61].mxu1  ;;  %v7307_v9 = vpop.permute.xlu1 %7306 }
 0x72c   : > { %8349 = vmatprep.mubr.bf16.mxu1 %v8006_v1  ;;  %v10688_v12 = vadd.f32 %v10687_v54, %v10686_v27  ;;  %v10689_v58 = vpop.f32.mrb[62].mxu1  ;;  %v17286_v1 = vld [vmem:[#allocation64_spill] sm:$0xff] }
 0x72d   : > { %v10690_v46 = vpop.f32.mrb[63].mxu1 }
 0x72e   : > { %v10400_v50 = vpack.c.bf16 %v10688_v12, %v10688_v12  ;;  %v10691_v10 = vadd.f32 %v10690_v46, %v10689_v58  ;;  %v17288_v46 = vld [vmem:[#allocation58_spill] sm:$0xff] }
 0x730   : > { %4177 = vst.msk [vmem:[%s15898_s0 + $0x78] sm:$0xf] %vm4146_vm0, %v10400_v50  ;;  %v10401_v5 = vpack.c.bf16 %v10691_v10, %v10691_v10  ;;  %v7531_v51 = vpop.permute.xlu0 %7530  ;;  %v17289_v10 = vld [vmem:[#allocation65_spill] sm:$0xff] }
 0x731   : > { %v7933_v18 = vsel %vm3359_vm14, %v16024_v40, %v7531_v51 }
 0x732   : > { %8350 = vmatmul.mubr.bf16.gmra.mrb[116].mxu1 %v7878_v35  ;;  %4178 = vst.msk [vmem:[%s15898_s0 + $0x7c] sm:$0xf] %vm4146_vm0, %v10401_v5 }
 0x735   : > { %v7227_v44 = vpop.permute.xlu1 %7226 }
 0x736   : > { %v7803_v15 = vsel %vm3359_vm14, %v10151_v22, %v7227_v44  ;;  %v17292_v22 = vld [vmem:[#allocation69_spill] sm:$0xff] }
 0x737   : > { %v7836_v43 = vsel %vm7804_vm12, %v7803_v15, %v7307_v9  ;;  %v17291_v9 = vld [vmem:[#allocation73_spill] sm:$0xff] }
 0x739   : > { %v7403_v24 = vpop.permute.xlu1 %7402 }
 0x73a   : > { %v7884_v32 = vsel %vm7837_vm13, %v7836_v43, %v7403_v24 }
 0x73f   : > { %v7705_v14 = vpop.permute.xlu0 %7704 }
 0x740   : > { %v8009_v19 = vsel %vm7837_vm13, %v7963_v21, %v7705_v14 }
 0x741   : > { %8357 = vmatprep.mubr.bf16.mxu1 %v8009_v19 }
 0x742   : > { %8358 = vmatmul.mubr.bf16.gmra.mrb[120].mxu1 %v7881_v26 }
 0x743   : > { %v7627_v29 = vpop.permute.xlu0 %7626 }
 0x744   : > { %v7965_v30 = vsel %vm7804_vm12, %v7933_v18, %v7627_v29  ;;  %v17293_v18 = vld [vmem:[#allocation71_spill] sm:$0xff] }
 0x747   : > { %v7707_v49 = vpop.permute.xlu0 %7706 }
 0x748   : > { %v8012_v23 = vsel %vm7837_vm13, %v7965_v30, %v7707_v49 }
 0x749   : > { %8365 = vmatprep.mubr.bf16.mxu1 %v8012_v23 }
 0x74a   : > { %8366 = vmatmul.mubr.bf16.gmra.mrb[124].mxu1 %v7884_v32 }
 0x79c   : > { %v10731_v52 = vpop.f32.mrb[64].mxu1 }
 0x79d   : > { %v10732_v16 = vpop.f32.mrb[65].mxu1 }
 0x79e   : > { %v10733_v40 = vadd.f32 %v10732_v16, %v10731_v52  ;;  %v10734_v63 = vpop.f32.mrb[66].mxu1 }
 0x79f   : > { %v10735_v39 = vpop.f32.mrb[67].mxu1 }
 0x7a0   : > { %v8248_v31 = vadd.f32 %v10733_v40, %v16235_v28  ;;  %v10736_v4 = vadd.f32 %v10735_v39, %v10734_v63 }
 0x7a2   : > { %v8409_v36 = vadd.f32 %v17286_v1, %v8248_v31  ;;  %v8251_v56 = vadd.f32 %v10736_v4, %v16235_v28  ;;  %v17294_v31 = vld [vmem:[#allocation78_spill] sm:$0xff] }
 0x7a4   : > { %v8412_v55 = vadd.f32 %v17287_v3, %v8251_v56  ;;  %v8535_v11 = vmax.f32 %v8409_v36, 0.0  ;;  %v17295_v36 = vld [vmem:[#allocation80_spill] sm:$0xff] }
 0x7a5   : > { %v10737_v37 = vpop.f32.mrb[68].mxu1 }
 0x7a6   : > { %v10738_v45 = vpop.f32.mrb[69].mxu1  ;;  %v8536_v27 = vmax.f32 %v8412_v55, 0.0 }
 0x7a7   : > { %v10739_v54 = vadd.f32 %v10738_v45, %v10737_v37  ;;  %v10740_v12 = vpop.f32.mrb[70].mxu1 }
 0x7a8   : > { %v10741_v58 = vpop.f32.mrb[71].mxu1  ;;  %v8567_v48 = vpack.c.bf16 %v8536_v27, %v8535_v11 }
 0x7a9   : > { %v8256_v38 = vadd.f32 %v10739_v54, %v16235_v28  ;;  %v10742_v35 = vadd.f32 %v10741_v58, %v10740_v12 }
 0x7aa   : > { %10991 = vmatprep.mubr.msk.bf16.mxu0 %vm3359_vm14, %v8567_v48 }
 0x7ab   : > { %v8417_v13 = vadd.f32 %v17288_v46, %v8256_v38  ;;  %v8259_v50 = vadd.f32 %v10742_v35, %v16235_v28  ;;  %v17296_v38 = vld [vmem:[#allocation77_spill] sm:$0xff] }
 0x7ad   : > { %v8420_v57 = vadd.f32 %v17289_v10, %v8259_v50  ;;  %v10743_v53 = vpop.f32.mrb[72].mxu1  ;;  %v8537_v5 = vmax.f32 %v8417_v13, 0.0  ;;  %v17297_v13 = vld [vmem:[#allocation79_spill] sm:$0xff] }
 0x7ae   : > { %v10744_v41 = vpop.f32.mrb[73].mxu1 }
 0x7af   : > { %v8538_v59 = vmax.f32 %v8420_v57, 0.0  ;;  %v10745_v0 = vadd.f32 %v10744_v41, %v10743_v53  ;;  %v10746_v42 = vpop.f32.mrb[74].mxu1 }
 0x7b0   : > { %v10747_v62 = vpop.f32.mrb[75].mxu1 }
 0x7b1   : > { %v8568_v20 = vpack.c.bf16 %v8538_v59, %v8537_v5  ;;  %v8264_v6 = vadd.f32 %v10745_v0, %v16235_v28  ;;  %v10748_v60 = vadd.f32 %v10747_v62, %v10746_v42 }
 0x7b3   : > { %v8425_v33 = vadd.f32 %v17290_v17, %v8264_v6  ;;  %v8267_v51 = vadd.f32 %v10748_v60, %v16235_v28  ;;  %10992 = vmatmul.mubr.msk.bf16.vlgmr.msra.gmra.mrb[104].mxu0 %vm3359_vm14, %v8568_v20  ;;  %v17298_v6 = vld [vmem:[#allocation87_spill] sm:$0xff] }
 0x7b5   : > { %v8428_v47 = vadd.f32 %v17291_v9, %v8267_v51  ;;  %v10749_v61 = vpop.f32.mrb[76].mxu1  ;;  %v8539_v34 = vmax.f32 %v8425_v33, 0.0  ;;  %v17299_v9 = vld [vmem:[#allocation89_spill] sm:$0xff] }
 0x7b6   : > { %v10750_v25 = vpop.f32.mrb[77].mxu1 }
 0x7b7   : > { %v8540_v21 = vmax.f32 %v8428_v47, 0.0  ;;  %v10751_v14 = vadd.f32 %v10750_v25, %v10749_v61  ;;  %v10752_v44 = vpop.f32.mrb[78].mxu1 }
 0x7b8   : > { %v10753_v19 = vpop.f32.mrb[79].mxu1 }
 0x7b9   : > { %v8569_v26 = vpack.c.bf16 %v8540_v21, %v8539_v34  ;;  %v8272_v8 = vadd.f32 %v10751_v14, %v16235_v28  ;;  %v10754_v7 = vadd.f32 %v10753_v19, %v10752_v44 }
 0x7bb   : > { %v8433_v29 = vadd.f32 %v17292_v22, %v8272_v8  ;;  %v8275_v15 = vadd.f32 %v10754_v7, %v16235_v28  ;;  %10995 = vmatprep.mubr.msk.bf16.mxu0 %vm3359_vm14, %v8569_v26 }
 0x7bd   : > { %v8436_v24 = vadd.f32 %v17293_v18, %v8275_v15  ;;  %v10755_v30 = vpop.f32.mrb[80].mxu1  ;;  %v8541_v23 = vmax.f32 %v8433_v29, 0.0  ;;  %v17300_v15 = vld [vmem:[#allocation85_spill] sm:$0xff] }
 0x7be   : > { %v10756_v49 = vpop.f32.mrb[81].mxu1 }
 0x7bf   : > { %v8542_v43 = vmax.f32 %v8436_v24, 0.0  ;;  %v10757_v32 = vadd.f32 %v10756_v49, %v10755_v30  ;;  %v10758_v52 = vpop.f32.mrb[82].mxu1  ;;  %v17301_v30 = vld [vmem:[#allocation88_spill] sm:$0xff] }
 0x7c0   : > { %v10759_v16 = vpop.f32.mrb[83].mxu1 }
 0x7c1   : > { %v8570_v40 = vpack.c.bf16 %v8542_v43, %v8541_v23  ;;  %v8280_v63 = vadd.f32 %v10757_v32, %v16235_v28  ;;  %v10760_v39 = vadd.f32 %v10759_v16, %v10758_v52 }
 0x7c3   : > { %v8441_v4 = vadd.f32 %v17294_v31, %v8280_v63  ;;  %v8283_v1 = vadd.f32 %v10760_v39, %v16235_v28  ;;  %10996 = vmatmul.mubr.msk.bf16.gmra.mrb[108].mxu0 %vm3359_vm14, %v8570_v40 }
 0x7c5   : > { %v8444_v56 = vadd.f32 %v17295_v36, %v8283_v1  ;;  %v10761_v3 = vpop.f32.mrb[84].mxu1  ;;  %v8543_v37 = vmax.f32 %v8441_v4, 0.0  ;;  %v17302_v1 = vld [vmem:[#allocation94_spill] sm:$0xff] }
 0x7c6   : > { %v10762_v55 = vpop.f32.mrb[85].mxu1 }
 0x7c7   : > { %v8544_v45 = vmax.f32 %v8444_v56, 0.0  ;;  %v10763_v11 = vadd.f32 %v10762_v55, %v10761_v3  ;;  %v10764_v27 = vpop.f32.mrb[86].mxu1  ;;  %v17303_v3 = vld [vmem:[#allocation96_spill] sm:$0xff] }
 0x7c8   : > { %v10765_v54 = vpop.f32.mrb[87].mxu1 }
 0x7c9   : > { %v8571_v12 = vpack.c.bf16 %v8544_v45, %v8543_v37  ;;  %v8288_v58 = vadd.f32 %v10763_v11, %v16235_v28  ;;  %v10766_v48 = vadd.f32 %v10765_v54, %v10764_v27 }
 0x7cb   : > { %v8449_v35 = vadd.f32 %v17296_v38, %v8288_v58  ;;  %v8291_v46 = vadd.f32 %v10766_v48, %v16235_v28  ;;  %10999 = vmatprep.mubr.msk.bf16.mxu0 %vm3359_vm14, %v8571_v12 }
 0x7cd   : > { %v8452_v50 = vadd.f32 %v17297_v13, %v8291_v46  ;;  %v10767_v10 = vpop.f32.mrb[88].mxu1  ;;  %v8545_v53 = vmax.f32 %v8449_v35, 0.0  ;;  %v17304_v46 = vld [vmem:[#allocation92_spill] sm:$0xff] }
 0x7ce   : > { %v10768_v57 = vpop.f32.mrb[89].mxu1 }
 0x7cf   : > { %v8546_v41 = vmax.f32 %v8452_v50, 0.0  ;;  %v10769_v5 = vadd.f32 %v10768_v57, %v10767_v10  ;;  %v10770_v59 = vpop.f32.mrb[90].mxu1  ;;  %v17305_v10 = vld [vmem:[#allocation95_spill] sm:$0xff] }
 0x7d0   : > { %v10771_v0 = vpop.f32.mrb[91].mxu1 }
 0x7d1   : > { %v8572_v42 = vpack.c.bf16 %v8546_v41, %v8545_v53  ;;  %v8296_v62 = vadd.f32 %v10769_v5, %v16235_v28  ;;  %v10772_v20 = vadd.f32 %v10771_v0, %v10770_v59 }
 0x7d2   : > { %v16270_v33 = vpop.f32.mrb[100].mxu0 }
 0x7d3   : > { %v8457_v60 = vadd.f32 %v17298_v6, %v8296_v62  ;;  %v8299_v17 = vadd.f32 %v10772_v20, %v16235_v28  ;;  %11000 = vmatmul.mubr.msk.bf16.gmra.mrb[112].mxu0 %vm3359_vm14, %v8572_v42  ;;  %v16272_v51 = vpop.f32.mrb[101].mxu0 }
 0x7d4   : > { %v16275_v25 = vpop.f32.mrb[102].mxu0 }
 0x7d5   : > { %v8460_v47 = vadd.f32 %v17299_v9, %v8299_v17  ;;  %v10773_v61 = vpop.f32.mrb[92].mxu1  ;;  %v16277_v21 = vpop.f32.mrb[103].mxu0  ;;  %v8547_v14 = vmax.f32 %v8457_v60, 0.0 }
 0x7d6   : > { %v10774_v34 = vpop.f32.mrb[93].mxu1 }
 0x7d7   : > { %v8548_v44 = vmax.f32 %v8460_v47, 0.0  ;;  %v10775_v19 = vadd.f32 %v10774_v34, %v10773_v61  ;;  %v10776_v26 = vpop.f32.mrb[94].mxu1  ;;  %v17306_v47 = vld [vmem:[#allocation101_spill] sm:$0xff] }
 0x7d8   : > { %v10777_v8 = vpop.f32.mrb[95].mxu1 }
 0x7d9   : > { %v8573_v7 = vpack.c.bf16 %v8548_v44, %v8547_v14  ;;  %v8304_v22 = vadd.f32 %v10775_v19, %v16235_v28  ;;  %v10778_v29 = vadd.f32 %v10777_v8, %v10776_v26 }
 0x7db   : > { %v8465_v18 = vadd.f32 %v17300_v15, %v8304_v22  ;;  %v8307_v24 = vadd.f32 %v10778_v29, %v16235_v28  ;;  %11003 = vmatprep.mubr.msk.bf16.mxu0 %vm3359_vm14, %v8573_v7 }
 0x7dd   : > { %v8468_v49 = vadd.f32 %v17301_v30, %v8307_v24  ;;  %v10779_v23 = vpop.f32.mrb[96].mxu1  ;;  %v8549_v32 = vmax.f32 %v8465_v18, 0.0  ;;  %v17307_v18 = vld [vmem:[#allocation99_spill] sm:$0xff]  ;;  %v17308_v30 = vld [vmem:[#allocation100_spill] sm:$0xff] }
 0x7de   : > { %v10780_v43 = vpop.f32.mrb[97].mxu1 }
 0x7df   : > { %v8550_v52 = vmax.f32 %v8468_v49, 0.0  ;;  %v10781_v16 = vadd.f32 %v10780_v43, %v10779_v23  ;;  %v10782_v40 = vpop.f32.mrb[98].mxu1 }
 0x7e0   : > { %v10783_v63 = vpop.f32.mrb[99].mxu1 }
 0x7e1   : > { %v8574_v39 = vpack.c.bf16 %v8550_v52, %v8549_v32  ;;  %v8312_v31 = vadd.f32 %v10781_v16, %v16235_v28  ;;  %v10784_v4 = vadd.f32 %v10783_v63, %v10782_v40 }
 0x7e3   : > { %v8473_v36 = vadd.f32 %v17302_v1, %v8312_v31  ;;  %v8315_v56 = vadd.f32 %v10784_v4, %v16235_v28  ;;  %11004 = vmatmul.mubr.msk.bf16.gmra.mrb[116].mxu0 %vm3359_vm14, %v8574_v39  ;;  %v17309_v1 = vld [vmem:[#allocation103_spill] sm:$0xff] }
 0x7e5   : > { %v8476_v55 = vadd.f32 %v17303_v3, %v8315_v56  ;;  %v10785_v37 = vpop.f32.mrb[100].mxu1  ;;  %v8551_v11 = vmax.f32 %v8473_v36, 0.0  ;;  %v17310_v3 = vld [vmem:[#allocation105_spill] sm:$0xff] }
 0x7e6   : > { %v10786_v45 = vpop.f32.mrb[101].mxu1 }
 0x7e7   : > { %v8552_v27 = vmax.f32 %v8476_v55, 0.0  ;;  %v10787_v54 = vadd.f32 %v10786_v45, %v10785_v37  ;;  %v10788_v12 = vpop.f32.mrb[102].mxu1 }
 0x7e8   : > { %v10789_v58 = vpop.f32.mrb[103].mxu1 }
 0x7e9   : > { %v8575_v48 = vpack.c.bf16 %v8552_v27, %v8551_v11  ;;  %v8320_v38 = vadd.f32 %v10787_v54, %v16235_v28  ;;  %v10790_v35 = vadd.f32 %v10789_v58, %v10788_v12 }
 0x7eb   : > { %v8481_v13 = vadd.f32 %v17304_v46, %v8320_v38  ;;  %v8323_v50 = vadd.f32 %v10790_v35, %v16235_v28  ;;  %11007 = vmatprep.mubr.msk.bf16.mxu0 %vm3359_vm14, %v8575_v48  ;;  %v17311_v46 = vld [vmem:[#allocation102_spill] sm:$0xff] }
 0x7ed   : > { %v8484_v57 = vadd.f32 %v17305_v10, %v8323_v50  ;;  %v10791_v53 = vpop.f32.mrb[104].mxu1  ;;  %v8553_v5 = vmax.f32 %v8481_v13, 0.0  ;;  %v17312_v10 = vld [vmem:[#allocation104_spill] sm:$0xff] }
 0x7ee   : > { %v10792_v41 = vpop.f32.mrb[105].mxu1 }
 0x7ef   : > { %v8554_v59 = vmax.f32 %v8484_v57, 0.0  ;;  %v10793_v0 = vadd.f32 %v10792_v41, %v10791_v53  ;;  %v10794_v42 = vpop.f32.mrb[106].mxu1 }
 0x7f0   : > { %v10795_v62 = vpop.f32.mrb[107].mxu1 }
 0x7f1   : > { %v8576_v20 = vpack.c.bf16 %v8554_v59, %v8553_v5  ;;  %v8328_v6 = vadd.f32 %v10793_v0, %v16235_v28  ;;  %v10796_v60 = vadd.f32 %v10795_v62, %v10794_v42 }
 0x7f3   : > { %v8489_v17 = vadd.f32 %v15748_v2, %v8328_v6  ;;  %v8331_v9 = vadd.f32 %v10796_v60, %v16235_v28  ;;  %11008 = vmatmul.mubr.msk.bf16.gmra.mrb[120].mxu0 %vm3359_vm14, %v8576_v20 }
 0x7f5   : > { %v8492_v61 = vadd.f32 %v17306_v47, %v8331_v9  ;;  %v10797_v34 = vpop.f32.mrb[108].mxu1  ;;  %v8555_v44 = vmax.f32 %v8489_v17, 0.0 }
 0x7f6   : > { %v10798_v14 = vpop.f32.mrb[109].mxu1 }
 0x7f7   : > { %v8556_v19 = vmax.f32 %v8492_v61, 0.0  ;;  %v10799_v26 = vadd.f32 %v10798_v14, %v10797_v34  ;;  %v10800_v8 = vpop.f32.mrb[110].mxu1 }
 0x7f8   : > { %v10801_v7 = vpop.f32.mrb[111].mxu1 }
 0x7f9   : > { %v8577_v22 = vpack.c.bf16 %v8556_v19, %v8555_v44  ;;  %v8336_v29 = vadd.f32 %v10799_v26, %v16235_v28  ;;  %v10802_v15 = vadd.f32 %v10801_v7, %v10800_v8 }
 0x7fb   : > { %v8497_v24 = vadd.f32 %v17307_v18, %v8336_v29  ;;  %v8339_v2 = vadd.f32 %v10802_v15, %v16235_v28  ;;  %11011 = vmatprep.mubr.msk.bf16.mxu0 %vm3359_vm14, %v8577_v22 }
 0x7fd   : > { %v8500_v49 = vadd.f32 %v17308_v30, %v8339_v2  ;;  %v10803_v23 = vpop.f32.mrb[112].mxu1  ;;  %v8557_v32 = vmax.f32 %v8497_v24, 0.0 }
 0x7fe   : > { %v10804_v43 = vpop.f32.mrb[113].mxu1 }
 0x7ff   : > { %v8558_v52 = vmax.f32 %v8500_v49, 0.0  ;;  %v10805_v16 = vadd.f32 %v10804_v43, %v10803_v23  ;;  %v10806_v40 = vpop.f32.mrb[114].mxu1  ;;  %v16328_v49 = vld [vmem:[%s16882_s13] ss:$0 sm:$0xff] }
 0x800   : > { %v10807_v63 = vpop.f32.mrb[115].mxu1 }
 0x801   : > { %v8578_v39 = vpack.c.bf16 %v8558_v52, %v8557_v32  ;;  %v8344_v31 = vadd.f32 %v10805_v16, %v16235_v28  ;;  %v10808_v4 = vadd.f32 %v10807_v63, %v10806_v40 }
 0x803   : > { %v8505_v36 = vadd.f32 %v17309_v1, %v8344_v31  ;;  %v8347_v56 = vadd.f32 %v10808_v4, %v16235_v28  ;;  %11012 = vmatmul.mubr.msk.bf16.gmra.mrb[124].mxu0 %vm3359_vm14, %v8578_v39 }
 0x805   : > { %v8508_v55 = vadd.f32 %v17310_v3, %v8347_v56  ;;  %v10809_v37 = vpop.f32.mrb[116].mxu1  ;;  %v8559_v11 = vmax.f32 %v8505_v36, 0.0 }
 0x806   : > { %v10810_v45 = vpop.f32.mrb[117].mxu1 }
 0x807   : > { %v8560_v27 = vmax.f32 %v8508_v55, 0.0  ;;  %v10811_v54 = vadd.f32 %v10810_v45, %v10809_v37  ;;  %v10812_v12 = vpop.f32.mrb[118].mxu1 }
 0x808   : > { %v10813_v58 = vpop.f32.mrb[119].mxu1 }
 0x809   : > { %v8579_v48 = vpack.c.bf16 %v8560_v27, %v8559_v11  ;;  %v8352_v38 = vadd.f32 %v10811_v54, %v16235_v28  ;;  %v10814_v35 = vadd.f32 %v10813_v58, %v10812_v12 }
 0x80b   : > { %v8513_v13 = vadd.f32 %v17311_v46, %v8352_v38  ;;  %v8355_v50 = vadd.f32 %v10814_v35, %v16235_v28  ;;  %11015 = vmatprep.mubr.msk.bf16.mxu0 %vm3359_vm14, %v8579_v48 }
 0x80d   : > { %v8516_v57 = vadd.f32 %v17312_v10, %v8355_v50  ;;  %v8561_v53 = vmax.f32 %v8513_v13, 0.0 }
 0x80f   : > { %v8562_v41 = vmax.f32 %v8516_v57, 0.0 }
 0x811   : > { %v8580_v5 = vpack.c.bf16 %v8562_v41, %v8561_v53 }
 0x813   : > { %11016 = vmatmul.mubr.msk.bf16.gmra.mrb[128].mxu0 %vm3359_vm14, %v8580_v5 }
 0x815   : > { %v10815_v59 = vpop.f32.mrb[120].mxu1 }
 0x816   : > { %v10816_v0 = vpop.f32.mrb[121].mxu1 }
 0x817   : > { %v10817_v42 = vadd.f32 %v10816_v0, %v10815_v59  ;;  %v10818_v62 = vpop.f32.mrb[122].mxu1 }
 0x818   : > { %v10819_v20 = vpop.f32.mrb[123].mxu1 }
 0x819   : > { %v10820_v6 = vadd.f32 %v10819_v20, %v10818_v62  ;;  %v8360_v60 = vadd.f32 %v10817_v42, %v16235_v28 }
 0x81b   : > { %v8521_v17 = vadd.f32 %v16272_v51, %v8360_v60  ;;  %v8363_v9 = vadd.f32 %v10820_v6, %v16235_v28 }
 0x81d   : > { %v8524_v47 = vadd.f32 %v16277_v21, %v8363_v9  ;;  %v10821_v61 = vpop.f32.mrb[124].mxu1  ;;  %v8563_v14 = vmax.f32 %v8521_v17, 0.0 }
 0x81e   : > { %v10822_v34 = vpop.f32.mrb[125].mxu1 }
 0x81f   : > { %v8564_v44 = vmax.f32 %v8524_v47, 0.0  ;;  %v10823_v19 = vadd.f32 %v10822_v34, %v10821_v61  ;;  %v10824_v26 = vpop.f32.mrb[126].mxu1 }
 0x820   : > { %v10825_v8 = vpop.f32.mrb[127].mxu1 }
 0x821   : > { %v8581_v7 = vpack.c.bf16 %v8564_v44, %v8563_v14  ;;  %v8368_v22 = vadd.f32 %v10823_v19, %v16235_v28  ;;  %v10826_v29 = vadd.f32 %v10825_v8, %v10824_v26 }
 0x823   : > { %v8529_v15 = vadd.f32 %v16270_v33, %v8368_v22  ;;  %v8371_v51 = vadd.f32 %v10826_v29, %v16235_v28  ;;  %11019 = vmatprep.mubr.msk.bf16.mxu0 %vm3359_vm14, %v8581_v7 }
 0x825   : > { %v8532_v21 = vadd.f32 %v16275_v25, %v8371_v51  ;;  %v8565_v18 = vmax.f32 %v8529_v15, 0.0 }
 0x827   : > { %v8566_v24 = vmax.f32 %v8532_v21, 0.0 }
 0x829   : > { %v8582_v2 = vpack.c.bf16 %v8566_v24, %v8565_v18 }
 0x82b   : > { %11020 = vmatmul.mubr.msk.bf16.gmra.mrb[132].mxu0 %vm3359_vm14, %v8582_v2 }
 0x886   : > { %v10993_v30 = vpop.f32.mrb[104].mxu0 }
 0x887   : > { %v8688_v23 = vpop.f32.mrb[105].mxu0  ;;  %v16331_v43 = vadd.f32 %v10993_v30, %v16328_v49 }
 0x888   : > { %v10994_v33 = vpop.f32.mrb[106].mxu0  ;;  %v16337_v32 = vadd.f32 %v16328_v49, %v8688_v23 }
 0x889   : > { %v16334_v28 = vadd.f32 %v10994_v33, %v16328_v49  ;;  %v8691_v25 = vpop.f32.mrb[107].mxu0 }
 0x88a   : > { %v16347_v52 = vadd.f32 %v16328_v49, %v8691_v25 }
 0x88b   : > { %v10474_v16 = vpack.c.bf16 %v16334_v28, %v16331_v43 }
 0x88c   : > { %v10469_v40 = vpack.c.bf16 %v16347_v52, %v16337_v32  ;;  %v8977_v24 = vsel %vm8975_vm2, %v16347_v52, -inf }
 0x88d   : > { %10546 = vst [vmem:[%s16344_s30 + $0x8] sm:$0xff] %v10474_v16  }
 0x88e   : > { %10470 = vst [vmem:[%s16344_s30] sm:$0xff] %v10469_v40  }
 0x896   : > { %v10997_v63 = vpop.f32.mrb[108].mxu0 }
 0x897   : > { %v8704_v39 = vpop.f32.mrb[109].mxu0  ;;  %v16356_v4 = vadd.f32 %v10997_v63, %v16328_v49 }
 0x898   : > { %v10998_v31 = vpop.f32.mrb[110].mxu0  ;;  %v16362_v56 = vadd.f32 %v16328_v49, %v8704_v39 }
 0x899   : > { %v16359_v1 = vadd.f32 %v10998_v31, %v16328_v49  ;;  %v8707_v36 = vpop.f32.mrb[111].mxu0 }
 0x89a   : > { %v16365_v3 = vadd.f32 %v16328_v49, %v8707_v36 }
 0x89b   : > { %v10484_v55 = vpack.c.bf16 %v16359_v1, %v16356_v4 }
 0x89c   : > { %v10479_v37 = vpack.c.bf16 %v16365_v3, %v16362_v56  ;;  %v8982_v18 = vsel %vm8975_vm2, %v16365_v3, -inf }
 0x89d   : > { %10548 = vst [vmem:[%s16344_s30 + $0x18] sm:$0xff] %v10484_v55   ;;  %v8983_v30 = vmax.f32 %v8977_v24, %v8982_v18 }
 0x89e   : > { %10547 = vst [vmem:[%s16344_s30 + $0x10] sm:$0xff] %v10479_v37  }
 0x8a6   : > { %v11001_v45 = vpop.f32.mrb[112].mxu0 }
 0x8a7   : > { %v8720_v11 = vpop.f32.mrb[113].mxu0  ;;  %v16374_v54 = vadd.f32 %v11001_v45, %v16328_v49 }
 0x8a8   : > { %v11002_v27 = vpop.f32.mrb[114].mxu0  ;;  %v16380_v48 = vadd.f32 %v16328_v49, %v8720_v11 }
 0x8a9   : > { %v16377_v12 = vadd.f32 %v11002_v27, %v16328_v49  ;;  %v8723_v58 = vpop.f32.mrb[115].mxu0 }
 0x8aa   : > { %v16383_v38 = vadd.f32 %v16328_v49, %v8723_v58 }
 0x8ab   : > { %v10494_v35 = vpack.c.bf16 %v16377_v12, %v16374_v54 }
 0x8ac   : > { %v10489_v46 = vpack.c.bf16 %v16383_v38, %v16380_v48  ;;  %v8990_v2 = vsel %vm8975_vm2, %v16383_v38, -inf }
 0x8ad   : > { %10550 = vst [vmem:[%s16344_s30 + $0x28] sm:$0xff] %v10494_v35   ;;  %v8991_v33 = vmax.f32 %v8983_v30, %v8990_v2 }
 0x8ae   : > { %10549 = vst [vmem:[%s16344_s30 + $0x20] sm:$0xff] %v10489_v46  }
 0x8b6   : > { %v11005_v13 = vpop.f32.mrb[116].mxu0 }
 0x8b7   : > { %v8736_v50 = vpop.f32.mrb[117].mxu0  ;;  %v16392_v57 = vadd.f32 %v11005_v13, %v16328_v49 }
 0x8b8   : > { %v11006_v10 = vpop.f32.mrb[118].mxu0  ;;  %v16398_v5 = vadd.f32 %v16328_v49, %v8736_v50 }
 0x8b9   : > { %v16395_v53 = vadd.f32 %v11006_v10, %v16328_v49  ;;  %v8739_v41 = vpop.f32.mrb[119].mxu0  ;;  %v8984_v10 = vsel %vm8975_vm2, %v16356_v4, -inf }
 0x8ba   : > { %v16401_v59 = vadd.f32 %v16328_v49, %v8739_v41  ;;  %v8980_v41 = vsel %vm8975_vm2, %v16362_v56, -inf }
 0x8bb   : > { %v10504_v0 = vpack.c.bf16 %v16395_v53, %v16392_v57  ;;  %v9002_v18 = vsel %vm8975_vm2, %v16395_v53, -inf }
 0x8bc   : > { %v10499_v42 = vpack.c.bf16 %v16401_v59, %v16398_v5  ;;  %v8998_v23 = vsel %vm8975_vm2, %v16401_v59, -inf }
 0x8bd   : > { %10552 = vst [vmem:[%s16344_s30 + $0x38] sm:$0xff] %v10504_v0   ;;  %v8999_v40 = vmax.f32 %v8991_v33, %v8998_v23  ;;  %v8978_v0 = vsel %vm8975_vm2, %v16331_v43, -inf }
 0x8be   : > { %10551 = vst [vmem:[%s16344_s30 + $0x30] sm:$0xff] %v10499_v42   ;;  %v8986_v42 = vsel %vm8975_vm2, %v16359_v1, -inf }
 0x8c6   : > { %v11009_v62 = vpop.f32.mrb[120].mxu0 }
 0x8c7   : > { %v8752_v20 = vpop.f32.mrb[121].mxu0  ;;  %v16410_v60 = vadd.f32 %v11009_v62, %v16328_v49  ;;  %v8992_v62 = vsel %vm8975_vm2, %v16374_v54, -inf }
 0x8c8   : > { %v11010_v6 = vpop.f32.mrb[122].mxu0  ;;  %v16416_v47 = vadd.f32 %v16328_v49, %v8752_v20  ;;  %v8976_v20 = vsel %vm8975_vm2, %v16337_v32, -inf }
 0x8c9   : > { %v16413_v17 = vadd.f32 %v11010_v6, %v16328_v49  ;;  %v8755_v9 = vpop.f32.mrb[123].mxu0  ;;  %v8985_v6 = vmax.f32 %v8978_v0, %v8984_v10  ;;  %v9008_v24 = vsel %vm8975_vm2, %v16410_v60, -inf }
 0x8ca   : > { %v16419_v61 = vadd.f32 %v16328_v49, %v8755_v9  ;;  %v8988_v9 = vsel %vm8975_vm2, %v16380_v48, -inf  ;;  %v9004_v23 = vsel %vm8975_vm2, %v16416_v47, -inf }
 0x8cb   : > { %v10514_v34 = vpack.c.bf16 %v16413_v17, %v16410_v60 }
 0x8cc   : > { %v10509_v14 = vpack.c.bf16 %v16419_v61, %v16416_v47  ;;  %v9006_v25 = vsel %vm8975_vm2, %v16419_v61, -inf }
 0x8cd   : > { %10554 = vst [vmem:[%s16344_s30 + $0x48] sm:$0xff] %v10514_v34   ;;  %v9007_v36 = vmax.f32 %v8999_v40, %v9006_v25  ;;  %v8979_v34 = vsel %vm8975_vm2, %v16334_v28, -inf  ;;  %v9010_v25 = vsel %vm8975_vm2, %v16413_v17, -inf }
 0x8ce   : > { %10553 = vst [vmem:[%s16344_s30 + $0x40] sm:$0xff] %v10509_v14   ;;  %v8981_v14 = vmax.f32 %v8976_v20, %v8980_v41 }
 0x8d6   : > { %v11013_v44 = vpop.f32.mrb[124].mxu0 }
 0x8d7   : > { %v8768_v19 = vpop.f32.mrb[125].mxu0  ;;  %v16428_v8 = vadd.f32 %v11013_v44, %v16328_v49  ;;  %v8994_v44 = vsel %vm8975_vm2, %v16377_v12, -inf }
 0x8d8   : > { %v11014_v26 = vpop.f32.mrb[126].mxu0  ;;  %v16434_v29 = vadd.f32 %v16328_v49, %v8768_v19  ;;  %v9000_v19 = vsel %vm8975_vm2, %v16392_v57, -inf }
 0x8d9   : > { %v16431_v7 = vadd.f32 %v11014_v26, %v16328_v49  ;;  %v8771_v22 = vpop.f32.mrb[127].mxu0  ;;  %v8987_v26 = vmax.f32 %v8979_v34, %v8986_v42 }
 0x8da   : > { %v16437_v15 = vadd.f32 %v16328_v49, %v8771_v22  ;;  %v8993_v22 = vmax.f32 %v8985_v6, %v8992_v62 }
 0x8db   : > { %v10524_v51 = vpack.c.bf16 %v16431_v7, %v16428_v8  ;;  %v8995_v2 = vmax.f32 %v8987_v26, %v8994_v44 }
 0x8dc   : > { %v10519_v21 = vpack.c.bf16 %v16437_v15, %v16434_v29  ;;  %v9014_v39 = vsel %vm8975_vm2, %v16437_v15, -inf  ;;  %v9001_v30 = vmax.f32 %v8993_v22, %v9000_v19 }
 0x8dd   : > { %10556 = vst [vmem:[%s16344_s30 + $0x58] sm:$0xff] %v10524_v51   ;;  %v9015_v58 = vmax.f32 %v9007_v36, %v9014_v39  ;;  %v8996_v51 = vsel %vm8975_vm2, %v16398_v5, -inf  ;;  %v9003_v40 = vmax.f32 %v8995_v2, %v9002_v18  ;;  %v9012_v39 = vsel %vm8975_vm2, %v16434_v29, -inf }
 0x8de   : > { %10555 = vst [vmem:[%s16344_s30 + $0x50] sm:$0xff] %v10519_v21   ;;  %v8989_v21 = vmax.f32 %v8981_v14, %v8988_v9  ;;  %v9018_v36 = vsel %vm8975_vm2, %v16431_v7, -inf }
 0x8e0   : > { %v8997_v33 = vmax.f32 %v8989_v21, %v8996_v51 }
 0x8e6   : > { %v11017_v16 = vpop.f32.mrb[128].mxu0 }
 0x8e7   : > { %v8784_v63 = vpop.f32.mrb[129].mxu0  ;;  %v16458_v55 = vadd.f32 %v11017_v16, %v16328_v49  ;;  %v9016_v16 = vsel %vm8975_vm2, %v16428_v8, -inf }
 0x8e8   : > { %v11018_v31 = vpop.f32.mrb[130].mxu0  ;;  %v16464_v11 = vadd.f32 %v16328_v49, %v8784_v63  ;;  %v9009_v63 = vmax.f32 %v9001_v30, %v9008_v24 }
 0x8e9   : > { %v16461_v37 = vadd.f32 %v11018_v31, %v16328_v49  ;;  %v8787_v45 = vpop.f32.mrb[131].mxu0  ;;  %v9005_v31 = vmax.f32 %v8997_v33, %v9004_v23 }
 0x8ea   : > { %v16467_v27 = vadd.f32 %v16328_v49, %v8787_v45  ;;  %v9024_v45 = vsel %vm8975_vm2, %v16458_v55, -inf }
 0x8eb   : > { %v10534_v35 = vpack.c.bf16 %v16461_v37, %v16458_v55  ;;  %v9013_v10 = vmax.f32 %v9005_v31, %v9012_v39  ;;  %v9026_v41 = vsel %vm8975_vm2, %v16461_v37, -inf }
 0x8ec   : > { %v10529_v46 = vpack.c.bf16 %v16467_v27, %v16464_v11  ;;  %v9022_v13 = vsel %vm8975_vm2, %v16467_v27, -inf }
 0x8ed   : > { %10558 = vst [vmem:[%s16344_s30 + $0x68] sm:$0xff] %v10534_v35   ;;  %v16476_v50 = vmax.f32 %v9015_v58, %v9022_v13  ;;  %v9011_v58 = vmax.f32 %v9003_v40, %v9010_v25  ;;  %v9017_v35 = vmax.f32 %v9009_v63, %v9016_v16 }
 0x8ee   : > { %10557 = vst [vmem:[%s16344_s30 + $0x60] sm:$0xff] %v10529_v46   ;;  %v9020_v46 = vsel %vm8975_vm2, %v16464_v11, -inf }
 0x8ef   : > { %v9019_v62 = vmax.f32 %v9011_v58, %v9018_v36  ;;  %v9025_v20 = vmax.f32 %v9017_v35, %v9024_v45  ;;  %v9021_v34 = vmax.f32 %v9013_v10, %v9020_v46 }
 0x8f1   : > { %v9027_v26 = vmax.f32 %v9019_v62, %v9026_v41 }
 0x8fe   : > { %v11021_v13 = vpop.f32.mrb[132].mxu0 }
 0x8ff   : > { %v16522_v0 = vadd.f32 %v11021_v13, %v16328_v49  ;;  %v8800_v42 = vpop.f32.mrb[133].mxu0 }
 0x900   : > { %v16525_v6 = vadd.f32 %v16328_v49, %v8800_v42  ;;  %v11022_v9 = vpop.f32.mrb[134].mxu0 }
 0x901   : > { %v9032_v14 = vsel %vm8975_vm2, %v16522_v0, -inf  ;;  %v16530_v44 = vadd.f32 %v11022_v9, %v16328_v49  ;;  %v8803_v19 = vpop.f32.mrb[135].mxu0 }
 0x902   : > { %v9033_v22 = vmax.f32 %v9025_v20, %v9032_v14  ;;  %v9028_v51 = vsel %vm8975_vm2, %v16525_v6, -inf  ;;  %v16535_v21 = vadd.f32 %v16328_v49, %v8803_v19 }
 0x903   : > { %v9029_v18 = vmax.f32 %v9021_v34, %v9028_v51  ;;  %v10544_v24 = vpack.c.bf16 %v16530_v44, %v16522_v0  ;;  %v9034_v2 = vsel %vm8975_vm2, %v16530_v44, -inf }
 0x904   : > { %v9035_v30 = vmax.f32 %v9027_v26, %v9034_v2  ;;  %v10539_v23 = vpack.c.bf16 %v16535_v21, %v16525_v6  ;;  %v9030_v33 = vsel %vm8975_vm2, %v16535_v21, -inf }
 0x905   : > { %10560 = vst [vmem:[%s16344_s30 + $0x78] sm:$0xff] %v10544_v24   ;;  %v9031_v25 = vmax.f32 %v16476_v50, %v9030_v33 }
 0x906   : > { %v9037_v16 = vmax.f32 %v9033_v22, %v9035_v30  ;;  %10559 = vst [vmem:[%s16344_s30 + $0x70] sm:$0xff] %v10539_v23  }
 0x907   : > { %v9036_v49 = vmax.f32 %v9029_v18, %v9031_v25 }
 0x909   : > { %v9038_v40 = vmax.f32 %v9036_v49, %v9037_v16 }
 0x90b   : > { %v9039_v63 = vrot.slane %v9038_v40, 4 }
 0x90d   : > { %v9040_v39 = vmax.f32 %v9038_v40, %v9039_v63 }
 0x90f   : > { %v9041_v31 = vrot.slane %v9040_v39, 2 }
 0x911   : > { %v9042_v36 = vmax.f32 %v9040_v39, %v9041_v31 }
 0x913   : > { %v9043_v45 = vrot.slane %v9042_v36, 1 }
 0x915   : > { %v16548_v58 = vmax.f32 %v9042_v36, %v9043_v45 }
 0x917   : > { %v9045_v35 = vsub.f32 %v16337_v32, %v16548_v58  ;;  %v9046_v46 = vsub.f32 %v16347_v52, %v16548_v58  ;;  %v9047_v50 = vsub.f32 %v16331_v43, %v16548_v58  ;;  %v9048_v13 = vsub.f32 %v16334_v28, %v16548_v58 }
 0x918   : > { %v9049_v10 = vsub.f32 %v16362_v56, %v16548_v58  ;;  %v9066_v41 = vsub.f32 %v16437_v15, %v16548_v58  ;;  %v9069_v42 = vsub.f32 %v16464_v11, %v16548_v58  ;;  %v9070_v32 = vsub.f32 %v16467_v27, %v16548_v58 }
 0x919   : > { %v9071_v52 = vsub.f32 %v16458_v55, %v16548_v58  ;;  %v9072_v43 = vsub.f32 %v16461_v37, %v16548_v58  ;;  %v9073_v28 = vsub.f32 %v16525_v6, %v16548_v58  ;;  %v9074_v56 = vsub.f32 %v16535_v21, %v16548_v58 }
 0x91a   : > { %v9075_v62 = vsub.f32 %v16522_v0, %v16548_v58  ;;  %v9076_v20 = vsub.f32 %v16530_v44, %v16548_v58  ;;  %v9077_v9 = vmul.f32 1.442695, %v9045_v35  ;;  %v9079_v34 = vmul.f32 1.442695, %v9046_v46 }
 0x91b   : > { %v9081_v14 = vmul.f32 1.442695, %v9047_v50  ;;  %v9050_v19 = vsub.f32 %v16365_v3, %v16548_v58  ;;  %v9083_v26 = vmul.f32 1.442695, %v9048_v13  ;;  %v9051_v22 = vsub.f32 %v16356_v4, %v16548_v58 }
 0x91c   : > { %11219 = vpow2.f32 %v9077_v9  ;;  %v9085_v51 = vmul.f32 1.442695, %v9049_v10  ;;  %v9052_v18 = vsub.f32 %v16359_v1, %v16548_v58  ;;  %v9053_v2 = vsub.f32 %v16380_v48, %v16548_v58 }
 0x91d   : > { %11221 = vpow2.f32 %v9079_v34  ;;  %v9087_v24 = vmul.f32 1.442695, %v9050_v19  ;;  %v9089_v30 = vmul.f32 1.442695, %v9051_v22  ;;  %v9054_v3 = vsub.f32 %v16383_v38, %v16548_v58 }
 0x91e   : > { %11223 = vpow2.f32 %v9081_v14  ;;  %v9091_v23 = vmul.f32 1.442695, %v9052_v18  ;;  %v9055_v4 = vsub.f32 %v16374_v54, %v16548_v58  ;;  %v9093_v33 = vmul.f32 1.442695, %v9053_v2 }
 0x91f   : > { %11225 = vpow2.f32 %v9083_v26  ;;  %v9056_v16 = vsub.f32 %v16377_v12, %v16548_v58  ;;  %v9095_v48 = vmul.f32 1.442695, %v9054_v3  ;;  %v9057_v63 = vsub.f32 %v16398_v5, %v16548_v58 }
 0x920   : > { %11227 = vpow2.f32 %v9085_v51  ;;  %v9097_v39 = vmul.f32 1.442695, %v9055_v4  ;;  %v9058_v45 = vsub.f32 %v16401_v59, %v16548_v58  ;;  %v9059_v5 = vsub.f32 %v16392_v57, %v16548_v58 }
 0x921   : > { %11229 = vpow2.f32 %v9087_v24  ;;  %v9099_v35 = vmul.f32 1.442695, %v9056_v16  ;;  %v9101_v10 = vmul.f32 1.442695, %v9057_v63  ;;  %v9060_v59 = vsub.f32 %v16395_v53, %v16548_v58 }
 0x922   : > { %11231 = vpow2.f32 %v9089_v30  ;;  %v9103_v19 = vmul.f32 1.442695, %v9058_v45  ;;  %v9061_v57 = vsub.f32 %v16416_v47, %v16548_v58  ;;  %v9105_v18 = vmul.f32 1.442695, %v9059_v5 }
 0x923   : > { %11233 = vpow2.f32 %v9091_v23  ;;  %v9062_v53 = vsub.f32 %v16419_v61, %v16548_v58  ;;  %v9107_v3 = vmul.f32 1.442695, %v9060_v59  ;;  %v9063_v47 = vsub.f32 %v16410_v60, %v16548_v58 }
 0x924   : > { %11235 = vpow2.f32 %v9093_v33  ;;  %v9109_v16 = vmul.f32 1.442695, %v9061_v57  ;;  %v9064_v61 = vsub.f32 %v16413_v17, %v16548_v58  ;;  %v9065_v60 = vsub.f32 %v16434_v29, %v16548_v58 }
 0x925   : > { %11237 = vpow2.f32 %v9095_v48  ;;  %v9111_v63 = vmul.f32 1.442695, %v9062_v53  ;;  %v9113_v45 = vmul.f32 1.442695, %v9063_v47  ;;  %v9119_v57 = vmul.f32 1.442695, %v9066_v41 }
 0x926   : > { %v16590_v25 = vpop.eup %11219  ;;  %11239 = vpow2.f32 %v9097_v39  ;;  %v9115_v17 = vmul.f32 1.442695, %v9064_v61  ;;  %v9117_v29 = vmul.f32 1.442695, %v9065_v60  ;;  %v9125_v47 = vmul.f32 1.442695, %v9069_v42 }
 0x927   : > { %v16592_v1 = vpop.eup %11221  ;;  %v9141_v49 = vsel %vm8975_vm2, %v16590_v25, 0.0  ;;  %11241 = vpow2.f32 %v9099_v35  ;;  %v9127_v61 = vmul.f32 1.442695, %v9070_v32  ;;  %v9129_v11 = vmul.f32 1.442695, %v9071_v52 }
 0x928   : > { %v16598_v38 = vpop.eup %11223  ;;  %v9142_v40 = vsel %vm8975_vm2, %v16592_v1, 0.0  ;;  %11243 = vpow2.f32 %v9101_v10  ;;  %v9131_v27 = vmul.f32 1.442695, %v9072_v43  ;;  %v9133_v55 = vmul.f32 1.442695, %v9073_v28 }
 0x929   : > { %v16602_v54 = vpop.eup %11225  ;;  %v9143_v31 = vadd.f32 %v9142_v40, %v9141_v49  ;;  %v9144_v12 = vsel %vm8975_vm2, %v16598_v38, 0.0  ;;  %11245 = vpow2.f32 %v9103_v19  ;;  %v9135_v37 = vmul.f32 1.442695, %v9074_v56 }
 0x92a   : > { %v16608_v36 = vpop.eup %11227  ;;  %v9146_v50 = vsel %vm8975_vm2, %v16602_v54, 0.0  ;;  %11247 = vpow2.f32 %v9105_v18  ;;  %v9137_v6 = vmul.f32 1.442695, %v9075_v62  ;;  %v9139_v21 = vmul.f32 1.442695, %v9076_v20 }
 0x92b   : > { %v9145_v46 = vadd.f32 %v9144_v12, %v9143_v31  ;;  %v16614_v13 = vpop.eup %11229  ;;  %v9148_v34 = vsel %vm8975_vm2, %v16608_v36, 0.0  ;;  %11249 = vpow2.f32 %v9107_v3 }
 0x92c   : > { %v16620_v14 = vpop.eup %11231  ;;  %v9150_v22 = vsel %vm8975_vm2, %v16614_v13, 0.0  ;;  %11251 = vpow2.f32 %v9109_v16 }
 0x92d   : > { %v9147_v9 = vadd.f32 %v9146_v50, %v9145_v46  ;;  %v16626_v51 = vpop.eup %11233  ;;  %v9152_v2 = vsel %vm8975_vm2, %v16620_v14, 0.0  ;;  %11253 = vpow2.f32 %v9111_v63 }
 0x92e   : > { %v16632_v30 = vpop.eup %11235  ;;  %v9154_v4 = vsel %vm8975_vm2, %v16626_v51, 0.0  ;;  %11255 = vpow2.f32 %v9113_v45 }
 0x92f   : > { %v9149_v26 = vadd.f32 %v9148_v34, %v9147_v9  ;;  %v16638_v33 = vpop.eup %11237  ;;  %v9156_v49 = vsel %vm8975_vm2, %v16632_v30, 0.0  ;;  %v9067_v34 = vsub.f32 %v16428_v8, %v16548_v58  ;;  %11257 = vpow2.f32 %v9115_v17 }
 0x930   : > { %v16644_v40 = vpop.eup %11239  ;;  %v9158_v31 = vsel %vm8975_vm2, %v16638_v33, 0.0  ;;  %11259 = vpow2.f32 %v9117_v29 }
 0x931   : > { %v9151_v24 = vadd.f32 %v9150_v22, %v9149_v26  ;;  %v16650_v12 = vpop.eup %11241  ;;  %v9160_v46 = vsel %vm8975_vm2, %v16644_v40, 0.0  ;;  %v9068_v22 = vsub.f32 %v16431_v7, %v16548_v58  ;;  %11261 = vpow2.f32 %v9119_v57 }
 0x932   : > { %v16656_v50 = vpop.eup %11243  ;;  %v9162_v10 = vsel %vm8975_vm2, %v16650_v12, 0.0 }
 0x933   : > { %v9153_v23 = vadd.f32 %v9152_v2, %v9151_v24  ;;  %v16660_v9 = vpop.eup %11245  ;;  %v9164_v19 = vsel %vm8975_vm2, %v16656_v50, 0.0  ;;  %v9121_v2 = vmul.f32 1.442695, %v9067_v34  ;;  %v9123_v7 = vmul.f32 1.442695, %v9068_v22 }
 0x934   : > { %v16666_v26 = vpop.eup %11247  ;;  %v9166_v8 = vsel %vm8975_vm2, %v16660_v9, 0.0 }
 0x935   : > { %v9155_v48 = vadd.f32 %v9154_v4, %v9153_v23  ;;  %v16675_v24 = vpop.eup %11249  ;;  %v9168_v3 = vsel %vm8975_vm2, %v16666_v26, 0.0  ;;  %11263 = vpow2.f32 %v9121_v2 }
 0x936   : > { %v16679_v23 = vpop.eup %11251  ;;  %v9170_v15 = vsel %vm8975_vm2, %v16675_v24, 0.0  ;;  %11265 = vpow2.f32 %v9123_v7 }
 0x937   : > { %v9157_v39 = vadd.f32 %v9156_v49, %v9155_v48  ;;  %v16683_v41 = vpop.eup %11253  ;;  %v9172_v48 = vsel %vm8975_vm2, %v16679_v23, 0.0  ;;  %11267 = vpow2.f32 %v9125_v47 }
 0x938   : > { %v16690_v49 = vpop.eup %11255  ;;  %11269 = vpow2.f32 %v9127_v61 }
 0x939   : > { %v9159_v35 = vadd.f32 %v9158_v31, %v9157_v39  ;;  %v9174_v39 = vsel %vm8975_vm2, %v16683_v41, 0.0  ;;  %v16697_v31 = vpop.eup %11257  ;;  %v9176_v60 = vsel %vm8975_vm2, %v16690_v49, 0.0  ;;  %11271 = vpow2.f32 %v9129_v11 }
 0x93a   : > { %v16704_v45 = vpop.eup %11259  ;;  %11273 = vpow2.f32 %v9131_v27 }
 0x93b   : > { %v9161_v5 = vadd.f32 %v9160_v46, %v9159_v35  ;;  %v9178_v35 = vsel %vm8975_vm2, %v16697_v31, 0.0  ;;  %v16711_v46 = vpop.eup %11261  ;;  %v9180_v17 = vsel %vm8975_vm2, %v16704_v45, 0.0  ;;  %11275 = vpow2.f32 %v9133_v55 }
 0x93c   : > { %11277 = vpow2.f32 %v9135_v37 }
 0x93d   : > { %v9163_v59 = vadd.f32 %v9162_v10, %v9161_v5  ;;  %v9182_v10 = vsel %vm8975_vm2, %v16711_v46, 0.0  ;;  %11279 = vpow2.f32 %v9137_v6 }
 0x93e   : > { %11281 = vpow2.f32 %v9139_v21 }
 0x93f   : > { %v9165_v18 = vadd.f32 %v9164_v19, %v9163_v59  ;;  %v16718_v5 = vpop.eup %11263 }
 0x940   : > { %v16725_v34 = vpop.eup %11265  ;;  %v9184_v29 = vsel %vm8975_vm2, %v16718_v5, 0.0 }
 0x941   : > { %v9167_v53 = vadd.f32 %v9166_v8, %v9165_v18  ;;  %v16732_v59 = vpop.eup %11267  ;;  %v9186_v19 = vsel %vm8975_vm2, %v16725_v34, 0.0 }
 0x942   : > { %v16739_v22 = vpop.eup %11269  ;;  %v9188_v62 = vsel %vm8975_vm2, %v16732_v59, 0.0 }
 0x943   : > { %v9169_v4 = vadd.f32 %v9168_v3, %v9167_v53  ;;  %v16743_v57 = vpop.eup %11271  ;;  %v9190_v8 = vsel %vm8975_vm2, %v16739_v22, 0.0 }
 0x944   : > { %v16747_v44 = vpop.eup %11273  ;;  %v9192_v20 = vsel %vm8975_vm2, %v16743_v57, 0.0 }
 0x945   : > { %v9171_v16 = vadd.f32 %v9170_v15, %v9169_v4  ;;  %v16751_v2 = vpop.eup %11275  ;;  %v9194_v3 = vsel %vm8975_vm2, %v16747_v44, 0.0 }
 0x946   : > { %v16755_v7 = vpop.eup %11277  ;;  %v9196_v15 = vsel %vm8975_vm2, %v16751_v2, 0.0 }
 0x947   : > { %v9173_v63 = vadd.f32 %v9172_v48, %v9171_v16  ;;  %v16759_v47 = vpop.eup %11279  ;;  %v9198_v48 = vsel %vm8975_vm2, %v16755_v7, 0.0 }
 0x948   : > { %v11282_v61 = vpop.eup %11281 }
 0x949   : > { %v9175_v42 = vadd.f32 %v9174_v39, %v9173_v63  ;;  %v9200_v39 = vsel %vm8975_vm2, %v16759_v47, 0.0 }
 0x94b   : > { %v9177_v32 = vadd.f32 %v9176_v60, %v9175_v42  ;;  %v9202_v42 = vsel %vm8975_vm2, %v11282_v61, 0.0 }
 0x94d   : > { %v9179_v52 = vadd.f32 %v9178_v35, %v9177_v32 }
 0x94f   : > { %v9181_v43 = vadd.f32 %v9180_v17, %v9179_v52 }
 0x951   : > { %v9183_v28 = vadd.f32 %v9182_v10, %v9181_v43 }
 0x953   : > { %v9185_v56 = vadd.f32 %v9184_v29, %v9183_v28 }
 0x955   : > { %v9187_v0 = vadd.f32 %v9186_v19, %v9185_v56 }
 0x957   : > { %v9189_v18 = vadd.f32 %v9188_v62, %v9187_v0  ;;  %v17313_v0 = vld [vmem:[#allocation6_spill] sm:$0xff] }
 0x959   : > { %v9191_v58 = vadd.f32 %v9190_v8, %v9189_v18  ;;  %v17314_v18 = vld [vmem:[#allocation5_spill] sm:$0xff] }
 0x95b   : > { %v9193_v53 = vadd.f32 %v9192_v20, %v9191_v58 }
 0x95d   : > { %v9195_v4 = vadd.f32 %v9194_v3, %v9193_v53  ;;  %v17316_v3 = vld [vmem:[#allocation8_spill] sm:$0xff] }
 0x95f   : > { %v9197_v16 = vadd.f32 %v9196_v15, %v9195_v4 }
 0x961   : > { %v9199_v63 = vadd.f32 %v9198_v48, %v9197_v16 }
 0x963   : > { %v9201_v11 = vadd.f32 %v9200_v39, %v9199_v63  ;;  %v17317_v63 = vld [vmem:[#allocation9_spill] sm:$0xff] }
 0x965   : > { %v9203_v60 = vadd.f32 %v9202_v42, %v9201_v11  ;;  %v17318_v11 = vld [vmem:[#allocation10_spill] sm:$0xff] }
 0x967   : > { %v9204_v27 = vrot.slane %v9203_v60, 4 }
 0x969   : > { %v9205_v32 = vadd.f32 %v9204_v27, %v9203_v60 }
 0x96b   : > { %v9206_v35 = vrot.slane %v9205_v32, 2 }
 0x96d   : > { %v9207_v55 = vadd.f32 %v9206_v35, %v9205_v32 }
 0x96f   : > { %v9208_v52 = vrot.slane %v9207_v55, 1 }
 0x971   : > { %v9209_v17 = vadd.f32 %v9208_v52, %v9207_v55 }
 0x973   : > { %11283 = vrcp.f32 %v9209_v17  ;;  %v17319_v17 = vld [vmem:[#allocation11_spill] sm:$0xff] }
 0x97d   : > { %v11284_v37 = vpop.eup %11283 }
 0x97e   : > { %v9212_v43 = vmul.f32 %v11284_v37, %v16592_v1  ;;  %v9211_v10 = vmul.f32 %v11284_v37, %v16590_v25  ;;  %v9213_v6 = vmul.f32 %v11284_v37, %v16598_v38  ;;  %v9214_v28 = vmul.f32 %v11284_v37, %v16602_v54 }
 0x97f   : > { %v9215_v29 = vmul.f32 %v11284_v37, %v16608_v36  ;;  %v9216_v21 = vmul.f32 %v11284_v37, %v16614_v13  ;;  %v9242_v56 = vmul.f32 %v11284_v37, %v11282_v61  ;;  %v9217_v19 = vmul.f32 %v11284_v37, %v16620_v14 }
 0x980   : > { %9250 = vperm.xlu1 %11047, %v9212_v43   ;;  %9245 = vperm.xlu0 %11046, %v9211_v10   ;;  %v9218_v1 = vmul.f32 %v11284_v37, %v16626_v51  ;;  %v9219_v25 = vmul.f32 %v11284_v37, %v16632_v30  ;;  %v9220_v38 = vmul.f32 %v11284_v37, %v16638_v33  ;;  %v17320_v43 = vld [vmem:[#allocation12_spill] sm:$0xff] }
 0x981   : > { %v9221_v54 = vmul.f32 %v11284_v37, %v16644_v40  ;;  %v9222_v36 = vmul.f32 %v11284_v37, %v16650_v12  ;;  %v9223_v13 = vmul.f32 %v11284_v37, %v16656_v50  ;;  %v9224_v14 = vmul.f32 %v11284_v37, %v16660_v9 }
 0x982   : > { %v9225_v51 = vmul.f32 %v11284_v37, %v16666_v26  ;;  %v9226_v30 = vmul.f32 %v11284_v37, %v16675_v24  ;;  %v9227_v33 = vmul.f32 %v11284_v37, %v16679_v23  ;;  %v9228_v40 = vmul.f32 %v11284_v37, %v16683_v41 }
 0x983   : > { %v9229_v12 = vmul.f32 %v11284_v37, %v16690_v49  ;;  %v9230_v50 = vmul.f32 %v11284_v37, %v16697_v31  ;;  %v9231_v9 = vmul.f32 %v11284_v37, %v16704_v45  ;;  %v9232_v26 = vmul.f32 %v11284_v37, %v16711_v46 }
 0x984   : > { %9255 = vperm.xlu1 %11047, %v9213_v6   ;;  %9260 = vperm.xlu0 %11046, %v9214_v28   ;;  %v9233_v24 = vmul.f32 %v11284_v37, %v16718_v5  ;;  %v9234_v23 = vmul.f32 %v11284_v37, %v16725_v34  ;;  %v9235_v41 = vmul.f32 %v11284_v37, %v16732_v59 }
 0x985   : > { %v9236_v49 = vmul.f32 %v11284_v37, %v16739_v22  ;;  %v9237_v31 = vmul.f32 %v11284_v37, %v16743_v57  ;;  %v9238_v45 = vmul.f32 %v11284_v37, %v16747_v44  ;;  %v9239_v46 = vmul.f32 %v11284_v37, %v16751_v2  ;;  %v17315_v2 = vld [vmem:[#allocation7_spill] sm:$0xff] }
 0x986   : > { %v9240_v5 = vmul.f32 %v11284_v37, %v16755_v7  ;;  %v9241_v34 = vmul.f32 %v11284_v37, %v16759_v47 }
 0x988   : > { %9265 = vperm.xlu1 %11047, %v9215_v29   ;;  %9270 = vperm.xlu0 %11046, %v9216_v21  }
 0x98c   : > { %9275 = vperm.xlu1 %11047, %v9217_v19   ;;  %9280 = vperm.xlu0 %11046, %v9218_v1   ;;  %v17321_v1 = vld [vmem:[#allocation13_spill] sm:$0xff] }
 0x990   : > { %9285 = vperm.xlu1 %11047, %v9219_v25   ;;  %9290 = vperm.xlu0 %11046, %v9220_v38   ;;  %v17322_v38 = vld [vmem:[#allocation14_spill] sm:$0xff] }
 0x994   : > { %9295 = vperm.xlu1 %11047, %v9221_v54   ;;  %9300 = vperm.xlu0 %11046, %v9222_v36  }
 0x998   : > { %9305 = vperm.xlu1 %11047, %v9223_v13   ;;  %9310 = vperm.xlu0 %11046, %v9224_v14  }
 0x99c   : > { %9315 = vperm.xlu1 %11047, %v9225_v51   ;;  %9320 = vperm.xlu0 %11046, %v9226_v30  }
 0x9a0   : > { %9325 = vperm.xlu1 %11047, %v9227_v33   ;;  %9330 = vperm.xlu0 %11046, %v9228_v40   ;;  %v17323_v40 = vld [vmem:[#allocation15_spill] sm:$0xff] }
 0x9a4   : > { %9335 = vperm.xlu1 %11047, %v9229_v12   ;;  %9340 = vperm.xlu0 %11046, %v9230_v50   ;;  %v17324_v50 = vld [vmem:[#allocation16_spill] sm:$0xff] }
 0x9a8   : > { %9345 = vperm.xlu1 %11047, %v9231_v9   ;;  %9350 = vperm.xlu0 %11046, %v9232_v26  }
 0x9ac   : > { %9355 = vperm.xlu1 %11047, %v9233_v24   ;;  %9360 = vperm.xlu0 %11046, %v9234_v23  }
 0x9b0   : > { %9365 = vperm.xlu1 %11047, %v9235_v41   ;;  %9370 = vperm.xlu0 %11046, %v9236_v49  }
 0x9b4   : > { %9375 = vperm.xlu1 %11047, %v9237_v31   ;;  %9380 = vperm.xlu0 %11046, %v9238_v45   ;;  %v17325_v45 = vld [vmem:[#allocation17_spill] sm:$0xff] }
 0x9b8   : > { %9385 = vperm.xlu1 %11047, %v9239_v46   ;;  %9390 = vperm.xlu0 %11046, %v9240_v5   ;;  %v17326_v5 = vld [vmem:[#allocation18_spill] sm:$0xff] }
 0x9bc   : > { %9395 = vperm.xlu1 %11047, %v9241_v34   ;;  %9400 = vperm.xlu0 %11046, %v9242_v56  }
 0x9ff   : > { %v9251_v59 = vpop.permute.xlu1 %9250  ;;  %v9246_v22 = vpop.permute.xlu0 %9245 }
 0xa00   : > { %v9404_v62 = vmul.f32 %v9251_v59, %v17313_v0  ;;  %v9403_v57 = vmul.f32 %v9246_v22, %v17314_v18 }
 0xa02   : > { %v9436_v8 = vsel %vm3359_vm14, %v9404_v62, 0.0  ;;  %v9435_v44 = vsel %vm3359_vm14, %v9403_v57, 0.0 }
 0xa03   : > { %v9256_v58 = vpop.permute.xlu1 %9255  ;;  %v9261_v20 = vpop.permute.xlu0 %9260  ;;  %v9437_v4 = vadd.f32 %v9436_v8, %v9435_v44  ;;  %v17327_v8 = vld [vmem:[#allocation19_spill] sm:$0xff] }
 0xa04   : > { %v9405_v53 = vmul.f32 %v9256_v58, %v17315_v2  ;;  %v9406_v7 = vmul.f32 %v9261_v20, %v17316_v3  ;;  %v17328_v58 = vld [vmem:[#allocation20_spill] sm:$0xff] }
 0xa06   : > { %v9438_v15 = vsel %vm3359_vm14, %v9405_v53, 0.0  ;;  %v9440_v61 = vsel %vm3359_vm14, %v9406_v7, 0.0 }
 0xa07   : > { %v9439_v47 = vadd.f32 %v9438_v15, %v9437_v4  ;;  %v9266_v16 = vpop.permute.xlu1 %9265  ;;  %v9271_v48 = vpop.permute.xlu0 %9270 }
 0xa08   : > { %v9407_v39 = vmul.f32 %v9266_v16, %v17317_v63  ;;  %v9408_v42 = vmul.f32 %v9271_v48, %v17318_v11  ;;  %v17330_v48 = vld [vmem:[#allocation22_spill] sm:$0xff] }
 0xa09   : > { %v9441_v60 = vadd.f32 %v9440_v61, %v9439_v47  ;;  %v17329_v47 = vld [vmem:[#allocation21_spill] sm:$0xff] }
 0xa0a   : > { %v9442_v27 = vsel %vm3359_vm14, %v9407_v39, 0.0  ;;  %v9444_v52 = vsel %vm3359_vm14, %v9408_v42, 0.0 }
 0xa0b   : > { %v9443_v32 = vadd.f32 %v9442_v27, %v9441_v60  ;;  %v9276_v35 = vpop.permute.xlu1 %9275  ;;  %v9281_v55 = vpop.permute.xlu0 %9280 }
 0xa0c   : > { %v9409_v37 = vmul.f32 %v9276_v35, %v17319_v17  ;;  %v9410_v10 = vmul.f32 %v9281_v55, %v17320_v43  ;;  %v17332_v55 = vld [vmem:[#allocation24_spill] sm:$0xff] }
 0xa0d   : > { %v9445_v6 = vadd.f32 %v9444_v52, %v9443_v32  ;;  %v17331_v32 = vld [vmem:[#allocation23_spill] sm:$0xff] }
 0xa0e   : > { %v9446_v28 = vsel %vm3359_vm14, %v9409_v37, 0.0  ;;  %v9448_v19 = vsel %vm3359_vm14, %v9410_v10, 0.0 }
 0xa0f   : > { %v9447_v29 = vadd.f32 %v9446_v28, %v9445_v6  ;;  %v9286_v21 = vpop.permute.xlu1 %9285  ;;  %v9291_v56 = vpop.permute.xlu0 %9290 }
 0xa10   : > { %v9411_v25 = vmul.f32 %v9286_v21, %v17321_v1  ;;  %v9412_v54 = vmul.f32 %v9291_v56, %v17322_v38  ;;  %v17334_v56 = vld [vmem:[#allocation26_spill] sm:$0xff] }
 0xa11   : > { %v9449_v36 = vadd.f32 %v9448_v19, %v9447_v29  ;;  %v17333_v29 = vld [vmem:[#allocation25_spill] sm:$0xff] }
 0xa12   : > { %v9450_v13 = vsel %vm3359_vm14, %v9411_v25, 0.0  ;;  %v9452_v33 = vsel %vm3359_vm14, %v9412_v54, 0.0 }
 0xa13   : > { %v9451_v14 = vadd.f32 %v9450_v13, %v9449_v36  ;;  %v9296_v51 = vpop.permute.xlu1 %9295  ;;  %v9301_v30 = vpop.permute.xlu0 %9300 }
 0xa14   : > { %v9413_v12 = vmul.f32 %v9296_v51, %v17323_v40  ;;  %v9414_v9 = vmul.f32 %v9301_v30, %v17324_v50  ;;  %v17336_v30 = vld [vmem:[#allocation28_spill] sm:$0xff] }
 0xa15   : > { %v9453_v26 = vadd.f32 %v9452_v33, %v9451_v14  ;;  %v17335_v14 = vld [vmem:[#allocation27_spill] sm:$0xff] }
 0xa16   : > { %v9454_v24 = vsel %vm3359_vm14, %v9413_v12, 0.0  ;;  %v9456_v31 = vsel %vm3359_vm14, %v9414_v9, 0.0 }
 0xa17   : > { %v9455_v23 = vadd.f32 %v9454_v24, %v9453_v26  ;;  %v9306_v41 = vpop.permute.xlu1 %9305  ;;  %v9311_v49 = vpop.permute.xlu0 %9310 }
 0xa18   : > { %v9415_v46 = vmul.f32 %v9306_v41, %v17325_v45  ;;  %v9416_v34 = vmul.f32 %v9311_v49, %v17326_v5  ;;  %v17338_v49 = vld [vmem:[#allocation30_spill] sm:$0xff] }
 0xa19   : > { %v9457_v59 = vadd.f32 %v9456_v31, %v9455_v23  ;;  %v17337_v23 = vld [vmem:[#allocation29_spill] sm:$0xff] }
 0xa1a   : > { %v9458_v22 = vsel %vm3359_vm14, %v9415_v46, 0.0  ;;  %v9460_v57 = vsel %vm3359_vm14, %v9416_v34, 0.0 }
 0xa1b   : > { %v9459_v0 = vadd.f32 %v9458_v22, %v9457_v59  ;;  %v9316_v62 = vpop.permute.xlu1 %9315  ;;  %v9321_v18 = vpop.permute.xlu0 %9320 }
 0xa1c   : > { %v9417_v44 = vmul.f32 %v9316_v62, %v17327_v8  ;;  %v9418_v20 = vmul.f32 %v9321_v18, %v17328_v58  ;;  %v17340_v18 = vld [vmem:[#allocation32_spill] sm:$0xff] }
 0xa1d   : > { %v9461_v2 = vadd.f32 %v9460_v57, %v9459_v0  ;;  %v17339_v0 = vld [vmem:[#allocation31_spill] sm:$0xff] }
 0xa1e   : > { %v9462_v53 = vsel %vm3359_vm14, %v9417_v44, 0.0  ;;  %v9464_v15 = vsel %vm3359_vm14, %v9418_v20, 0.0 }
 0xa1f   : > { %v9463_v3 = vadd.f32 %v9462_v53, %v9461_v2  ;;  %v9326_v7 = vpop.permute.xlu1 %9325  ;;  %v9331_v4 = vpop.permute.xlu0 %9330 }
 0xa20   : > { %v9419_v16 = vmul.f32 %v9326_v7, %v17329_v47  ;;  %v9420_v61 = vmul.f32 %v9331_v4, %v17330_v48  ;;  %v17342_v4 = vld [vmem:[#allocation34_spill] sm:$0xff] }
 0xa21   : > { %v9465_v63 = vadd.f32 %v9464_v15, %v9463_v3  ;;  %v17341_v3 = vld [vmem:[#allocation33_spill] sm:$0xff] }
 0xa22   : > { %v9466_v39 = vsel %vm3359_vm14, %v9419_v16, 0.0  ;;  %v9468_v27 = vsel %vm3359_vm14, %v9420_v61, 0.0 }
 0xa23   : > { %v9467_v11 = vadd.f32 %v9466_v39, %v9465_v63  ;;  %v9336_v42 = vpop.permute.xlu1 %9335  ;;  %v9341_v60 = vpop.permute.xlu0 %9340 }
 0xa24   : > { %v9421_v35 = vmul.f32 %v9336_v42, %v17331_v32  ;;  %v9422_v52 = vmul.f32 %v9341_v60, %v17332_v55  ;;  %v17344_v60 = vld [vmem:[#allocation36_spill] sm:$0xff] }
 0xa25   : > { %v9469_v17 = vadd.f32 %v9468_v27, %v9467_v11  ;;  %v17343_v11 = vld [vmem:[#allocation35_spill] sm:$0xff] }
 0xa26   : > { %v9470_v37 = vsel %vm3359_vm14, %v9421_v35, 0.0  ;;  %v9472_v28 = vsel %vm3359_vm14, %v9422_v52, 0.0 }
 0xa27   : > { %v9471_v43 = vadd.f32 %v9470_v37, %v9469_v17  ;;  %v9346_v10 = vpop.permute.xlu1 %9345  ;;  %v9351_v6 = vpop.permute.xlu0 %9350 }
 0xa28   : > { %v9423_v21 = vmul.f32 %v9346_v10, %v17333_v29  ;;  %v9424_v19 = vmul.f32 %v9351_v6, %v17334_v56 }
 0xa29   : > { %v9473_v1 = vadd.f32 %v9472_v28, %v9471_v43 }
 0xa2a   : > { %v9474_v25 = vsel %vm3359_vm14, %v9423_v21, 0.0  ;;  %v9476_v13 = vsel %vm3359_vm14, %v9424_v19, 0.0 }
 0xa2b   : > { %v9475_v38 = vadd.f32 %v9474_v25, %v9473_v1  ;;  %v9356_v54 = vpop.permute.xlu1 %9355  ;;  %v9361_v36 = vpop.permute.xlu0 %9360 }
 0xa2c   : > { %v9425_v51 = vmul.f32 %v9356_v54, %v17335_v14  ;;  %v9426_v33 = vmul.f32 %v9361_v36, %v17336_v30 }
 0xa2d   : > { %v9477_v40 = vadd.f32 %v9476_v13, %v9475_v38 }
 0xa2e   : > { %v9478_v12 = vsel %vm3359_vm14, %v9425_v51, 0.0  ;;  %v9480_v24 = vsel %vm3359_vm14, %v9426_v33, 0.0 }
 0xa2f   : > { %v9479_v50 = vadd.f32 %v9478_v12, %v9477_v40  ;;  %v9366_v9 = vpop.permute.xlu1 %9365  ;;  %v9371_v26 = vpop.permute.xlu0 %9370 }
 0xa30   : > { %v9427_v41 = vmul.f32 %v9366_v9, %v17337_v23  ;;  %v9428_v31 = vmul.f32 %v9371_v26, %v17338_v49 }
 0xa31   : > { %v9481_v45 = vadd.f32 %v9480_v24, %v9479_v50 }
 0xa32   : > { %v9482_v46 = vsel %vm3359_vm14, %v9427_v41, 0.0  ;;  %v9484_v22 = vsel %vm3359_vm14, %v9428_v31, 0.0 }
 0xa33   : > { %v9483_v5 = vadd.f32 %v9482_v46, %v9481_v45  ;;  %v9376_v34 = vpop.permute.xlu1 %9375  ;;  %v9381_v59 = vpop.permute.xlu0 %9380 }
 0xa34   : > { %v9429_v62 = vmul.f32 %v9376_v34, %v17339_v0  ;;  %v9430_v57 = vmul.f32 %v9381_v59, %v17340_v18 }
 0xa35   : > { %v9485_v8 = vadd.f32 %v9484_v22, %v9483_v5 }
 0xa36   : > { %v9486_v44 = vsel %vm3359_vm14, %v9429_v62, 0.0  ;;  %v9488_v53 = vsel %vm3359_vm14, %v9430_v57, 0.0 }
 0xa37   : > { %v9487_v58 = vadd.f32 %v9486_v44, %v9485_v8  ;;  %v9386_v20 = vpop.permute.xlu1 %9385  ;;  %v9391_v2 = vpop.permute.xlu0 %9390 }
 0xa38   : > { %v9431_v7 = vmul.f32 %v9386_v20, %v17341_v3  ;;  %v9432_v15 = vmul.f32 %v9391_v2, %v17342_v4 }
 0xa39   : > { %v9489_v47 = vadd.f32 %v9488_v53, %v9487_v58 }
 0xa3a   : > { %v9490_v16 = vsel %vm3359_vm14, %v9431_v7, 0.0  ;;  %v9492_v39 = vsel %vm3359_vm14, %v9432_v15, 0.0 }
 0xa3b   : > { %v9491_v48 = vadd.f32 %v9490_v16, %v9489_v47  ;;  %v9396_v61 = vpop.permute.xlu1 %9395  ;;  %v9401_v63 = vpop.permute.xlu0 %9400 }
 0xa3c   : > { %v9433_v42 = vmul.f32 %v9396_v61, %v17343_v11  ;;  %v9434_v27 = vmul.f32 %v9401_v63, %v17344_v60 }
 0xa3d   : > { %v9493_v32 = vadd.f32 %v9492_v39, %v9491_v48 }
 0xa3e   : > { %v9494_v35 = vsel %vm3359_vm14, %v9433_v42, 0.0  ;;  %v9496_v52 = vsel %vm3359_vm14, %v9434_v27, 0.0 }
 0xa3f   : > { %v9495_v55 = vadd.f32 %v9494_v35, %v9493_v32 }
 0xa41   : > { %v9497_v17 = vadd.f32 %v9496_v52, %v9495_v55 }
 0xa43   : > { %v9498_v37 = vrot.slane %v9497_v17, 4 }
 0xa45   : > { %v9499_v43 = vadd.f32 %v9498_v37, %v9497_v17 }
 0xa47   : > { %v9500_v10 = vrot.slane %v9499_v43, 2 }
 0xa49   : > { %v9501_v6 = vadd.f32 %v9500_v10, %v9499_v43 }
 0xa4b   : > { %v9502_v28 = vrot.slane %v9501_v6, 1 }
 0xa4d   : > { %v9503_v29 = vadd.f32 %v9502_v28, %v9501_v6 }
 0xa4f   : > { %9504 = vst.msk [vmem:[%s542_s18] sm:$0x1] %vm4685_vm1, %v9503_v29 }
 0xa50 PF: > { %s27_s21 = sadd.s32 1, %s11425_s21  }
 0xa51   : > { %p24_p4 = scmp.ge.s32.totalorder %s27_s21, 4  }
 0xa53   :  { %26 = sbr.rel (!%p24_p4) target bundleno = 2 (0x2), region = 134 }

</bundles_post_ra>
